<compile_context>
chip_gen: v7x
topology: tpu7x:2x2x1
jax: 0.10.0
libtpu: 0.0.40
codegen_flags: <defaults>
</compile_context>

<pallas_src>
import functools

import jax
import jax.numpy as jnp
from jax import lax
from jax.experimental import pallas as pl
from jax.experimental.pallas import tpu as pltpu

BN_EPS = 1e-5
LEAKY_SLOPE = 0.2


# ----------------------------------------------------------------------------
# Pallas kernel: conv1(s2) + BN1 + LReLU + conv2(s1) + BN2 + LReLU, fused.
# One grid step = one (batch, row-tile) pair.
# ----------------------------------------------------------------------------
def conv_block_ds_kernel(sd_ref, w1_ref, s1_ref, b1_ref, w2_ref, s2_ref, b2_ref,
                         o_ref, y1p_ref):
    # sd_ref : (Th+3, Ws, 4*Cin)  space-to-depth input window (1-row halo each
    #                             side already included), Ws = Wo + 1.
    # w1_ref : (4, 4*Cin, Cp)     conv1 slab weights, slab s = dy*2 + dx.
    # w2_ref : (3, 3*Cp, Cp)      conv2 weights, row ky, K ordered (kx, cin).
    # s*/b*  : (1, Cp) f32        BN scale / bias (inference affine).
    # o_ref  : (Th, Wo, Cp)       NHWC output tile (lane-dense Cp).
    # y1p_ref: (Th+2, Wo+2, Cp)   VMEM scratch: conv1 output + conv2 halo.
    C4 = sd_ref.shape[-1]
    Th, Wo, Cp = o_ref.shape
    Hy = Th + 2                                   # y1 rows incl. 1-row halo
    f32 = jnp.float32
    prec = lax.Precision.HIGHEST if sd_ref.dtype == f32 else None

    r = pl.program_id(1)
    last_r = pl.num_programs(1) - 1

    # ---- conv1 (3x3, stride 2, pad 1): 4 space-to-depth slab matmuls --------
    # sd channels are ordered (py, px, cin); slab s = dy*2 + dx multiplies the
    # block at spatial offset (dy, dx).  The dx (sublane) shift is hoisted and
    # reused for both dy offsets (leading-dim slices are address-only).
    sd = sd_ref[...]                              # compute dtype (bf16 or f32)
    sd_l = sd[:, 0:Wo, :]                         # dx = 0
    sd_r = sd[:, 1:Wo + 1, :]                     # dx = 1 (single sublane shift)
    taps1 = (sd_l[0:Hy], sd_r[0:Hy], sd_l[1:Hy + 1], sd_r[1:Hy + 1])
    acc1 = jnp.zeros((Hy * Wo, Cp), f32)
    for s in range(4):
        acc1 = acc1 + jnp.dot(taps1[s].reshape(Hy * Wo, C4), w1_ref[s],
                              preferred_element_type=f32, precision=prec)
    y1 = acc1 * s1_ref[...] + b1_ref[...]         # BN1 (inference affine, f32)
    y1 = jnp.where(y1 >= 0, y1, LEAKY_SLOPE * y1)  # LeakyReLU(0.2)
    # Dropout2d: identity in inference mode.

    # ---- conv2 halo scratch ---------------------------------------------------
    # Interior <- y1 (all Hy rows, cols 1..Wo); left/right border columns are
    # zeroed every step; the top/bottom halo rows are zeroed only at the image
    # boundary (elsewhere they hold the recomputed neighbor y1 row).
    zcol = jnp.zeros((Hy, 1, Cp), y1p_ref.dtype)
    y1p_ref[:, 0:1, :] = zcol
    y1p_ref[:, Wo + 1:Wo + 2, :] = zcol
    y1p_ref[:, 1:Wo + 1, :] = y1.reshape(Hy, Wo, Cp).astype(y1p_ref.dtype)

    zrow = jnp.zeros((1, Wo + 2, Cp), y1p_ref.dtype)

    @pl.when(r == 0)
    def _():
        y1p_ref[0:1, :, :] = zrow                 # top image boundary

    @pl.when(r == last_r)
    def _():
        y1p_ref[Hy - 1:Hy, :, :] = zrow           # bottom image boundary

    # ---- conv2 (3x3, stride 1, pad 1): 3 matmuls, K fused over kx ------------
    # 3 hoisted column (sublane) views, lane-aligned channel concat (Cp is a
    # multiple of 128), then one matmul per ky with a leading-dim row slice.
    cat = jnp.concatenate(
        [y1p_ref[:, 0:Wo, :], y1p_ref[:, 1:Wo + 1, :], y1p_ref[:, 2:Wo + 2, :]],
        axis=-1)                                  # (Hy, Wo, 3*Cp)
    acc2 = jnp.zeros((Th * Wo, Cp), f32)
    for ky in range(3):
        acc2 = acc2 + jnp.dot(cat[ky:ky + Th].reshape(Th * Wo, 3 * Cp),
                              w2_ref[ky], preferred_element_type=f32,
                              precision=prec)
    y2 = acc2 * s2_ref[...] + b2_ref[...]         # BN2 (inference affine, f32)
    y2 = jnp.where(y2 >= 0, y2, LEAKY_SLOPE * y2)  # LeakyReLU(0.2)
    # Dropout2d: identity in inference mode.

    o_ref[...] = y2.reshape(Th, Wo, Cp).astype(o_ref.dtype)


# ----------------------------------------------------------------------------
# Host-side parameter packing
# ----------------------------------------------------------------------------
def bn_affine(bn, cout_p):
    """(gamma, beta, mean, var) -> (1, Cp) scale and bias, zero-padded."""
    gamma, beta, mean, var = bn
    scale = gamma / jnp.sqrt(var + BN_EPS)
    bias = beta - mean * scale
    c = gamma.shape[0]
    s = jnp.zeros((1, cout_p), jnp.float32).at[0, :c].set(scale)
    b = jnp.zeros((1, cout_p), jnp.float32).at[0, :c].set(bias)
    return s, b


def pack_conv1_weights(w_oihw, cout_p, dtype):
    """PyTorch (Cout, Cin, 3, 3) -> (4, 4*Cin, Cp) slab matrices.

    Slab s = dy*2 + dx multiplies the space-to-depth block at offset (dy, dx);
    K is ordered (py, px, cin).  3x3 taps with 2*dy+py > 2 or 2*dx+px > 2 do
    not exist and keep zero weight (this also neutralizes the dummy even-ing
    pad row/col for odd H/W); output channels >= Cout stay zero (lane pad).
    """
    cout, cin = w_oihw.shape[0], w_oihw.shape[1]
    w = jnp.zeros((2, 2, 2, 2, cin, cout_p), jnp.float32)
    for ky in range(3):
        dy, py = divmod(ky, 2)
        for kx in range(3):
            dx, px = divmod(kx, 2)
            w = w.at[dy, dx, py, px, :, :cout].set(w_oihw[:, :, ky, kx].T)
    return w.reshape(4, 4 * cin, cout_p).astype(dtype)


def pack_conv2_weights(w_oihw, cout_p, dtype):
    """PyTorch (Cout, Cin, 3, 3) -> (3, 3*Cp, Cp); row ky, K ordered (kx, cin)."""
    cout, cin = w_oihw.shape[0], w_oihw.shape[1]
    w = jnp.zeros((3, 3, cout_p, cout_p), jnp.float32)
    for ky in range(3):
        for kx in range(3):
            w = w.at[ky, kx, :cin, :cout].set(w_oihw[:, :, ky, kx].T)
    return w.reshape(3, 3 * cout_p, cout_p).astype(dtype)


# ----------------------------------------------------------------------------
# ConvBlock_DS forward (NCHW in, NCHW out), single fused pallas_call
# ----------------------------------------------------------------------------
def conv_block_ds_forward(x_nchw, params, *, compute_dtype=jnp.bfloat16,
                          row_tile=None):
    w1, w2 = params["w1"], params["w2"]
    Cout = w1.shape[0]
    N, Cin, H, W = x_nchw.shape
    Ho, Wo = (H + 1) // 2, (W + 1) // 2            # stride-2 conv output size
    Cp = -(-Cout // 128) * 128                     # lane-dense output channels

    # Row tiling: keeps the per-step working set inside v7x's 64 MiB VMEM and
    # provides enough parallel grid steps for both TensorCores at small batch.
    if row_tile is None:
        row_tile = Ho
        if Ho > 64:
            for t in range(64, 7, -1):
                if Ho % t == 0:
                    row_tile = t
                    break
    if Ho % row_tile != 0:
        row_tile = Ho                              # fallback: whole image/step
    Th = row_tile
    R = Ho // Th

    s1, b1 = bn_affine(params["bn1"], Cp)
    s2, b2 = bn_affine(params["bn2"], Cp)
    w1p = pack_conv1_weights(w1, Cp, compute_dtype)    # (4, 4*Cin, Cp)
    w2p = pack_conv2_weights(w2, Cp, compute_dtype)    # (3, 3*Cp, Cp)

    # NHWC, conv pad=1 (+ optional even-ing pad), then space-to-depth so every
    # stride-2 tap is a contiguous slice inside the kernel.
    x = jnp.transpose(x_nchw, (0, 2, 3, 1)).astype(compute_dtype)
    Hp, Wp = H + 2, W + 2
    Hp_e, Wp_e = Hp + (Hp % 2), Wp + (Wp % 2)
    xp = jnp.pad(x, ((0, 0), (1, Hp_e - H - 1), (1, Wp_e - W - 1), (0, 0)))
    Hs, Ws = Hp_e // 2, Wp_e // 2
    assert Hs == Ho + 1 and Ws == Wo + 1
    C4 = 4 * Cin
    sd = (xp.reshape(N, Hs, 2, Ws, 2, Cin)
            .transpose(0, 1, 3, 2, 4, 5)
            .reshape(N, Hs, Ws, C4))               # channels = (py, px, cin)

    # Overlapping row windows: Th+3 sd rows per tile (Th body rows + 1-row y1
    # halo each side + the dy=1 slab row).  Duplication factor (Th+3)/Th.
    sd = jnp.pad(sd, ((0, 0), (1, 1), (0, 0), (0, 0)))       # (N, Ho+3, Ws, C4)
    rows = jnp.arange(R)[:, None] * Th + jnp.arange(Th + 3)[None, :]
    sd_tiles = sd[:, rows]                                   # (N, R, Th+3, Ws, C4)

    # VMEM budget from the actual tile sizes (covers the 16 MiB v5e default).
    def tile_bytes(shape, dtype):
        s = list(shape)
        s[-1] = -(-s[-1] // 128) * 128
        sub = 8 if jnp.dtype(dtype).itemsize == 4 else 16
        s[-2] = -(-s[-2] // sub) * sub
        n = 1
        for d in s:
            n *= d
        return n * jnp.dtype(dtype).itemsize

    est = (2 * tile_bytes((Th + 3, Ws, C4), compute_dtype)        # sd (dbl buf)
           + 2 * tile_bytes((4, 4 * Cin, Cp), compute_dtype)
           + 2 * tile_bytes((3, 3 * Cp, Cp), compute_dtype)
           + 8 * tile_bytes((1, Cp), jnp.float32)
           + tile_bytes((Th + 2, Wo + 2, Cp), compute_dtype)      # y1 scratch
           + 2 * tile_bytes((Th, Wo, Cp), jnp.float32)            # out (dbl buf)
           + 8 * tile_bytes((Th + 2, Wo, Cp), jnp.float32))       # in-kernel temps
    vmem_limit = int(min(96 * 2 ** 20, max(32 * 2 ** 20, 2 * est)))

    out_nhwc = pl.pallas_call(
        conv_block_ds_kernel,
        out_shape=jax.ShapeDtypeStruct((N, Ho, Wo, Cp), jnp.float32),
        grid_spec=pltpu.PrefetchScalarGridSpec(
            num_scalar_prefetch=0,
            grid=(N, R),
            in_specs=[
                pl.BlockSpec((None, None, Th + 3, Ws, C4),
                             lambda n, r: (n, r, 0, 0, 0)),
                pl.BlockSpec((4, 4 * Cin, Cp), lambda n, r: (0, 0, 0)),
                pl.BlockSpec((1, Cp), lambda n, r: (0, 0)),
                pl.BlockSpec((1, Cp), lambda n, r: (0, 0)),
                pl.BlockSpec((3, 3 * Cp, Cp), lambda n, r: (0, 0, 0)),
                pl.BlockSpec((1, Cp), lambda n, r: (0, 0)),
                pl.BlockSpec((1, Cp), lambda n, r: (0, 0)),
            ],
            out_specs=pl.BlockSpec((None, Th, Wo, Cp),
                                   lambda n, r: (n, r, 0, 0)),
            scratch_shapes=[pltpu.VMEM((Th + 2, Wo + 2, Cp), compute_dtype)],
        ),
        compiler_params=pltpu.CompilerParams(
            dimension_semantics=("parallel", "parallel"),
            vmem_limit_bytes=vmem_limit),
    )(sd_tiles, w1p, s1, b1, w2p, s2, b2)

    return jnp.transpose(out_nhwc[..., :Cout], (0, 3, 1, 2))   # back to NCHW


# ----------------------------------------------------------------------------
# Pure-JAX reference (lax.conv at HIGHEST precision) for correctness checking
# ----------------------------------------------------------------------------
def reference_forward(x_nchw, params):
    def conv(x, w, stride):
        return lax.conv_general_dilated(
            x, w, (stride, stride), ((1, 1), (1, 1)),
            dimension_numbers=("NCHW", "OIHW", "NCHW"),
            precision=lax.Precision.HIGHEST)

    def bn(x, p):
        g, b, m, v = p
        inv = g / jnp.sqrt(v + BN_EPS)
        return (x - m[None, :, None, None]) * inv[None, :, None, None] \
            + b[None, :, None, None]

    def lrelu(x):
        return jnp.where(x >= 0, x, LEAKY_SLOPE * x)

    y = lrelu(bn(conv(x_nchw, params["w1"], 2), params["bn1"]))
    y = lrelu(bn(conv(y, params["w2"], 1), params["bn2"]))
    return y


def make_params(key, in_chans, out_chans):
    ks = jax.random.split(key, 10)
    w1 = jax.random.normal(ks[0], (out_chans, in_chans, 3, 3), jnp.float32) * 0.2
    w2 = jax.random.normal(ks[1], (out_chans, out_chans, 3, 3), jnp.float32) * 0.2
    bn1 = (jax.random.uniform(ks[2], (out_chans,), jnp.float32, 0.5, 1.5),   # gamma
           jax.random.normal(ks[3], (out_chans,), jnp.float32) * 0.1,        # beta
           jax.random.normal(ks[4], (out_chans,), jnp.float32) * 0.1,        # running_mean
           jax.random.uniform(ks[5], (out_chans,), jnp.float32, 0.5, 1.5))   # running_var
    bn2 = (jax.random.uniform(ks[6], (out_chans,), jnp.float32, 0.5, 1.5),
           jax.random.normal(ks[7], (out_chans,), jnp.float32) * 0.1,
           jax.random.normal(ks[8], (out_chans,), jnp.float32) * 0.1,
           jax.random.uniform(ks[9], (out_chans,), jnp.float32, 0.5, 1.5))
    return {"w1": w1, "w2": w2, "bn1": bn1, "bn2": bn2}


if __name__ == "__main__":
    N, in_chans, out_chans, H, W = 2, 4, 8, 16, 16
    drop_prob = 0.1  # inference mode -> Dropout2d is identity

    key = jax.random.PRNGKey(0)
    k_x, k_p = jax.random.split(key)
    x = jax.random.normal(k_x, (N, in_chans, H, W), jnp.float32)
    params = make_params(k_p, in_chans, out_chans)

    ref = jax.block_until_ready(reference_forward(x, params))
    Ho, Wo = (H + 1) // 2, (W + 1) // 2

    # 1) f32 operands, whole image per grid step (v5e-safe baseline).
    fwd_f32 = jax.jit(functools.partial(
        conv_block_ds_forward, params=params, compute_dtype=jnp.float32))
    out_f32 = jax.block_until_ready(fwd_f32(x))
    assert out_f32.shape == (N, out_chans, Ho, Wo), out_f32.shape
    assert jnp.allclose(out_f32, ref, rtol=1e-5, atol=2e-5), \
        float(jnp.max(jnp.abs(out_f32 - ref)))

    # 2) f32 operands, 2 row tiles (exercises the halo path / feeds 2 TCs).
    fwd_f32_rt = jax.jit(functools.partial(
        conv_block_ds_forward, params=params, compute_dtype=jnp.float32,
        row_tile=4))
    out_rt = jax.block_until_ready(fwd_f32_rt(x))
    assert jnp.allclose(out_rt, ref, rtol=1e-5, atol=2e-5), \
        float(jnp.max(jnp.abs(out_rt - ref)))

    # 3) bf16 operands straight into the MXU, f32 accumulation / BN / LReLU.
    fwd_bf16 = jax.jit(functools.partial(
        conv_block_ds_forward, params=params, compute_dtype=jnp.bfloat16,
        row_tile=4))
    out_bf16 = jax.block_until_ready(fwd_bf16(x))
    assert jnp.allclose(out_bf16, ref, rtol=5e-2, atol=8e-2), \
        float(jnp.max(jnp.abs(out_bf16 - ref)))

    print("KERNEL_OK")
</pallas_src>

<mosaic_0001>
module attributes {stable_mosaic.version = 11 : i64} {
  func.func @conv_block_ds_kernel(%arg0: i32, %arg1: i32, %arg2: memref<1x1x11x9x16xf32, #tpu.memory_space<vmem>>, %arg3: memref<4x16x128xf32, #tpu.memory_space<vmem>>, %arg4: memref<1x128xf32, #tpu.memory_space<vmem>>, %arg5: memref<1x128xf32, #tpu.memory_space<vmem>>, %arg6: memref<3x384x128xf32, #tpu.memory_space<vmem>>, %arg7: memref<1x128xf32, #tpu.memory_space<vmem>>, %arg8: memref<1x128xf32, #tpu.memory_space<vmem>>, %arg9: memref<1x8x8x128xf32, #tpu.memory_space<vmem>>, %arg10: memref<10x10x128xf32, #tpu.memory_space<vmem>>) attributes {dimension_semantics = [#tpu.dimension_semantics<parallel>, #tpu.dimension_semantics<parallel>], iteration_bounds = array<i64: 2, 1>, scalar_prefetch = 0 : i64, scratch_operands = 1 : i64, tpu.core_type = #tpu.core_type<tc>, window_params = [{transform_indices = @transform_0, window_bounds = array<i64: 1, 1, 11, 9, 16>}, {pipeline_mode = #tpu.pipeline_mode<synchronous>, transform_indices = @transform_1, window_bounds = array<i64: 4, 16, 128>}, {pipeline_mode = #tpu.pipeline_mode<synchronous>, transform_indices = @transform_2, window_bounds = array<i64: 1, 128>}, {pipeline_mode = #tpu.pipeline_mode<synchronous>, transform_indices = @transform_3, window_bounds = array<i64: 1, 128>}, {pipeline_mode = #tpu.pipeline_mode<synchronous>, transform_indices = @transform_4, window_bounds = array<i64: 3, 384, 128>}, {pipeline_mode = #tpu.pipeline_mode<synchronous>, transform_indices = @transform_5, window_bounds = array<i64: 1, 128>}, {pipeline_mode = #tpu.pipeline_mode<synchronous>, transform_indices = @transform_6, window_bounds = array<i64: 1, 128>}, {transform_indices = @transform_7, window_bounds = array<i64: 1, 8, 8, 128>}]} {
    %c0 = arith.constant 0 : index
    %c0_0 = arith.constant 0 : index
    %c0_1 = arith.constant 0 : index
    %c0_2 = arith.constant 0 : index
    %c0_3 = arith.constant 0 : index
    %0 = vector.load %arg2[%c0, %c0_0, %c0_1, %c0_2, %c0_3] : memref<1x1x11x9x16xf32, #tpu.memory_space<vmem>>, vector<1x1x11x9x16xf32>
    %1 = vector.shape_cast %0 : vector<1x1x11x9x16xf32> to vector<11x9x16xf32>
    %2 = vector.extract_strided_slice %1 {offsets = [0, 0, 0], sizes = [11, 8, 16], strides = [1, 1, 1]} : vector<11x9x16xf32> to vector<11x8x16xf32>
    %3 = vector.extract_strided_slice %1 {offsets = [0, 1, 0], sizes = [11, 8, 16], strides = [1, 1, 1]} : vector<11x9x16xf32> to vector<11x8x16xf32>
    %4 = vector.extract_strided_slice %2 {offsets = [0, 0, 0], sizes = [10, 8, 16], strides = [1, 1, 1]} : vector<11x8x16xf32> to vector<10x8x16xf32>
    %5 = vector.extract_strided_slice %3 {offsets = [0, 0, 0], sizes = [10, 8, 16], strides = [1, 1, 1]} : vector<11x8x16xf32> to vector<10x8x16xf32>
    %6 = vector.extract_strided_slice %2 {offsets = [1, 0, 0], sizes = [10, 8, 16], strides = [1, 1, 1]} : vector<11x8x16xf32> to vector<10x8x16xf32>
    %7 = vector.extract_strided_slice %3 {offsets = [1, 0, 0], sizes = [10, 8, 16], strides = [1, 1, 1]} : vector<11x8x16xf32> to vector<10x8x16xf32>
    %cst = arith.constant 0.000000e+00 : f32
    %8 = vector.broadcast %cst : f32 to vector<80x128xf32>
    %9 = vector.shape_cast %4 : vector<10x8x16xf32> to vector<80x16xf32>
    %c0_4 = arith.constant 0 : index
    %c0_5 = arith.constant 0 : index
    %c0_6 = arith.constant 0 : index
    %10 = vector.load %arg3[%c0_4, %c0_5, %c0_6] : memref<4x16x128xf32, #tpu.memory_space<vmem>>, vector<1x16x128xf32>
    %11 = vector.shape_cast %10 : vector<1x16x128xf32> to vector<16x128xf32>
    %cst_7 = arith.constant dense<0.000000e+00> : vector<80x128xf32>
    %12 = tpu.matmul %9, %11, %cst_7 {dimension_numbers = #tpu.dot_dimension_numbers<[1], [0], [0], [1], [0, 0, 1, 1], [], []>, precision = #tpu.contract_precision<fp32>} : vector<80x16xf32>, vector<16x128xf32>, vector<80x128xf32> -> vector<80x128xf32>
    %13 = arith.addf %8, %12 : vector<80x128xf32>
    %14 = vector.shape_cast %5 : vector<10x8x16xf32> to vector<80x16xf32>
    %c1 = arith.constant 1 : index
    %c0_8 = arith.constant 0 : index
    %c0_9 = arith.constant 0 : index
    %15 = vector.load %arg3[%c1, %c0_8, %c0_9] : memref<4x16x128xf32, #tpu.memory_space<vmem>>, vector<1x16x128xf32>
    %16 = vector.shape_cast %15 : vector<1x16x128xf32> to vector<16x128xf32>
    %cst_10 = arith.constant dense<0.000000e+00> : vector<80x128xf32>
    %17 = tpu.matmul %14, %16, %cst_10 {dimension_numbers = #tpu.dot_dimension_numbers<[1], [0], [0], [1], [0, 0, 1, 1], [], []>, precision = #tpu.contract_precision<fp32>} : vector<80x16xf32>, vector<16x128xf32>, vector<80x128xf32> -> vector<80x128xf32>
    %18 = arith.addf %13, %17 : vector<80x128xf32>
    %19 = vector.shape_cast %6 : vector<10x8x16xf32> to vector<80x16xf32>
    %c2 = arith.constant 2 : index
    %c0_11 = arith.constant 0 : index
    %c0_12 = arith.constant 0 : index
    %20 = vector.load %arg3[%c2, %c0_11, %c0_12] : memref<4x16x128xf32, #tpu.memory_space<vmem>>, vector<1x16x128xf32>
    %21 = vector.shape_cast %20 : vector<1x16x128xf32> to vector<16x128xf32>
    %cst_13 = arith.constant dense<0.000000e+00> : vector<80x128xf32>
    %22 = tpu.matmul %19, %21, %cst_13 {dimension_numbers = #tpu.dot_dimension_numbers<[1], [0], [0], [1], [0, 0, 1, 1], [], []>, precision = #tpu.contract_precision<fp32>} : vector<80x16xf32>, vector<16x128xf32>, vector<80x128xf32> -> vector<80x128xf32>
    %23 = arith.addf %18, %22 : vector<80x128xf32>
    %24 = vector.shape_cast %7 : vector<10x8x16xf32> to vector<80x16xf32>
    %c3 = arith.constant 3 : index
    %c0_14 = arith.constant 0 : index
    %c0_15 = arith.constant 0 : index
    %25 = vector.load %arg3[%c3, %c0_14, %c0_15] : memref<4x16x128xf32, #tpu.memory_space<vmem>>, vector<1x16x128xf32>
    %26 = vector.shape_cast %25 : vector<1x16x128xf32> to vector<16x128xf32>
    %cst_16 = arith.constant dense<0.000000e+00> : vector<80x128xf32>
    %27 = tpu.matmul %24, %26, %cst_16 {dimension_numbers = #tpu.dot_dimension_numbers<[1], [0], [0], [1], [0, 0, 1, 1], [], []>, precision = #tpu.contract_precision<fp32>} : vector<80x16xf32>, vector<16x128xf32>, vector<80x128xf32> -> vector<80x128xf32>
    %28 = arith.addf %23, %27 : vector<80x128xf32>
    %c0_17 = arith.constant 0 : index
    %c0_18 = arith.constant 0 : index
    %29 = vector.load %arg4[%c0_17, %c0_18] : memref<1x128xf32, #tpu.memory_space<vmem>>, vector<1x128xf32>
    %30 = vector.broadcast %29 : vector<1x128xf32> to vector<80x128xf32>
    %31 = arith.mulf %28, %30 : vector<80x128xf32>
    %c0_19 = arith.constant 0 : index
    %c0_20 = arith.constant 0 : index
    %32 = vector.load %arg5[%c0_19, %c0_20] : memref<1x128xf32, #tpu.memory_space<vmem>>, vector<1x128xf32>
    %33 = vector.broadcast %32 : vector<1x128xf32> to vector<80x128xf32>
    %34 = arith.addf %31, %33 : vector<80x128xf32>
    %cst_21 = arith.constant 0.000000e+00 : f32
    %35 = vector.broadcast %cst_21 : f32 to vector<80x128xf32>
    %36 = arith.cmpf oge, %34, %35 : vector<80x128xf32>
    %cst_22 = arith.constant 2.000000e-01 : f32
    %37 = vector.broadcast %cst_22 : f32 to vector<80x128xf32>
    %38 = arith.mulf %37, %34 : vector<80x128xf32>
    %39 = arith.select %36, %34, %38 : vector<80x128xi1>, vector<80x128xf32>
    %cst_23 = arith.constant 0.000000e+00 : f32
    %40 = vector.broadcast %cst_23 : f32 to vector<10x1x128xf32>
    %c0_24 = arith.constant 0 : index
    %c0_25 = arith.constant 0 : index
    %c0_26 = arith.constant 0 : index
    %41 = vector.load %arg10[%c0_24, %c0_25, %c0_26] : memref<10x10x128xf32, #tpu.memory_space<vmem>>, vector<10x1x128xf32>
    tpu.vector_store %arg10[%c0_24, %c0_25, %c0_26], %40 {strides = array<i32>} : memref<10x10x128xf32, #tpu.memory_space<vmem>>, vector<10x1x128xf32>,
    %c0_27 = arith.constant 0 : index
    %c9 = arith.constant 9 : index
    %c0_28 = arith.constant 0 : index
    %42 = vector.load %arg10[%c0_27, %c9, %c0_28] : memref<10x10x128xf32, #tpu.memory_space<vmem>>, vector<10x1x128xf32>
    tpu.vector_store %arg10[%c0_27, %c9, %c0_28], %40 {strides = array<i32>} : memref<10x10x128xf32, #tpu.memory_space<vmem>>, vector<10x1x128xf32>,
    %43 = vector.shape_cast %39 : vector<80x128xf32> to vector<10x8x128xf32>
    %c0_29 = arith.constant 0 : index
    %c1_30 = arith.constant 1 : index
    %c0_31 = arith.constant 0 : index
    %44 = vector.load %arg10[%c0_29, %c1_30, %c0_31] : memref<10x10x128xf32, #tpu.memory_space<vmem>>, vector<10x8x128xf32>
    tpu.vector_store %arg10[%c0_29, %c1_30, %c0_31], %43 {strides = array<i32>} : memref<10x10x128xf32, #tpu.memory_space<vmem>>, vector<10x8x128xf32>,
    %cst_32 = arith.constant 0.000000e+00 : f32
    %45 = vector.broadcast %cst_32 : f32 to vector<1x10x128xf32>
    %c0_i32 = arith.constant 0 : i32
    %46 = arith.cmpi eq, %arg1, %c0_i32 : i32
    %47 = arith.extui %46 : i1 to i32
    %c0_i32_33 = arith.constant 0 : i32
    %48 = arith.cmpi ne, %47, %c0_i32_33 : i32
    scf.if %48 {
      %c0_68 = arith.constant 0 : index
      %c0_69 = arith.constant 0 : index
      %c0_70 = arith.constant 0 : index
      %90 = vector.load %arg10[%c0_68, %c0_69, %c0_70] : memref<10x10x128xf32, #tpu.memory_space<vmem>>, vector<1x10x128xf32>
      tpu.vector_store %arg10[%c0_68, %c0_69, %c0_70], %45 {strides = array<i32>} : memref<10x10x128xf32, #tpu.memory_space<vmem>>, vector<1x10x128xf32>,
    } else {
    }
    %c0_i32_34 = arith.constant 0 : i32
    %49 = arith.cmpi eq, %arg1, %c0_i32_34 : i32
    %50 = arith.extui %49 : i1 to i32
    %c0_i32_35 = arith.constant 0 : i32
    %51 = arith.cmpi ne, %50, %c0_i32_35 : i32
    scf.if %51 {
      %c9_68 = arith.constant 9 : index
      %c0_69 = arith.constant 0 : index
      %c0_70 = arith.constant 0 : index
      %90 = vector.load %arg10[%c9_68, %c0_69, %c0_70] : memref<10x10x128xf32, #tpu.memory_space<vmem>>, vector<1x10x128xf32>
      tpu.vector_store %arg10[%c9_68, %c0_69, %c0_70], %45 {strides = array<i32>} : memref<10x10x128xf32, #tpu.memory_space<vmem>>, vector<1x10x128xf32>,
    } else {
    }
    %c0_36 = arith.constant 0 : index
    %c0_37 = arith.constant 0 : index
    %c0_38 = arith.constant 0 : index
    %52 = vector.load %arg10[%c0_36, %c0_37, %c0_38] : memref<10x10x128xf32, #tpu.memory_space<vmem>>, vector<10x8x128xf32>
    %c0_39 = arith.constant 0 : index
    %c1_40 = arith.constant 1 : index
    %c0_41 = arith.constant 0 : index
    %53 = vector.load %arg10[%c0_39, %c1_40, %c0_41] : memref<10x10x128xf32, #tpu.memory_space<vmem>>, vector<10x8x128xf32>
    %c0_42 = arith.constant 0 : index
    %c2_43 = arith.constant 2 : index
    %c0_44 = arith.constant 0 : index
    %54 = vector.load %arg10[%c0_42, %c2_43, %c0_44] : memref<10x10x128xf32, #tpu.memory_space<vmem>>, vector<10x8x128xf32>
    %55 = tpu.concatenate %52, %53, %54 in 2 : vector<10x8x128xf32>, vector<10x8x128xf32>, vector<10x8x128xf32> -> vector<10x8x384xf32>
    %cst_45 = arith.constant 0.000000e+00 : f32
    %56 = vector.broadcast %cst_45 : f32 to vector<64x128xf32>
    %57 = vector.extract_strided_slice %55 {offsets = [0, 0, 0], sizes = [8, 8, 384], strides = [1, 1, 1]} : vector<10x8x384xf32> to vector<8x8x384xf32>
    %58 = vector.shape_cast %57 : vector<8x8x384xf32> to vector<64x384xf32>
    %c0_46 = arith.constant 0 : index
    %c0_47 = arith.constant 0 : index
    %c0_48 = arith.constant 0 : index
    %59 = vector.load %arg6[%c0_46, %c0_47, %c0_48] : memref<3x384x128xf32, #tpu.memory_space<vmem>>, vector<1x384x128xf32>
    %60 = vector.shape_cast %59 : vector<1x384x128xf32> to vector<384x128xf32>
    %cst_49 = arith.constant dense<0.000000e+00> : vector<64x128xf32>
    %61 = tpu.matmul %58, %60, %cst_49 {dimension_numbers = #tpu.dot_dimension_numbers<[1], [0], [0], [1], [0, 0, 1, 1], [], []>, precision = #tpu.contract_precision<fp32>} : vector<64x384xf32>, vector<384x128xf32>, vector<64x128xf32> -> vector<64x128xf32>
    %62 = arith.addf %56, %61 : vector<64x128xf32>
    %63 = vector.extract_strided_slice %55 {offsets = [1, 0, 0], sizes = [8, 8, 384], strides = [1, 1, 1]} : vector<10x8x384xf32> to vector<8x8x384xf32>
    %64 = vector.shape_cast %63 : vector<8x8x384xf32> to vector<64x384xf32>
    %c1_50 = arith.constant 1 : index
    %c0_51 = arith.constant 0 : index
    %c0_52 = arith.constant 0 : index
    %65 = vector.load %arg6[%c1_50, %c0_51, %c0_52] : memref<3x384x128xf32, #tpu.memory_space<vmem>>, vector<1x384x128xf32>
    %66 = vector.shape_cast %65 : vector<1x384x128xf32> to vector<384x128xf32>
    %cst_53 = arith.constant dense<0.000000e+00> : vector<64x128xf32>
    %67 = tpu.matmul %64, %66, %cst_53 {dimension_numbers = #tpu.dot_dimension_numbers<[1], [0], [0], [1], [0, 0, 1, 1], [], []>, precision = #tpu.contract_precision<fp32>} : vector<64x384xf32>, vector<384x128xf32>, vector<64x128xf32> -> vector<64x128xf32>
    %68 = arith.addf %62, %67 : vector<64x128xf32>
    %69 = vector.extract_strided_slice %55 {offsets = [2, 0, 0], sizes = [8, 8, 384], strides = [1, 1, 1]} : vector<10x8x384xf32> to vector<8x8x384xf32>
    %70 = vector.shape_cast %69 : vector<8x8x384xf32> to vector<64x384xf32>
    %c2_54 = arith.constant 2 : index
    %c0_55 = arith.constant 0 : index
    %c0_56 = arith.constant 0 : index
    %71 = vector.load %arg6[%c2_54, %c0_55, %c0_56] : memref<3x384x128xf32, #tpu.memory_space<vmem>>, vector<1x384x128xf32>
    %72 = vector.shape_cast %71 : vector<1x384x128xf32> to vector<384x128xf32>
    %cst_57 = arith.constant dense<0.000000e+00> : vector<64x128xf32>
    %73 = tpu.matmul %70, %72, %cst_57 {dimension_numbers = #tpu.dot_dimension_numbers<[1], [0], [0], [1], [0, 0, 1, 1], [], []>, precision = #tpu.contract_precision<fp32>} : vector<64x384xf32>, vector<384x128xf32>, vector<64x128xf32> -> vector<64x128xf32>
    %74 = arith.addf %68, %73 : vector<64x128xf32>
    %c0_58 = arith.constant 0 : index
    %c0_59 = arith.constant 0 : index
    %75 = vector.load %arg7[%c0_58, %c0_59] : memref<1x128xf32, #tpu.memory_space<vmem>>, vector<1x128xf32>
    %76 = vector.broadcast %75 : vector<1x128xf32> to vector<64x128xf32>
    %77 = arith.mulf %74, %76 : vector<64x128xf32>
    %c0_60 = arith.constant 0 : index
    %c0_61 = arith.constant 0 : index
    %78 = vector.load %arg8[%c0_60, %c0_61] : memref<1x128xf32, #tpu.memory_space<vmem>>, vector<1x128xf32>
    %79 = vector.broadcast %78 : vector<1x128xf32> to vector<64x128xf32>
    %80 = arith.addf %77, %79 : vector<64x128xf32>
    %cst_62 = arith.constant 0.000000e+00 : f32
    %81 = vector.broadcast %cst_62 : f32 to vector<64x128xf32>
    %82 = arith.cmpf oge, %80, %81 : vector<64x128xf32>
    %cst_63 = arith.constant 2.000000e-01 : f32
    %83 = vector.broadcast %cst_63 : f32 to vector<64x128xf32>
    %84 = arith.mulf %83, %80 : vector<64x128xf32>
    %85 = arith.select %82, %80, %84 : vector<64x128xi1>, vector<64x128xf32>
    %86 = vector.shape_cast %85 : vector<64x128xf32> to vector<8x8x128xf32>
    %c0_64 = arith.constant 0 : index
    %c0_65 = arith.constant 0 : index
    %c0_66 = arith.constant 0 : index
    %c0_67 = arith.constant 0 : index
    %87 = vector.load %arg9[%c0_64, %c0_65, %c0_66, %c0_67] : memref<1x8x8x128xf32, #tpu.memory_space<vmem>>, vector<1x8x8x128xf32>
    %88 = vector.shape_cast %87 : vector<1x8x8x128xf32> to vector<8x8x128xf32>
    %89 = vector.shape_cast %86 : vector<8x8x128xf32> to vector<1x8x8x128xf32>
    tpu.vector_store %arg9[%c0_64, %c0_65, %c0_66, %c0_67], %89 {strides = array<i32>} : memref<1x8x8x128xf32, #tpu.memory_space<vmem>>, vector<1x8x8x128xf32>,
    return
  }
  func.func @transform_0(%arg0: i32, %arg1: i32) -> (i32, i32, i32, i32, i32) {
    %c0_i32 = arith.constant 0 : i32
    %c0_i32_0 = arith.constant 0 : i32
    %c0_i32_1 = arith.constant 0 : i32
    %c0_i32_2 = arith.constant 0 : i32
    return %arg0, %arg1, %c0_i32, %c0_i32_0, %c0_i32_1 : i32, i32, i32, i32, i32
  }
  func.func @transform_1(%arg0: i32, %arg1: i32) -> (i32, i32, i32) {
    %c0_i32 = arith.constant 0 : i32
    %c0_i32_0 = arith.constant 0 : i32
    %c0_i32_1 = arith.constant 0 : i32
    %c0_i32_2 = arith.constant 0 : i32
    return %c0_i32, %c0_i32_0, %c0_i32_1 : i32, i32, i32
  }
  func.func @transform_2(%arg0: i32, %arg1: i32) -> (i32, i32) {
    %c0_i32 = arith.constant 0 : i32
    %c0_i32_0 = arith.constant 0 : i32
    %c0_i32_1 = arith.constant 0 : i32
    return %c0_i32, %c0_i32_0 : i32, i32
  }
  func.func @transform_3(%arg0: i32, %arg1: i32) -> (i32, i32) {
    %c0_i32 = arith.constant 0 : i32
    %c0_i32_0 = arith.constant 0 : i32
    %c0_i32_1 = arith.constant 0 : i32
    return %c0_i32, %c0_i32_0 : i32, i32
  }
  func.func @transform_4(%arg0: i32, %arg1: i32) -> (i32, i32, i32) {
    %c0_i32 = arith.constant 0 : i32
    %c0_i32_0 = arith.constant 0 : i32
    %c0_i32_1 = arith.constant 0 : i32
    %c0_i32_2 = arith.constant 0 : i32
    return %c0_i32, %c0_i32_0, %c0_i32_1 : i32, i32, i32
  }
  func.func @transform_5(%arg0: i32, %arg1: i32) -> (i32, i32) {
    %c0_i32 = arith.constant 0 : i32
    %c0_i32_0 = arith.constant 0 : i32
    %c0_i32_1 = arith.constant 0 : i32
    return %c0_i32, %c0_i32_0 : i32, i32
  }
  func.func @transform_6(%arg0: i32, %arg1: i32) -> (i32, i32) {
    %c0_i32 = arith.constant 0 : i32
    %c0_i32_0 = arith.constant 0 : i32
    %c0_i32_1 = arith.constant 0 : i32
    return %c0_i32, %c0_i32_0 : i32, i32
  }
  func.func @transform_7(%arg0: i32, %arg1: i32) -> (i32, i32, i32, i32) {
    %c0_i32 = arith.constant 0 : i32
    %c0_i32_0 = arith.constant 0 : i32
    %c0_i32_1 = arith.constant 0 : i32
    return %arg0, %arg1, %c0_i32, %c0_i32_0 : i32, i32, i32, i32
  }
}

</mosaic_0001>

<bundles_post_ra>
// kernel: conv_block_ds_forward.1
= control target key start
LH: loop header
LB: loop body
LE: loop exit
PB: predicated region body
PF: predicated region fallthrough
CT: control target
= control target key end

     0   :  { %s15760_s24 = smov 0   ;;  %s15762_s25 = smov 0   ;;  %s21103_s0 = inlined_call_operand.vmem [shape: f32[2,1,11,9,16], index: 0, kind: input, shape index: {}]   ;;  %s21104_s1 = inlined_call_operand.vmem [shape: f32[4,16,128], index: 1, kind: input, shape index: {}]   ;;  %s21105_s2 = inlined_call_operand.vmem [shape: f32[1,128], index: 2, kind: input, shape index: {}]   ;;  %s21106_s3 = inlined_call_operand.vmem [shape: f32[1,128], index: 3, kind: input, shape index: {}]   ;;  %s21107_s4 = inlined_call_operand.vmem [shape: f32[3,384,128], index: 4, kind: input, shape index: {}]   ;;  %s21108_s5 = inlined_call_operand.vmem [shape: f32[1,128], index: 5, kind: input, shape index: {}]   ;;  %s21109_s6 = inlined_call_operand.vmem [shape: f32[1,128], index: 6, kind: input, shape index: {}]   ;;  %s21110_s7 = inlined_call_operand.vmem [shape: f32[2,8,8,128], index: 7, kind: output, shape index: {}]  }
   0x1   :  { %s15764_s26 = smov 0  }
   0x2 LB: > { %s29_s27 = sadd.s32 1, %s15713_s25  ;;  %p10885_p0 = scmp.ge.s32.totalorder %s15717_s26, 1  ;;  %s15717_s26 = sphi %s15764_s26, %s17_s26   ;;  %s15713_s25 = sphi %s15762_s25, %s23045_s25   ;;  %s15709_s24 = sphi %s15760_s24, %s23044_s24  }
   0x3   : > { %p31_p1 = scmp.ge.s32.totalorder %s29_s27, 2  ;;  %p257_p2 = scmp.lt.s32.totalorder %s15717_s26, 3 }
   0x5   : > { %s23047_s27 = smov (%p31_p1, %s29_s27), 0  ;;  %p258_p3 = pnand %p10885_p0, %p257_p2 }
   0x7   : > { %261 = sbr.rel (%p258_p3) target bundleno = 1731 (0x6c3), region = 48 }
   0xe   : > { %v10889_v0 = vld [vmem:[%s21104_s1 + $0x10] sm:$0xff]  ;;  %v10890_v1 = vld [vmem:[%s21104_s1 + $0x18] sm:$0xff]  ;;  %p297_p4 = scmp.lt.s32.totalorder %s15709_s24, 1  ;;  %vm360_vm0 = vcmask 1046528   ;;  %vm394_vm1 = vcmask 130048  }
   0xf   : > { %v416_v2 = vand.u32 4294901760, %v10889_v0  ;;  %v419_v3 = vand.u32 4294901760, %v10890_v1 }
  0x10   : > { %s23049_s24 = smov (!%p297_p4, %s15709_s24), 1 }
  0x11   : > { %v15786_v4 = vpack.c.bf16 %v419_v3, %v416_v2  ;;  %v15788_v5 = vsub.f32 %v10889_v0, %v416_v2  ;;  %v15790_v6 = vsub.f32 %v10890_v1, %v419_v3  ;;  %s15652_s9 = smul.u32 176, %s23049_s24  ;;  %s10997_s11 = sshll.u32 %s23049_s24, 6 }
  0x12   : > { %s21084_s14 = scalar_lea.vmem %s21110_s7, %s10997_s11 }
  0x13   : > { %v585_v7 = vand.u32 4294901760, %v15788_v5  ;;  %v592_v8 = vand.u32 4294901760, %v15790_v6  ;;  %13975 = vmatprep.subr.bf16.mxu1 %v15786_v4  ;;  %s15799_s12 = scalar_lea.vmem %s21103_s0, %s15652_s9  ;;  %v13982_v25 = vpack.c.bf16 %v15790_v6, %v15788_v5 }
  0x14   : > { %13977 = vmatpush3.bf16.msra.mxu1 %v15786_v4  ;;  %v15809_v11 = vld [vmem:[%s15799_s12] sm:$0xff]  ;;  %v317_v12 = vld [vmem:[%s15799_s12 + $0x8] sm:$0x1]  ;;  %v15813_v13 = vld [vmem:[%s15799_s12 + $0x10] sm:$0xff] }
  0x15   : > { %v586_v9 = vsub.f32 %v15788_v5, %v585_v7  ;;  %v593_v10 = vsub.f32 %v15790_v6, %v592_v8  ;;  %v361_v14 = vrot.slane %v15809_v11, 1  ;;  %v362_v15 = vrot.slane %v317_v12, 1  ;;  %v319_v16 = vld [vmem:[%s15799_s12 + $0x18] sm:$0x1]  ;;  %v15819_v18 = vld [vmem:[%s15799_s12 + $0x20] sm:$0xff]  ;;  %v15827_v27 = vld [vmem:[%s15799_s12 + $0x30] sm:$0xff] }
  0x16   : > { %v364_v17 = vrot.slane %v15813_v13, 1  ;;  %v365_v21 = vrot.slane %v319_v16, 1  ;;  %v321_v22 = vld [vmem:[%s15799_s12 + $0x28] sm:$0x1]  ;;  %v367_v23 = vrot.slane %v15819_v18, 1  ;;  %v15831_v29 = vld [vmem:[%s15799_s12 + $0x40] sm:$0xff] }
  0x17   : > { %v587_v19 = vand.u32 4294901760, %v586_v9  ;;  %v594_v20 = vand.u32 4294901760, %v593_v10  ;;  %v363_v24 = vsel %vm360_vm0, %v361_v14, %v362_v15  ;;  %v368_v26 = vrot.slane %v321_v22, 1  ;;  %v323_v28 = vld [vmem:[%s15799_s12 + $0x38] sm:$0x1]  ;;  %v15840_v35 = vld [vmem:[%s15799_s12 + $0x50] sm:$0xff] }
  0x18   : > { %v15834_v31 = vsel %vm394_vm1, %v363_v24, 0  ;;  %v366_v32 = vsel %vm360_vm0, %v364_v17, %v365_v21  ;;  %v370_v33 = vrot.slane %v15827_v27, 1  ;;  %v325_v34 = vld [vmem:[%s15799_s12 + $0x48] sm:$0x1]  ;;  %v15843_v36 = vld [vmem:[%s15799_s12 + $0x60] sm:$0xff]  ;;  %v371_v40 = vrot.slane %v323_v28, 1 }
  0x19   : > { %v13978_v30 = vpack.c.bf16 %v594_v20, %v587_v19  ;;  %v15846_v37 = vand.u32 4294901760, %v15834_v31  ;;  %v15849_v38 = vsel %vm394_vm1, %v366_v32, 0  ;;  %v369_v39 = vsel %vm360_vm0, %v367_v23, %v368_v26  ;;  %v327_v41 = vld [vmem:[%s15799_s12 + $0x58] sm:$0x1]  ;;  %v15854_v42 = vld [vmem:[%s15799_s12 + $0x70] sm:$0xff]  ;;  %v15872_v57 = vld [vmem:[%s15799_s12 + $0x80] sm:$0xff] }
  0x1a   : > { %v15857_v43 = vand.u32 4294901760, %v15849_v38  ;;  %v399_v44 = vsel %vm394_vm1, %v369_v39, 0  ;;  %v373_v45 = vrot.slane %v15831_v29, 1  ;;  %v374_v46 = vrot.slane %v325_v34, 1  ;;  %v329_v47 = vld [vmem:[%s15799_s12 + $0x68] sm:$0x1] }
  0x1b   : > { %13979 = vmatprep.subr.bf16.mxu0 %v13978_v30  ;;  %12749 = vmatprep.mubr.f32.mxu0 %v15846_v37  ;;  %v15863_v48 = vand.u32 4294901760, %v399_v44  ;;  %v372_v49 = vsel %vm360_vm0, %v370_v33, %v371_v40  ;;  %v376_v50 = vrot.slane %v15840_v35, 1  ;;  %v377_v51 = vrot.slane %v327_v41, 1  ;;  %v331_v52 = vld [vmem:[%s15799_s12 + $0x78] sm:$0x1]  ;;  %v15879_v62 = vld [vmem:[%s15799_s12 + $0x90] sm:$0xff] }
  0x1c   : > { %21704 = vst [vmem:[#allocation3_spill] sm:$0xff] %v15857_v43  ;;  %13981 = vmatpush3.bf16.msra.mxu0 %v13978_v30  ;;  %v401_v53 = vsel %vm394_vm1, %v372_v49, 0  ;;  %v375_v54 = vsel %vm360_vm0, %v373_v45, %v374_v46  ;;  %v379_v55 = vrot.slane %v15843_v36, 1  ;;  %v380_v56 = vrot.slane %v329_v47, 1  ;;  %v333_v58 = vld [vmem:[%s15799_s12 + $0x88] sm:$0x1] }
  0x1d   : > { %21705 = vst [vmem:[#allocation4_spill] sm:$0xff] %v15863_v48  ;;  %13983 = vmatprep.subr.bf16.mxu0 %v13982_v25  ;;  %v403_v59 = vsel %vm394_vm1, %v375_v54, 0  ;;  %v378_v60 = vsel %vm360_vm0, %v376_v50, %v377_v51  ;;  %v382_v61 = vrot.slane %v15854_v42, 1  ;;  %v335_v63 = vld [vmem:[%s15799_s12 + $0x98] sm:$0x1]  ;;  %v15883_v0 = vand.u32 4294901760, %v401_v53 }
  0x1e   : > { %v381_v1 = vsel %vm360_vm0, %v379_v55, %v380_v56  ;;  %v383_v2 = vrot.slane %v331_v52, 1  ;;  %v15887_v3 = vand.u32 4294901760, %v403_v59  ;;  %v405_v9 = vsel %vm394_vm1, %v378_v60, 0  ;;  %v338_v40 = vld [vmem:[%s21104_s1] sm:$0xff]  ;;  %v339_v5 = vld [vmem:[%s21104_s1 + $0x8] sm:$0xff] }
  0x1f   : > { %12750 = vmatmul.mubr.f32.vlgmr.msra.gmra.mrb[0].mxu0 %v15857_v43  ;;  %21706 = vst [vmem:[#allocation5_spill] sm:$0xff] %v15883_v0  ;;  %v385_v10 = vrot.slane %v15872_v57, 1  ;;  %v386_v12 = vrot.slane %v333_v58, 1  ;;  %v407_v14 = vsel %vm394_vm1, %v381_v1, 0  ;;  %v388_v16 = vrot.slane %v15879_v62, 1 }
  0x20   : > { %13985 = vmatpush3.bf16.msra.mxu0 %v13982_v25  ;;  %12752 = vmatprep.mubr.f32.mxu0 %v15863_v48  ;;  %21707 = vst [vmem:[#allocation6_spill] sm:$0xff] %v15887_v3  ;;  %v384_v15 = vsel %vm360_vm0, %v382_v61, %v383_v2  ;;  %v389_v17 = vrot.slane %v335_v63, 1  ;;  %v15897_v20 = vand.u32 4294901760, %v405_v9  ;;  %v15900_v21 = vand.u32 4294901760, %v407_v14 }
  0x21   : > { %13987 = vmatprep.subr.bf16.mxu0 %v15786_v4  ;;  %v387_v19 = vsel %vm360_vm0, %v385_v10, %v386_v12  ;;  %v409_v22 = vsel %vm394_vm1, %v384_v15, 0  ;;  %v15918_v32 = vsub.f32 %v15834_v31, %v15846_v37  ;;  %v15923_v33 = vsub.f32 %v15849_v38, %v15857_v43 }
  0x22   : > { %21708 = vst [vmem:[#allocation7_spill] sm:$0xff] %v15897_v20  ;;  %21709 = vst [vmem:[#allocation8_spill] sm:$0xff] %v15900_v21  ;;  %v411_v23 = vsel %vm394_vm1, %v387_v19, 0  ;;  %v390_v24 = vsel %vm360_vm0, %v388_v16, %v389_v17  ;;  %v15906_v25 = vand.u32 4294901760, %v409_v22  ;;  %v15927_v34 = vsub.f32 %v399_v44, %v15863_v48 }
  0x23   : > { %12753 = vmatmul.mubr.f32.gmra.mrb[2].mxu0 %v15883_v0  ;;  %v15909_v26 = vand.u32 4294901760, %v411_v23  ;;  %v413_v28 = vsel %vm394_vm1, %v390_v24, 0  ;;  %v13990_v39 = vpack.c.bf16 %v592_v8, %v585_v7  ;;  %v15935_v31 = vsub.f32 %v401_v53, %v15883_v0 }
  0x24   : > { %12755 = vmatprep.mubr.f32.mxu0 %v15887_v3  ;;  %21710 = vst [vmem:[#allocation9_spill] sm:$0xff] %v15906_v25  ;;  %v15913_v30 = vand.u32 4294901760, %v413_v28  ;;  %v15940_v38 = vsub.f32 %v403_v59, %v15887_v3  ;;  %v15950_v6 = vsub.f32 %v405_v9, %v15897_v20  ;;  %v1282_v7 = vand.u32 4294901760, %v338_v40 }
  0x25   : > { %21711 = vst [vmem:[#allocation10_spill] sm:$0xff] %v15909_v26  ;;  %v1285_v8 = vand.u32 4294901760, %v339_v5  ;;  %v15954_v41 = vsub.f32 %v407_v14, %v15900_v21  ;;  %v15962_v46 = vsub.f32 %v409_v22, %v15906_v25  ;;  %v15966_v47 = vsub.f32 %v411_v23, %v15909_v26 }
  0x26   : > { %21712 = vst [vmem:[#allocation11_spill] sm:$0xff] %v15913_v30  ;;  %v15956_v44 = vsub.f32 %v338_v40, %v1282_v7  ;;  %v15972_v51 = vsub.f32 %v413_v28, %v15913_v30  ;;  %v21111_v53 = vand.u32 4294901760, %v15918_v32  ;;  %v15980_v54 = vand.u32 4294901760, %v15923_v33 }
  0x27   : > { %12756 = vmatmul.mubr.f32.gmra.mrb[4].mxu0 %v15897_v20  ;;  %v15958_v45 = vsub.f32 %v339_v5, %v1285_v8  ;;  %21713 = vst [vmem:[#allocation12_spill] sm:$0xff] %v15962_v46  ;;  %21714 = vst [vmem:[#allocation13_spill] sm:$0xff] %v15966_v47  ;;  %v15985_v55 = vand.u32 4294901760, %v15927_v34  ;;  %v15989_v56 = vand.u32 4294901760, %v15935_v31  ;;  %v15993_v58 = vand.u32 4294901760, %v15940_v38 }
  0x28   : > { %12758 = vmatprep.mubr.f32.mxu0 %v15900_v21  ;;  %v1451_v49 = vand.u32 4294901760, %v15956_v44  ;;  %21715 = vst [vmem:[#allocation14_spill] sm:$0xff] %v15972_v51  ;;  %v15998_v59 = vand.u32 4294901760, %v15950_v6  ;;  %v16002_v60 = vand.u32 4294901760, %v15954_v41  ;;  %v16006_v61 = vand.u32 4294901760, %v15962_v46 }
  0x29   : > { %v1458_v50 = vand.u32 4294901760, %v15958_v45  ;;  %v16010_v63 = vand.u32 4294901760, %v15966_v47  ;;  %v16014_v1 = vand.u32 4294901760, %v15972_v51  ;;  %v16019_v2 = vpack.c.bf16 %v1285_v8, %v1282_v7 }
  0x2a   : > { %v1452_v9 = vsub.f32 %v15956_v44, %v1451_v49  ;;  %v1263_v16 = vsel %vm394_vm1, %v15813_v13, 0  ;;  %v1265_v19 = vsel %vm394_vm1, %v15819_v18, 0  ;;  %v1267_v23 = vsel %vm394_vm1, %v15827_v27, 0 }
  0x2b   : > { %12759 = vmatmul.mubr.f32.gmra.mrb[6].mxu0 %v15906_v25  ;;  %v15974_v52 = vpack.c.bf16 %v1458_v50, %v1451_v49  ;;  %21716 = vst [vmem:[#allocation15_spill] sm:$0xff] %v16010_v63  ;;  %21717 = vst [vmem:[#allocation16_spill] sm:$0xff] %v16014_v1  ;;  %v1459_v10 = vsub.f32 %v15958_v45, %v1458_v50  ;;  %v16043_v22 = vand.u32 4294901760, %v1263_v16  ;;  %v16053_v13 = vand.u32 4294901760, %v1265_v19 }
  0x2c   : > { %12761 = vmatprep.mubr.f32.mxu0 %v15909_v26  ;;  %v1453_v12 = vand.u32 4294901760, %v1452_v9  ;;  %v16060_v24 = vand.u32 4294901760, %v1267_v23  ;;  %v1273_v40 = vsel %vm394_vm1, %v15843_v36, 0  ;;  %v1275_v9 = vsel %vm394_vm1, %v15854_v42, 0 }
  0x2d   : > { %v1460_v14 = vand.u32 4294901760, %v1459_v10  ;;  %v16058_v18 = vsub.f32 %v1263_v16, %v16043_v22  ;;  %v16093_v36 = vand.u32 4294901760, %v1273_v40  ;;  %v1277_v10 = vsel %vm394_vm1, %v15872_v57, 0 }
  0x2e   : > { %v16078_v7 = vsub.f32 %v1267_v23, %v16060_v24  ;;  %v16111_v23 = vand.u32 4294901760, %v1275_v9 }
  0x2f   : > { %12762 = vmatmul.mubr.f32.gmra.mrb[8].mxu0 %v15913_v30  ;;  %v14002_v17 = vpack.c.bf16 %v1460_v14, %v1453_v12  ;;  %v16075_v5 = vand.u32 4294901760, %v16058_v18  ;;  %v16117_v57 = vsub.f32 %v1273_v40, %v16093_v36 }
  0x30   : > { %12768 = vmatprep.mubr.f32.mxu0 %v15918_v32  ;;  %v16102_v12 = vand.u32 4294901760, %v16078_v7 }
  0x33   : > { %12769 = vmatmul.mubr.f32.vlgmr.msra.gmra.mrb[0].mxu0 %v15923_v33 }
  0x34   : > { %13989 = vmatpush3.bf16.msra.mxu0 %v15786_v4  ;;  %12771 = vmatprep.mubr.f32.mxu0 %v15927_v34 }
  0x35   : > { %13991 = vmatprep.subr.bf16.mxu0 %v13990_v39 }
  0x37   : > { %12772 = vmatmul.mubr.f32.gmra.mrb[2].mxu0 %v15935_v31 }
  0x38   : > { %12774 = vmatprep.mubr.f32.mxu0 %v15940_v38 }
  0x3b   : > { %12775 = vmatmul.mubr.f32.gmra.mrb[4].mxu0 %v15950_v6 }
  0x3c   : > { %12777 = vmatprep.mubr.f32.mxu0 %v15954_v41 }
  0x3f   : > { %12778 = vmatmul.mubr.f32.gmra.mrb[6].mxu0 %v15962_v46 }
  0x40   : > { %12780 = vmatprep.mubr.f32.mxu0 %v15966_v47 }
  0x43   : > { %12781 = vmatmul.mubr.f32.gmra.mrb[8].mxu0 %v15972_v51 }
  0x44   : > { %12787 = vmatprep.mubr.f32.mxu0 %v21111_v53 }
  0x47   : > { %12788 = vmatmul.mubr.f32.vlgmr.msra.gmra.mrb[0].mxu0 %v15980_v54 }
  0x48   : > { %13993 = vmatpush3.bf16.msra.mxu0 %v13990_v39  ;;  %12790 = vmatprep.mubr.f32.mxu0 %v15985_v55  ;;  %v16068_v39 = vsub.f32 %v1265_v19, %v16053_v13 }
  0x49   : > { %13995 = vmatprep.subr.bf16.mxu0 %v15786_v4 }
  0x4b   : > { %12791 = vmatmul.mubr.f32.gmra.mrb[2].mxu0 %v15989_v56 }
  0x4c   : > { %12793 = vmatprep.mubr.f32.mxu0 %v15993_v58 }
  0x4f   : > { %12794 = vmatmul.mubr.f32.gmra.mrb[4].mxu0 %v15998_v59 }
  0x50   : > { %12796 = vmatprep.mubr.f32.mxu0 %v16002_v60 }
  0x53   : > { %12797 = vmatmul.mubr.f32.gmra.mrb[6].mxu0 %v16006_v61 }
  0x54   : > { %12799 = vmatprep.mubr.f32.mxu0 %v16010_v63 }
  0x57   : > { %12800 = vmatmul.mubr.f32.gmra.mrb[8].mxu0 %v16014_v1 }
  0x58   : > { %12806 = vmatprep.mubr.f32.mxu0 %v15846_v37 }
  0x5b   : > { %12807 = vmatmul.mubr.f32.vlgmr.msra.gmra.mrb[0].mxu0 %v15857_v43 }
  0x5c   : > { %13997 = vmatpush3.bf16.msra.mxu0 %v15786_v4  ;;  %12809 = vmatprep.mubr.f32.mxu0 %v15863_v48  ;;  %v1261_v4 = vsel %vm394_vm1, %v15809_v11, 0 }
  0x5d   : > { %13999 = vmatprep.subr.bf16.mxu0 %v16019_v2  ;;  %v16036_v15 = vand.u32 4294901760, %v1261_v4 }
  0x5f   : > { %12810 = vmatmul.mubr.f32.gmra.mrb[2].mxu0 %v15883_v0  ;;  %v16047_v11 = vsub.f32 %v1261_v4, %v16036_v15  ;;  %v1361_v4 = vsub.f32 %v16058_v18, %v16075_v5 }
  0x60   : > { %12812 = vmatprep.mubr.f32.mxu0 %v15887_v3 }
  0x61   : > { %v21112_v28 = vand.u32 4294901760, %v16047_v11  ;;  %v16123_v53 = vand.u32 4294901760, %v1361_v4  ;;  %v16141_v4 = vand.u32 4294901760, %v16117_v57  ;;  %v21718_v46 = vand.u32 4294901760, %v16047_v11 }
  0x63   : > { %12813 = vmatmul.mubr.f32.gmra.mrb[4].mxu0 %v15897_v20  ;;  %v1351_v8 = vsub.f32 %v16047_v11, %v21112_v28 }
  0x64   : > { %12815 = vmatprep.mubr.f32.mxu0 %v15900_v21 }
  0x65   : > { %v1352_v14 = vand.u32 4294901760, %v1351_v8  ;;  %v1279_v8 = vsel %vm394_vm1, %v15879_v62, 0 }
  0x66   : > { %v16134_v40 = vand.u32 4294901760, %v1279_v8 }
  0x67   : > { %12816 = vmatmul.mubr.f32.gmra.mrb[6].mxu0 %v15906_v25 }
  0x68   : > { %12818 = vmatprep.mubr.f32.mxu0 %v15909_v26 }
  0x6b   : > { %12819 = vmatmul.mubr.f32.gmra.mrb[8].mxu0 %v15913_v30 }
  0x6c   : > { %12825 = vmatprep.mubr.f32.mxu0 %v15846_v37  ;;  %v1269_v37 = vsel %vm394_vm1, %v15831_v29, 0  ;;  %v1271_v29 = vsel %vm394_vm1, %v15840_v35, 0  ;;  %v16091_v35 = vand.u32 4294901760, %v16068_v39 }
  0x6d   : > { %v16064_v27 = vand.u32 4294901760, %v1269_v37  ;;  %v16087_v50 = vand.u32 4294901760, %v1271_v29 }
  0x6e   : > { %v1371_v42 = vsub.f32 %v16068_v39, %v16091_v35 }
  0x6f   : > { %12826 = vmatmul.mubr.f32.vlgmr.msra.gmra.mrb[0].mxu0 %v15857_v43  ;;  %v16085_v49 = vsub.f32 %v1269_v37, %v16064_v27  ;;  %v16109_v19 = vsub.f32 %v1271_v29, %v16087_v50  ;;  %v16119_v37 = vand.u32 4294901760, %v1277_v10  ;;  %v1381_v29 = vsub.f32 %v16078_v7, %v16102_v12 }
  0x70   : > { %14001 = vmatpush3.bf16.msra.mxu0 %v16019_v2  ;;  %12828 = vmatprep.mubr.f32.mxu0 %v15863_v48 }
  0x71   : > { %14003 = vmatprep.subr.bf16.mxu0 %v14002_v17  ;;  %v16106_v16 = vand.u32 4294901760, %v16085_v49  ;;  %v16129_v28 = vand.u32 4294901760, %v16109_v19 }
  0x73   : > { %12829 = vmatmul.mubr.f32.gmra.mrb[2].mxu0 %v15883_v0  ;;  %v1391_v62 = vsub.f32 %v16085_v49, %v16106_v16 }
  0x74   : > { %12831 = vmatprep.mubr.f32.mxu0 %v15887_v3 }
  0x77   : > { %12832 = vmatmul.mubr.f32.gmra.mrb[4].mxu0 %v15897_v20  ;;  %v16157_v20 = vsub.f32 %v1279_v8, %v16134_v40 }
  0x78   : > { %12834 = vmatprep.mubr.f32.mxu0 %v15900_v21  ;;  %v14006_v21 = vpack.c.bf16 %v15958_v45, %v15956_v44  ;;  %v1411_v44 = vsub.f32 %v16117_v57, %v16141_v4 }
  0x7b   : > { %12835 = vmatmul.mubr.f32.gmra.mrb[6].mxu0 %v15906_v25  ;;  %v16136_v25 = vand.u32 4294901760, %v1371_v42 }
  0x7c   : > { %12837 = vmatprep.mubr.f32.mxu0 %v15909_v26  ;;  %v16132_v26 = vsub.f32 %v1275_v9, %v16111_v23  ;;  %v16149_v9 = vand.u32 4294901760, %v1381_v29 }
  0x7e   : > { %v16154_v42 = vand.u32 4294901760, %v16132_v26 }
  0x7f   : > { %12838 = vmatmul.mubr.f32.gmra.mrb[8].mxu0 %v15913_v30  ;;  %v16144_v30 = vsub.f32 %v1277_v10, %v16119_v37  ;;  %v16160_v10 = vand.u32 4294901760, %v1391_v62  ;;  %v16176_v62 = vand.u32 4294901760, %v1411_v44 }
  0x80   : > { %12844 = vmatprep.mubr.f32.mxu0 %v1352_v14  ;;  %v1401_v14 = vsub.f32 %v16109_v19, %v16129_v28  ;;  %v1421_v8 = vsub.f32 %v16132_v26, %v16154_v42 }
  0x81   : > { %v16165_v45 = vand.u32 4294901760, %v16144_v30 }
  0x82   : > { %v16168_v29 = vand.u32 4294901760, %v1401_v14  ;;  %v16181_v0 = vand.u32 4294901760, %v1421_v8 }
  0x83   : > { %12845 = vmatmul.mubr.f32.vlgmr.msra.gmra.mrb[0].mxu0 %v16123_v53  ;;  %v1431_v3 = vsub.f32 %v16144_v30, %v16165_v45 }
  0x84   : > { %14005 = vmatpush3.bf16.msra.mxu0 %v14002_v17  ;;  %12847 = vmatprep.mubr.f32.mxu0 %v16136_v25  ;;  %v16173_v17 = vand.u32 4294901760, %v16157_v20 }
  0x85   : > { %14007 = vmatprep.subr.bf16.mxu0 %v14006_v21  ;;  %v16186_v48 = vand.u32 4294901760, %v1431_v3  ;;  %v10891_v3 = vld [vmem:[%s21104_s1 + $0x20] sm:$0xff] }
  0x86   : > { %v1441_v14 = vsub.f32 %v16157_v20, %v16173_v17  ;;  %v2134_v44 = vand.u32 4294901760, %v10891_v3 }
  0x87   : > { %12848 = vmatmul.mubr.f32.gmra.mrb[2].mxu0 %v16149_v9 }
  0x88   : > { %12850 = vmatprep.mubr.f32.mxu0 %v16160_v10  ;;  %v16189_v43 = vand.u32 4294901760, %v1441_v14  ;;  %v2302_v14 = vsub.f32 %v10891_v3, %v2134_v44 }
  0x8a   : > { %v2303_v1 = vand.u32 4294901760, %v2302_v14 }
  0x8b   : > { %12851 = vmatmul.mubr.f32.gmra.mrb[4].mxu0 %v16168_v29 }
  0x8c   : > { %12853 = vmatprep.mubr.f32.mxu0 %v16176_v62 }
  0x8f   : > { %12854 = vmatmul.mubr.f32.gmra.mrb[6].mxu0 %v16181_v0 }
  0x90   : > { %12856 = vmatprep.mubr.f32.mxu0 %v16186_v48 }
  0x93   : > { %12857 = vmatmul.mubr.f32.gmra.mrb[8].mxu0 %v16189_v43 }
  0x94   : > { %12863 = vmatprep.mubr.f32.mxu0 %v16036_v15 }
  0x97   : > { %12864 = vmatmul.mubr.f32.vlgmr.msra.gmra.mrb[0].mxu0 %v16043_v22 }
  0x98   : > { %14009 = vmatpush3.bf16.msra.mxu0 %v14006_v21  ;;  %12866 = vmatprep.mubr.f32.mxu0 %v16053_v13  ;;  %v10892_v21 = vld [vmem:[%s21104_s1 + $0x28] sm:$0xff] }
  0x99   : > { %14011 = vmatprep.subr.bf16.mxu0 %v16019_v2  ;;  %v2137_v8 = vand.u32 4294901760, %v10892_v21 }
  0x9b   : > { %12867 = vmatmul.mubr.f32.gmra.mrb[2].mxu0 %v16060_v24  ;;  %v2309_v51 = vsub.f32 %v10892_v21, %v2137_v8 }
  0x9c   : > { %12869 = vmatprep.mubr.f32.mxu0 %v16064_v27 }
  0x9d   : > { %v2310_v47 = vand.u32 4294901760, %v2309_v51 }
  0x9f   : > { %12870 = vmatmul.mubr.f32.gmra.mrb[4].mxu0 %v16087_v50  ;;  %v16220_v63 = vpack.c.bf16 %v2310_v47, %v2303_v1 }
  0xa0   : > { %12872 = vmatprep.mubr.f32.mxu0 %v16093_v36 }
  0xa3   : > { %12873 = vmatmul.mubr.f32.gmra.mrb[6].mxu0 %v16111_v23 }
  0xa4   : > { %12875 = vmatprep.mubr.f32.mxu0 %v16119_v37 }
  0xa7   : > { %12876 = vmatmul.mubr.f32.gmra.mrb[8].mxu0 %v16134_v40 }
  0xa8   : > { %12882 = vmatprep.mubr.f32.mxu0 %v16047_v11  ;;  %v2311_v11 = vsub.f32 %v2309_v51, %v2310_v47  ;;  %v16260_v47 = vld [vmem:[%s15799_s12 + $0xa0] sm:$0xff] }
  0xaa   : > { %v2312_v3 = vand.u32 4294901760, %v2311_v11 }
  0xab   : > { %12883 = vmatmul.mubr.f32.vlgmr.msra.gmra.mrb[0].mxu0 %v16058_v18 }
  0xac   : > { %14013 = vmatpush3.bf16.msra.mxu0 %v16019_v2  ;;  %12885 = vmatprep.mubr.f32.mxu0 %v16068_v39 }
  0xad   : > { %14015 = vmatprep.subr.bf16.mxu0 %v15974_v52 }
  0xaf   : > { %12886 = vmatmul.mubr.f32.gmra.mrb[2].mxu0 %v16078_v7 }
  0xb0   : > { %12888 = vmatprep.mubr.f32.mxu0 %v16085_v49 }
  0xb3   : > { %12889 = vmatmul.mubr.f32.gmra.mrb[4].mxu0 %v16109_v19 }
  0xb4   : > { %12891 = vmatprep.mubr.f32.mxu0 %v16117_v57 }
  0xb7   : > { %12892 = vmatmul.mubr.f32.gmra.mrb[6].mxu0 %v16132_v26 }
  0xb8   : > { %12894 = vmatprep.mubr.f32.mxu0 %v16144_v30 }
  0xbb   : > { %12895 = vmatmul.mubr.f32.gmra.mrb[8].mxu0 %v16157_v20 }
  0xbc   : > { %12901 = vmatprep.mubr.f32.mxu0 %v21718_v46  ;;  %v16238_v46 = vpack.c.bf16 %v2137_v8, %v2134_v44  ;;  %v14030_v44 = vpack.c.bf16 %v2309_v51, %v2302_v14 }
  0xbf   : > { %12902 = vmatmul.mubr.f32.vlgmr.msra.gmra.mrb[0].mxu0 %v16075_v5 }
  0xc0   : > { %14017 = vmatpush3.bf16.msra.mxu0 %v15974_v52  ;;  %12904 = vmatprep.mubr.f32.mxu0 %v16091_v35  ;;  %v2304_v52 = vsub.f32 %v2302_v14, %v2303_v1  ;;  %v2131_v1 = vsel %vm394_vm1, %v16260_v47, 0 }
  0xc1   : > { %14019 = vmatprep.subr.bf16.mxu0 %v16019_v2 }
  0xc3   : > { %12905 = vmatmul.mubr.f32.gmra.mrb[2].mxu0 %v16102_v12 }
  0xc4   : > { %12907 = vmatprep.mubr.f32.mxu0 %v16106_v16 }
  0xc7   : > { %12908 = vmatmul.mubr.f32.gmra.mrb[4].mxu0 %v16129_v28 }
  0xc8   : > { %12910 = vmatprep.mubr.f32.mxu0 %v16141_v4 }
  0xcb   : > { %12911 = vmatmul.mubr.f32.gmra.mrb[6].mxu0 %v16154_v42 }
  0xcc   : > { %12913 = vmatprep.mubr.f32.mxu0 %v16165_v45 }
  0xcf   : > { %12914 = vmatmul.mubr.f32.gmra.mrb[8].mxu0 %v16173_v17 }
  0xd0   : > { %12920 = vmatprep.mubr.f32.mxu0 %v16036_v15 }
  0xd3   : > { %12921 = vmatmul.mubr.f32.vlgmr.msra.gmra.mrb[0].mxu0 %v16043_v22 }
  0xd4   : > { %14021 = vmatpush3.bf16.msra.mxu0 %v16019_v2  ;;  %12923 = vmatprep.mubr.f32.mxu0 %v16053_v13  ;;  %v2305_v2 = vand.u32 4294901760, %v2304_v52 }
  0xd5   : > { %14023 = vmatprep.subr.bf16.mxu0 %v16238_v46 }
  0xd6   : > { %v14026_v21 = vpack.c.bf16 %v2312_v3, %v2305_v2  ;;  %v21721_v3 = vld [vmem:[#allocation15_spill] sm:$0xff] }
  0xd7   : > { %12924 = vmatmul.mubr.f32.gmra.mrb[2].mxu0 %v16060_v24 }
  0xd8   : > { %12926 = vmatprep.mubr.f32.mxu0 %v16064_v27 }
  0xdb   : > { %12927 = vmatmul.mubr.f32.gmra.mrb[4].mxu0 %v16087_v50 }
  0xdc   : > { %12929 = vmatprep.mubr.f32.mxu0 %v16093_v36 }
  0xdf   : > { %12930 = vmatmul.mubr.f32.gmra.mrb[6].mxu0 %v16111_v23 }
  0xe0   : > { %12932 = vmatprep.mubr.f32.mxu0 %v16119_v37 }
  0xe3   : > { %12933 = vmatmul.mubr.f32.gmra.mrb[8].mxu0 %v16134_v40 }
  0xe4   : > { %12939 = vmatprep.mubr.f32.mxu0 %v16036_v15  ;;  %v16267_v15 = vand.u32 4294901760, %v2131_v1 }
  0xe6   : > { %v2291_v8 = vsub.f32 %v2131_v1, %v16267_v15 }
  0xe7   : > { %12940 = vmatmul.mubr.f32.vlgmr.msra.gmra.mrb[0].mxu0 %v16043_v22 }
  0xe8   : > { %14025 = vmatpush3.bf16.msra.mxu0 %v16238_v46  ;;  %12942 = vmatprep.mubr.f32.mxu0 %v16053_v13  ;;  %v2292_v52 = vand.u32 4294901760, %v2291_v8 }
  0xe9   : > { %14027 = vmatprep.subr.bf16.mxu0 %v14026_v21 }
  0xea   : > { %v2293_v11 = vsub.f32 %v2291_v8, %v2292_v52 }
  0xeb   : > { %12943 = vmatmul.mubr.f32.gmra.mrb[2].mxu0 %v16060_v24 }
  0xec   : > { %12945 = vmatprep.mubr.f32.mxu0 %v16064_v27  ;;  %v2294_v51 = vand.u32 4294901760, %v2293_v11 }
  0xef   : > { %12946 = vmatmul.mubr.f32.gmra.mrb[4].mxu0 %v16087_v50 }
  0xf0   : > { %12948 = vmatprep.mubr.f32.mxu0 %v16093_v36 }
  0xf3   : > { %12949 = vmatmul.mubr.f32.gmra.mrb[6].mxu0 %v16111_v23 }
  0xf4   : > { %12951 = vmatprep.mubr.f32.mxu0 %v16119_v37 }
  0xf7   : > { %12952 = vmatmul.mubr.f32.gmra.mrb[8].mxu0 %v16134_v40 }
  0xf8   : > { %12958 = vmatprep.mubr.f32.mxu0 %v16123_v53 }
  0xfb   : > { %12959 = vmatmul.mubr.f32.vlgmr.msra.gmra.mrb[0].mxu0 %v16136_v25 }
  0xfc   : > { %14029 = vmatpush3.bf16.msra.mxu0 %v14026_v21  ;;  %12961 = vmatprep.mubr.f32.mxu0 %v16149_v9  ;;  %v21722_v21 = vld [vmem:[#allocation13_spill] sm:$0xff] }
  0xfd   : > { %14031 = vmatprep.subr.bf16.mxu0 %v14030_v44  ;;  %v565_v1 = vsub.f32 %v21722_v21, %v21721_v3 }
  0xff   : > { %12962 = vmatmul.mubr.f32.gmra.mrb[2].mxu0 %v16160_v10 }
 0x100   : > { %12964 = vmatprep.mubr.f32.mxu0 %v16168_v29  ;;  %v545_v29 = vsub.f32 %v15954_v41, %v16002_v60 }
 0x102   : > { %v16376_v2 = vand.u32 4294901760, %v545_v29 }
 0x103   : > { %12965 = vmatmul.mubr.f32.gmra.mrb[4].mxu0 %v16176_v62  ;;  %v21720_v62 = vld [vmem:[#allocation12_spill] sm:$0xff] }
 0x104   : > { %12967 = vmatprep.mubr.f32.mxu0 %v16181_v0  ;;  %v555_v14 = vsub.f32 %v21720_v62, %v16006_v61 }
 0x107   : > { %12968 = vmatmul.mubr.f32.gmra.mrb[6].mxu0 %v16186_v48  ;;  %v10894_v48 = vld [vmem:[%s21104_s1 + $0x38] sm:$0xff] }
 0x108   : > { %12970 = vmatprep.mubr.f32.mxu0 %v16189_v43  ;;  %v10893_v43 = vld [vmem:[%s21104_s1 + $0x30] sm:$0xff]  ;;  %v3002_v25 = vand.u32 4294901760, %v10894_v48 }
 0x109   : > { %v2999_v0 = vand.u32 4294901760, %v10893_v43 }
 0x10b   : > { %12971 = vmatmul.mubr.f32.gmra.mrb[8].mxu0 %v2294_v51  ;;  %v16303_v53 = vsub.f32 %v10893_v43, %v2999_v0  ;;  %v16391_v51 = vand.u32 4294901760, %v565_v1  ;;  %v2990_v43 = vrot.slane %v16260_v47, 1  ;;  %v10913_v47 = vld [vmem:[%s21107_s4 + $0x200] sm:$0xff] }
 0x10c   : > { %12977 = vmatprep.mubr.f32.mxu0 %v16043_v22 }
 0x10f   : > { %12978 = vmatmul.mubr.f32.vlgmr.msra.gmra.mrb[0].mxu0 %v16053_v13 }
 0x110   : > { %14033 = vmatpush3.bf16.msra.mxu0 %v14030_v44  ;;  %12980 = vmatprep.mubr.f32.mxu0 %v16060_v24  ;;  %v337_v44 = vld [vmem:[%s15799_s12 + $0xa8] sm:$0x1] }
 0x111   : > { %14035 = vmatprep.subr.bf16.mxu0 %v16238_v46 }
 0x113   : > { %12981 = vmatmul.mubr.f32.gmra.mrb[2].mxu0 %v16064_v27 }
 0x114   : > { %12983 = vmatprep.mubr.f32.mxu0 %v16087_v50 }
 0x117   : > { %12984 = vmatmul.mubr.f32.gmra.mrb[4].mxu0 %v16093_v36 }
 0x118   : > { %12986 = vmatprep.mubr.f32.mxu0 %v16111_v23 }
 0x11b   : > { %12987 = vmatmul.mubr.f32.gmra.mrb[6].mxu0 %v16119_v37 }
 0x11c   : > { %12989 = vmatprep.mubr.f32.mxu0 %v16134_v40 }
 0x11f   : > { %12990 = vmatmul.mubr.f32.gmra.mrb[8].mxu0 %v16267_v15 }
 0x120   : > { %12996 = vmatprep.mubr.f32.mxu0 %v16058_v18  ;;  %v16305_v18 = vsub.f32 %v10894_v48, %v3002_v25  ;;  %v2991_v48 = vrot.slane %v337_v44, 1  ;;  %v16468_v44 = vld [vmem:[%s21107_s4 + $0x228] sm:$0xff] }
 0x123   : > { %12997 = vmatmul.mubr.f32.vlgmr.msra.gmra.mrb[0].mxu0 %v16068_v39  ;;  %v3168_v39 = vand.u32 4294901760, %v16303_v53 }
 0x124   : > { %14037 = vmatpush3.bf16.msra.mxu0 %v16238_v46  ;;  %12999 = vmatprep.mubr.f32.mxu0 %v16078_v7  ;;  %v3175_v7 = vand.u32 4294901760, %v16305_v18 }
 0x125   : > { %14039 = vmatprep.subr.bf16.mxu0 %v16220_v63 }
 0x126   : > { %v16312_v9 = vpack.c.bf16 %v3175_v7, %v3168_v39 }
 0x127   : > { %13000 = vmatmul.mubr.f32.gmra.mrb[2].mxu0 %v16085_v49 }
 0x128   : > { %13002 = vmatprep.mubr.f32.mxu0 %v16109_v19  ;;  %v3176_v19 = vsub.f32 %v16305_v18, %v3175_v7  ;;  %v16419_v7 = vld [vmem:[%s21107_s4 + $0x210] sm:$0xff] }
 0x12a   : > { %v3177_v10 = vand.u32 4294901760, %v3176_v19 }
 0x12b   : > { %13003 = vmatmul.mubr.f32.gmra.mrb[4].mxu0 %v16117_v57  ;;  %v525_v57 = vsub.f32 %v15940_v38, %v15993_v58 }
 0x12c   : > { %13005 = vmatprep.mubr.f32.mxu0 %v16132_v26  ;;  %v495_v26 = vsub.f32 %v15923_v33, %v15980_v54 }
 0x12e   : > { %v16344_v49 = vand.u32 4294901760, %v495_v26  ;;  %v16424_v26 = vld [vmem:[%s21107_s4 + $0x218] sm:$0xff] }
 0x12f   : > { %13006 = vmatmul.mubr.f32.gmra.mrb[6].mxu0 %v16144_v30  ;;  %v505_v30 = vsub.f32 %v15927_v34, %v15985_v55 }
 0x130   : > { %13008 = vmatprep.mubr.f32.mxu0 %v16157_v20  ;;  %v16327_v20 = vpack.c.bf16 %v3002_v25, %v2999_v0  ;;  %v4133_v0 = vand.u32 4294901760, %v10913_v47 }
 0x133   : > { %13009 = vmatmul.mubr.f32.gmra.mrb[8].mxu0 %v2291_v8  ;;  %v21723_v8 = vld [vmem:[#allocation16_spill] sm:$0xff] }
 0x134   : > { %13015 = vmatprep.mubr.f32.mxu0 %v16075_v5 }
 0x137   : > { %13016 = vmatmul.mubr.f32.vlgmr.msra.gmra.mrb[0].mxu0 %v16091_v35  ;;  %v515_v35 = vsub.f32 %v15935_v31, %v15989_v56 }
 0x138   : > { %14041 = vmatpush3.bf16.msra.mxu0 %v16220_v63  ;;  %13018 = vmatprep.mubr.f32.mxu0 %v16102_v12  ;;  %v21719_v63 = vand.u32 4294901760, %v15918_v32  ;;  %v16348_v12 = vand.u32 4294901760, %v505_v30 }
 0x139   : > { %14043 = vmatprep.subr.bf16.mxu0 %v16238_v46 }
 0x13b   : > { %13019 = vmatmul.mubr.f32.gmra.mrb[2].mxu0 %v16106_v16  ;;  %v3169_v16 = vsub.f32 %v16303_v53, %v3168_v39 }
 0x13c   : > { %13021 = vmatprep.mubr.f32.mxu0 %v16129_v28  ;;  %v485_v28 = vsub.f32 %v15918_v32, %v21719_v63  ;;  %v16358_v32 = vand.u32 4294901760, %v515_v35  ;;  %v4139_v63 = vand.u32 4294901760, %v16419_v7  ;;  %v16437_v35 = vld [vmem:[%s21107_s4 + $0x198] sm:$0xff] }
 0x13d   : > { %v4094_v1 = vand.u32 4294901760, %v16437_v35 }
 0x13e   : > { %v486_v5 = vand.u32 4294901760, %v485_v28  ;;  %v4142_v28 = vand.u32 4294901760, %v16424_v26  ;;  %v16457_v29 = vsub.f32 %v16419_v7, %v4139_v63 }
 0x13f   : > { %13022 = vmatmul.mubr.f32.gmra.mrb[4].mxu0 %v16141_v4  ;;  %v535_v4 = vsub.f32 %v15950_v6, %v15998_v59 }
 0x140   : > { %13024 = vmatprep.mubr.f32.mxu0 %v16154_v42  ;;  %12730 = vmatprep.mubr.f32.mxu1 %v486_v5  ;;  %v3170_v42 = vand.u32 4294901760, %v3169_v16  ;;  %v16432_v5 = vld [vmem:[%s21107_s4 + $0x190] sm:$0xff]  ;;  %v16439_v16 = vsub.f32 %v10913_v47, %v4133_v0 }
 0x141   : > { %12731 = vmatmul.mubr.f32.vlgmr.msra.gmra.mrb[0].mxu1 %v16344_v49 }
 0x142   : > { %12733 = vmatprep.mubr.f32.mxu1 %v16348_v12 }
 0x143   : > { %13025 = vmatmul.mubr.f32.gmra.mrb[6].mxu0 %v16165_v45  ;;  %v16362_v45 = vand.u32 4294901760, %v525_v57 }
 0x144   : > { %13027 = vmatprep.mubr.f32.mxu0 %v16173_v17  ;;  %v16370_v17 = vand.u32 4294901760, %v535_v4  ;;  %v4091_v4 = vand.u32 4294901760, %v16432_v5 }
 0x145   : > { %12734 = vmatmul.mubr.f32.gmra.mrb[2].mxu1 %v16358_v32 }
 0x146   : > { %12736 = vmatprep.mubr.f32.mxu1 %v16362_v45 }
 0x147   : > { %13028 = vmatmul.mubr.f32.gmra.mrb[8].mxu0 %v2292_v52  ;;  %v21724_v52 = vld [vmem:[#allocation14_spill] sm:$0xff] }
 0x148   : > { %13034 = vmatprep.mubr.f32.mxu0 %v16043_v22  ;;  %v575_v11 = vsub.f32 %v21724_v52, %v21723_v8 }
 0x149   : > { %12737 = vmatmul.mubr.f32.gmra.mrb[4].mxu1 %v16370_v17 }
 0x14a   : > { %12739 = vmatprep.mubr.f32.mxu1 %v16376_v2 }
 0x14b   : > { %13035 = vmatmul.mubr.f32.vlgmr.msra.gmra.mrb[0].mxu0 %v16053_v13 }
 0x14c   : > { %14045 = vmatpush3.bf16.msra.mxu0 %v16238_v46  ;;  %13037 = vmatprep.mubr.f32.mxu0 %v16060_v24  ;;  %v16374_v46 = vpack.c.bf16 %v3177_v10, %v3170_v42  ;;  %v16449_v42 = vld [vmem:[%s21107_s4 + $0x220] sm:$0xff] }
 0x14d   : > { %14047 = vmatprep.subr.bf16.mxu0 %v16327_v20 }
 0x14f   : > { %13038 = vmatmul.mubr.f32.gmra.mrb[2].mxu0 %v16064_v27 }
 0x150   : > { %13040 = vmatprep.mubr.f32.mxu0 %v16087_v50 }
 0x153   : > { %13041 = vmatmul.mubr.f32.gmra.mrb[4].mxu0 %v16093_v36 }
 0x154   : > { %13043 = vmatprep.mubr.f32.mxu0 %v16111_v23 }
 0x157   : > { %13044 = vmatmul.mubr.f32.gmra.mrb[6].mxu0 %v16119_v37 }
 0x158   : > { %13046 = vmatprep.mubr.f32.mxu0 %v16134_v40 }
 0x15b   : > { %13047 = vmatmul.mubr.f32.gmra.mrb[8].mxu0 %v16267_v15 }
 0x15c   : > { %13053 = vmatprep.mubr.f32.mxu0 %v16043_v22  ;;  %v16386_v22 = vand.u32 4294901760, %v555_v14  ;;  %v16462_v14 = vsub.f32 %v16424_v26, %v4142_v28  ;;  %v16628_v26 = vld [vmem:[%s21107_s4 + $0x240] sm:$0xff] }
 0x15e   : > { %12740 = vmatmul.mubr.f32.gmra.mrb[6].mxu1 %v16386_v22  ;;  %v14138_v47 = vpack.c.bf16 %v16462_v14, %v16457_v29 }
 0x15f   : > { %13054 = vmatmul.mubr.f32.vlgmr.msra.gmra.mrb[0].mxu0 %v16053_v13  ;;  %12742 = vmatprep.mubr.f32.mxu1 %v16391_v51  ;;  %v16398_v13 = vand.u32 4294901760, %v575_v11  ;;  %v16476_v11 = vsub.f32 %v16432_v5, %v4091_v4 }
 0x160   : > { %14049 = vmatpush3.bf16.msra.mxu0 %v16327_v20  ;;  %13056 = vmatprep.mubr.f32.mxu0 %v16060_v24  ;;  %v2992_v24 = vsel %vm360_vm0, %v2990_v43, %v2991_v48 }
 0x161   : > { %14051 = vmatprep.subr.bf16.mxu0 %v16374_v46  ;;  %v2996_v30 = vsel %vm394_vm1, %v2992_v24, 0 }
 0x162   : > { %12743 = vmatmul.mubr.f32.gmra.mrb[8].mxu1 %v16398_v13 }
 0x163   : > { %13057 = vmatmul.mubr.f32.gmra.mrb[2].mxu0 %v16064_v27  ;;  %v10914_v27 = vld [vmem:[%s21107_s4 + $0x208] sm:$0xff] }
 0x164   : > { %13059 = vmatprep.mubr.f32.mxu0 %v16087_v50  ;;  %v10897_v50 = vld [vmem:[%s21107_s4 + $0x180] sm:$0xff]  ;;  %v4136_v25 = vand.u32 4294901760, %v10914_v27 }
 0x165   : > { %v4085_v39 = vand.u32 4294901760, %v10897_v50 }
 0x166   : > { %v16441_v19 = vsub.f32 %v10914_v27, %v4136_v25  ;;  %v16478_v43 = vpack.c.bf16 %v4136_v25, %v4133_v0  ;;  %v4145_v27 = vand.u32 4294901760, %v16449_v42  ;;  %v16494_v0 = vand.u32 4294901760, %v2996_v30 }
 0x167   : > { %13060 = vmatmul.mubr.f32.gmra.mrb[4].mxu0 %v16093_v36  ;;  %v10898_v36 = vld [vmem:[%s21107_s4 + $0x188] sm:$0xff]  ;;  %v16443_v57 = vsub.f32 %v10897_v50, %v4085_v39  ;;  %v4148_v50 = vand.u32 4294901760, %v16468_v44 }
 0x168   : > { %13062 = vmatprep.mubr.f32.mxu0 %v16111_v23  ;;  %v4088_v23 = vand.u32 4294901760, %v10898_v36  ;;  %21725 = vst [vmem:[#allocation12_spill] sm:$0xff] %v16478_v43 }
 0x16a   : > { %v16452_v10 = vsub.f32 %v10898_v36, %v4088_v23  ;;  %v16480_v48 = vpack.c.bf16 %v4088_v23, %v4085_v39  ;;  %v16501_v36 = vsub.f32 %v16449_v42, %v4145_v27  ;;  %v16507_v39 = vsub.f32 %v16468_v44, %v4148_v50 }
 0x16b   : > { %13063 = vmatmul.mubr.f32.gmra.mrb[6].mxu0 %v16119_v37  ;;  %v14134_v37 = vpack.c.bf16 %v16441_v19, %v16439_v16 }
 0x16c   : > { %13065 = vmatprep.mubr.f32.mxu0 %v16134_v40  ;;  %21726 = vst [vmem:[#allocation15_spill] sm:$0xff] %v16480_v48  ;;  %v14136_v24 = vpack.c.bf16 %v16452_v10, %v16443_v57  ;;  %v16489_v40 = vsub.f32 %v16437_v35, %v4094_v1  ;;  %v14142_v23 = vpack.c.bf16 %v16507_v39, %v16501_v36  ;;  %v4157_v35 = vand.u32 4294901760, %v16628_v26 }
 0x16d   : > { %14135 = vmatprep.subr.bf16.mxu1 %v14134_v37  ;;  %v3156_v37 = vsub.f32 %v2996_v30, %v16494_v0 }
 0x16e   : > { %14137 = vmatpush3.bf16.msra.mxu1 %v14136_v24  ;;  %v14140_v25 = vpack.c.bf16 %v16489_v40, %v16476_v11  ;;  %v16650_v24 = vld [vmem:[%s21107_s4 + $0x1c8] sm:$0xff] }
 0x16f   : > { %13066 = vmatmul.mubr.f32.gmra.mrb[8].mxu0 %v16267_v15  ;;  %14139 = vmatprep.subr.bf16.mxu1 %v14138_v47  ;;  %v14054_v15 = vpack.c.bf16 %v16305_v18, %v16303_v53 }
 0x170   : > { %13072 = vmatprep.mubr.f32.mxu0 %v16344_v49  ;;  %v3157_v49 = vand.u32 4294901760, %v3156_v37 }
 0x172   : > { %14141 = vmatpush3.bf16.msra.mxu1 %v14140_v25  ;;  %v3158_v53 = vsub.f32 %v3156_v37, %v3157_v49  ;;  %v4112_v25 = vand.u32 4294901760, %v16650_v24 }
 0x173   : > { %13073 = vmatmul.mubr.f32.vlgmr.msra.gmra.mrb[0].mxu0 %v16348_v12  ;;  %14143 = vmatprep.subr.bf16.mxu1 %v14142_v23  ;;  %v21727_v12 = vld [vmem:[#allocation3_spill] sm:$0xff]  ;;  %v16666_v23 = vsub.f32 %v16628_v26, %v4157_v35 }
 0x174   : > { %14053 = vmatpush3.bf16.msra.mxu0 %v16374_v46  ;;  %13075 = vmatprep.mubr.f32.mxu0 %v16358_v32  ;;  %v3159_v18 = vand.u32 4294901760, %v3158_v53  ;;  %v21728_v32 = vld [vmem:[#allocation4_spill] sm:$0xff]  ;;  %v21731_v46 = vld [vmem:[#allocation7_spill] sm:$0xff]  ;;  %v16685_v44 = vsub.f32 %v16650_v24, %v4112_v25 }
 0x175   : > { %14055 = vmatprep.subr.bf16.mxu0 %v14054_v15 }
 0x177   : > { %13076 = vmatmul.mubr.f32.gmra.mrb[2].mxu0 %v16362_v45  ;;  %v21729_v45 = vld [vmem:[#allocation5_spill] sm:$0xff] }
 0x178   : > { %13078 = vmatprep.mubr.f32.mxu0 %v16370_v17  ;;  %v21730_v17 = vld [vmem:[#allocation6_spill] sm:$0xff] }
 0x17b   : > { %13079 = vmatmul.mubr.f32.gmra.mrb[4].mxu0 %v16376_v2  ;;  %v21732_v2 = vld [vmem:[#allocation8_spill] sm:$0xff] }
 0x17c   : > { %13081 = vmatprep.mubr.f32.mxu0 %v16386_v22  ;;  %v21733_v22 = vld [vmem:[#allocation9_spill] sm:$0xff] }
 0x17f   : > { %13082 = vmatmul.mubr.f32.gmra.mrb[6].mxu0 %v16391_v51  ;;  %v21734_v51 = vld [vmem:[#allocation10_spill] sm:$0xff] }
 0x180   : > { %13084 = vmatprep.mubr.f32.mxu0 %v16398_v13  ;;  %v21735_v13 = vld [vmem:[#allocation11_spill] sm:$0xff] }
 0x183   : > { %13085 = vmatmul.mubr.f32.gmra.mrb[8].mxu0 %v3159_v18 }
 0x184   : > { %13091 = vmatprep.mubr.f32.mxu0 %v21727_v12 }
 0x187   : > { %13092 = vmatmul.mubr.f32.vlgmr.msra.gmra.mrb[0].mxu0 %v21728_v32 }
 0x188   : > { %14057 = vmatpush3.bf16.msra.mxu0 %v14054_v15  ;;  %13094 = vmatprep.mubr.f32.mxu0 %v21729_v45  ;;  %v16661_v15 = vpack.c.bf16 %v4148_v50, %v4145_v27  ;;  %v16690_v27 = vld [vmem:[%s21107_s4 + $0x250] sm:$0xff]  ;;  %v16695_v50 = vld [vmem:[%s21107_s4 + $0x258] sm:$0xff] }
 0x189   : > { %14059 = vmatprep.subr.bf16.mxu0 %v16327_v20 }
 0x18a   : > { %21738 = vst [vmem:[#allocation14_spill] sm:$0xff] %v16661_v15 }
 0x18b   : > { %13095 = vmatmul.mubr.f32.gmra.mrb[2].mxu0 %v21730_v17 }
 0x18c   : > { %13097 = vmatprep.mubr.f32.mxu0 %v21731_v46 }
 0x18f   : > { %13098 = vmatmul.mubr.f32.gmra.mrb[4].mxu0 %v21732_v2 }
 0x190   : > { %13100 = vmatprep.mubr.f32.mxu0 %v21733_v22 }
 0x193   : > { %13101 = vmatmul.mubr.f32.gmra.mrb[6].mxu0 %v21734_v51 }
 0x194   : > { %13103 = vmatprep.mubr.f32.mxu0 %v21735_v13 }
 0x197   : > { %13104 = vmatmul.mubr.f32.gmra.mrb[8].mxu0 %v16494_v0 }
 0x198   : > { %13110 = vmatprep.mubr.f32.mxu0 %v15923_v33  ;;  %v10901_v33 = vld [vmem:[%s21107_s4 + $0x1a0] sm:$0xff] }
 0x19b   : > { %13111 = vmatmul.mubr.f32.vlgmr.msra.gmra.mrb[0].mxu0 %v15927_v34  ;;  %v10902_v34 = vld [vmem:[%s21107_s4 + $0x1a8] sm:$0xff] }
 0x19c   : > { %14061 = vmatpush3.bf16.msra.mxu0 %v16327_v20  ;;  %13113 = vmatprep.mubr.f32.mxu0 %v15935_v31  ;;  %v4097_v31 = vand.u32 4294901760, %v10901_v33 }
 0x19d   : > { %14063 = vmatprep.subr.bf16.mxu0 %v16312_v9 }
 0x19f   : > { %13114 = vmatmul.mubr.f32.gmra.mrb[2].mxu0 %v15940_v38  ;;  %v4100_v38 = vand.u32 4294901760, %v10902_v34 }
 0x1a0   : > { %13116 = vmatprep.mubr.f32.mxu0 %v15950_v6  ;;  %v16585_v6 = vsub.f32 %v10901_v33, %v4097_v31 }
 0x1a1   : > { %v16675_v53 = vpack.c.bf16 %v4100_v38, %v4097_v31 }
 0x1a3   : > { %13117 = vmatmul.mubr.f32.gmra.mrb[4].mxu0 %v15954_v41  ;;  %v16587_v41 = vsub.f32 %v10902_v34, %v4100_v38  ;;  %21739 = vst [vmem:[#allocation3_spill] sm:$0xff] %v16675_v53 }
 0x1a4   : > { %13119 = vmatprep.mubr.f32.mxu0 %v21720_v62  ;;  %v16607_v62 = vpack.c.bf16 %v4142_v28, %v4139_v63  ;;  %v16633_v63 = vld [vmem:[%s21107_s4 + $0x248] sm:$0xff] }
 0x1a6   : > { %21736 = vst [vmem:[#allocation13_spill] sm:$0xff] %v16607_v62 }
 0x1a7   : > { %13120 = vmatmul.mubr.f32.gmra.mrb[6].mxu0 %v21722_v21 }
 0x1a8   : > { %13122 = vmatprep.mubr.f32.mxu0 %v21724_v52  ;;  %v16619_v52 = vpack.c.bf16 %v4094_v1, %v4091_v4  ;;  %v4160_v4 = vand.u32 4294901760, %v16633_v63  ;;  %v16645_v1 = vld [vmem:[%s21107_s4 + $0x1c0] sm:$0xff] }
 0x1aa   : > { %21737 = vst [vmem:[#allocation16_spill] sm:$0xff] %v16619_v52 }
 0x1ab   : > { %13123 = vmatmul.mubr.f32.gmra.mrb[8].mxu0 %v3156_v37  ;;  %v16671_v37 = vsub.f32 %v16633_v63, %v4160_v4 }
 0x1ac   : > { %13129 = vmatprep.mubr.f32.mxu0 %v15980_v54  ;;  %v10919_v54 = vld [vmem:[%s21107_s4 + $0x230] sm:$0xff] }
 0x1af   : > { %13130 = vmatmul.mubr.f32.vlgmr.msra.gmra.mrb[0].mxu0 %v15985_v55  ;;  %v10920_v55 = vld [vmem:[%s21107_s4 + $0x238] sm:$0xff] }
 0x1b0   : > { %14065 = vmatpush3.bf16.msra.mxu0 %v16312_v9  ;;  %13132 = vmatprep.mubr.f32.mxu0 %v15989_v56  ;;  %v4151_v56 = vand.u32 4294901760, %v10919_v54 }
 0x1b1   : > { %14067 = vmatprep.subr.bf16.mxu0 %v16327_v20 }
 0x1b3   : > { %13133 = vmatmul.mubr.f32.gmra.mrb[2].mxu0 %v15993_v58  ;;  %v4154_v58 = vand.u32 4294901760, %v10920_v55 }
 0x1b4   : > { %13135 = vmatprep.mubr.f32.mxu0 %v15998_v59  ;;  %v10903_v59 = vld [vmem:[%s21107_s4 + $0x1b0] sm:$0xff] }
 0x1b5   : > { %v4103_v9 = vand.u32 4294901760, %v10903_v59  ;;  %v16611_v21 = vsub.f32 %v10920_v55, %v4154_v58  ;;  %v16746_v55 = vld [vmem:[%s21107_s4 + $0x260] sm:$0xff] }
 0x1b7   : > { %13136 = vmatmul.mubr.f32.gmra.mrb[4].mxu0 %v16002_v60  ;;  %v10904_v60 = vld [vmem:[%s21107_s4 + $0x1b8] sm:$0xff]  ;;  %v16621_v30 = vsub.f32 %v10903_v59, %v4103_v9 }
 0x1b8   : > { %13138 = vmatprep.mubr.f32.mxu0 %v16006_v61  ;;  %v14144_v61 = vpack.c.bf16 %v16587_v41, %v16585_v6 }
 0x1ba   : > { %14145 = vmatpush3.bf16.msra.mxu1 %v14144_v61 }
 0x1bb   : > { %13139 = vmatmul.mubr.f32.gmra.mrb[6].mxu0 %v21721_v3  ;;  %v16609_v3 = vsub.f32 %v10919_v54, %v4151_v56 }
 0x1bc   : > { %13141 = vmatprep.mubr.f32.mxu0 %v21723_v8 }
 0x1bd   : > { %v14146_v5 = vpack.c.bf16 %v16611_v21, %v16609_v3 }
 0x1bf   : > { %13142 = vmatmul.mubr.f32.gmra.mrb[8].mxu0 %v3157_v49  ;;  %14147 = vmatprep.subr.bf16.mxu1 %v14146_v5 }
 0x1c0   : > { %13148 = vmatprep.mubr.f32.mxu0 %v21727_v12 }
 0x1c3   : > { %13149 = vmatmul.mubr.f32.vlgmr.msra.gmra.mrb[0].mxu0 %v21728_v32 }
 0x1c4   : > { %14069 = vmatpush3.bf16.msra.mxu0 %v16327_v20  ;;  %13151 = vmatprep.mubr.f32.mxu0 %v21729_v45  ;;  %v4106_v20 = vand.u32 4294901760, %v10904_v60 }
 0x1c5   : > { %14071 = vmatprep.subr.bf16.mxu0 %v16478_v43 }
 0x1c6   : > { %v16623_v7 = vsub.f32 %v10904_v60, %v4106_v20  ;;  %v16731_v31 = vpack.c.bf16 %v4106_v20, %v4103_v9  ;;  %v21148_v60 = vand.u32 4294901760, %v16746_v55  ;;  %v16763_v9 = vld [vmem:[%s21107_s4 + $0x1e0] sm:$0xff]  ;;  %v16768_v20 = vld [vmem:[%s21107_s4 + $0x1e8] sm:$0xff] }
 0x1c7   : > { %13152 = vmatmul.mubr.f32.gmra.mrb[2].mxu0 %v21730_v17 }
 0x1c8   : > { %13154 = vmatprep.mubr.f32.mxu0 %v21731_v46  ;;  %v14148_v47 = vpack.c.bf16 %v16623_v7, %v16621_v30  ;;  %21741 = vst [vmem:[#allocation5_spill] sm:$0xff] %v16731_v31 }
 0x1ca   : > { %14149 = vmatpush3.bf16.msra.mxu1 %v14148_v47 }
 0x1cb   : > { %13155 = vmatmul.mubr.f32.gmra.mrb[4].mxu0 %v21732_v2 }
 0x1cc   : > { %13157 = vmatprep.mubr.f32.mxu0 %v21733_v22 }
 0x1cf   : > { %13158 = vmatmul.mubr.f32.gmra.mrb[6].mxu0 %v21734_v51 }
 0x1d0   : > { %13160 = vmatprep.mubr.f32.mxu0 %v21735_v13 }
 0x1d3   : > { %13161 = vmatmul.mubr.f32.gmra.mrb[8].mxu0 %v16494_v0 }
 0x1d4   : > { %13167 = vmatprep.mubr.f32.mxu0 %v21727_v12  ;;  %v14150_v12 = vpack.c.bf16 %v16671_v37, %v16666_v23 }
 0x1d6   : > { %14151 = vmatprep.subr.bf16.mxu1 %v14150_v12  ;;  %v4121_v12 = vand.u32 4294901760, %v16763_v9 }
 0x1d7   : > { %13168 = vmatmul.mubr.f32.vlgmr.msra.gmra.mrb[0].mxu0 %v21728_v32  ;;  %v21144_v32 = vand.u32 4294901760, %v16690_v27 }
 0x1d8   : > { %13170 = vmatprep.mubr.f32.mxu0 %v21729_v45  ;;  %14073 = vmatpush3.bf16.msra.mxu0 %v16480_v48  ;;  %v21143_v45 = vand.u32 4294901760, %v16695_v50  ;;  %v16819_v63 = vsub.f32 %v16763_v9, %v4121_v12  ;;  %v10912_v9 = vld [vmem:[%s21107_s4 + $0x1f8] sm:$0xff] }
 0x1d9   : > { %14075 = vmatprep.subr.bf16.mxu0 %v16607_v62  ;;  %v16724_v33 = vsub.f32 %v16690_v27, %v21144_v32 }
 0x1da   : > { %v16729_v34 = vsub.f32 %v16695_v50, %v21143_v45  ;;  %v16805_v45 = vsub.f32 %v16746_v55, %v21148_v60  ;;  %v4130_v60 = vand.u32 4294901760, %v10912_v9 }
 0x1db   : > { %13171 = vmatmul.mubr.f32.gmra.mrb[2].mxu0 %v21730_v17  ;;  %v16707_v17 = vld [vmem:[%s21107_s4 + $0x1d0] sm:$0xff] }
 0x1dc   : > { %13173 = vmatprep.mubr.f32.mxu0 %v21731_v46  ;;  %14077 = vmatpush3.bf16.msra.mxu0 %v16619_v52  ;;  %v16712_v46 = vld [vmem:[%s21107_s4 + $0x1d8] sm:$0xff]  ;;  %v14154_v59 = vpack.c.bf16 %v16729_v34, %v16724_v33  ;;  %v21747_v52 = vand.u32 4294901760, %v16707_v17 }
 0x1dd   : > { %14079 = vmatprep.subr.bf16.mxu0 %v16661_v15 }
 0x1df   : > { %13174 = vmatmul.mubr.f32.gmra.mrb[4].mxu0 %v21732_v2 }
 0x1e0   : > { %13176 = vmatprep.mubr.f32.mxu0 %v21733_v22  ;;  %14081 = vmatpush3.bf16.msra.mxu0 %v16675_v53  ;;  %v21142_v22 = vand.u32 4294901760, %v16707_v17 }
 0x1e2   : > { %v16736_v38 = vsub.f32 %v16707_v17, %v21142_v22  ;;  %v16800_v22 = vpack.c.bf16 %v4160_v4, %v4157_v35  ;;  %v10927_v4 = vld [vmem:[%s21107_s4 + $0x270] sm:$0xff] }
 0x1e3   : > { %13177 = vmatmul.mubr.f32.gmra.mrb[6].mxu0 %v21734_v51  ;;  %v21141_v51 = vand.u32 4294901760, %v16712_v46  ;;  %v4175_v24 = vand.u32 4294901760, %v10927_v4 }
 0x1e4   : > { %13179 = vmatprep.mubr.f32.mxu0 %v21735_v13  ;;  %v16719_v13 = vpack.c.bf16 %v4154_v58, %v4151_v56  ;;  %v16751_v56 = vld [vmem:[%s21107_s4 + $0x268] sm:$0xff]  ;;  %21742 = vst [vmem:[#allocation6_spill] sm:$0xff] %v16800_v22 }
 0x1e5   : > { %v16741_v54 = vsub.f32 %v16712_v46, %v21141_v51  ;;  %v21147_v61 = vand.u32 4294901760, %v16751_v56  ;;  %v21145_v51 = vmov 0.0   ;;  %v16852_v53 = vsub.f32 %v10927_v4, %v4175_v24 }
 0x1e6   : > { %21740 = vst [vmem:[#allocation4_spill] sm:$0xff] %v16719_v13  ;;  %14083 = vmatprep.subr.bf16.mxu0 %v16719_v13  ;;  %3918 = vst [vmem:[#allocation2] sm:$0x1] %v21145_v51 }
 0x1e7   : > { %13180 = vmatmul.mubr.f32.gmra.mrb[8].mxu0 %v16494_v0  ;;  %v4109_v0 = vand.u32 4294901760, %v16645_v1  ;;  %v14156_v47 = vpack.c.bf16 %v16741_v54, %v16736_v38  ;;  %3928 = vst [vmem:[#allocation2 + $0x9] sm:$0x1] %v21145_v51  ;;  %3919 = vst [vmem:[#allocation2 + $0x10] sm:$0x1] %v21145_v51  ;;  %v16810_v32 = vsub.f32 %v16751_v56, %v21147_v61 }
 0x1e8   : > { %14085 = vmatpush3.bf16.msra.mxu0 %v16731_v31  ;;  %3920 = vst [vmem:[#allocation2 + $0x20] sm:$0x1] %v21145_v51  ;;  %3921 = vst [vmem:[#allocation2 + $0x30] sm:$0x1] %v21145_v51  ;;  %v21745_v31 = vand.u32 4294901760, %v16695_v50 }
 0x1e9   : > { %v16680_v42 = vsub.f32 %v16645_v1, %v4109_v0  ;;  %3922 = vst [vmem:[#allocation2 + $0x40] sm:$0x1] %v21145_v51  ;;  %3923 = vst [vmem:[#allocation2 + $0x50] sm:$0x1] %v21145_v51  ;;  %v16816_v26 = vpack.c.bf16 %v4112_v25, %v4109_v0  ;;  %14087 = vmatprep.subr.bf16.mxu0 %v16800_v22  ;;  %v14158_v1 = vpack.c.bf16 %v16810_v32, %v16805_v45  ;;  %v10911_v25 = vld [vmem:[%s21107_s4 + $0x1f0] sm:$0xff] }
 0x1ea   : > { %3924 = vst [vmem:[#allocation2 + $0x60] sm:$0x1] %v21145_v51  ;;  %3925 = vst [vmem:[#allocation2 + $0x70] sm:$0x1] %v21145_v51  ;;  %v4127_v61 = vand.u32 4294901760, %v10911_v25  ;;  %v21744_v22 = vand.u32 4294901760, %v16690_v27 }
 0x1eb   : > { %v14152_v2 = vpack.c.bf16 %v16685_v44, %v16680_v42  ;;  %3926 = vst [vmem:[#allocation2 + $0x80] sm:$0x1] %v21145_v51  ;;  %3929 = vst [vmem:[#allocation2 + $0x19] sm:$0x1] %v21145_v51 }
 0x1ec   : > { %3930 = vst [vmem:[#allocation2 + $0x29] sm:$0x1] %v21145_v51  ;;  %3931 = vst [vmem:[#allocation2 + $0x39] sm:$0x1] %v21145_v51  ;;  %14089 = vmatpush3.bf16.msra.mxu0 %v16816_v26  ;;  %v16850_v13 = vpack.c.bf16 %v21745_v31, %v21744_v22  ;;  %v16862_v48 = vsub.f32 %v10911_v25, %v4127_v61  ;;  %v16889_v4 = vpack.c.bf16 %v4130_v60, %v4127_v61 }
 0x1ed   : > { %14153 = vmatpush3.bf16.msra.mxu1 %v14152_v2  ;;  %v4124_v2 = vand.u32 4294901760, %v16768_v20  ;;  %3932 = vst [vmem:[#allocation2 + $0x49] sm:$0x1] %v21145_v51  ;;  %3933 = vst [vmem:[#allocation2 + $0x59] sm:$0x1] %v21145_v51 }
 0x1ee   : > { %3934 = vst [vmem:[#allocation2 + $0x69] sm:$0x1] %v21145_v51  ;;  %3935 = vst [vmem:[#allocation2 + $0x79] sm:$0x1] %v21145_v51  ;;  %14155 = vmatprep.subr.bf16.mxu1 %v14154_v59  ;;  %v10928_v59 = vld [vmem:[%s21107_s4 + $0x278] sm:$0xff]  ;;  %14091 = vmatprep.subr.bf16.mxu0 %v16850_v13 }
 0x1ef   : > { %3936 = vst [vmem:[#allocation2 + $0x89] sm:$0x1] %v21145_v51  ;;  %3937 = vst [vmem:[#allocation2 + $0x99] sm:$0x1] %v21145_v51  ;;  %v16822_v35 = vsub.f32 %v16768_v20, %v4124_v2  ;;  %v4178_v0 = vand.u32 4294901760, %v10928_v59  ;;  %v16882_v31 = vpack.c.bf16 %v4124_v2, %v4121_v12 }
 0x1f0   : > { %21743 = vst [vmem:[#allocation7_spill] sm:$0xff] %v16816_v26  ;;  %21746 = vst [vmem:[#allocation8_spill] sm:$0xff] %v16850_v13  ;;  %v21748_v26 = vand.u32 4294901760, %v16712_v46  ;;  %v21751_v46 = vand.u32 4294901760, %v16751_v56  ;;  %v4423_v56 = vand.u32 4294901760, %v16441_v19 }
 0x1f1   : > { %14157 = vmatpush3.bf16.msra.mxu1 %v14156_v47  ;;  %v14160_v51 = vpack.c.bf16 %v16822_v35, %v16819_v63  ;;  %v16854_v15 = vsub.f32 %v10928_v59, %v4178_v0  ;;  %21753 = vst [vmem:[#allocation11_spill] sm:$0xff] %v16882_v31  ;;  %21755 = vst [vmem:[#allocation18_spill] sm:$0xff] %v16889_v4 }
 0x1f2   : > { %14159 = vmatprep.subr.bf16.mxu1 %v14158_v1  ;;  %v16860_v62 = vpack.c.bf16 %v21748_v26, %v21747_v52  ;;  %v16864_v1 = vsub.f32 %v10912_v9, %v4130_v60  ;;  %v21750_v52 = vand.u32 4294901760, %v16746_v55  ;;  %v16887_v26 = vpack.c.bf16 %v4178_v0, %v4175_v24 }
 0x1f3   : > { %v14162_v50 = vpack.c.bf16 %v16854_v15, %v16852_v53  ;;  %v4416_v55 = vand.u32 4294901760, %v16439_v16  ;;  %v4424_v2 = vsub.f32 %v16441_v19, %v4423_v56  ;;  %v21169_v24 = vand.u32 4294901760, %v16585_v6 }
 0x1f4   : > { %21749 = vst [vmem:[#allocation9_spill] sm:$0xff] %v16860_v62  ;;  %14093 = vmatpush3.bf16.msra.mxu0 %v16860_v62  ;;  %v14164_v17 = vpack.c.bf16 %v16864_v1, %v16862_v48  ;;  %21754 = vst [vmem:[#allocation17_spill] sm:$0xff] %v16887_v26  ;;  %v21168_v60 = vand.u32 4294901760, %v16587_v41  ;;  %v21198_v62 = vand.u32 4294901760, %v16852_v53 }
 0x1f5   : > { %14161 = vmatpush3.bf16.msra.mxu1 %v14160_v51  ;;  %v16880_v51 = vpack.c.bf16 %v21751_v46, %v21750_v52  ;;  %v4417_v12 = vsub.f32 %v16439_v16, %v4416_v55  ;;  %v4425_v25 = vand.u32 4294901760, %v4424_v2  ;;  %v4333_v61 = vsub.f32 %v16585_v6, %v21169_v24 }
 0x1f6   : > { %14163 = vmatprep.subr.bf16.mxu1 %v14162_v50  ;;  %v4340_v0 = vsub.f32 %v16587_v41, %v21168_v60  ;;  %v21167_v16 = vand.u32 4294901760, %v16609_v3  ;;  %v21171_v52 = vand.u32 4294901760, %v16621_v30  ;;  %v21183_v24 = vand.u32 4294901760, %v16685_v44 }
 0x1f7   : > { %21752 = vst [vmem:[#allocation10_spill] sm:$0xff] %v16880_v51  ;;  %14095 = vmatprep.subr.bf16.mxu0 %v16880_v51  ;;  %v4418_v59 = vand.u32 4294901760, %v4417_v12  ;;  %v4334_v50 = vand.u32 4294901760, %v4333_v61  ;;  %v21172_v12 = vand.u32 4294901760, %v16623_v7 }
 0x1f8   : > { %14097 = vmatpush3.bf16.msra.mxu0 %v16882_v31  ;;  %v4341_v19 = vand.u32 4294901760, %v4340_v0  ;;  %v4459_v46 = vsub.f32 %v16609_v3, %v21167_v16  ;;  %v21176_v0 = vand.u32 4294901760, %v16666_v23  ;;  %v21181_v16 = vand.u32 4294901760, %v16671_v37 }
 0x1f9   : > { %14165 = vmatpush3.bf16.msra.mxu1 %v14164_v17  ;;  %14099 = vmatprep.subr.bf16.mxu0 %v16887_v26  ;;  %v14102_v9 = vpack.c.bf16 %v4425_v25, %v4418_v59  ;;  %v21170_v17 = vand.u32 4294901760, %v16611_v21  ;;  %v4347_v25 = vsub.f32 %v16621_v30, %v21171_v52  ;;  %v4354_v61 = vsub.f32 %v16623_v7, %v21172_v12 }
 0x1fa   : > { %14167 = vmatprep.subr.bf16.mxu1 %v16478_v43  ;;  %v16912_v2 = vpack.c.bf16 %v4341_v19, %v4334_v50  ;;  %v21182_v19 = vand.u32 4294901760, %v16680_v42  ;;  %v4473_v52 = vsub.f32 %v16666_v23, %v21176_v0  ;;  %v21184_v0 = vand.u32 4294901760, %v16724_v33 }
 0x1fb   : > { %v4466_v59 = vsub.f32 %v16611_v21, %v21170_v17  ;;  %v4348_v50 = vand.u32 4294901760, %v4347_v25  ;;  %v4355_v17 = vand.u32 4294901760, %v4354_v61  ;;  %v4368_v25 = vsub.f32 %v16685_v44, %v21183_v24 }
 0x1fc   : > { %14101 = vmatpush3.bf16.msra.mxu0 %v16889_v4  ;;  %v4474_v61 = vand.u32 4294901760, %v4473_v52  ;;  %v21187_v24 = vand.u32 4294901760, %v16741_v54 }
 0x1fd   : > { %14103 = vmatprep.subr.bf16.mxu0 %v14102_v9  ;;  %v4460_v9 = vand.u32 4294901760, %v4459_v46  ;;  %v4467_v60 = vand.u32 4294901760, %v4466_v59  ;;  %v4480_v46 = vsub.f32 %v16671_v37, %v21181_v16  ;;  %v4361_v59 = vsub.f32 %v16680_v42, %v21182_v19 }
 0x1fe   : > { %v16941_v43 = vpack.c.bf16 %v4355_v17, %v4348_v50  ;;  %v4369_v31 = vand.u32 4294901760, %v4368_v25  ;;  %v21185_v16 = vand.u32 4294901760, %v16729_v34  ;;  %v4487_v19 = vsub.f32 %v16724_v33, %v21184_v0 }
 0x1ff   : > { %v16933_v12 = vpack.c.bf16 %v4467_v60, %v4460_v9  ;;  %v4481_v4 = vand.u32 4294901760, %v4480_v46  ;;  %v4362_v26 = vand.u32 4294901760, %v4361_v59  ;;  %v21186_v60 = vand.u32 4294901760, %v16736_v38 }
 0x200   : > { %v4494_v52 = vsub.f32 %v16729_v34, %v21185_v16  ;;  %v4488_v46 = vand.u32 4294901760, %v4487_v19  ;;  %v21190_v59 = vand.u32 4294901760, %v16805_v45  ;;  %v21193_v25 = vand.u32 4294901760, %v16810_v32 }
 0x201   : > { %v16946_v9 = vpack.c.bf16 %v4481_v4, %v4474_v61  ;;  %v16952_v17 = vpack.c.bf16 %v4369_v31, %v4362_v26  ;;  %v4375_v50 = vsub.f32 %v16736_v38, %v21186_v60  ;;  %v4382_v4 = vsub.f32 %v16741_v54, %v21187_v24 }
 0x202   : > { %v4495_v61 = vand.u32 4294901760, %v4494_v52  ;;  %v21199_v26 = vand.u32 4294901760, %v16819_v63  ;;  %v21194_v0 = vand.u32 4294901760, %v16822_v35  ;;  %v4501_v60 = vsub.f32 %v16805_v45, %v21190_v59 }
 0x203   : > { %21756 = vst [vmem:[#allocation19_spill] sm:$0xff] %v16946_v9  ;;  %21757 = vst [vmem:[#allocation20_spill] sm:$0xff] %v16952_v17  ;;  %v4376_v31 = vand.u32 4294901760, %v4375_v50  ;;  %v4383_v16 = vand.u32 4294901760, %v4382_v4  ;;  %v4508_v19 = vsub.f32 %v16810_v32, %v21193_v25  ;;  %v16973_v24 = vpack.c.bf16 %v4423_v56, %v4416_v55 }
 0x204   : > { %v16975_v17 = vpack.c.bf16 %v4495_v61, %v4488_v46  ;;  %v4389_v52 = vsub.f32 %v16819_v63, %v21199_v26  ;;  %v4396_v50 = vsub.f32 %v16822_v35, %v21194_v0  ;;  %v4502_v51 = vand.u32 4294901760, %v4501_v60 }
 0x205   : > { %21758 = vst [vmem:[#allocation21_spill] sm:$0xff] %v16973_v24  ;;  %v16983_v4 = vpack.c.bf16 %v4383_v16, %v4376_v31  ;;  %v4509_v59 = vand.u32 4294901760, %v4508_v19  ;;  %v21197_v55 = vand.u32 4294901760, %v16854_v15  ;;  %v21196_v56 = vand.u32 4294901760, %v16862_v48 }
 0x206   : > { %v4390_v9 = vand.u32 4294901760, %v4389_v52  ;;  %v4397_v25 = vand.u32 4294901760, %v4396_v50  ;;  %v4515_v61 = vsub.f32 %v16852_v53, %v21198_v62  ;;  %v21195_v0 = vand.u32 4294901760, %v16864_v1 }
 0x207   : > { %v16988_v46 = vpack.c.bf16 %v4509_v59, %v4502_v51  ;;  %v4522_v60 = vsub.f32 %v16854_v15, %v21197_v55  ;;  %v4403_v31 = vsub.f32 %v16862_v48, %v21196_v56  ;;  %v17008_v59 = vld [vmem:[%s21107_s4 + $0x80] sm:$0xff]  ;;  %v17025_v56 = vld [vmem:[%s21107_s4 + $0x8] sm:$0xff] }
 0x208   : > { %v16994_v16 = vpack.c.bf16 %v4397_v25, %v4390_v9  ;;  %v4516_v19 = vand.u32 4294901760, %v4515_v61  ;;  %v4410_v51 = vsub.f32 %v16864_v1, %v21195_v0  ;;  %v17013_v9 = vld [vmem:[%s21107_s4 + $0x88] sm:$0xff]  ;;  %v21202_v50 = vand.u32 4294901760, %v17008_v59  ;;  %v17020_v0 = vld [vmem:[%s21107_s4] sm:$0xff] }
 0x209   : > { %v4523_v25 = vand.u32 4294901760, %v4522_v60  ;;  %v4404_v52 = vand.u32 4294901760, %v4403_v31  ;;  %v21201_v61 = vand.u32 4294901760, %v17013_v9  ;;  %v21200_v62 = vand.u32 4294901760, %v17020_v0 }
 0x20a   : > { %21759 = vst [vmem:[#allocation22_spill] sm:$0xff] %v16994_v16  ;;  %v4411_v55 = vand.u32 4294901760, %v4410_v51  ;;  %v21203_v60 = vand.u32 4294901760, %v17025_v56  ;;  %v17034_v26 = vsub.f32 %v17008_v59, %v21202_v50 }
 0x20b   : > { %v17029_v31 = vpack.c.bf16 %v4523_v25, %v4516_v19  ;;  %v17039_v16 = vsub.f32 %v17013_v9, %v21201_v61  ;;  %v17046_v51 = vsub.f32 %v17020_v0, %v21200_v62  ;;  %v17056_v25 = vld [vmem:[%s21107_s4 + $0x90] sm:$0xff]  ;;  %v21765_v62 = vand.u32 4294901760, %v16587_v41 }
 0x20c   : > { %21760 = vst [vmem:[#allocation23_spill] sm:$0xff] %v17034_v26  ;;  %v17041_v24 = vpack.c.bf16 %v4411_v55, %v4404_v52  ;;  %v17051_v19 = vsub.f32 %v17025_v56, %v21203_v60  ;;  %v17061_v55 = vld [vmem:[%s21107_s4 + $0x98] sm:$0xff]  ;;  %v21764_v52 = vand.u32 4294901760, %v16585_v6  ;;  %v21210_v50 = vand.u32 4294901760, %v17056_v25  ;;  %v17080_v26 = vld [vmem:[%s21107_s4 + $0x10] sm:$0xff] }
 0x20d   : > { %21761 = vst [vmem:[#allocation24_spill] sm:$0xff] %v17039_v16  ;;  %21762 = vst [vmem:[#allocation25_spill] sm:$0xff] %v17046_v51  ;;  %v21208_v60 = vand.u32 4294901760, %v17061_v55  ;;  %v21768_v51 = vand.u32 4294901760, %v16611_v21  ;;  %v17085_v6 = vld [vmem:[%s21107_s4 + $0x18] sm:$0xff]  ;;  %v21209_v41 = vand.u32 4294901760, %v17080_v26 }
 0x20e   : > { %21763 = vst [vmem:[#allocation26_spill] sm:$0xff] %v17051_v19  ;;  %v17067_v61 = vpack.c.bf16 %v21765_v62, %v21764_v52  ;;  %v21767_v19 = vand.u32 4294901760, %v16609_v3  ;;  %v21770_v3 = vand.u32 4294901760, %v16621_v30  ;;  %v21771_v21 = vand.u32 4294901760, %v16623_v7 }
 0x20f   : > { %v17103_v52 = vsub.f32 %v17061_v55, %v21208_v60  ;;  %v17108_v62 = vsub.f32 %v17080_v26, %v21209_v41  ;;  %v21776_v30 = vand.u32 4294901760, %v17085_v6 }
 0x210   : > { %21766 = vst [vmem:[#allocation27_spill] sm:$0xff] %v17067_v61  ;;  %v17075_v16 = vpack.c.bf16 %v21768_v51, %v21767_v19  ;;  %v17093_v51 = vpack.c.bf16 %v21771_v21, %v21770_v3  ;;  %v17098_v19 = vsub.f32 %v17056_v25, %v21210_v50  ;;  %v17118_v3 = vld [vmem:[%s21107_s4 + $0xa0] sm:$0xff]  ;;  %v17123_v21 = vld [vmem:[%s21107_s4 + $0xa8] sm:$0xff]  ;;  %v21779_v50 = vand.u32 4294901760, %v16666_v23 }
 0x211   : > { %21774 = vst [vmem:[#allocation31_spill] sm:$0xff] %v17103_v52  ;;  %21775 = vst [vmem:[#allocation32_spill] sm:$0xff] %v17108_v62  ;;  %v17113_v7 = vsub.f32 %v17085_v6, %v21776_v30  ;;  %v21780_v62 = vand.u32 4294901760, %v16671_v37  ;;  %v17141_v52 = vld [vmem:[%s21107_s4 + $0x28] sm:$0xff]  ;;  %v21784_v23 = vand.u32 4294901760, %v16680_v42  ;;  %v21785_v37 = vand.u32 4294901760, %v16685_v44 }
 0x212   : > { %21769 = vst [vmem:[#allocation28_spill] sm:$0xff] %v17075_v16  ;;  %21772 = vst [vmem:[#allocation29_spill] sm:$0xff] %v17093_v51  ;;  %v21792_v42 = vand.u32 4294901760, %v17141_v52 }
 0x213   : > { %21773 = vst [vmem:[#allocation30_spill] sm:$0xff] %v17098_v19  ;;  %21777 = vst [vmem:[#allocation33_spill] sm:$0xff] %v17113_v7  ;;  %v17131_v30 = vpack.c.bf16 %v21780_v62, %v21779_v50  ;;  %v17136_v7 = vld [vmem:[%s21107_s4 + $0x20] sm:$0xff]  ;;  %v17149_v50 = vpack.c.bf16 %v21785_v37, %v21784_v23  ;;  %v21787_v62 = vand.u32 4294901760, %v17118_v3  ;;  %v17174_v23 = vld [vmem:[%s21107_s4 + $0xb0] sm:$0xff] }
 0x214   : > { %v16613_v8 = vpop.f32.mrb[0].mxu1  ;;  %21778 = vst [vmem:[#allocation34_spill] sm:$0xff] %v17123_v21  ;;  %21782 = vst [vmem:[#allocation36_spill] sm:$0xff] %v17136_v7  ;;  %v21215_v60 = vand.u32 4294901760, %v17136_v7  ;;  %v17169_v44 = vsub.f32 %v17141_v52, %v21792_v42 }
 0x215   : > { %v16635_v28 = vpop.f32.mrb[1].mxu1  ;;  %21781 = vst [vmem:[#allocation35_spill] sm:$0xff] %v17131_v30  ;;  %21783 = vst [vmem:[#allocation37_spill] sm:$0xff] %v17141_v52  ;;  %v17154_v19 = vsub.f32 %v17118_v3, %v21787_v62  ;;  %v21789_v30 = vand.u32 4294901760, %v17123_v21 }
 0x216   : > { %21786 = vst [vmem:[#allocation38_spill] sm:$0xff] %v17149_v50  ;;  %v17164_v41 = vsub.f32 %v17136_v7, %v21215_v60  ;;  %21793 = vst [vmem:[#allocation42_spill] sm:$0xff] %v17169_v44  ;;  %v21796_v60 = vand.u32 4294901760, %v16724_v33  ;;  %v17192_v44 = vld [vmem:[%s21107_s4 + $0x30] sm:$0xff]  ;;  %v21801_v33 = vand.u32 4294901760, %v16736_v38 }
 0x217   : > { %21788 = vst [vmem:[#allocation39_spill] sm:$0xff] %v17154_v19  ;;  %v17159_v51 = vsub.f32 %v17123_v21, %v21789_v30  ;;  %21794 = vst [vmem:[#allocation43_spill] sm:$0xff] %v17174_v23  ;;  %v17179_v30 = vld [vmem:[%s21107_s4 + $0xb8] sm:$0xff]  ;;  %v21220_v37 = vand.u32 4294901760, %v17192_v44 }
 0x218   : > { %v16673_v49 = vpop.f32.mrb[2].mxu1  ;;  %21791 = vst [vmem:[#allocation41_spill] sm:$0xff] %v17164_v41  ;;  %21795 = vst [vmem:[#allocation44_spill] sm:$0xff] %v17179_v30  ;;  %v21797_v41 = vand.u32 4294901760, %v16729_v34  ;;  %v21802_v34 = vand.u32 4294901760, %v16741_v54 }
 0x219   : > { %v16697_v18 = vpop.f32.mrb[3].mxu1  ;;  %21790 = vst [vmem:[#allocation40_spill] sm:$0xff] %v17159_v51  ;;  %21799 = vst [vmem:[#allocation46_spill] sm:$0xff] %v17192_v44  ;;  %v17197_v51 = vld [vmem:[%s21107_s4 + $0x38] sm:$0xff]  ;;  %v17220_v62 = vsub.f32 %v17192_v44, %v21220_v37  ;;  %v21813_v37 = vand.u32 4294901760, %v16805_v45  ;;  %v21818_v45 = vand.u32 4294901760, %v16819_v63 }
 0x21a   : > { %v17187_v42 = vpack.c.bf16 %v21797_v41, %v21796_v60  ;;  %21800 = vst [vmem:[#allocation47_spill] sm:$0xff] %v17197_v51  ;;  %v17205_v60 = vpack.c.bf16 %v21802_v34, %v21801_v33  ;;  %v21804_v41 = vand.u32 4294901760, %v17174_v23  ;;  %v21809_v38 = vand.u32 4294901760, %v17197_v51  ;;  %v17230_v33 = vld [vmem:[%s21107_s4 + $0xc0] sm:$0xff] }
 0x21b   : > { %21808 = vst [vmem:[#allocation51_spill] sm:$0xff] %v17220_v62  ;;  %21811 = vst [vmem:[#allocation53_spill] sm:$0xff] %v17230_v33  ;;  %v21814_v62 = vand.u32 4294901760, %v16810_v32  ;;  %v21819_v32 = vand.u32 4294901760, %v16822_v35 }
 0x21c   : > { %v16753_v58 = vpop.f32.mrb[4].mxu1  ;;  %21798 = vst [vmem:[#allocation45_spill] sm:$0xff] %v17187_v42  ;;  %21803 = vst [vmem:[#allocation48_spill] sm:$0xff] %v17205_v60  ;;  %v17210_v19 = vsub.f32 %v17174_v23, %v21804_v41  ;;  %v21806_v42 = vand.u32 4294901760, %v17179_v30  ;;  %v17225_v54 = vsub.f32 %v17197_v51, %v21809_v38 }
 0x21d   : > { %v16770_v5 = vpop.f32.mrb[5].mxu1  ;;  %v17243_v38 = vpack.c.bf16 %v21814_v62, %v21813_v37  ;;  %v17261_v37 = vpack.c.bf16 %v21819_v32, %v21818_v45  ;;  %v21821_v62 = vand.u32 4294901760, %v17230_v33  ;;  %v17286_v45 = vld [vmem:[%s21107_s4 + $0xd0] sm:$0xff] }
 0x21e   : > { %21805 = vst [vmem:[#allocation49_spill] sm:$0xff] %v17210_v19  ;;  %v17215_v50 = vsub.f32 %v17179_v30, %v21806_v42  ;;  %21810 = vst [vmem:[#allocation52_spill] sm:$0xff] %v17225_v54  ;;  %v17235_v42 = vld [vmem:[%s21107_s4 + $0xc8] sm:$0xff]  ;;  %v17248_v54 = vld [vmem:[%s21107_s4 + $0x40] sm:$0xff] }
 0x21f   : > { %21812 = vst [vmem:[#allocation54_spill] sm:$0xff] %v17235_v42  ;;  %21815 = vst [vmem:[#allocation55_spill] sm:$0xff] %v17243_v38  ;;  %v21225_v34 = vand.u32 4294901760, %v17248_v54  ;;  %v17266_v19 = vsub.f32 %v17230_v33, %v21821_v62  ;;  %v21823_v38 = vand.u32 4294901760, %v17235_v42 }
 0x220   : > { %21807 = vst [vmem:[#allocation50_spill] sm:$0xff] %v17215_v50  ;;  %21816 = vst [vmem:[#allocation56_spill] sm:$0xff] %v17248_v54  ;;  %v17253_v50 = vld [vmem:[%s21107_s4 + $0x48] sm:$0xff] }
 0x221   : > { %21817 = vst [vmem:[#allocation57_spill] sm:$0xff] %v17253_v50  ;;  %21820 = vst [vmem:[#allocation58_spill] sm:$0xff] %v17261_v37  ;;  %v17271_v60 = vsub.f32 %v17235_v42, %v21823_v38  ;;  %v17276_v41 = vsub.f32 %v17248_v54, %v21225_v34  ;;  %v21826_v63 = vand.u32 4294901760, %v17253_v50  ;;  %v17291_v38 = vld [vmem:[%s21107_s4 + $0xd8] sm:$0xff]  ;;  %v21830_v34 = vand.u32 4294901760, %v16852_v53 }
 0x222   : > { %21822 = vst [vmem:[#allocation59_spill] sm:$0xff] %v17266_v19  ;;  %21828 = vst [vmem:[#allocation63_spill] sm:$0xff] %v17286_v45  ;;  %v21835_v53 = vand.u32 4294901760, %v16862_v48 }
 0x223   : > { %21824 = vst [vmem:[#allocation60_spill] sm:$0xff] %v17271_v60  ;;  %21825 = vst [vmem:[#allocation61_spill] sm:$0xff] %v17276_v41  ;;  %v17281_v35 = vsub.f32 %v17253_v50, %v21826_v63  ;;  %v21831_v41 = vand.u32 4294901760, %v16854_v15  ;;  %v17309_v60 = vld [vmem:[%s21107_s4 + $0x58] sm:$0xff]  ;;  %v21836_v15 = vand.u32 4294901760, %v16864_v1  ;;  %v21861_v50 = vand.u32 4294901760, %v16476_v11 }
 0x224   : > { %21829 = vst [vmem:[#allocation64_spill] sm:$0xff] %v17291_v38  ;;  %21834 = vst [vmem:[#allocation67_spill] sm:$0xff] %v17309_v60  ;;  %v21843_v48 = vand.u32 4294901760, %v17309_v60 }
 0x225   : > { %21827 = vst [vmem:[#allocation62_spill] sm:$0xff] %v17281_v35  ;;  %v17299_v63 = vpack.c.bf16 %v21831_v41, %v21830_v34  ;;  %v17304_v35 = vld [vmem:[%s21107_s4 + $0x50] sm:$0xff]  ;;  %v17317_v34 = vpack.c.bf16 %v21836_v15, %v21835_v53  ;;  %v21838_v41 = vand.u32 4294901760, %v17286_v45  ;;  %v17342_v53 = vld [vmem:[%s21107_s4 + $0xe0] sm:$0xff]  ;;  %v17460_v54 = vsub.f32 %v16476_v11, %v21861_v50 }
 0x226   : > { %21833 = vst [vmem:[#allocation66_spill] sm:$0xff] %v17304_v35  ;;  %v21230_v32 = vand.u32 4294901760, %v17304_v35  ;;  %v17337_v1 = vsub.f32 %v17309_v60, %v21843_v48  ;;  %21845 = vst [vmem:[#allocation73_spill] sm:$0xff] %v17342_v53  ;;  %v21236_v15 = vand.u32 4294901760, %v17342_v53  ;;  %v17359_v48 = vld [vmem:[%s21107_s4 + $0x68] sm:$0xff]  ;;  %v21273_v50 = vand.u32 4294901760, %v16507_v39 }
 0x227   : > { %21832 = vst [vmem:[#allocation65_spill] sm:$0xff] %v17299_v63  ;;  %21837 = vst [vmem:[#allocation68_spill] sm:$0xff] %v17317_v34  ;;  %v17322_v19 = vsub.f32 %v17286_v45, %v21838_v41  ;;  %v21840_v63 = vand.u32 4294901760, %v17291_v38 }
 0x228   : > { %v17332_v62 = vsub.f32 %v17304_v35, %v21230_v32  ;;  %21844 = vst [vmem:[#allocation72_spill] sm:$0xff] %v17337_v1  ;;  %v17354_v32 = vld [vmem:[%s21107_s4 + $0x60] sm:$0xff]  ;;  %21848 = vst [vmem:[#allocation76_spill] sm:$0xff] %v17359_v48  ;;  %v21259_v35 = vand.u32 4294901760, %v16443_v57 }
 0x229   : > { %21839 = vst [vmem:[#allocation69_spill] sm:$0xff] %v17322_v19  ;;  %v17327_v37 = vsub.f32 %v17291_v38, %v21840_v63  ;;  %v17347_v63 = vld [vmem:[%s21107_s4 + $0xe8] sm:$0xff]  ;;  %21847 = vst [vmem:[#allocation75_spill] sm:$0xff] %v17354_v32  ;;  %v21238_v1 = vand.u32 4294901760, %v17354_v32 }
 0x22a   : > { %21842 = vst [vmem:[#allocation71_spill] sm:$0xff] %v17332_v62  ;;  %21846 = vst [vmem:[#allocation74_spill] sm:$0xff] %v17347_v63  ;;  %v21237_v41 = vand.u32 4294901760, %v17347_v63  ;;  %v21240_v62 = vand.u32 4294901760, %v17359_v48 }
 0x22b   : > { %21841 = vst [vmem:[#allocation70_spill] sm:$0xff] %v17327_v37  ;;  %v17366_v37 = vsub.f32 %v17342_v53, %v21236_v15  ;;  %v17376_v34 = vsub.f32 %v17354_v32, %v21238_v1  ;;  %v17386_v15 = vld [vmem:[%s21107_s4 + $0xf0] sm:$0xff] }
 0x22c   : > { %v17371_v19 = vsub.f32 %v17347_v63, %v21237_v41  ;;  %v17381_v60 = vsub.f32 %v17359_v48, %v21240_v62  ;;  %21853 = vst [vmem:[#allocation81_spill] sm:$0xff] %v17386_v15  ;;  %v17391_v41 = vld [vmem:[%s21107_s4 + $0xf8] sm:$0xff]  ;;  %v17396_v1 = vld [vmem:[%s21107_s4 + $0x70] sm:$0xff] }
 0x22d   : > { %21849 = vst [vmem:[#allocation77_spill] sm:$0xff] %v17366_v37  ;;  %21851 = vst [vmem:[#allocation79_spill] sm:$0xff] %v17376_v34  ;;  %v21249_v34 = vand.u32 4294901760, %v17386_v15  ;;  %v21252_v62 = vand.u32 4294901760, %v17391_v41 }
 0x22e   : > { %21850 = vst [vmem:[#allocation78_spill] sm:$0xff] %v17371_v19  ;;  %21852 = vst [vmem:[#allocation80_spill] sm:$0xff] %v17381_v60  ;;  %v17403_v60 = vld [vmem:[%s21107_s4 + $0x78] sm:$0xff]  ;;  %v21253_v19 = vand.u32 4294901760, %v17396_v1 }
 0x22f   : > { %21854 = vst [vmem:[#allocation82_spill] sm:$0xff] %v17391_v41  ;;  %21855 = vst [vmem:[#allocation83_spill] sm:$0xff] %v17396_v1  ;;  %v21254_v37 = vand.u32 4294901760, %v17403_v60  ;;  %v17410_v48 = vsub.f32 %v17386_v15, %v21249_v34  ;;  %v17415_v32 = vsub.f32 %v17391_v41, %v21252_v62  ;;  %v21260_v34 = vand.u32 4294901760, %v16452_v10 }
 0x230   : > { %21856 = vst [vmem:[#allocation84_spill] sm:$0xff] %v17403_v60  ;;  %v17420_v63 = vsub.f32 %v17396_v1, %v21253_v19  ;;  %v21265_v15 = vand.u32 4294901760, %v16462_v14  ;;  %v4305_v62 = vsub.f32 %v16443_v57, %v21259_v35 }
 0x231   : > { %v16830_v47 = vpop.f32.mrb[6].mxu1  ;;  %21857 = vst [vmem:[#allocation85_spill] sm:$0xff] %v17410_v48  ;;  %21858 = vst [vmem:[#allocation86_spill] sm:$0xff] %v17415_v32  ;;  %v17425_v53 = vsub.f32 %v17403_v60, %v21254_v37  ;;  %v21264_v48 = vand.u32 4294901760, %v16457_v29  ;;  %v4312_v19 = vsub.f32 %v16452_v10, %v21260_v34  ;;  %v17447_v60 = vld [vmem:[%s21105_s2] ss:$0 sm:$0xff] }
 0x232   : > { %v16841_v20 = vpop.f32.mrb[7].mxu1  ;;  %21859 = vst [vmem:[#allocation87_spill] sm:$0xff] %v17420_v63  ;;  %v4306_v41 = vand.u32 4294901760, %v4305_v62  ;;  %v21862_v62 = vand.u32 4294901760, %v16489_v40 }
 0x233   : > { %21860 = vst [vmem:[#allocation88_spill] sm:$0xff] %v17425_v53  ;;  %v4431_v37 = vsub.f32 %v16457_v29, %v21264_v48  ;;  %v4438_v53 = vsub.f32 %v16462_v14, %v21265_v15  ;;  %v4313_v38 = vand.u32 4294901760, %v4312_v19  ;;  %v17454_v48 = vld [vmem:[%s21106_s3] ss:$0 sm:$0xff] }
 0x234   : > { %v17468_v42 = vsub.f32 %v16489_v40, %v21862_v62 }
 0x235   : > { %v16866_v27 = vpop.f32.mrb[8].mxu1  ;;  %v4432_v63 = vand.u32 4294901760, %v4431_v37  ;;  %v4439_v45 = vand.u32 4294901760, %v4438_v53  ;;  %v17472_v53 = vpack.c.bf16 %v4313_v38, %v4306_v41 }
 0x236   : > { %v16871_v22 = vpop.f32.mrb[9].mxu1 }
 0x2aa   : > { %v13169_v32 = vpop.f32.mrb[0].mxu0 }
 0x2ab   : > { %v15222_v34 = vadd.f32 %v13169_v32, %v16613_v8  ;;  %v3786_v1 = vpop.f32.mrb[1].mxu0 }
 0x2ac   : > { %v15223_v15 = vadd.f32 %v3786_v1, %v16635_v28 }
 0x2ad   : > { %v3862_v35 = vmul.f32 %v15222_v34, %v17447_v60 }
 0x2ae   : > { %v3861_v19 = vmul.f32 %v15223_v15, %v17447_v60  ;;  %v13172_v32 = vpop.f32.mrb[2].mxu0  ;;  %v17477_v15 = vpack.c.bf16 %v4439_v45, %v4432_v63 }
 0x2af   : > { %v3879_v28 = vadd.f32 %v17454_v48, %v3862_v35  ;;  %v15224_v37 = vadd.f32 %v13172_v32, %v16673_v49  ;;  %v3798_v1 = vpop.f32.mrb[3].mxu0  ;;  %v21863_v35 = vand.u32 4294901760, %v16501_v36 }
 0x2b0   : > { %v3878_v34 = vadd.f32 %v17454_v48, %v3861_v19  ;;  %v15225_v8 = vadd.f32 %v3798_v1, %v16697_v18 }
 0x2b1   : > { %vm3889_vm2 = vcmp.ge.f32.partialorder %v3879_v28, 0.0  ;;  %v3899_v62 = vmul.f32 0.2, %v3879_v28  ;;  %v3864_v51 = vmul.f32 %v15224_v37, %v17447_v60  ;;  %v17484_v49 = vsub.f32 %v16501_v36, %v21863_v35 }
 0x2b2   : > { %vm3888_vm3 = vcmp.ge.f32.partialorder %v3878_v34, 0.0  ;;  %v3898_v38 = vmul.f32 0.2, %v3878_v34  ;;  %v3863_v41 = vmul.f32 %v15225_v8, %v17447_v60  ;;  %v13175_v19 = vpop.f32.mrb[4].mxu0  ;;  %v17493_v37 = vsub.f32 %v16507_v39, %v21273_v50 }
 0x2b3   : > { %v3909_v45 = vsel %vm3889_vm2, %v3879_v28, %v3899_v62  ;;  %v3881_v63 = vadd.f32 %v17454_v48, %v3864_v51  ;;  %v15226_v32 = vadd.f32 %v13175_v19, %v16753_v58  ;;  %v3810_v1 = vpop.f32.mrb[5].mxu0  ;;  %v21865_v62 = vmov 0.0  }
 0x2b4   : > { %3939 = vst [vmem:[#allocation2 + $0x11] sm:$0xff] %v3909_v45  ;;  %v3908_v35 = vsel %vm3888_vm3, %v3878_v34, %v3898_v38  ;;  %v3880_v33 = vadd.f32 %v17454_v48, %v3863_v41  ;;  %v15227_v8 = vadd.f32 %v3810_v1, %v16770_v5  ;;  %v17497_v44 = vand.u32 4294901760, %v3909_v45 }
 0x2b5   : > { %3938 = vst [vmem:[#allocation2 + $0x1] sm:$0xff] %v3908_v35  ;;  %vm3891_vm4 = vcmp.ge.f32.partialorder %v3881_v63, 0.0  ;;  %v3901_v28 = vmul.f32 0.2, %v3881_v63  ;;  %v3866_v51 = vmul.f32 %v15226_v32, %v17447_v60 }
 0x2b6   : > { %21864 = vst [vmem:[#allocation89_spill] sm:$0xff] %v17497_v44  ;;  %3952 = vst [vmem:[#allocation2] sm:$0xff] %v21865_v62  ;;  %vm3890_vm5 = vcmp.ge.f32.partialorder %v3880_v33, 0.0  ;;  %v3900_v19 = vmul.f32 0.2, %v3880_v33  ;;  %v3865_v34 = vmul.f32 %v15227_v8, %v17447_v60  ;;  %v13178_v38 = vpop.f32.mrb[6].mxu0  ;;  %v17505_v5 = vsub.f32 %v3909_v45, %v17497_v44 }
 0x2b7   : > { %3953 = vst [vmem:[#allocation2 + $0x8] sm:$0x3] %v21865_v62  ;;  %v3911_v41 = vsel %vm3891_vm4, %v3881_v63, %v3901_v28  ;;  %v3883_v1 = vadd.f32 %v17454_v48, %v3866_v51  ;;  %v15228_v35 = vadd.f32 %v13178_v38, %v16830_v47  ;;  %v3822_v32 = vpop.f32.mrb[7].mxu0 }
 0x2b8   : > { %21866 = vst [vmem:[#allocation90_spill] sm:$0xff] %v17505_v5  ;;  %3941 = vst [vmem:[#allocation2 + $0x31] sm:$0xff] %v3911_v41  ;;  %v3910_v58 = vsel %vm3890_vm5, %v3880_v33, %v3900_v19  ;;  %v3882_v18 = vadd.f32 %v17454_v48, %v3865_v34  ;;  %v15229_v30 = vadd.f32 %v3822_v32, %v16841_v20  ;;  %4712 = vmatprep.mubr.f32.mxu1 %v17505_v5 }
 0x2b9   : > { %v17514_v8 = vand.u32 4294901760, %v17505_v5  ;;  %3940 = vst [vmem:[#allocation2 + $0x21] sm:$0xff] %v3910_v58  ;;  %vm3893_vm6 = vcmp.ge.f32.partialorder %v3883_v1, 0.0  ;;  %v3903_v45 = vmul.f32 0.2, %v3883_v1  ;;  %v3868_v63 = vmul.f32 %v15228_v35, %v17447_v60 }
 0x2ba   : > { %v17517_v47 = vand.u32 4294901760, %v3910_v58  ;;  %vm3892_vm7 = vcmp.ge.f32.partialorder %v3882_v18, 0.0  ;;  %v3902_v28 = vmul.f32 0.2, %v3882_v18  ;;  %v3867_v33 = vmul.f32 %v15229_v30, %v17447_v60  ;;  %v13181_v51 = vpop.f32.mrb[8].mxu0 }
 0x2bb   : > { %v4183_v20 = vsub.f32 %v17505_v5, %v17514_v8  ;;  %v17522_v19 = vsel %vm3893_vm6, %v3883_v1, %v3903_v45  ;;  %v3885_v34 = vadd.f32 %v17454_v48, %v3868_v63  ;;  %v15230_v38 = vadd.f32 %v13181_v51, %v16866_v27  ;;  %v3834_v32 = vpop.f32.mrb[9].mxu0  ;;  %v3958_v50 = vld [vmem:[#allocation2 + $0x10] sm:$0xff] }
 0x2bc   : > { %21867 = vst [vmem:[#allocation91_spill] sm:$0xff] %v17517_v47  ;;  %v17527_v35 = vsub.f32 %v3910_v58, %v17517_v47  ;;  %3943 = vst [vmem:[#allocation2 + $0x51] sm:$0xff] %v17522_v19  ;;  %v3912_v23 = vsel %vm3892_vm7, %v3882_v18, %v3902_v28  ;;  %v3884_v30 = vadd.f32 %v17454_v48, %v3867_v33  ;;  %v17532_v7 = vand.u32 4294901760, %v3958_v50 }
 0x2bd   : > { %v15231_v52 = vadd.f32 %v3834_v32, %v16871_v22  ;;  %3942 = vst [vmem:[#allocation2 + $0x41] sm:$0xff] %v3912_v23  ;;  %vm3895_vm8 = vcmp.ge.f32.partialorder %v3885_v34, 0.0  ;;  %v3905_v1 = vmul.f32 0.2, %v3885_v34  ;;  %v3870_v45 = vmul.f32 %v15230_v38, %v17447_v60 }
 0x2be   : > { %21868 = vst [vmem:[#allocation92_spill] sm:$0xff] %v17527_v35  ;;  %21869 = vst [vmem:[#allocation93_spill] sm:$0xff] %v17532_v7  ;;  %v17535_v27 = vand.u32 4294901760, %v4183_v20  ;;  %vm3894_vm9 = vcmp.ge.f32.partialorder %v3884_v30, 0.0  ;;  %v3904_v63 = vmul.f32 0.2, %v3884_v30  ;;  %v17539_v51 = vsub.f32 %v3958_v50, %v17532_v7 }
 0x2bf   : > { %v3869_v58 = vmul.f32 %v15231_v52, %v17447_v60  ;;  %v17541_v18 = vsel %vm3895_vm8, %v3885_v34, %v3905_v1  ;;  %v3887_v22 = vadd.f32 %v17454_v48, %v3870_v45  ;;  %v17545_v28 = vand.u32 4294901760, %v3911_v41  ;;  %v3960_v33 = vld [vmem:[#allocation2 + $0x30] sm:$0xff]  ;;  %v21875_v1 = vld [vmem:[#allocation15_spill] sm:$0xff] }
 0x2c0   : > { %21870 = vst [vmem:[#allocation94_spill] sm:$0xff] %v17535_v27  ;;  %21871 = vst [vmem:[#allocation95_spill] sm:$0xff] %v17539_v51  ;;  %4185 = vmatprep.mubr.f32.mxu0 %v17535_v27  ;;  %v17548_v38 = vand.u32 4294901760, %v17527_v35  ;;  %v17551_v20 = vsel %vm3894_vm9, %v3884_v30, %v3904_v63  ;;  %4715 = vmatmul.mubr.f32.vlgmr.msra.gmra.mrb[10].mxu1 %v17539_v51  ;;  %v3959_v60 = vld [vmem:[#allocation2 + $0x20] sm:$0xff]  ;;  %v17556_v50 = vand.u32 4294901760, %v17539_v51  ;;  %v17558_v34 = vand.u32 4294901760, %v3960_v33 }
 0x2c1   : > { %21872 = vst [vmem:[#allocation96_spill] sm:$0xff] %v17545_v28  ;;  %3945 = vst [vmem:[#allocation2 + $0x71] sm:$0xff] %v17541_v18  ;;  %v3886_v52 = vadd.f32 %v17454_v48, %v3869_v58  ;;  %vm3897_vm10 = vcmp.ge.f32.partialorder %v3887_v22, 0.0  ;;  %v3907_v32 = vmul.f32 0.2, %v3887_v22  ;;  %14169 = vmatpush3.bf16.msra.mxu1 %v21875_v1  ;;  %4721 = vmatprep.mubr.f32.mxu1 %v17527_v35  ;;  %v17563_v30 = vand.u32 4294901760, %v3959_v60 }
 0x2c2   : > { %21873 = vst [vmem:[#allocation97_spill] sm:$0xff] %v17548_v38  ;;  %21874 = vst [vmem:[#allocation98_spill] sm:$0xff] %v17558_v34  ;;  %v17566_v48 = vsub.f32 %v3911_v41, %v17545_v28  ;;  %v21878_v63 = vld [vmem:[#allocation13_spill] sm:$0xff]  ;;  %v4189_v58 = vsub.f32 %v17539_v51, %v17556_v50  ;;  %v17572_v5 = vsub.f32 %v3960_v33, %v17558_v34  ;;  %v17579_v61 = vand.u32 4294901760, %v3912_v23 }
 0x2c3   : > { %3944 = vst [vmem:[#allocation2 + $0x61] sm:$0xff] %v17551_v20  ;;  %21876 = vst [vmem:[#allocation99_spill] sm:$0xff] %v17563_v30  ;;  %vm3896_vm11 = vcmp.ge.f32.partialorder %v3886_v52, 0.0  ;;  %v3906_v45 = vmul.f32 0.2, %v3886_v52  ;;  %14171 = vmatprep.subr.bf16.mxu1 %v21878_v63  ;;  %v3917_v27 = vsel %vm3897_vm10, %v3887_v22, %v3907_v32  ;;  %v17575_v1 = vsub.f32 %v3959_v60, %v17563_v30  ;;  %v3962_v41 = vld [vmem:[#allocation2 + $0x50] sm:$0xff] }
 0x2c4   : > { %21877 = vst [vmem:[#allocation100_spill] sm:$0xff] %v17566_v48  ;;  %21879 = vst [vmem:[#allocation101_spill] sm:$0xff] %v17572_v5  ;;  %v4198_v16 = vsub.f32 %v17527_v35, %v17548_v38  ;;  %v17583_v63 = vand.u32 4294901760, %v4189_v58  ;;  %v17586_v51 = vand.u32 4294901760, %v17566_v48  ;;  %v3961_v33 = vld [vmem:[#allocation2 + $0x40] sm:$0xff]  ;;  %v17589_v22 = vand.u32 4294901760, %v17522_v19 }
 0x2c5   : > { %21880 = vst [vmem:[#allocation102_spill] sm:$0xff] %v17575_v1  ;;  %21881 = vst [vmem:[#allocation103_spill] sm:$0xff] %v17579_v61  ;;  %v17581_v28 = vsel %vm3896_vm11, %v3886_v52, %v3906_v45  ;;  %4724 = vmatmul.mubr.f32.gmra.mrb[12].mxu1 %v17575_v1  ;;  %v17598_v52 = vsub.f32 %v3912_v23, %v17579_v61  ;;  %v17601_v60 = vand.u32 4294901760, %v17575_v1  ;;  %v17603_v32 = vand.u32 4294901760, %v3961_v33  ;;  %v21889_v45 = vld [vmem:[#allocation16_spill] sm:$0xff] }
 0x2c6   : > { %3947 = vst [vmem:[#allocation2 + $0x91] sm:$0xff] %v3917_v27  ;;  %21882 = vst [vmem:[#allocation104_spill] sm:$0xff] %v17583_v63  ;;  %v17595_v27 = vand.u32 4294901760, %v4198_v16  ;;  %14173 = vmatpush3.bf16.msra.mxu1 %v21889_v45  ;;  %4191 = vmatmul.mubr.f32.vlgmr.msra.gmra.mrb[10].mxu0 %v17583_v63  ;;  %v4213_v58 = vsub.f32 %v17566_v48, %v17586_v51  ;;  %v17611_v35 = vsub.f32 %v17522_v19, %v17589_v22 }
 0x2c7   : > { %21883 = vst [vmem:[#allocation105_spill] sm:$0xff] %v17586_v51  ;;  %21884 = vst [vmem:[#allocation106_spill] sm:$0xff] %v17589_v22  ;;  %v17614_v16 = vand.u32 4294901760, %v17572_v5  ;;  %v17616_v23 = vand.u32 4294901760, %v3962_v41  ;;  %4730 = vmatprep.mubr.f32.mxu1 %v17566_v48  ;;  %14105 = vmatpush3.bf16.msra.mxu0 %v17472_v53  ;;  %v17623_v63 = vsub.f32 %v3961_v33, %v17603_v32  ;;  %v17626_v45 = vand.u32 4294901760, %v17598_v52  ;;  %v21896_v22 = vld [vmem:[#allocation14_spill] sm:$0xff] }
 0x2c8   : > { %3955 = vst [vmem:[#allocation2 + $0x90] sm:$0xff] %v21865_v62  ;;  %3956 = vst [vmem:[#allocation2 + $0x98] sm:$0x3] %v21865_v62  ;;  %v4204_v62 = vsub.f32 %v17575_v1, %v17601_v60  ;;  %v17629_v19 = vand.u32 4294901760, %v17551_v20  ;;  %14175 = vmatprep.subr.bf16.mxu1 %v21896_v22  ;;  %4200 = vmatprep.mubr.f32.mxu0 %v17595_v27  ;;  %v17633_v61 = vand.u32 4294901760, %v4213_v58  ;;  %v21898_v53 = vand.u32 4294901760, %v17460_v54 }
 0x2c9   : > { %3946 = vst [vmem:[#allocation2 + $0x81] sm:$0xff] %v17581_v28  ;;  %21885 = vst [vmem:[#allocation107_spill] sm:$0xff] %v17595_v27  ;;  %v21899_v48 = vand.u32 4294901760, %v17468_v42  ;;  %v4219_v33 = vsub.f32 %v17572_v5, %v17614_v16  ;;  %v21901_v34 = vand.u32 4294901760, %v17493_v37  ;;  %4733 = vmatmul.mubr.f32.gmra.mrb[14].mxu1 %v17572_v5  ;;  %14107 = vmatprep.subr.bf16.mxu0 %v17477_v15  ;;  %v17653_v42 = vand.u32 4294901760, %v17623_v63  ;;  %v21920_v27 = vld [vmem:[#allocation6_spill] sm:$0xff] }
 0x2ca   : > { %21886 = vst [vmem:[#allocation108_spill] sm:$0xff] %v17598_v52  ;;  %21887 = vst [vmem:[#allocation109_spill] sm:$0xff] %v17601_v60  ;;  %v3963_v21 = vld [vmem:[#allocation2 + $0x60] sm:$0xff]  ;;  %v17646_v22 = vand.u32 4294901760, %v4204_v62  ;;  %v17650_v54 = vsub.f32 %v3962_v41, %v17616_v23  ;;  %4739 = vmatprep.mubr.f32.mxu1 %v17598_v52  ;;  %v4228_v37 = vsub.f32 %v17598_v52, %v17626_v45  ;;  %v3964_v41 = vld [vmem:[#allocation2 + $0x70] sm:$0xff] }
 0x2cb   : > { %21888 = vst [vmem:[#allocation110_spill] sm:$0xff] %v17603_v32  ;;  %21890 = vst [vmem:[#allocation111_spill] sm:$0xff] %v17611_v35  ;;  %v14108_v1 = vpack.c.bf16 %v21899_v48, %v21898_v53  ;;  %v21900_v32 = vand.u32 4294901760, %v17484_v49  ;;  %v17656_v48 = vand.u32 4294901760, %v17611_v35  ;;  %v21906_v49 = vld [vmem:[#allocation3_spill] sm:$0xff]  ;;  %v17664_v62 = vsub.f32 %v17551_v20, %v17629_v19 }
 0x2cc   : > { %21891 = vst [vmem:[#allocation112_spill] sm:$0xff] %v17614_v16  ;;  %21892 = vst [vmem:[#allocation113_spill] sm:$0xff] %v17616_v23  ;;  %14177 = vmatpush3.bf16.msra.mxu1 %v21906_v49  ;;  %v17666_v15 = vand.u32 4294901760, %v3963_v21  ;;  %4206 = vmatmul.mubr.f32.gmra.mrb[12].mxu0 %v17646_v22  ;;  %v17674_v58 = vand.u32 4294901760, %v4219_v33  ;;  %v4234_v53 = vsub.f32 %v17623_v63, %v17653_v42  ;;  %v17685_v5 = vand.u32 4294901760, %v17650_v54 }
 0x2cd   : > { %21893 = vst [vmem:[#allocation114_spill] sm:$0xff] %v17623_v63  ;;  %21894 = vst [vmem:[#allocation115_spill] sm:$0xff] %v17626_v45  ;;  %v14110_v30 = vpack.c.bf16 %v21901_v34, %v21900_v32  ;;  %v17669_v34 = vand.u32 4294901760, %v17541_v18  ;;  %v21910_v32 = vld [vmem:[#allocation4_spill] sm:$0xff]  ;;  %4215 = vmatprep.mubr.f32.mxu0 %v17633_v61  ;;  %14109 = vmatpush3.bf16.msra.mxu0 %v14108_v1  ;;  %v4243_v20 = vsub.f32 %v17611_v35, %v17656_v48  ;;  %v21915_v1 = vld [vmem:[#allocation5_spill] sm:$0xff] }
 0x2ce   : > { %21895 = vst [vmem:[#allocation116_spill] sm:$0xff] %v17629_v19  ;;  %21897 = vst [vmem:[#allocation117_spill] sm:$0xff] %v17633_v61  ;;  %14179 = vmatprep.subr.bf16.mxu1 %v21910_v32  ;;  %4742 = vmatmul.mubr.f32.gmra.mrb[16].mxu1 %v17623_v63  ;;  %v17682_v52 = vsub.f32 %v3963_v21, %v17666_v15  ;;  %v17691_v33 = vand.u32 4294901760, %v4228_v37  ;;  %v17698_v63 = vand.u32 4294901760, %v17664_v62  ;;  %v17701_v21 = vand.u32 4294901760, %v17581_v28 }
 0x2cf   : > { %21902 = vst [vmem:[#allocation118_spill] sm:$0xff] %v17646_v22  ;;  %21903 = vst [vmem:[#allocation119_spill] sm:$0xff] %v17650_v54  ;;  %14111 = vmatprep.subr.bf16.mxu0 %v14110_v30  ;;  %v17687_v22 = vand.u32 4294901760, %v3964_v41  ;;  %4748 = vmatprep.mubr.f32.mxu1 %v17611_v35  ;;  %v17695_v30 = vsub.f32 %v17541_v18, %v17669_v34  ;;  %v17707_v37 = vand.u32 4294901760, %v4234_v53 }
 0x2d0   : > { %21904 = vst [vmem:[#allocation120_spill] sm:$0xff] %v17653_v42  ;;  %21905 = vst [vmem:[#allocation121_spill] sm:$0xff] %v17656_v48  ;;  %14181 = vmatpush3.bf16.msra.mxu1 %v21915_v1  ;;  %v3965_v61 = vld [vmem:[#allocation2 + $0x80] sm:$0xff]  ;;  %4221 = vmatmul.mubr.f32.gmra.mrb[14].mxu0 %v17674_v58  ;;  %v4249_v18 = vsub.f32 %v17650_v54, %v17685_v5  ;;  %v17729_v53 = vsub.f32 %v17581_v28, %v17701_v21 }
 0x2d1   : > { %21907 = vst [vmem:[#allocation3_spill] sm:$0xff] %v17664_v62  ;;  %21908 = vst [vmem:[#allocation122_spill] sm:$0xff] %v17666_v15  ;;  %14183 = vmatprep.subr.bf16.mxu1 %v21920_v27  ;;  %4230 = vmatprep.mubr.f32.mxu0 %v17691_v33  ;;  %v17714_v35 = vsub.f32 %v3964_v41, %v17687_v22  ;;  %v17719_v27 = vand.u32 4294901760, %v3965_v61  ;;  %v17732_v41 = vand.u32 4294901760, %v17695_v30 }
 0x2d2   : > { %21909 = vst [vmem:[#allocation123_spill] sm:$0xff] %v17669_v34  ;;  %21911 = vst [vmem:[#allocation4_spill] sm:$0xff] %v17674_v58  ;;  %14113 = vmatpush3.bf16.msra.mxu0 %v16912_v2  ;;  %4751 = vmatmul.mubr.f32.gmra.mrb[18].mxu1 %v17650_v54  ;;  %v17717_v58 = vand.u32 4294901760, %v17682_v52  ;;  %v17723_v2 = vand.u32 4294901760, %v4243_v20  ;;  %v17739_v20 = vand.u32 4294901760, %v4249_v18 }
 0x2d3   : > { %21912 = vst [vmem:[#allocation124_spill] sm:$0xff] %v17682_v52  ;;  %21913 = vst [vmem:[#allocation125_spill] sm:$0xff] %v17685_v5  ;;  %14115 = vmatprep.subr.bf16.mxu0 %v16933_v12  ;;  %4757 = vmatprep.mubr.f32.mxu1 %v17664_v62  ;;  %v4258_v12 = vsub.f32 %v17664_v62, %v17698_v63  ;;  %v21930_v62 = vld [vmem:[#allocation19_spill] sm:$0xff]  ;;  %v17745_v54 = vsub.f32 %v3965_v61, %v17719_v27  ;;  %v21937_v61 = vld [vmem:[#allocation20_spill] sm:$0xff] }
 0x2d4   : > { %21914 = vst [vmem:[#allocation126_spill] sm:$0xff] %v17687_v22  ;;  %21916 = vst [vmem:[#allocation5_spill] sm:$0xff] %v17691_v33  ;;  %v21925_v33 = vld [vmem:[#allocation7_spill] sm:$0xff]  ;;  %4236 = vmatmul.mubr.f32.gmra.mrb[16].mxu0 %v17707_v37  ;;  %v4264_v28 = vsub.f32 %v17682_v52, %v17717_v58  ;;  %v4273_v18 = vsub.f32 %v17695_v30, %v17732_v41 }
 0x2d5   : > { %21917 = vst [vmem:[#allocation127_spill] sm:$0xff] %v17695_v30  ;;  %21918 = vst [vmem:[#allocation128_spill] sm:$0xff] %v17698_v63  ;;  %14185 = vmatpush3.bf16.msra.mxu1 %v21925_v33  ;;  %4245 = vmatprep.mubr.f32.mxu0 %v17723_v2 }
 0x2d6   : > { %21919 = vst [vmem:[#allocation129_spill] sm:$0xff] %v17701_v21  ;;  %21921 = vst [vmem:[#allocation130_spill] sm:$0xff] %v17707_v37  ;;  %14187 = vmatprep.subr.bf16.mxu1 %v16850_v13  ;;  %14117 = vmatpush3.bf16.msra.mxu0 %v16941_v43  ;;  %v17748_v37 = vand.u32 4294901760, %v17714_v35  ;;  %v21933_v13 = vld [vmem:[#allocation9_spill] sm:$0xff]  ;;  %v17752_v43 = vand.u32 4294901760, %v4258_v12 }
 0x2d7   : > { %21922 = vst [vmem:[#allocation131_spill] sm:$0xff] %v17714_v35  ;;  %21923 = vst [vmem:[#allocation132_spill] sm:$0xff] %v17717_v58  ;;  %4760 = vmatmul.mubr.f32.gmra.mrb[20].mxu1 %v17682_v52  ;;  %14119 = vmatprep.subr.bf16.mxu0 %v21930_v62  ;;  %v17757_v62 = vand.u32 4294901760, %v17729_v53  ;;  %v21936_v52 = vld [vmem:[#allocation10_spill] sm:$0xff] }
 0x2d8   : > { %21924 = vst [vmem:[#allocation133_spill] sm:$0xff] %v17719_v27  ;;  %21926 = vst [vmem:[#allocation7_spill] sm:$0xff] %v17723_v2  ;;  %4766 = vmatprep.mubr.f32.mxu1 %v17695_v30  ;;  %4251 = vmatmul.mubr.f32.gmra.mrb[18].mxu0 %v17739_v20  ;;  %v17764_v2 = vand.u32 4294901760, %v4264_v28  ;;  %v4279_v12 = vsub.f32 %v17714_v35, %v17748_v37  ;;  %v17770_v30 = vand.u32 4294901760, %v17745_v54  ;;  %v21942_v28 = vld [vmem:[#allocation17_spill] sm:$0xff] }
 0x2d9   : > { %21927 = vst [vmem:[#allocation134_spill] sm:$0xff] %v17729_v53  ;;  %21928 = vst [vmem:[#allocation135_spill] sm:$0xff] %v17732_v41  ;;  %14189 = vmatpush3.bf16.msra.mxu1 %v21933_v13  ;;  %4260 = vmatprep.mubr.f32.mxu0 %v17752_v43  ;;  %v21940_v13 = vld [vmem:[#allocation11_spill] sm:$0xff] }
 0x2da   : > { %21929 = vst [vmem:[#allocation136_spill] sm:$0xff] %v17739_v20  ;;  %21931 = vst [vmem:[#allocation19_spill] sm:$0xff] %v17745_v54  ;;  %14191 = vmatprep.subr.bf16.mxu1 %v21936_v52  ;;  %14121 = vmatpush3.bf16.msra.mxu0 %v21937_v61  ;;  %v17774_v20 = vand.u32 4294901760, %v4273_v18  ;;  %v4288_v61 = vsub.f32 %v17729_v53, %v17757_v62  ;;  %v4294_v18 = vsub.f32 %v17745_v54, %v17770_v30 }
 0x2db   : > { %21932 = vst [vmem:[#allocation137_spill] sm:$0xff] %v17748_v37  ;;  %21934 = vst [vmem:[#allocation138_spill] sm:$0xff] %v17752_v43  ;;  %4769 = vmatmul.mubr.f32.gmra.mrb[22].mxu1 %v17714_v35  ;;  %14123 = vmatprep.subr.bf16.mxu0 %v16975_v17  ;;  %v17783_v17 = vand.u32 4294901760, %v4279_v12  ;;  %v21944_v35 = vld [vmem:[#allocation18_spill] sm:$0xff]  ;;  %v21948_v12 = vld [vmem:[#allocation21_spill] sm:$0xff]  ;;  %v21950_v43 = vand.u32 4294901760, %v16462_v14 }
 0x2dc   : > { %21935 = vst [vmem:[#allocation139_spill] sm:$0xff] %v17757_v62  ;;  %21938 = vst [vmem:[#allocation20_spill] sm:$0xff] %v17764_v2  ;;  %4775 = vmatprep.mubr.f32.mxu1 %v17729_v53  ;;  %4266 = vmatmul.mubr.f32.gmra.mrb[20].mxu0 %v17764_v2  ;;  %v17790_v53 = vand.u32 4294901760, %v4288_v61  ;;  %v21946_v2 = vand.u32 4294901760, %v16443_v57  ;;  %v17805_v61 = vand.u32 4294901760, %v4294_v18  ;;  %v21953_v57 = vand.u32 4294901760, %v17008_v59 }
 0x2dd   : > { %21939 = vst [vmem:[#allocation140_spill] sm:$0xff] %v17770_v30  ;;  %14193 = vmatpush3.bf16.msra.mxu1 %v21940_v13  ;;  %21941 = vst [vmem:[#allocation141_spill] sm:$0xff] %v17774_v20  ;;  %4275 = vmatprep.mubr.f32.mxu0 %v17774_v20  ;;  %v21947_v20 = vand.u32 4294901760, %v16452_v10  ;;  %v21954_v10 = vand.u32 4294901760, %v17013_v9  ;;  %v21957_v14 = vand.u32 4294901760, %v16489_v40  ;;  %v21960_v9 = vand.u32 4294901760, %v17020_v0 }
 0x2de   : > { %14195 = vmatprep.subr.bf16.mxu1 %v21942_v28  ;;  %14125 = vmatpush3.bf16.msra.mxu0 %v16983_v4  ;;  %21943 = vst [vmem:[#allocation142_spill] sm:$0xff] %v17783_v17  ;;  %21945 = vst [vmem:[#allocation143_spill] sm:$0xff] %v17790_v53  ;;  %v21963_v40 = vand.u32 4294901760, %v17056_v25  ;;  %v21967_v0 = vand.u32 4294901760, %v17085_v6  ;;  %v21969_v25 = vand.u32 4294901760, %v17118_v3  ;;  %v21976_v6 = vld [vmem:[#allocation96_spill] sm:$0xff] }
 0x2df   : > { %4778 = vmatmul.mubr.f32.gmra.mrb[24].mxu1 %v17745_v54  ;;  %14127 = vmatprep.subr.bf16.mxu0 %v16988_v46  ;;  %v14200_v4 = vpack.c.bf16 %v21947_v20, %v21946_v2  ;;  %v21949_v46 = vand.u32 4294901760, %v16457_v29  ;;  %21952 = vst [vmem:[#allocation21_spill] sm:$0xff] %v17805_v61  ;;  %v17812_v2 = vpack.c.bf16 %v21954_v10, %v21953_v57  ;;  %v21956_v29 = vand.u32 4294901760, %v16476_v11  ;;  %v21979_v10 = vld [vmem:[#allocation37_spill] sm:$0xff]  ;;  %v17985_v13 = vld [vmem:[%s21107_s4 + $0x2a0] sm:$0xff] }
 0x2e0   : > { %4882 = vmatprep.mubr.f32.mxu1 %v17514_v8  ;;  %4281 = vmatmul.mubr.f32.gmra.mrb[22].mxu0 %v17783_v17  ;;  %v21958_v20 = vand.u32 4294901760, %v16501_v36  ;;  %v21964_v36 = vand.u32 4294901760, %v17061_v55  ;;  %v21970_v55 = vld [vmem:[#allocation34_spill] sm:$0xff]  ;;  %v21980_v3 = vand.u32 4294901760, %v21979_v10 }
 0x2e1   : > { %14197 = vmatpush3.bf16.msra.mxu1 %v21944_v35  ;;  %v14202_v54 = vpack.c.bf16 %v21950_v43, %v21949_v46  ;;  %4290 = vmatprep.mubr.f32.mxu0 %v17790_v53  ;;  %v21951_v35 = vld [vmem:[#allocation22_spill] sm:$0xff]  ;;  %v21961_v43 = vand.u32 4294901760, %v17025_v56  ;;  %v21977_v46 = vld [vmem:[#allocation36_spill] sm:$0xff] }
 0x2e2   : > { %14199 = vmatprep.subr.bf16.mxu1 %v21948_v12  ;;  %14129 = vmatpush3.bf16.msra.mxu0 %v21951_v35  ;;  %21955 = vst [vmem:[#allocation22_spill] sm:$0xff] %v17812_v2  ;;  %v14204_v35 = vpack.c.bf16 %v21957_v14, %v21956_v29  ;;  %v21974_v12 = vld [vmem:[#allocation99_spill] sm:$0xff]  ;;  %v21978_v57 = vand.u32 4294901760, %v21977_v46  ;;  %v21998_v46 = vld [vmem:[#allocation54_spill] sm:$0xff] }
 0x2e3   : > { %14131 = vmatprep.subr.bf16.mxu0 %v17029_v31  ;;  %v21959_v31 = vand.u32 4294901760, %v16507_v39  ;;  %v17830_v11 = vpack.c.bf16 %v21961_v43, %v21960_v9  ;;  %v17838_v39 = vpack.c.bf16 %v21964_v36, %v21963_v40  ;;  %v21982_v14 = vld [vmem:[#allocation43_spill] sm:$0xff]  ;;  %v21987_v9 = vld [vmem:[#allocation29_spill] sm:$0xff]  ;;  %v21988_v43 = vld [vmem:[#allocation98_spill] sm:$0xff] }
 0x2e4   : > { %4886 = vmatmul.mubr.f32.vlgmr.msra.gmra.mrb[26].mxu1 %v17556_v50  ;;  %4296 = vmatmul.mubr.f32.gmra.mrb[24].mxu0 %v17805_v61  ;;  %v17868_v29 = vpack.c.bf16 %v21980_v3, %v21978_v57  ;;  %v21989_v40 = vld [vmem:[#allocation35_spill] sm:$0xff]  ;;  %v21999_v57 = vand.u32 4294901760, %v21998_v46  ;;  %v22001_v3 = vld [vmem:[#allocation38_spill] sm:$0xff] }
 0x2e5   : > { %14201 = vmatpush3.bf16.msra.mxu1 %v14200_v4  ;;  %4893 = vmatprep.mubr.f32.mxu1 %v17548_v38  ;;  %v14206_v59 = vpack.c.bf16 %v21959_v31, %v21958_v20  ;;  %21962 = vst [vmem:[#allocation144_spill] sm:$0xff] %v17830_v11  ;;  %21965 = vst [vmem:[#allocation145_spill] sm:$0xff] %v17838_v39  ;;  %v21973_v4 = vld [vmem:[#allocation27_spill] sm:$0xff]  ;;  %v21984_v20 = vld [vmem:[#allocation44_spill] sm:$0xff] }
 0x2e6   : > { %14203 = vmatprep.subr.bf16.mxu1 %v14202_v54  ;;  %14133 = vmatpush3.bf16.msra.mxu0 %v17041_v24  ;;  %v21966_v24 = vand.u32 4294901760, %v17080_v26  ;;  %v21971_v54 = vand.u32 4294901760, %v21970_v55  ;;  %v21975_v26 = vld [vmem:[#allocation28_spill] sm:$0xff]  ;;  %21981 = vst [vmem:[#allocation27_spill] sm:$0xff] %v17868_v29  ;;  %v21985_v31 = vand.u32 4294901760, %v21984_v20  ;;  %v21990_v36 = vld [vmem:[#allocation103_spill] sm:$0xff] }
 0x2e7   : > { %4526 = vmatprep.mubr.f32.mxu0 %v17497_v44  ;;  %14551 = vmatprep.subr.bf16.mxu0 %v17812_v2  ;;  %v22004_v20 = vld [vmem:[#allocation106_spill] sm:$0xff] }
 0x2e8   : > { %4897 = vmatmul.mubr.f32.gmra.mrb[28].mxu1 %v17601_v60  ;;  %v17848_v56 = vpack.c.bf16 %v21967_v0, %v21966_v24  ;;  %v17856_v18 = vpack.c.bf16 %v21971_v54, %v21969_v25  ;;  %v21991_v24 = vld [vmem:[#allocation46_spill] sm:$0xff]  ;;  %v21993_v25 = vld [vmem:[#allocation47_spill] sm:$0xff] }
 0x2e9   : > { %14205 = vmatpush3.bf16.msra.mxu1 %v14204_v35  ;;  %4904 = vmatprep.mubr.f32.mxu1 %v17586_v51  ;;  %v21983_v35 = vand.u32 4294901760, %v21982_v14  ;;  %v21992_v0 = vand.u32 4294901760, %v21991_v24  ;;  %v21994_v55 = vand.u32 4294901760, %v21993_v25  ;;  %v22002_v14 = vld [vmem:[#allocation110_spill] sm:$0xff]  ;;  %v22010_v25 = vld [vmem:[#allocation63_spill] sm:$0xff] }
 0x2ea   : > { %4528 = vmatmul.mubr.f32.vlgmr.msra.gmra.mrb[26].mxu0 %v17532_v7  ;;  %14207 = vmatprep.subr.bf16.mxu1 %v14206_v59  ;;  %21968 = vst [vmem:[#allocation146_spill] sm:$0xff] %v17848_v56  ;;  %21972 = vst [vmem:[#allocation34_spill] sm:$0xff] %v17856_v18 }
 0x2eb   : > { %4533 = vmatprep.mubr.f32.mxu0 %v17517_v47  ;;  %14553 = vmatpush3.bf16.msra.mxu0 %v17830_v11  ;;  %v17876_v59 = vpack.c.bf16 %v21985_v31, %v21983_v35  ;;  %v17888_v54 = vpack.c.bf16 %v21994_v55, %v21992_v0  ;;  %v22003_v35 = vld [vmem:[#allocation45_spill] sm:$0xff]  ;;  %v22005_v31 = vld [vmem:[#allocation56_spill] sm:$0xff]  ;;  %v22011_v55 = vand.u32 4294901760, %v22010_v25 }
 0x2ec   : > { %4908 = vmatmul.mubr.f32.gmra.mrb[30].mxu1 %v17614_v16  ;;  %14555 = vmatprep.subr.bf16.mxu0 %v17838_v39 }
 0x2ed   : > { %14209 = vmatpush3.bf16.msra.mxu1 %v21973_v4  ;;  %4915 = vmatprep.mubr.f32.mxu1 %v17626_v45  ;;  %21986 = vst [vmem:[#allocation28_spill] sm:$0xff] %v17876_v59  ;;  %21995 = vst [vmem:[#allocation36_spill] sm:$0xff] %v17888_v54  ;;  %v21996_v4 = vld [vmem:[#allocation53_spill] sm:$0xff] }
 0x2ee   : > { %4535 = vmatmul.mubr.f32.gmra.mrb[28].mxu0 %v21974_v12  ;;  %14211 = vmatprep.subr.bf16.mxu1 %v21975_v26  ;;  %v21997_v26 = vand.u32 4294901760, %v21996_v4  ;;  %v22012_v4 = vld [vmem:[#allocation64_spill] sm:$0xff] }
 0x2ef   : > { %4540 = vmatprep.mubr.f32.mxu0 %v21976_v6  ;;  %14557 = vmatpush3.bf16.msra.mxu0 %v17848_v56 }
 0x2f0   : > { %4919 = vmatmul.mubr.f32.gmra.mrb[32].mxu1 %v17653_v42  ;;  %14559 = vmatprep.subr.bf16.mxu0 %v17856_v18  ;;  %v17896_v10 = vpack.c.bf16 %v21999_v57, %v21997_v26  ;;  %v22013_v26 = vand.u32 4294901760, %v22012_v4  ;;  %v3967_v57 = vld [vmem:[#allocation2 + $0x1] sm:$0xff]  ;;  %v22023_v4 = vld [vmem:[#allocation73_spill] sm:$0xff] }
 0x2f1   : > { %14213 = vmatpush3.bf16.msra.mxu1 %v21987_v9  ;;  %4926 = vmatprep.mubr.f32.mxu1 %v17656_v48  ;;  %v22006_v9 = vand.u32 4294901760, %v22005_v31  ;;  %v22017_v31 = vld [vmem:[#allocation66_spill] sm:$0xff] }
 0x2f2   : > { %4542 = vmatmul.mubr.f32.gmra.mrb[30].mxu0 %v21988_v43  ;;  %14215 = vmatprep.subr.bf16.mxu1 %v21989_v40  ;;  %22000 = vst [vmem:[#allocation37_spill] sm:$0xff] %v17896_v10  ;;  %v22007_v40 = vld [vmem:[#allocation57_spill] sm:$0xff]  ;;  %v17916_v46 = vpack.c.bf16 %v22013_v26, %v22011_v55  ;;  %v17930_v55 = vand.u32 4294901760, %v3967_v57  ;;  %v22024_v26 = vand.u32 4294901760, %v22023_v4  ;;  %v17960_v4 = vld [vmem:[%s21107_s4 + $0x298] sm:$0xff] }
 0x2f3   : > { %4547 = vmatprep.mubr.f32.mxu0 %v21990_v36  ;;  %14561 = vmatpush3.bf16.msra.mxu0 %v17868_v29  ;;  %v22008_v24 = vand.u32 4294901760, %v22007_v40  ;;  %v22019_v40 = vld [vmem:[#allocation67_spill] sm:$0xff]  ;;  %22029 = vst [vmem:[#allocation47_spill] sm:$0xff] %v17960_v4 }
 0x2f4   : > { %4930 = vmatmul.mubr.f32.gmra.mrb[34].mxu1 %v17685_v5  ;;  %14563 = vmatprep.subr.bf16.mxu0 %v17876_v59  ;;  %22014 = vst [vmem:[#allocation44_spill] sm:$0xff] %v17916_v46  ;;  %22022 = vst [vmem:[#allocation35_spill] sm:$0xff] %v17930_v55 }
 0x2f5   : > { %14217 = vmatpush3.bf16.msra.mxu1 %v22001_v3  ;;  %4937 = vmatprep.mubr.f32.mxu1 %v17698_v63  ;;  %v17908_v0 = vpack.c.bf16 %v22008_v24, %v22006_v9  ;;  %v22015_v3 = vld [vmem:[#allocation48_spill] sm:$0xff]  ;;  %v22018_v9 = vand.u32 4294901760, %v22017_v31  ;;  %v22020_v24 = vand.u32 4294901760, %v22019_v40  ;;  %v17943_v31 = vld [vmem:[%s21107_s4 + $0x280] sm:$0xff]  ;;  %v17953_v40 = vld [vmem:[%s21107_s4 + $0x290] sm:$0xff] }
 0x2f6   : > { %4549 = vmatmul.mubr.f32.gmra.mrb[32].mxu0 %v22002_v14  ;;  %14219 = vmatprep.subr.bf16.mxu1 %v22003_v35  ;;  %v22016_v35 = vld [vmem:[#allocation55_spill] sm:$0xff]  ;;  %v22038_v63 = vld [vmem:[#allocation82_spill] sm:$0xff]  ;;  %v22049_v48 = vand.u32 4294901760, %v17943_v31 }
 0x2f7   : > { %4554 = vmatprep.mubr.f32.mxu0 %v22004_v20  ;;  %14565 = vmatpush3.bf16.msra.mxu0 %v17888_v54  ;;  %22009 = vst [vmem:[#allocation43_spill] sm:$0xff] %v17908_v0  ;;  %v17928_v25 = vpack.c.bf16 %v22020_v24, %v22018_v9  ;;  %v17948_v9 = vld [vmem:[%s21107_s4 + $0x288] sm:$0xff]  ;;  %v22028_v24 = vld [vmem:[#allocation58_spill] sm:$0xff]  ;;  %v22039_v28 = vand.u32 4294901760, %v22038_v63 }
 0x2f8   : > { %4941 = vmatmul.mubr.f32.gmra.mrb[36].mxu1 %v17717_v58  ;;  %14567 = vmatprep.subr.bf16.mxu0 %v17896_v10  ;;  %v17997_v63 = vld [vmem:[%s21107_s4 + $0x2a8] sm:$0xff]  ;;  %v22050_v52 = vand.u32 4294901760, %v17948_v9 }
 0x2f9   : > { %14221 = vmatpush3.bf16.msra.mxu1 %v22015_v3  ;;  %4948 = vmatprep.mubr.f32.mxu1 %v17732_v41  ;;  %22021 = vst [vmem:[#allocation29_spill] sm:$0xff] %v17928_v25  ;;  %v22025_v3 = vld [vmem:[#allocation74_spill] sm:$0xff]  ;;  %v22036_v41 = vld [vmem:[#allocation81_spill] sm:$0xff] }
 0x2fa   : > { %4556 = vmatmul.mubr.f32.gmra.mrb[34].mxu0 %v17616_v23  ;;  %14223 = vmatprep.subr.bf16.mxu1 %v22016_v35  ;;  %v22026_v35 = vand.u32 4294901760, %v22025_v3  ;;  %v10962_v3 = vld [vmem:[%s21107_s4 + $0x388] sm:$0xff]  ;;  %v22037_v58 = vand.u32 4294901760, %v22036_v41  ;;  %v18044_v42 = vpack.c.bf16 %v22050_v52, %v22049_v48 }
 0x2fb   : > { %4561 = vmatprep.mubr.f32.mxu0 %v17629_v19  ;;  %14569 = vmatpush3.bf16.msra.mxu0 %v17908_v0  ;;  %v22042_v41 = vld [vmem:[#allocation68_spill] sm:$0xff] }
 0x2fc   : > { %4952 = vmatmul.mubr.f32.gmra.mrb[38].mxu1 %v17748_v37  ;;  %14571 = vmatprep.subr.bf16.mxu0 %v17916_v46  ;;  %v17938_v61 = vpack.c.bf16 %v22026_v35, %v22024_v26  ;;  %v10961_v26 = vld [vmem:[%s21107_s4 + $0x380] sm:$0xff]  ;;  %v22030_v35 = vld [vmem:[#allocation65_spill] sm:$0xff]  ;;  %v17980_v5 = vpack.c.bf16 %v22039_v28, %v22037_v58  ;;  %v22046_v46 = vld [vmem:[#allocation84_spill] sm:$0xff]  ;;  %22051 = vst [vmem:[#allocation56_spill] sm:$0xff] %v18044_v42 }
 0x2fd   : > { %14225 = vmatpush3.bf16.msra.mxu1 %v22028_v24  ;;  %4959 = vmatprep.mubr.f32.mxu1 %v17757_v62  ;;  %v22031_v24 = vld [vmem:[#allocation75_spill] sm:$0xff]  ;;  %v22033_v62 = vld [vmem:[#allocation76_spill] sm:$0xff]  ;;  %v22047_v28 = vand.u32 4294901760, %v22046_v46  ;;  %v22052_v46 = vand.u32 4294901760, %v17953_v40 }
 0x2fe   : > { %22027 = vst [vmem:[#allocation46_spill] sm:$0xff] %v17938_v61  ;;  %4563 = vmatmul.mubr.f32.gmra.mrb[36].mxu0 %v17666_v15  ;;  %14227 = vmatprep.subr.bf16.mxu1 %v22030_v35  ;;  %v22032_v53 = vand.u32 4294901760, %v22031_v24  ;;  %v22034_v17 = vand.u32 4294901760, %v22033_v62  ;;  %22040 = vst [vmem:[#allocation54_spill] sm:$0xff] %v17980_v5  ;;  %v17990_v35 = vsub.f32 %v3967_v57, %v17930_v55  ;;  %v10945_v58 = vld [vmem:[%s21107_s4 + $0x300] sm:$0xff]  ;;  %v10946_v62 = vld [vmem:[%s21107_s4 + $0x308] sm:$0xff] }
 0x2ff   : > { %4568 = vmatprep.mubr.f32.mxu0 %v17669_v34  ;;  %14573 = vmatpush3.bf16.msra.mxu0 %v17928_v25  ;;  %v8574_v57 = vand.u32 4294901760, %v10961_v26  ;;  %v8577_v24 = vand.u32 4294901760, %v10962_v3  ;;  %v22043_v55 = vld [vmem:[#allocation12_spill] sm:$0xff]  ;;  %v18029_v25 = vld [vmem:[%s21107_s4 + $0x2b8] sm:$0xff]  ;;  %v22056_v42 = vld [vmem:[#allocation15_spill] sm:$0xff] }
 0x300   : > { %v17974_v37 = vpack.c.bf16 %v22034_v17, %v22032_v53  ;;  %22041 = vst [vmem:[#allocation38_spill] sm:$0xff] %v17990_v35  ;;  %4963 = vmatmul.mubr.f32.gmra.mrb[40].mxu1 %v17770_v30  ;;  %14575 = vmatprep.subr.bf16.mxu0 %v17938_v61  ;;  %v10963_v53 = vld [vmem:[%s21107_s4 + $0x390] sm:$0xff]  ;;  %v10964_v30 = vld [vmem:[%s21107_s4 + $0x398] sm:$0xff]  ;;  %v8526_v61 = vand.u32 4294901760, %v10945_v58 }
 0x301   : > { %14229 = vmatpush3.bf16.msra.mxu1 %v22042_v41  ;;  %5129 = vmatprep.mubr.f32.mxu1 %v17497_v44  ;;  %v8529_v41 = vand.u32 4294901760, %v10946_v62  ;;  %v18024_v44 = vld [vmem:[%s21107_s4 + $0x2b0] sm:$0xff]  ;;  %v18060_v52 = vpack.c.bf16 %v8577_v24, %v8574_v57  ;;  %v8580_v48 = vand.u32 4294901760, %v10963_v53  ;;  %v8583_v0 = vand.u32 4294901760, %v10964_v30 }
 0x302   : > { %22035 = vst [vmem:[#allocation53_spill] sm:$0xff] %v17974_v37  ;;  %4570 = vmatmul.mubr.f32.gmra.mrb[38].mxu0 %v17687_v22  ;;  %14231 = vmatprep.subr.bf16.mxu1 %v22043_v55  ;;  %v22044_v55 = vld [vmem:[#allocation83_spill] sm:$0xff] }
 0x303   : > { %4575 = vmatprep.mubr.f32.mxu0 %v17701_v21  ;;  %14577 = vmatpush3.bf16.msra.mxu0 %v17974_v37  ;;  %v22045_v17 = vand.u32 4294901760, %v22044_v55  ;;  %v10947_v21 = vld [vmem:[%s21107_s4 + $0x310] sm:$0xff]  ;;  %v10948_v55 = vld [vmem:[%s21107_s4 + $0x318] sm:$0xff]  ;;  %22055 = vst [vmem:[#allocation63_spill] sm:$0xff] %v18060_v52  ;;  %v10965_v37 = vld [vmem:[%s21107_s4 + $0x3a0] sm:$0xff] }
 0x304   : > { %5131 = vmatmul.mubr.f32.vlgmr.msra.gmra.mrb[42].mxu1 %v17532_v7  ;;  %14579 = vmatprep.subr.bf16.mxu0 %v17980_v5  ;;  %v10966_v7 = vld [vmem:[%s21107_s4 + $0x3a8] sm:$0xff]  ;;  %v18070_v5 = vsub.f32 %v10961_v26, %v8574_v57  ;;  %v22061_v26 = vand.u32 4294901760, %v17985_v13  ;;  %v8532_v52 = vand.u32 4294901760, %v10947_v21 }
 0x305   : > { %v18037_v22 = vpack.c.bf16 %v22047_v28, %v22045_v17  ;;  %v22053_v28 = vand.u32 4294901760, %v17960_v4  ;;  %14233 = vmatpush3.bf16.msra.mxu1 %v22056_v42  ;;  %5136 = vmatprep.mubr.f32.mxu1 %v17517_v47  ;;  %v18084_v4 = vld [vmem:[%s21107_s4 + $0x2c8] sm:$0xff]  ;;  %v22060_v42 = vld [vmem:[#allocation13_spill] sm:$0xff]  ;;  %v22065_v47 = vand.u32 4294901760, %v17990_v35  ;;  %v18111_v35 = vpack.c.bf16 %v8583_v0, %v8580_v48 }
 0x306   : > { %22057 = vst [vmem:[#allocation64_spill] sm:$0xff] %v18070_v5  ;;  %22059 = vst [vmem:[#allocation55_spill] sm:$0xff] %v18084_v4  ;;  %4577 = vmatmul.mubr.f32.gmra.mrb[40].mxu0 %v17719_v27  ;;  %14235 = vmatprep.subr.bf16.mxu1 %v22060_v42  ;;  %v18101_v5 = vsub.f32 %v10946_v62, %v8529_v41  ;;  %v8586_v42 = vand.u32 4294901760, %v10965_v37  ;;  %v8589_v27 = vand.u32 4294901760, %v10966_v7  ;;  %v10967_v62 = vld [vmem:[%s21107_s4 + $0x3b0] sm:$0xff] }
 0x307   : > { %22048 = vst [vmem:[#allocation45_spill] sm:$0xff] %v18037_v22  ;;  %v18058_v17 = vpack.c.bf16 %v22053_v28, %v22052_v46  ;;  %v18072_v46 = vsub.f32 %v10962_v3, %v8577_v24  ;;  %v22062_v3 = vand.u32 4294901760, %v17997_v63  ;;  %v18094_v24 = vpack.c.bf16 %v8529_v41, %v8526_v61  ;;  %14581 = vmatpush3.bf16.msra.mxu0 %v18037_v22  ;;  %v10968_v41 = vld [vmem:[%s21107_s4 + $0x3b8] sm:$0xff] }
 0x308   : > { %v8535_v28 = vand.u32 4294901760, %v10948_v55  ;;  %7078 = vmatprep.mubr.f32.mxu0 %v22065_v47  ;;  %22067 = vst [vmem:[#allocation74_spill] sm:$0xff] %v18101_v5  ;;  %5138 = vmatmul.mubr.f32.gmra.mrb[44].mxu1 %v21974_v12  ;;  %22068 = vst [vmem:[#allocation58_spill] sm:$0xff] %v18111_v35  ;;  %v18113_v47 = vsub.f32 %v10963_v53, %v8580_v48  ;;  %v22072_v53 = vand.u32 4294901760, %v18024_v44  ;;  %v22073_v48 = vand.u32 4294901760, %v18029_v25 }
 0x309   : > { %22054 = vst [vmem:[#allocation57_spill] sm:$0xff] %v18058_v17  ;;  %22058 = vst [vmem:[#allocation48_spill] sm:$0xff] %v18072_v46  ;;  %v18079_v17 = vld [vmem:[%s21107_s4 + $0x2c0] sm:$0xff]  ;;  %v18092_v57 = vpack.c.bf16 %v22062_v3, %v22061_v26  ;;  %v18099_v46 = vsub.f32 %v10945_v58, %v8526_v61  ;;  %v10950_v3 = vld [vmem:[%s21107_s4 + $0x328] sm:$0xff]  ;;  %14615 = vmatprep.subr.bf16.mxu0 %v17812_v2  ;;  %5143 = vmatprep.mubr.f32.mxu1 %v21976_v6  ;;  %v22076_v35 = vmov 0.0  }
 0x30a   : > { %22064 = vst [vmem:[#allocation67_spill] sm:$0xff] %v18094_v24  ;;  %v10949_v26 = vld [vmem:[%s21107_s4 + $0x320] sm:$0xff]  ;;  %22069 = vst [vmem:[#allocation65_spill] sm:$0xff] %v18113_v47  ;;  %v22070_v24 = vld [vmem:[#allocation16_spill] sm:$0xff]  ;;  %v18125_v2 = vsub.f32 %v10964_v30, %v8583_v0  ;;  %v18131_v61 = vpack.c.bf16 %v22073_v48, %v22072_v53  ;;  %v18133_v58 = vsub.f32 %v10947_v21, %v8532_v52  ;;  %7082 = vmatmul.mubr.f32.vlgmr.msra.gmra.mrb[42].mxu0 %v22076_v35 }
 0x30b   : > { %22063 = vst [vmem:[#allocation66_spill] sm:$0xff] %v18092_v57  ;;  %22066 = vst [vmem:[#allocation73_spill] sm:$0xff] %v18099_v46  ;;  %14237 = vmatpush3.bf16.msra.mxu1 %v22070_v24  ;;  %v18138_v47 = vld [vmem:[%s21107_s4 + $0x2d0] sm:$0xff]  ;;  %v22077_v24 = vld [vmem:[#allocation14_spill] sm:$0xff]  ;;  %v18142_v5 = vpack.c.bf16 %v8535_v28, %v8532_v52  ;;  %v18144_v30 = vsub.f32 %v10948_v55, %v8535_v28  ;;  %v8538_v0 = vand.u32 4294901760, %v10949_v26  ;;  %7089 = vmatprep.mubr.f32.mxu0 %v17514_v8 }
 0x30c   : > { %22071 = vst [vmem:[#allocation75_spill] sm:$0xff] %v18125_v2  ;;  %22074 = vst [vmem:[#allocation76_spill] sm:$0xff] %v18131_v61  ;;  %14239 = vmatprep.subr.bf16.mxu1 %v22077_v24  ;;  %v8541_v2 = vand.u32 4294901760, %v10950_v3  ;;  %v18149_v21 = vld [vmem:[%s21107_s4 + $0x2d8] sm:$0xff]  ;;  %v10951_v53 = vld [vmem:[%s21107_s4 + $0x330] sm:$0xff]  ;;  %14617 = vmatpush3.bf16.msra.mxu0 %v17830_v11  ;;  %v18159_v55 = vpack.c.bf16 %v8589_v27, %v8586_v42  ;;  %v18161_v52 = vsub.f32 %v10965_v37, %v8586_v42 }
 0x30d   : > { %22075 = vst [vmem:[#allocation81_spill] sm:$0xff] %v18133_v58  ;;  %22078 = vst [vmem:[#allocation82_spill] sm:$0xff] %v18142_v5  ;;  %v10952_v48 = vld [vmem:[%s21107_s4 + $0x338] sm:$0xff]  ;;  %v8592_v28 = vand.u32 4294901760, %v10967_v62  ;;  %v8595_v24 = vand.u32 4294901760, %v10968_v41  ;;  %v10969_v5 = vld [vmem:[%s21107_s4 + $0x3c0] sm:$0xff]  ;;  %5145 = vmatmul.mubr.f32.gmra.mrb[46].mxu1 %v21988_v43  ;;  %14619 = vmatprep.subr.bf16.mxu0 %v17838_v39  ;;  %v18171_v8 = vsub.f32 %v10966_v7, %v8589_v27 }
 0x30e   : > { %22079 = vst [vmem:[#allocation68_spill] sm:$0xff] %v18144_v30  ;;  %22080 = vst [vmem:[#allocation12_spill] sm:$0xff] %v18159_v55  ;;  %v10970_v30 = vld [vmem:[%s21107_s4 + $0x3c8] sm:$0xff]  ;;  %v22083_v11 = vand.u32 4294901760, %v18079_v17  ;;  %v22084_v37 = vand.u32 4294901760, %v18084_v4  ;;  %v18179_v55 = vsub.f32 %v10949_v26, %v8538_v0  ;;  %v10953_v7 = vld [vmem:[%s21107_s4 + $0x340] sm:$0xff]  ;;  %5150 = vmatprep.mubr.f32.mxu1 %v21990_v36  ;;  %7093 = vmatmul.mubr.f32.gmra.mrb[44].mxu0 %v17556_v50 }
 0x30f   : > { %22081 = vst [vmem:[#allocation83_spill] sm:$0xff] %v18161_v52  ;;  %22082 = vst [vmem:[#allocation84_spill] sm:$0xff] %v18171_v8  ;;  %v18184_v52 = vld [vmem:[%s21107_s4 + $0x2e0] sm:$0xff]  ;;  %v18189_v58 = vld [vmem:[%s21107_s4 + $0x2e8] sm:$0xff]  ;;  %14241 = vmatpush3.bf16.msra.mxu1 %v21906_v49  ;;  %v8544_v26 = vand.u32 4294901760, %v10951_v53  ;;  %v18205_v49 = vsub.f32 %v10950_v3, %v8541_v2  ;;  %v8598_v8 = vand.u32 4294901760, %v10969_v5  ;;  %7100 = vmatprep.mubr.f32.mxu0 %v17548_v38 }
 0x310   : > { %v18177_v42 = vpack.c.bf16 %v22084_v37, %v22083_v11  ;;  %22086 = vst [vmem:[#allocation13_spill] sm:$0xff] %v18179_v55  ;;  %v8547_v37 = vand.u32 4294901760, %v10952_v48  ;;  %v10954_v39 = vld [vmem:[%s21107_s4 + $0x348] sm:$0xff]  ;;  %14243 = vmatprep.subr.bf16.mxu1 %v21910_v32  ;;  %v18203_v55 = vpack.c.bf16 %v8541_v2, %v8538_v0  ;;  %v8601_v61 = vand.u32 4294901760, %v10970_v30  ;;  %14621 = vmatpush3.bf16.msra.mxu0 %v17848_v56  ;;  %v10971_v0 = vld [vmem:[%s21107_s4 + $0x3d0] sm:$0xff] }
 0x311   : > { %v18209_v11 = vpack.c.bf16 %v8595_v24, %v8592_v28  ;;  %v18211_v27 = vsub.f32 %v10967_v62, %v8592_v28  ;;  %5152 = vmatmul.mubr.f32.gmra.mrb[48].mxu1 %v22002_v14  ;;  %14623 = vmatprep.subr.bf16.mxu0 %v17856_v18  ;;  %v18217_v32 = vsub.f32 %v10968_v41, %v8595_v24  ;;  %v8550_v2 = vand.u32 4294901760, %v10953_v7  ;;  %v10972_v62 = vld [vmem:[%s21107_s4 + $0x3d8] sm:$0xff]  ;;  %v18242_v56 = vld [vmem:[%s21107_s4 + $0x2f0] sm:$0xff] }
 0x312   : > { %22085 = vst [vmem:[#allocation15_spill] sm:$0xff] %v18177_v42  ;;  %v3978_v42 = vld [vmem:[#allocation2 + $0x12] sm:$0xff]  ;;  %22087 = vst [vmem:[#allocation16_spill] sm:$0xff] %v18203_v55  ;;  %v8553_v3 = vand.u32 4294901760, %v10954_v39  ;;  %5157 = vmatprep.mubr.f32.mxu1 %v22004_v20  ;;  %v22092_v50 = vand.u32 4294901760, %v18138_v47  ;;  %v22093_v41 = vand.u32 4294901760, %v18149_v21  ;;  %v18235_v4 = vpack.c.bf16 %v8547_v37, %v8544_v26  ;;  %7104 = vmatmul.mubr.f32.gmra.mrb[46].mxu0 %v17601_v60 }
 0x313   : > { %22088 = vst [vmem:[#allocation14_spill] sm:$0xff] %v18209_v11  ;;  %22089 = vst [vmem:[#allocation147_spill] sm:$0xff] %v18211_v27  ;;  %v18225_v28 = vand.u32 4294901760, %v3978_v42  ;;  %14245 = vmatpush3.bf16.msra.mxu1 %v21915_v1  ;;  %v18237_v18 = vsub.f32 %v10951_v53, %v8544_v26  ;;  %v22098_v1 = vld [vmem:[#allocation6_spill] sm:$0xff]  ;;  %v18246_v38 = vsub.f32 %v10952_v48, %v8547_v37  ;;  %v10955_v26 = vld [vmem:[%s21107_s4 + $0x350] sm:$0xff]  ;;  %7111 = vmatprep.mubr.f32.mxu0 %v17586_v51 }
 0x314   : > { %22090 = vst [vmem:[#allocation148_spill] sm:$0xff] %v18217_v32  ;;  %v18233_v24 = vpack.c.bf16 %v22093_v41, %v22092_v50  ;;  %22095 = vst [vmem:[#allocation151_spill] sm:$0xff] %v18235_v4  ;;  %14247 = vmatprep.subr.bf16.mxu1 %v22098_v1  ;;  %v18248_v32 = vpack.c.bf16 %v8601_v61, %v8598_v8  ;;  %v18250_v27 = vsub.f32 %v10969_v5, %v8598_v8  ;;  %v18255_v53 = vld [vmem:[%s21107_s4 + $0x2f8] sm:$0xff]  ;;  %v3979_v60 = vld [vmem:[#allocation2 + $0x22] sm:$0xff] }
 0x315   : > { %22091 = vst [vmem:[#allocation149_spill] sm:$0xff] %v18225_v28  ;;  %22096 = vst [vmem:[#allocation152_spill] sm:$0xff] %v18237_v18  ;;  %v10956_v50 = vld [vmem:[%s21107_s4 + $0x358] sm:$0xff]  ;;  %14625 = vmatpush3.bf16.msra.mxu0 %v17868_v29  ;;  %v18265_v48 = vsub.f32 %v10970_v30, %v8601_v61  ;;  %v22104_v5 = vand.u32 4294901760, %v18184_v52  ;;  %v22105_v8 = vand.u32 4294901760, %v18189_v58  ;;  %v8604_v41 = vand.u32 4294901760, %v10971_v0  ;;  %5159 = vmatmul.mubr.f32.gmra.mrb[50].mxu1 %v17616_v23 }
 0x316   : > { %22094 = vst [vmem:[#allocation150_spill] sm:$0xff] %v18233_v24  ;;  %22097 = vst [vmem:[#allocation153_spill] sm:$0xff] %v18242_v56  ;;  %v8607_v1 = vand.u32 4294901760, %v10972_v62  ;;  %14627 = vmatprep.subr.bf16.mxu0 %v17876_v59  ;;  %v18277_v51 = vsub.f32 %v10953_v7, %v8550_v2  ;;  %v18280_v61 = vsub.f32 %v3978_v42, %v18225_v28  ;;  %v10973_v30 = vld [vmem:[%s21107_s4 + $0x3e0] sm:$0xff]  ;;  %5164 = vmatprep.mubr.f32.mxu1 %v17629_v19  ;;  %v3980_v42 = vld [vmem:[#allocation2 + $0x32] sm:$0xff] }
 0x317   : > { %22099 = vst [vmem:[#allocation6_spill] sm:$0xff] %v18246_v38  ;;  %22100 = vst [vmem:[#allocation154_spill] sm:$0xff] %v18248_v32  ;;  %v18271_v37 = vpack.c.bf16 %v22105_v8, %v22104_v5  ;;  %v10974_v5 = vld [vmem:[%s21107_s4 + $0x3e8] sm:$0xff]  ;;  %14249 = vmatpush3.bf16.msra.mxu1 %v21925_v33  ;;  %v8559_v59 = vand.u32 4294901760, %v10956_v50  ;;  %7115 = vmatmul.mubr.f32.gmra.mrb[48].mxu0 %v17614_v16  ;;  %v18294_v28 = vsub.f32 %v10954_v39, %v8553_v3  ;;  %v10957_v7 = vld [vmem:[%s21107_s4 + $0x360] sm:$0xff] }
 0x318   : > { %22101 = vst [vmem:[#allocation155_spill] sm:$0xff] %v18250_v27  ;;  %22102 = vst [vmem:[#allocation156_spill] sm:$0xff] %v18255_v53  ;;  %v18275_v27 = vpack.c.bf16 %v8553_v3, %v8550_v2  ;;  %v8556_v2 = vand.u32 4294901760, %v10955_v26  ;;  %v22110_v29 = vld [vmem:[#allocation8_spill] sm:$0xff]  ;;  %v22114_v33 = vand.u32 4294901760, %v17948_v9  ;;  %7122 = vmatprep.mubr.f32.mxu0 %v17626_v45  ;;  %v18313_v39 = vpack.c.bf16 %v8607_v1, %v8604_v41  ;;  %v22124_v45 = vld [vmem:[#allocation9_spill] sm:$0xff] }
 0x319   : > { %22103 = vst [vmem:[#allocation157_spill] sm:$0xff] %v18265_v48  ;;  %22106 = vst [vmem:[#allocation158_spill] sm:$0xff] %v18271_v37  ;;  %14251 = vmatprep.subr.bf16.mxu1 %v22110_v29  ;;  %14629 = vmatpush3.bf16.msra.mxu0 %v17888_v54  ;;  %v18315_v29 = vsub.f32 %v10971_v0, %v8604_v41  ;;  %v18322_v3 = vsub.f32 %v10972_v62, %v8607_v1  ;;  %v18327_v54 = vand.u32 4294901760, %v3980_v42 }
 0x31a   : > { %22107 = vst [vmem:[#allocation159_spill] sm:$0xff] %v18275_v27  ;;  %22108 = vst [vmem:[#allocation160_spill] sm:$0xff] %v18277_v51  ;;  %v22112_v27 = vand.u32 4294901760, %v17943_v31  ;;  %v18304_v8 = vsub.f32 %v17948_v9, %v22114_v33  ;;  %v18309_v51 = vand.u32 4294901760, %v3979_v60  ;;  %v10958_v9 = vld [vmem:[%s21107_s4 + $0x368] sm:$0xff]  ;;  %5166 = vmatmul.mubr.f32.gmra.mrb[52].mxu1 %v17666_v15  ;;  %14631 = vmatprep.subr.bf16.mxu0 %v17896_v10  ;;  %v18325_v33 = vand.u32 4294901760, %v18280_v61 }
 0x31b   : > { %22109 = vst [vmem:[#allocation161_spill] sm:$0xff] %v18280_v61  ;;  %22111 = vst [vmem:[#allocation8_spill] sm:$0xff] %v18294_v28  ;;  %v22122_v0 = vand.u32 4294901760, %v17953_v40  ;;  %14253 = vmatpush3.bf16.msra.mxu1 %v22124_v45  ;;  %5171 = vmatprep.mubr.f32.mxu1 %v17669_v34  ;;  %v22125_v16 = vand.u32 4294901760, %v18242_v56  ;;  %v22126_v10 = vand.u32 4294901760, %v18255_v53  ;;  %v18342_v1 = vpack.c.bf16 %v8559_v59, %v8556_v2  ;;  %v22133_v45 = vld [vmem:[#allocation10_spill] sm:$0xff] }
 0x31c   : > { %v18299_v37 = vsub.f32 %v17943_v31, %v22112_v27  ;;  %22115 = vst [vmem:[#allocation163_spill] sm:$0xff] %v18304_v8  ;;  %22116 = vst [vmem:[#allocation164_spill] sm:$0xff] %v18309_v51  ;;  %v8610_v31 = vand.u32 4294901760, %v10973_v30  ;;  %v8613_v27 = vand.u32 4294901760, %v10974_v5  ;;  %14255 = vmatprep.subr.bf16.mxu1 %v22133_v45  ;;  %v8565_v53 = vand.u32 4294901760, %v10958_v9  ;;  %v22140_v45 = vld [vmem:[#allocation126_spill] sm:$0xff] }
 0x31d   : > { %22117 = vst [vmem:[#allocation165_spill] sm:$0xff] %v18313_v39  ;;  %22118 = vst [vmem:[#allocation166_spill] sm:$0xff] %v18315_v29  ;;  %v18332_v41 = vsub.f32 %v17953_v40, %v22122_v0  ;;  %v18340_v62 = vpack.c.bf16 %v22126_v10, %v22125_v16  ;;  %v22129_v29 = vld [vmem:[#allocation47_spill] sm:$0xff]  ;;  %v22132_v0 = vld [vmem:[#allocation120_spill] sm:$0xff]  ;;  %v18354_v16 = vsub.f32 %v3979_v60, %v18309_v51 }
 0x31e   : > { %22113 = vst [vmem:[#allocation162_spill] sm:$0xff] %v18299_v37  ;;  %22119 = vst [vmem:[#allocation167_spill] sm:$0xff] %v18322_v3  ;;  %v8562_v3 = vand.u32 4294901760, %v10957_v7  ;;  %v22130_v39 = vand.u32 4294901760, %v22129_v29  ;;  %v3981_v40 = vld [vmem:[#allocation2 + $0x42] sm:$0xff]  ;;  %7126 = vmatmul.mubr.f32.gmra.mrb[50].mxu0 %v22132_v0  ;;  %v3982_v10 = vld [vmem:[#allocation2 + $0x52] sm:$0xff]  ;;  %v18362_v0 = vpack.c.bf16 %v8613_v27, %v8610_v31  ;;  %5173 = vmatmul.mubr.f32.gmra.mrb[54].mxu1 %v22140_v45 }
 0x31f   : > { %22120 = vst [vmem:[#allocation168_spill] sm:$0xff] %v18325_v33  ;;  %22121 = vst [vmem:[#allocation169_spill] sm:$0xff] %v18327_v54  ;;  %v22141_v34 = vld [vmem:[#allocation44_spill] sm:$0xff]  ;;  %v5422_v56 = vsub.f32 %v18280_v61, %v18325_v33  ;;  %v18369_v60 = vsub.f32 %v3980_v42, %v18327_v54  ;;  %v18386_v42 = vsub.f32 %v10973_v30, %v8610_v31  ;;  %v18391_v61 = vand.u32 4294901760, %v3982_v10  ;;  %v22149_v54 = vld [vmem:[#allocation125_spill] sm:$0xff] }
 0x320   : > { %22123 = vst [vmem:[#allocation170_spill] sm:$0xff] %v18332_v41  ;;  %22127 = vst [vmem:[#allocation9_spill] sm:$0xff] %v18340_v62  ;;  %v18347_v28 = vsub.f32 %v22129_v29, %v22130_v39  ;;  %v22136_v62 = vld [vmem:[#allocation43_spill] sm:$0xff]  ;;  %v18358_v39 = vsub.f32 %v10955_v26, %v8556_v2  ;;  %v18360_v29 = vsub.f32 %v10956_v50, %v8559_v59  ;;  %v18379_v59 = vld [vmem:[%s21107_s4 + $0x3f8] sm:$0xff]  ;;  %v18382_v50 = vand.u32 4294901760, %v3981_v40 }
 0x321   : > { %22128 = vst [vmem:[#allocation171_spill] sm:$0xff] %v18342_v1  ;;  %22134 = vst [vmem:[#allocation10_spill] sm:$0xff] %v18354_v16  ;;  %v22135_v1 = vld [vmem:[#allocation121_spill] sm:$0xff]  ;;  %14633 = vmatpush3.bf16.msra.mxu0 %v22136_v62  ;;  %v22144_v2 = vld [vmem:[#allocation11_spill] sm:$0xff]  ;;  %v22151_v26 = vand.u32 4294901760, %v18299_v37  ;;  %v18401_v30 = vpack.c.bf16 %v8565_v53, %v8562_v3  ;;  %v18408_v33 = vsub.f32 %v10957_v7, %v8562_v3 }
 0x322   : > { %22131 = vst [vmem:[#allocation47_spill] sm:$0xff] %v18347_v28  ;;  %7133 = vmatprep.mubr.f32.mxu0 %v22135_v1  ;;  %22137 = vst [vmem:[#allocation172_spill] sm:$0xff] %v18358_v39  ;;  %14635 = vmatprep.subr.bf16.mxu0 %v22141_v34  ;;  %v18374_v62 = vld [vmem:[%s21107_s4 + $0x3f0] sm:$0xff]  ;;  %v18388_v1 = vsub.f32 %v10974_v5, %v8613_v27  ;;  %v18404_v5 = vand.u32 4294901760, %v18354_v16  ;;  %v22155_v31 = vld [vmem:[#allocation128_spill] sm:$0xff]  ;;  %v18431_v3 = vsub.f32 %v3981_v40, %v18382_v50 }
 0x323   : > { %22138 = vst [vmem:[#allocation173_spill] sm:$0xff] %v18360_v29  ;;  %22139 = vst [vmem:[#allocation174_spill] sm:$0xff] %v18362_v0  ;;  %14257 = vmatpush3.bf16.msra.mxu1 %v22144_v2  ;;  %v22145_v34 = vld [vmem:[#allocation129_spill] sm:$0xff]  ;;  %7137 = vmatmul.mubr.f32.gmra.mrb[52].mxu0 %v22149_v54  ;;  %v5503_v29 = vsub.f32 %v18299_v37, %v22151_v26  ;;  %v22152_v2 = vand.u32 4294901760, %v18304_v8  ;;  %v8616_v54 = vand.u32 4294901760, %v18374_v62  ;;  %v8619_v26 = vand.u32 4294901760, %v18379_v59 }
 0x324   : > { %22142 = vst [vmem:[#allocation175_spill] sm:$0xff] %v18369_v60  ;;  %22143 = vst [vmem:[#allocation176_spill] sm:$0xff] %v18382_v50  ;;  %5178 = vmatprep.mubr.f32.mxu1 %v22145_v34  ;;  %v22150_v51 = vld [vmem:[#allocation17_spill] sm:$0xff]  ;;  %7144 = vmatprep.mubr.f32.mxu0 %v22155_v31  ;;  %v22160_v37 = vld [vmem:[#allocation46_spill] sm:$0xff] }
 0x325   : > { %22146 = vst [vmem:[#allocation11_spill] sm:$0xff] %v18386_v42  ;;  %22147 = vst [vmem:[#allocation177_spill] sm:$0xff] %v18388_v1  ;;  %14259 = vmatprep.subr.bf16.mxu1 %v22150_v51  ;;  %v5510_v39 = vsub.f32 %v18304_v8, %v22152_v2  ;;  %v22156_v27 = vld [vmem:[#allocation29_spill] sm:$0xff]  ;;  %v18410_v51 = vsub.f32 %v10958_v9, %v8565_v53  ;;  %v18419_v1 = vand.u32 4294901760, %v5422_v56  ;;  %v22163_v53 = vand.u32 4294901760, %v18332_v41  ;;  %v10960_v9 = vld [vmem:[%s21107_s4 + $0x378] sm:$0xff] }
 0x326   : > { %22148 = vst [vmem:[#allocation178_spill] sm:$0xff] %v18391_v61  ;;  %22153 = vst [vmem:[#allocation17_spill] sm:$0xff] %v18401_v30  ;;  %14637 = vmatpush3.bf16.msra.mxu0 %v22156_v27  ;;  %v10959_v2 = vld [vmem:[%s21107_s4 + $0x370] sm:$0xff]  ;;  %v18422_v27 = vand.u32 4294901760, %v18369_v60  ;;  %v22165_v31 = vld [vmem:[#allocation18_spill] sm:$0xff]  ;;  %v22167_v56 = vand.u32 4294901760, %v18347_v28  ;;  %v18492_v15 = vsub.f32 %v18379_v59, %v8619_v26 }
 0x327   : > { %22154 = vst [vmem:[#allocation179_spill] sm:$0xff] %v18404_v5  ;;  %22157 = vst [vmem:[#allocation180_spill] sm:$0xff] %v18408_v33  ;;  %v22159_v8 = vld [vmem:[#allocation133_spill] sm:$0xff]  ;;  %14639 = vmatprep.subr.bf16.mxu0 %v22160_v37  ;;  %v5517_v7 = vsub.f32 %v18332_v41, %v22163_v53  ;;  %14261 = vmatpush3.bf16.msra.mxu1 %v22165_v31  ;;  %v18439_v33 = vsub.f32 %v3982_v10, %v18391_v61  ;;  %v22169_v42 = vld [vmem:[#allocation64_spill] sm:$0xff]  ;;  %v5504_v40 = vand.u32 4294901760, %v5503_v29 }
 0x328   : > { %22158 = vst [vmem:[#allocation181_spill] sm:$0xff] %v18410_v51  ;;  %5180 = vmatmul.mubr.f32.gmra.mrb[56].mxu1 %v22159_v8  ;;  %22161 = vst [vmem:[#allocation182_spill] sm:$0xff] %v18419_v1  ;;  %v22166_v51 = vld [vmem:[#allocation89_spill] sm:$0xff]  ;;  %v5524_v37 = vsub.f32 %v18347_v28, %v22167_v56  ;;  %v22170_v30 = vld [vmem:[#allocation48_spill] sm:$0xff]  ;;  %v5511_v50 = vand.u32 4294901760, %v5510_v39  ;;  %v5432_v31 = vsub.f32 %v18354_v16, %v18404_v5  ;;  %v8568_v34 = vand.u32 4294901760, %v10959_v2 }
 0x329   : > { %22162 = vst [vmem:[#allocation183_spill] sm:$0xff] %v18422_v27  ;;  %22164 = vst [vmem:[#allocation184_spill] sm:$0xff] %v18431_v3  ;;  %5282 = vmatprep.mubr.f32.mxu1 %v22166_v51  ;;  %v8864_v1 = vand.u32 4294901760, %v22170_v30  ;;  %v22171_v0 = vld [vmem:[#allocation132_spill] sm:$0xff]  ;;  %v22173_v45 = vld [vmem:[#allocation135_spill] sm:$0xff]  ;;  %v8571_v10 = vand.u32 4294901760, %v10960_v9 }
 0x32a   : > { %22168 = vst [vmem:[#allocation18_spill] sm:$0xff] %v18439_v33  ;;  %7148 = vmatmul.mubr.f32.gmra.mrb[54].mxu0 %v22171_v0  ;;  %v22172_v8 = vld [vmem:[#allocation56_spill] sm:$0xff]  ;;  %v22174_v56 = vld [vmem:[#allocation53_spill] sm:$0xff]  ;;  %v22175_v61 = vand.u32 4294901760, %v17985_v13  ;;  %v22177_v0 = vand.u32 4294901760, %v17997_v63  ;;  %v8745_v39 = vand.u32 4294901760, %v18099_v46  ;;  %v18507_v59 = vsub.f32 %v10959_v2, %v8568_v34 }
 0x32b   : > { %14263 = vmatprep.subr.bf16.mxu1 %v22172_v8  ;;  %7155 = vmatprep.mubr.f32.mxu0 %v22173_v45  ;;  %v22179_v29 = vld [vmem:[#allocation93_spill] sm:$0xff]  ;;  %v22180_v5 = vld [vmem:[#allocation54_spill] sm:$0xff]  ;;  %v18464_v45 = vpack.c.bf16 %v8619_v26, %v8616_v54  ;;  %v5518_v16 = vand.u32 4294901760, %v5517_v7  ;;  %v22185_v32 = vand.u32 4294901760, %v22169_v42  ;;  %22189 = vst [vmem:[#allocation191_spill] sm:$0xff] %v18492_v15  ;;  %v18509_v26 = vsub.f32 %v10960_v9, %v8571_v10 }
 0x32c   : > { %14641 = vmatpush3.bf16.msra.mxu0 %v22174_v56  ;;  %v18452_v53 = vsub.f32 %v17985_v13, %v22175_v61  ;;  %v18457_v48 = vsub.f32 %v17997_v63, %v22177_v0  ;;  %5284 = vmatmul.mubr.f32.vlgmr.msra.gmra.mrb[58].mxu1 %v22179_v29  ;;  %v5442_v56 = vsub.f32 %v18369_v60, %v18422_v27  ;;  %v18467_v13 = vand.u32 4294901760, %v18431_v3  ;;  %v22183_v61 = vld [vmem:[#allocation91_spill] sm:$0xff]  ;;  %v22186_v7 = vld [vmem:[#allocation137_spill] sm:$0xff]  ;;  %v22196_v2 = vld [vmem:[#allocation74_spill] sm:$0xff] }
 0x32d   : > { %14643 = vmatprep.subr.bf16.mxu0 %v22180_v5  ;;  %22181 = vst [vmem:[#allocation187_spill] sm:$0xff] %v18464_v45  ;;  %14265 = vmatpush3.bf16.msra.mxu1 %v22172_v8  ;;  %v5525_v63 = vand.u32 4294901760, %v5524_v37  ;;  %v18472_v0 = vand.u32 4294901760, %v18439_v33  ;;  %v18477_v5 = vsub.f32 %v22169_v42, %v22185_v32  ;;  %v18480_v27 = vsub.f32 %v22170_v30, %v8864_v1  ;;  %v22187_v60 = vld [vmem:[#allocation57_spill] sm:$0xff]  ;;  %v22190_v32 = vld [vmem:[#allocation35_spill] sm:$0xff] }
 0x32e   : > { %22176 = vst [vmem:[#allocation185_spill] sm:$0xff] %v18452_v53  ;;  %22178 = vst [vmem:[#allocation186_spill] sm:$0xff] %v18457_v48  ;;  %5289 = vmatprep.mubr.f32.mxu1 %v22183_v61  ;;  %7159 = vmatmul.mubr.f32.gmra.mrb[56].mxu0 %v22186_v7  ;;  %v18484_v45 = vpack.c.bf16 %v5511_v50, %v5504_v40  ;;  %v18486_v8 = vand.u32 4294901760, %v5432_v31  ;;  %v18489_v37 = vsub.f32 %v18374_v62, %v8616_v54  ;;  %v22192_v54 = vld [vmem:[#allocation63_spill] sm:$0xff] }
 0x32f   : > { %22182 = vst [vmem:[#allocation188_spill] sm:$0xff] %v18467_v13  ;;  %22184 = vst [vmem:[#allocation189_spill] sm:$0xff] %v18472_v0  ;;  %14267 = vmatprep.subr.bf16.mxu1 %v22187_v60  ;;  %7478 = vmatprep.mubr.f32.mxu0 %v22190_v32  ;;  %v18496_v30 = vpack.c.bf16 %v8571_v10, %v8568_v34  ;;  %v5530_v7 = vand.u32 4294901760, %v18452_v53  ;;  %v5537_v4 = vand.u32 4294901760, %v18457_v48  ;;  %v18505_v62 = vand.u32 4294901760, %v5442_v56  ;;  %v3983_v34 = vld [vmem:[#allocation2 + $0x62] sm:$0xff] }
 0x330   : > { %22188 = vst [vmem:[#allocation190_spill] sm:$0xff] %v18486_v8  ;;  %14645 = vmatpush3.bf16.msra.mxu0 %v18037_v22  ;;  %v18501_v50 = vsub.f32 %v18099_v46, %v8745_v39  ;;  %5291 = vmatmul.mubr.f32.gmra.mrb[60].mxu1 %v21974_v12  ;;  %22194 = vst [vmem:[#allocation194_spill] sm:$0xff] %v18507_v59  ;;  %v18515_v31 = vpack.c.bf16 %v5525_v63, %v5518_v16  ;;  %v8752_v9 = vand.u32 4294901760, %v22196_v2  ;;  %v3984_v10 = vld [vmem:[#allocation2 + $0x72] sm:$0xff]  ;;  %v22224_v59 = vld [vmem:[#allocation12_spill] sm:$0xff] }
 0x331   : > { %22191 = vst [vmem:[#allocation192_spill] sm:$0xff] %v18496_v30  ;;  %14839 = vmatprep.subr.bf16.mxu0 %v22192_v54  ;;  %22193 = vst [vmem:[#allocation193_spill] sm:$0xff] %v18505_v62  ;;  %14269 = vmatpush3.bf16.msra.mxu1 %v22187_v60  ;;  %v22197_v40 = vand.u32 4294901760, %v18024_v44  ;;  %v22199_v63 = vand.u32 4294901760, %v18029_v25  ;;  %v22201_v56 = vand.u32 4294901760, %v18332_v41  ;;  %v22202_v22 = vand.u32 4294901760, %v18347_v28 }
 0x332   : > { %22195 = vst [vmem:[#allocation195_spill] sm:$0xff] %v18509_v26  ;;  %5296 = vmatprep.mubr.f32.mxu1 %v21976_v6  ;;  %14271 = vmatprep.subr.bf16.mxu1 %v18092_v57  ;;  %v22204_v54 = vld [vmem:[#allocation67_spill] sm:$0xff]  ;;  %v18543_v60 = vsub.f32 %v18452_v53, %v5530_v7  ;;  %v18564_v46 = vpack.c.bf16 %v8752_v9, %v8745_v39  ;;  %v22218_v39 = vld [vmem:[#allocation81_spill] sm:$0xff] }
 0x333   : > { %7480 = vmatmul.mubr.f32.vlgmr.msra.gmra.mrb[58].mxu0 %v22076_v35  ;;  %v18527_v16 = vsub.f32 %v18024_v44, %v22197_v40  ;;  %v18532_v32 = vsub.f32 %v18029_v25, %v22199_v63  ;;  %v18538_v35 = vpack.c.bf16 %v22202_v22, %v22201_v56  ;;  %v18546_v44 = vsub.f32 %v18457_v48, %v5537_v4  ;;  %v22207_v22 = vld [vmem:[#allocation58_spill] sm:$0xff]  ;;  %v22215_v48 = vld [vmem:[#allocation55_spill] sm:$0xff] }
 0x334   : > { %7485 = vmatprep.mubr.f32.mxu0 %v22166_v51  ;;  %14841 = vmatpush3.bf16.msra.mxu0 %v22204_v54  ;;  %v22205_v25 = vand.u32 4294901760, %v22169_v42  ;;  %v18555_v56 = vand.u32 4294901760, %v3983_v34  ;;  %v22209_v51 = vand.u32 4294901760, %v18079_v17  ;;  %v18562_v54 = vpack.c.bf16 %v5537_v4, %v5530_v7  ;;  %22211 = vst [vmem:[#allocation202_spill] sm:$0xff] %v18564_v46  ;;  %v22217_v4 = vld [vmem:[#allocation76_spill] sm:$0xff] }
 0x335   : > { %22198 = vst [vmem:[#allocation196_spill] sm:$0xff] %v18527_v16  ;;  %22200 = vst [vmem:[#allocation197_spill] sm:$0xff] %v18532_v32  ;;  %5298 = vmatmul.mubr.f32.gmra.mrb[62].mxu1 %v21988_v43  ;;  %14843 = vmatprep.subr.bf16.mxu0 %v22207_v22  ;;  %v22216_v53 = vand.u32 4294901760, %v22215_v48  ;;  %v22219_v46 = vld [vmem:[#allocation68_spill] sm:$0xff]  ;;  %v18586_v28 = vsub.f32 %v22196_v2, %v8752_v9  ;;  %v22230_v7 = vand.u32 4294901760, %v18138_v47  ;;  %v5539_v41 = vand.u32 4294901760, %v18546_v44 }
 0x336   : > { %22203 = vst [vmem:[#allocation198_spill] sm:$0xff] %v18538_v35  ;;  %v18551_v63 = vpack.c.bf16 %v8864_v1, %v22205_v25  ;;  %22208 = vst [vmem:[#allocation200_spill] sm:$0xff] %v18555_v56  ;;  %v18560_v35 = vsub.f32 %v18079_v17, %v22209_v51  ;;  %14273 = vmatpush3.bf16.msra.mxu1 %v18092_v57  ;;  %5303 = vmatprep.mubr.f32.mxu1 %v21990_v36  ;;  %v18568_v1 = vand.u32 4294901760, %v3984_v10  ;;  %v22213_v25 = vld [vmem:[#allocation65_spill] sm:$0xff]  ;;  %v22220_v57 = vld [vmem:[#allocation82_spill] sm:$0xff] }
 0x337   : > { %22210 = vst [vmem:[#allocation201_spill] sm:$0xff] %v18562_v54  ;;  %v8871_v40 = vand.u32 4294901760, %v22213_v25  ;;  %v18575_v42 = vsub.f32 %v22215_v48, %v22216_v53  ;;  %7487 = vmatmul.mubr.f32.gmra.mrb[60].mxu0 %v22179_v29  ;;  %14275 = vmatprep.subr.bf16.mxu1 %v22217_v4  ;;  %v5544_v17 = vand.u32 4294901760, %v18527_v16  ;;  %v5551_v51 = vand.u32 4294901760, %v18532_v32  ;;  %v22221_v48 = vld [vmem:[#allocation83_spill] sm:$0xff]  ;;  %v22222_v29 = vld [vmem:[#allocation84_spill] sm:$0xff] }
 0x338   : > { %22206 = vst [vmem:[#allocation199_spill] sm:$0xff] %v18551_v63  ;;  %22212 = vst [vmem:[#allocation203_spill] sm:$0xff] %v18568_v1  ;;  %v22214_v63 = vld [vmem:[#allocation75_spill] sm:$0xff]  ;;  %7492 = vmatprep.mubr.f32.mxu0 %v22183_v61  ;;  %14845 = vmatpush3.bf16.msra.mxu0 %v22220_v57  ;;  %v22225_v54 = vld [vmem:[#allocation13_spill] sm:$0xff]  ;;  %v22227_v57 = vand.u32 4294901760, %v22218_v39  ;;  %v22228_v9 = vand.u32 4294901760, %v22219_v46  ;;  %v18611_v15 = vsub.f32 %v18138_v47, %v22230_v7 }
 0x339   : > { %v8878_v22 = vand.u32 4294901760, %v22214_v63  ;;  %5305 = vmatmul.mubr.f32.gmra.mrb[64].mxu1 %v22002_v14  ;;  %14847 = vmatprep.subr.bf16.mxu0 %v22224_v59  ;;  %v18596_v61 = vpack.c.bf16 %v5551_v51, %v5544_v17  ;;  %v18623_v53 = vsub.f32 %v3983_v34, %v18555_v56  ;;  %v8754_v47 = vand.u32 4294901760, %v18586_v28  ;;  %v22245_v28 = vld [vmem:[#allocation147_spill] sm:$0xff] }
 0x33a   : > { %v18602_v2 = vpack.c.bf16 %v22228_v9, %v22227_v57  ;;  %14277 = vmatpush3.bf16.msra.mxu1 %v22217_v4  ;;  %5310 = vmatprep.mubr.f32.mxu1 %v22004_v20  ;;  %v22233_v57 = vld [vmem:[#allocation15_spill] sm:$0xff]  ;;  %v5532_v9 = vand.u32 4294901760, %v18543_v60  ;;  %v22237_v7 = vand.u32 4294901760, %v22222_v29  ;;  %v22239_v44 = vand.u32 4294901760, %v18560_v35 }
 0x33b   : > { %v18590_v26 = vpack.c.bf16 %v8878_v22, %v8871_v40  ;;  %22226 = vst [vmem:[#allocation55_spill] sm:$0xff] %v18596_v61  ;;  %v22231_v61 = vand.u32 4294901760, %v18149_v21  ;;  %7494 = vmatmul.mubr.f32.gmra.mrb[62].mxu0 %v21974_v12  ;;  %14279 = vmatprep.subr.bf16.mxu1 %v22233_v57  ;;  %22234 = vst [vmem:[#allocation84_spill] sm:$0xff] %v18623_v53  ;;  %v22240_v34 = vand.u32 4294901760, %v18575_v42  ;;  %v22243_v4 = vand.u32 4294901760, %v18205_v49  ;;  %v22265_v12 = vld [vmem:[#allocation157_spill] sm:$0xff] }
 0x33c   : > { %22229 = vst [vmem:[#allocation68_spill] sm:$0xff] %v18602_v2  ;;  %v18626_v2 = vsub.f32 %v3984_v10, %v18568_v1  ;;  %7499 = vmatprep.mubr.f32.mxu0 %v21976_v6  ;;  %14849 = vmatpush3.bf16.msra.mxu0 %v18203_v55  ;;  %v22242_v10 = vand.u32 4294901760, %v22225_v54  ;;  %v22248_v1 = vand.u32 4294901760, %v18189_v58  ;;  %v18672_v56 = vand.u32 4294901760, %v18623_v53 }
 0x33d   : > { %22223 = vst [vmem:[#allocation65_spill] sm:$0xff] %v18590_v26  ;;  %v18616_v26 = vsub.f32 %v18149_v21, %v22231_v61  ;;  %v3985_v21 = vld [vmem:[#allocation2 + $0x82] sm:$0xff]  ;;  %v22236_v61 = vand.u32 4294901760, %v22221_v48  ;;  %v18641_v59 = vpack.c.bf16 %v22240_v34, %v22239_v44  ;;  %5312 = vmatmul.mubr.f32.gmra.mrb[66].mxu1 %v17616_v23  ;;  %14851 = vmatprep.subr.bf16.mxu0 %v18209_v11  ;;  %v22247_v34 = vand.u32 4294901760, %v18184_v52 }
 0x33e   : > { %22235 = vst [vmem:[#allocation13_spill] sm:$0xff] %v18626_v2  ;;  %v18647_v55 = vpack.c.bf16 %v22243_v4, %v22242_v10  ;;  %14281 = vmatpush3.bf16.msra.mxu1 %v22233_v57  ;;  %5317 = vmatprep.mubr.f32.mxu1 %v17629_v19  ;;  %22249 = vst [vmem:[#allocation147_spill] sm:$0xff] %v18672_v56  ;;  %v8879_v4 = vsub.f32 %v22214_v63, %v8878_v22  ;;  %v18676_v44 = vand.u32 4294901760, %v3985_v21 }
 0x33f   : > { %22232 = vst [vmem:[#allocation83_spill] sm:$0xff] %v18616_v26  ;;  %v18635_v60 = vpack.c.bf16 %v22237_v7, %v22236_v61  ;;  %22241 = vst [vmem:[#allocation205_spill] sm:$0xff] %v18641_v59  ;;  %v22246_v61 = vld [vmem:[#allocation148_spill] sm:$0xff]  ;;  %v18662_v10 = vsub.f32 %v18184_v52, %v22247_v34  ;;  %v18667_v7 = vsub.f32 %v18189_v58, %v22248_v1  ;;  %7501 = vmatmul.mubr.f32.gmra.mrb[64].mxu0 %v21988_v43  ;;  %v22251_v52 = vld [vmem:[#allocation151_spill] sm:$0xff] }
 0x340   : > { %22244 = vst [vmem:[#allocation206_spill] sm:$0xff] %v18647_v55  ;;  %14283 = vmatprep.subr.bf16.mxu1 %v18233_v24  ;;  %22250 = vst [vmem:[#allocation148_spill] sm:$0xff] %v18676_v44  ;;  %7506 = vmatprep.mubr.f32.mxu0 %v21990_v36  ;;  %v18681_v58 = vand.u32 4294901760, %v18626_v2  ;;  %v22253_v1 = vand.u32 4294901760, %v22245_v28  ;;  %v22254_v34 = vand.u32 4294901760, %v22246_v61  ;;  %v22256_v59 = vand.u32 4294901760, %v18611_v15 }
 0x341   : > { %22238 = vst [vmem:[#allocation204_spill] sm:$0xff] %v18635_v60  ;;  %v8872_v60 = vsub.f32 %v22213_v25, %v8871_v40  ;;  %14853 = vmatpush3.bf16.msra.mxu0 %v22251_v52  ;;  %v22257_v40 = vand.u32 4294901760, %v18616_v26  ;;  %v22259_v11 = vand.u32 4294901760, %v18237_v18  ;;  %v22260_v57 = vand.u32 4294901760, %v18246_v38  ;;  %v22262_v36 = vld [vmem:[#allocation122_spill] sm:$0xff] }
 0x342   : > { %22252 = vst [vmem:[#allocation207_spill] sm:$0xff] %v18681_v58  ;;  %v18687_v55 = vpack.c.bf16 %v22254_v34, %v22253_v1  ;;  %5319 = vmatmul.mubr.f32.gmra.mrb[68].mxu1 %v22262_v36  ;;  %v22263_v43 = vld [vmem:[#allocation154_spill] sm:$0xff]  ;;  %v5545_v6 = vsub.f32 %v18527_v16, %v5544_v17  ;;  %v5552_v1 = vsub.f32 %v18532_v32, %v5551_v51  ;;  %v22264_v34 = vld [vmem:[#allocation155_spill] sm:$0xff] }
 0x343   : > { %v18693_v22 = vpack.c.bf16 %v22257_v40, %v22256_v59  ;;  %v18699_v52 = vpack.c.bf16 %v22260_v57, %v22259_v11  ;;  %14855 = vmatprep.subr.bf16.mxu0 %v22263_v43  ;;  %14285 = vmatpush3.bf16.msra.mxu1 %v18233_v24  ;;  %v22266_v59 = vld [vmem:[#allocation123_spill] sm:$0xff]  ;;  %v22267_v57 = vld [vmem:[#allocation160_spill] sm:$0xff]  ;;  %v22269_v17 = vld [vmem:[#allocation158_spill] sm:$0xff]  ;;  %v8873_v51 = vand.u32 4294901760, %v8872_v60  ;;  %v22271_v24 = vand.u32 4294901760, %v22219_v46 }
 0x344   : > { %22255 = vst [vmem:[#allocation208_spill] sm:$0xff] %v18687_v55  ;;  %5324 = vmatprep.mubr.f32.mxu1 %v22266_v59  ;;  %7508 = vmatmul.mubr.f32.gmra.mrb[66].mxu0 %v22002_v14  ;;  %v22270_v55 = vand.u32 4294901760, %v22218_v39  ;;  %v18722_v40 = vsub.f32 %v3985_v21, %v18676_v44  ;;  %v8880_v43 = vand.u32 4294901760, %v8879_v4  ;;  %v22274_v11 = vand.u32 4294901760, %v22264_v34  ;;  %v22284_v4 = vld [vmem:[#allocation165_spill] sm:$0xff] }
 0x345   : > { %22258 = vst [vmem:[#allocation209_spill] sm:$0xff] %v18693_v22  ;;  %22261 = vst [vmem:[#allocation210_spill] sm:$0xff] %v18699_v52  ;;  %v22268_v22 = vld [vmem:[#allocation8_spill] sm:$0xff]  ;;  %14287 = vmatprep.subr.bf16.mxu1 %v22269_v17  ;;  %v8767_v32 = vsub.f32 %v22219_v46, %v22271_v24  ;;  %7513 = vmatprep.mubr.f32.mxu0 %v22004_v20  ;;  %v22273_v52 = vld [vmem:[#allocation159_spill] sm:$0xff]  ;;  %v22275_v60 = vand.u32 4294901760, %v22265_v12  ;;  %v22280_v24 = vand.u32 4294901760, %v22267_v57 }
 0x346   : > { %v8760_v63 = vsub.f32 %v22218_v39, %v22270_v55  ;;  %22272 = vst [vmem:[#allocation155_spill] sm:$0xff] %v18722_v40  ;;  %14857 = vmatpush3.bf16.msra.mxu0 %v22273_v52  ;;  %v22277_v55 = vand.u32 4294901760, %v18662_v10  ;;  %v22278_v39 = vand.u32 4294901760, %v18667_v7  ;;  %v22281_v21 = vand.u32 4294901760, %v22268_v22  ;;  %v22283_v52 = vld [vmem:[#allocation126_spill] sm:$0xff] }
 0x347   : > { %v18730_v14 = vpack.c.bf16 %v22275_v60, %v22274_v11  ;;  %5326 = vmatmul.mubr.f32.gmra.mrb[70].mxu1 %v22283_v52  ;;  %14859 = vmatprep.subr.bf16.mxu0 %v22284_v4  ;;  %v22285_v44 = vand.u32 4294901760, %v18477_v5  ;;  %v22286_v11 = vand.u32 4294901760, %v18480_v27  ;;  %v22291_v27 = vld [vmem:[#allocation153_spill] sm:$0xff]  ;;  %v22302_v4 = vld [vmem:[#allocation174_spill] sm:$0xff] }
 0x348   : > { %v18736_v16 = vpack.c.bf16 %v22278_v39, %v22277_v55  ;;  %v18742_v20 = vpack.c.bf16 %v22281_v21, %v22280_v24  ;;  %v5546_v39 = vand.u32 4294901760, %v5545_v6  ;;  %v5553_v55 = vand.u32 4294901760, %v5552_v1  ;;  %14289 = vmatpush3.bf16.msra.mxu1 %v22269_v17  ;;  %v22293_v6 = vld [vmem:[#allocation156_spill] sm:$0xff]  ;;  %7515 = vmatmul.mubr.f32.gmra.mrb[68].mxu0 %v17616_v23  ;;  %v22304_v17 = vld [vmem:[#allocation166_spill] sm:$0xff] }
 0x349   : > { %22276 = vst [vmem:[#allocation157_spill] sm:$0xff] %v18730_v14  ;;  %v18750_v60 = vpack.c.bf16 %v22286_v11, %v22285_v44  ;;  %v18752_v14 = vpack.c.bf16 %v5539_v41, %v5532_v9  ;;  %v22288_v24 = vsub.f32 %v18431_v3, %v18467_v13  ;;  %v22292_v44 = vand.u32 4294901760, %v22291_v27  ;;  %v22295_v11 = vld [vmem:[#allocation9_spill] sm:$0xff]  ;;  %7520 = vmatprep.mubr.f32.mxu0 %v17629_v19 }
 0x34a   : > { %22279 = vst [vmem:[#allocation160_spill] sm:$0xff] %v18736_v16  ;;  %22282 = vst [vmem:[#allocation8_spill] sm:$0xff] %v18742_v20  ;;  %v22287_v16 = vld [vmem:[#allocation129_spill] sm:$0xff]  ;;  %v22290_v20 = vand.u32 4294901760, %v18501_v50  ;;  %v22294_v9 = vand.u32 4294901760, %v22293_v6  ;;  %14291 = vmatprep.subr.bf16.mxu1 %v22295_v11  ;;  %v8761_v50 = vand.u32 4294901760, %v8760_v63  ;;  %v18791_v13 = vpack.c.bf16 %v8880_v43, %v8873_v51 }
 0x34b   : > { %5331 = vmatprep.mubr.f32.mxu1 %v22287_v16  ;;  %v18759_v21 = vand.u32 4294901760, %v22288_v24  ;;  %v18768_v41 = vsub.f32 %v22291_v27, %v22292_v44  ;;  %v5472_v24 = vsub.f32 %v18623_v53, %v18672_v56  ;;  %v22297_v27 = vld [vmem:[#allocation171_spill] sm:$0xff]  ;;  %v22298_v44 = vsub.f32 %v18439_v33, %v18472_v0  ;;  %v22301_v56 = vld [vmem:[#allocation133_spill] sm:$0xff]  ;;  %v22306_v51 = vld [vmem:[#allocation182_spill] sm:$0xff] }
 0x34c   : > { %v18763_v5 = vpack.c.bf16 %v8754_v47, %v22290_v20  ;;  %v18773_v1 = vsub.f32 %v22293_v6, %v22294_v9  ;;  %v8768_v20 = vand.u32 4294901760, %v8767_v32  ;;  %v18780_v47 = vand.u32 4294901760, %v18722_v40  ;;  %14861 = vmatpush3.bf16.msra.mxu0 %v22297_v27  ;;  %5333 = vmatmul.mubr.f32.gmra.mrb[72].mxu1 %v22301_v56  ;;  %v22307_v33 = vld [vmem:[#allocation172_spill] sm:$0xff]  ;;  %v22329_v16 = vld [vmem:[#allocation181_spill] sm:$0xff] }
 0x34d   : > { %22289 = vst [vmem:[#allocation211_spill] sm:$0xff] %v18759_v21  ;;  %v18787_v6 = vand.u32 4294901760, %v22298_v44  ;;  %v5482_v9 = vsub.f32 %v18626_v2, %v18681_v58  ;;  %v22300_v63 = vand.u32 4294901760, %v22221_v48  ;;  %14863 = vmatprep.subr.bf16.mxu0 %v22302_v4  ;;  %v18800_v27 = vpack.c.bf16 %v5553_v55, %v5546_v39  ;;  %v22305_v58 = vld [vmem:[#allocation167_spill] sm:$0xff]  ;;  %14293 = vmatpush3.bf16.msra.mxu1 %v22295_v11  ;;  %v22308_v39 = vld [vmem:[#allocation173_spill] sm:$0xff] }
 0x34e   : > { %22296 = vst [vmem:[#allocation153_spill] sm:$0xff] %v18780_v47  ;;  %v22303_v0 = vand.u32 4294901760, %v22222_v29  ;;  %13214 = vmatprep.mubr.f32.mxu1 %v22306_v51  ;;  %7522 = vmatmul.mubr.f32.gmra.mrb[70].mxu0 %v22262_v36  ;;  %v18817_v53 = vpack.c.bf16 %v8768_v20, %v8761_v50  ;;  %v22310_v51 = vand.u32 4294901760, %v22225_v54  ;;  %v22311_v4 = vld [vmem:[#allocation17_spill] sm:$0xff]  ;;  %v22313_v2 = vand.u32 4294901760, %v22304_v17 }
 0x34f   : > { %22299 = vst [vmem:[#allocation156_spill] sm:$0xff] %v18787_v6  ;;  %v18796_v32 = vsub.f32 %v22221_v48, %v22300_v63  ;;  %14295 = vmatprep.subr.bf16.mxu1 %v18484_v45  ;;  %7527 = vmatprep.mubr.f32.mxu0 %v22266_v59  ;;  %v18828_v55 = vand.u32 4294901760, %v5482_v9  ;;  %v22316_v20 = vand.u32 4294901760, %v18768_v41  ;;  %v22317_v43 = vand.u32 4294901760, %v18773_v1  ;;  %v22322_v9 = vld [vmem:[#allocation187_spill] sm:$0xff] }
 0x350   : > { %v8893_v44 = vsub.f32 %v22222_v29, %v22303_v0  ;;  %v18815_v0 = vand.u32 4294901760, %v5472_v24  ;;  %v18824_v63 = vsub.f32 %v22225_v54, %v22310_v51  ;;  %14865 = vmatpush3.bf16.msra.mxu0 %v22311_v4  ;;  %v22314_v24 = vand.u32 4294901760, %v22305_v58  ;;  %13215 = vmatmul.mubr.f32.vlgmr.msra.gmra.mrb[74].mxu1 %v18486_v8  ;;  %v22327_v8 = vld [vmem:[#allocation177_spill] sm:$0xff] }
 0x351   : > { %22312 = vst [vmem:[#allocation167_spill] sm:$0xff] %v18828_v55  ;;  %v18840_v11 = vpack.c.bf16 %v22317_v43, %v22316_v20  ;;  %v22319_v51 = vand.u32 4294901760, %v22307_v33  ;;  %v22320_v3 = vand.u32 4294901760, %v22308_v39  ;;  %14867 = vmatprep.subr.bf16.mxu0 %v22322_v9  ;;  %v8887_v4 = vand.u32 4294901760, %v18796_v32  ;;  %14297 = vmatpush3.bf16.msra.mxu1 %v18484_v45 }
 0x352   : > { %22309 = vst [vmem:[#allocation166_spill] sm:$0xff] %v18815_v0  ;;  %v18834_v50 = vpack.c.bf16 %v22314_v24, %v22313_v2  ;;  %v22323_v2 = vand.u32 4294901760, %v18560_v35  ;;  %v22325_v20 = vand.u32 4294901760, %v18205_v49  ;;  %13217 = vmatprep.mubr.f32.mxu1 %v18505_v62  ;;  %7529 = vmatmul.mubr.f32.gmra.mrb[72].mxu0 %v22283_v52  ;;  %v22330_v59 = vand.u32 4294901760, %v22245_v28 }
 0x353   : > { %22318 = vst [vmem:[#allocation173_spill] sm:$0xff] %v18840_v11  ;;  %v18846_v56 = vpack.c.bf16 %v22320_v3, %v22319_v51  ;;  %v22326_v3 = vld [vmem:[#allocation11_spill] sm:$0xff]  ;;  %14299 = vmatprep.subr.bf16.mxu1 %v18515_v31  ;;  %v22331_v45 = vand.u32 4294901760, %v22246_v61  ;;  %v22332_v51 = vand.u32 4294901760, %v18237_v18  ;;  %v8775_v9 = vand.u32 4294901760, %v18824_v63 }
 0x354   : > { %22315 = vst [vmem:[#allocation172_spill] sm:$0xff] %v18834_v50  ;;  %v5559_v24 = vsub.f32 %v18560_v35, %v22323_v2  ;;  %v22324_v50 = vand.u32 4294901760, %v18575_v42  ;;  %v8781_v11 = vsub.f32 %v18205_v49, %v22325_v20  ;;  %v8900_v20 = vsub.f32 %v22245_v28, %v22330_v59  ;;  %14869 = vmatpush3.bf16.msra.mxu0 %v18496_v30  ;;  %v22333_v2 = vld [vmem:[#allocation107_spill] sm:$0xff] }
 0x355   : > { %22321 = vst [vmem:[#allocation212_spill] sm:$0xff] %v18846_v56  ;;  %v22328_v56 = vld [vmem:[#allocation180_spill] sm:$0xff]  ;;  %v8907_v62 = vsub.f32 %v22246_v61, %v22331_v45  ;;  %v8788_v32 = vsub.f32 %v18237_v18, %v22332_v51  ;;  %8626 = vmatprep.mubr.f32.mxu0 %v22333_v2  ;;  %v22335_v59 = vand.u32 4294901760, %v22326_v3  ;;  %v22336_v36 = vand.u32 4294901760, %v22327_v8  ;;  %13218 = vmatmul.mubr.f32.gmra.mrb[76].mxu1 %v18759_v21  ;;  %v22344_v21 = vld [vmem:[#allocation194_spill] sm:$0xff] }
 0x356   : > { %v5566_v43 = vsub.f32 %v18575_v42, %v22324_v50  ;;  %v8894_v50 = vand.u32 4294901760, %v8893_v44  ;;  %v22334_v44 = vand.u32 4294901760, %v18246_v38  ;;  %v22338_v45 = vand.u32 4294901760, %v22328_v56  ;;  %14871 = vmatprep.subr.bf16.mxu0 %v18750_v60  ;;  %14301 = vmatpush3.bf16.msra.mxu1 %v18515_v31 }
 0x357   : > { %v18887_v19 = vpack.c.bf16 %v22336_v36, %v22335_v59  ;;  %v22339_v51 = vand.u32 4294901760, %v22329_v16  ;;  %v5560_v63 = vand.u32 4294901760, %v5559_v24  ;;  %13220 = vmatprep.mubr.f32.mxu1 %v18787_v6  ;;  %v22345_v24 = vld [vmem:[#allocation195_spill] sm:$0xff]  ;;  %14303 = vmatprep.subr.bf16.mxu1 %v18752_v14  ;;  %v8901_v18 = vand.u32 4294901760, %v8900_v20  ;;  %v3976_v20 = vld [vmem:[#allocation2 + $0x91] sm:$0xff] }
 0x358   : > { %v8795_v52 = vsub.f32 %v18246_v38, %v22334_v44  ;;  %v5567_v2 = vand.u32 4294901760, %v5566_v43  ;;  %v22341_v44 = vand.u32 4294901760, %v18611_v15  ;;  %v22342_v38 = vand.u32 4294901760, %v18616_v26 }
 0x359   : > { %22337 = vst [vmem:[#allocation11_spill] sm:$0xff] %v18887_v19  ;;  %v18893_v23 = vpack.c.bf16 %v22339_v51, %v22338_v45  ;;  %v22343_v45 = vld [vmem:[#allocation191_spill] sm:$0xff]  ;;  %v8782_v19 = vand.u32 4294901760, %v8781_v11  ;;  %v8789_v31 = vand.u32 4294901760, %v8788_v32  ;;  %v22348_v51 = vand.u32 4294901760, %v18489_v37  ;;  %13221 = vmatmul.mubr.f32.gmra.mrb[78].mxu1 %v18815_v0 }
 0x35a   : > { %v5573_v30 = vsub.f32 %v18611_v15, %v22341_v44  ;;  %v5580_v36 = vsub.f32 %v18616_v26, %v22342_v38  ;;  %v14878_v44 = vpack.c.bf16 %v8894_v50, %v8887_v4  ;;  %v8908_v38 = vand.u32 4294901760, %v8907_v62  ;;  %v22347_v26 = vld [vmem:[#allocation117_spill] sm:$0xff]  ;;  %14305 = vmatpush3.bf16.msra.mxu1 %v18752_v14  ;;  %13223 = vmatprep.mubr.f32.mxu1 %v18828_v55 }
 0x35b   : > { %22340 = vst [vmem:[#allocation177_spill] sm:$0xff] %v18893_v23  ;;  %v22346_v23 = vld [vmem:[#allocation118_spill] sm:$0xff]  ;;  %v8796_v59 = vand.u32 4294901760, %v8795_v52  ;;  %v22349_v60 = vand.u32 4294901760, %v22343_v45  ;;  %v22351_v43 = vand.u32 4294901760, %v22344_v21  ;;  %v22354_v52 = vand.u32 4294901760, %v22264_v34  ;;  %14307 = vmatprep.subr.bf16.mxu1 %v18800_v27 }
 0x35c   : > { %8632 = vmatmul.mubr.f32.vlgmr.msra.gmra.mrb[74].mxu0 %v22346_v23  ;;  %v22352_v23 = vand.u32 4294901760, %v22345_v24  ;;  %v5574_v62 = vand.u32 4294901760, %v5573_v30  ;;  %v22355_v32 = vand.u32 4294901760, %v22265_v12  ;;  %v22357_v30 = vand.u32 4294901760, %v18667_v7 }
 0x35d   : > { %8641 = vmatprep.mubr.f32.mxu0 %v22347_v26  ;;  %14873 = vmatpush3.bf16.msra.mxu0 %v18763_v5  ;;  %v18917_v6 = vpack.c.bf16 %v22349_v60, %v22348_v51  ;;  %v5581_v5 = vand.u32 4294901760, %v5580_v36  ;;  %v8914_v11 = vsub.f32 %v22264_v34, %v22354_v52  ;;  %v22356_v51 = vand.u32 4294901760, %v18662_v10  ;;  %v22358_v60 = vld [vmem:[#allocation4_spill] sm:$0xff] }
 0x35e   : > { %v18923_v4 = vpack.c.bf16 %v22352_v23, %v22351_v43  ;;  %14875 = vmatprep.subr.bf16.mxu0 %v18791_v13  ;;  %v8921_v50 = vsub.f32 %v22265_v12, %v22355_v32  ;;  %v14310_v23 = vpack.c.bf16 %v5567_v2, %v5560_v63  ;;  %v5594_v36 = vsub.f32 %v18667_v7, %v22357_v30 }
 0x35f   : > { %22350 = vst [vmem:[#allocation180_spill] sm:$0xff] %v18917_v6  ;;  %v5587_v13 = vsub.f32 %v18662_v10, %v22356_v51  ;;  %v22359_v43 = vsub.f32 %v18722_v40, %v18780_v47  ;;  %v14880_v14 = vpack.c.bf16 %v8782_v19, %v8775_v9  ;;  %v14882_v32 = vpack.c.bf16 %v8908_v38, %v8901_v18  ;;  %v22362_v51 = vld [vmem:[#allocation5_spill] sm:$0xff] }
 0x360   : > { %22353 = vst [vmem:[#allocation181_spill] sm:$0xff] %v18923_v4  ;;  %8647 = vmatmul.mubr.f32.gmra.mrb[76].mxu0 %v22358_v60  ;;  %v22361_v2 = vand.u32 4294901760, %v22267_v57  ;;  %v22363_v30 = vand.u32 4294901760, %v22268_v22  ;;  %v22364_v60 = vand.u32 4294901760, %v22304_v17  ;;  %v18962_v18 = vand.u32 4294901760, %v3976_v20  ;;  %14309 = vmatpush3.bf16.msra.mxu1 %v18800_v27 }
 0x361   : > { %v18946_v52 = vand.u32 4294901760, %v22359_v43  ;;  %8656 = vmatprep.mubr.f32.mxu0 %v22362_v51  ;;  %14877 = vmatpush3.bf16.msra.mxu0 %v18817_v53  ;;  %v22365_v43 = vand.u32 4294901760, %v22305_v58  ;;  %v14314_v9 = vpack.c.bf16 %v5581_v5, %v5574_v62  ;;  %v14884_v38 = vpack.c.bf16 %v8796_v59, %v8789_v31  ;;  %v15678_v5 = vld [vmem:[#allocation2] sm:$0xff] }
 0x362   : > { %v8802_v63 = vsub.f32 %v22267_v57, %v22361_v2  ;;  %v8809_v55 = vsub.f32 %v22268_v22, %v22363_v30  ;;  %v8928_v0 = vsub.f32 %v22304_v17, %v22364_v60  ;;  %22366 = vst [vmem:[#allocation194_spill] sm:$0xff] %v18962_v18  ;;  %14879 = vmatprep.subr.bf16.mxu0 %v14878_v44  ;;  %v8915_v53 = vand.u32 4294901760, %v8914_v11  ;;  %v22367_v30 = vld [vmem:[#allocation149_spill] sm:$0xff] }
 0x363   : > { %22360 = vst [vmem:[#allocation191_spill] sm:$0xff] %v18946_v52  ;;  %v8935_v19 = vsub.f32 %v22305_v58, %v22365_v43  ;;  %13224 = vmatmul.mubr.f32.gmra.mrb[80].mxu1 %v18946_v52  ;;  %v8922_v2 = vand.u32 4294901760, %v8921_v50  ;;  %v5588_v51 = vand.u32 4294901760, %v5587_v13  ;;  %v5595_v26 = vand.u32 4294901760, %v5594_v36  ;;  %v22370_v52 = vld [vmem:[#allocation130_spill] sm:$0xff]  ;;  %14311 = vmatprep.subr.bf16.mxu1 %v14310_v23  ;;  %v22374_v50 = vld [vmem:[#allocation7_spill] sm:$0xff] }
 0x364   : > { %13258 = vmatprep.mubr.f32.mxu1 %v22367_v30  ;;  %v22368_v60 = vand.u32 4294901760, %v18768_v41  ;;  %v22369_v43 = vand.u32 4294901760, %v22307_v33  ;;  %8662 = vmatmul.mubr.f32.gmra.mrb[78].mxu0 %v22370_v52  ;;  %v8803_v59 = vand.u32 4294901760, %v8802_v63  ;;  %v22371_v44 = vand.u32 4294901760, %v18773_v1 }
 0x365   : > { %v22372_v31 = vand.u32 4294901760, %v22308_v39  ;;  %v18980_v11 = vand.u32 4294901760, %v15678_v5  ;;  %8671 = vmatprep.mubr.f32.mxu0 %v22374_v50  ;;  %14881 = vmatpush3.bf16.msra.mxu0 %v14880_v14  ;;  %v8810_v13 = vand.u32 4294901760, %v8809_v55  ;;  %v8929_v36 = vand.u32 4294901760, %v8928_v0  ;;  %v22377_v55 = vld [vmem:[#allocation136_spill] sm:$0xff] }
 0x366   : > { %v5601_v4 = vsub.f32 %v18768_v41, %v22368_v60  ;;  %v8816_v6 = vsub.f32 %v22307_v33, %v22369_v43  ;;  %v5608_v27 = vsub.f32 %v18773_v1, %v22371_v44  ;;  %v8936_v60 = vand.u32 4294901760, %v8935_v19  ;;  %14883 = vmatprep.subr.bf16.mxu0 %v14882_v32  ;;  %14313 = vmatpush3.bf16.msra.mxu1 %v14310_v23 }
 0x367   : > { %v8823_v62 = vsub.f32 %v22308_v39, %v22372_v31  ;;  %22373 = vst [vmem:[#allocation195_spill] sm:$0xff] %v18980_v11  ;;  %v18984_v43 = vsub.f32 %v3976_v20, %v18962_v18  ;;  %v14886_v63 = vpack.c.bf16 %v8922_v2, %v8915_v53  ;;  %v22375_v44 = vand.u32 4294901760, %v22326_v3  ;;  %14315 = vmatprep.subr.bf16.mxu1 %v14314_v9  ;;  %v22379_v2 = vld [vmem:[#allocation138_spill] sm:$0xff] }
 0x368   : > { %v22376_v31 = vand.u32 4294901760, %v22327_v8  ;;  %v14318_v47 = vpack.c.bf16 %v5595_v26, %v5588_v51  ;;  %v5602_v50 = vand.u32 4294901760, %v5601_v4  ;;  %v8817_v14 = vand.u32 4294901760, %v8816_v6  ;;  %8677 = vmatmul.mubr.f32.gmra.mrb[80].mxu0 %v22377_v55 }
 0x369   : > { %v8942_v52 = vsub.f32 %v22326_v3, %v22375_v44  ;;  %v5609_v0 = vand.u32 4294901760, %v5608_v27  ;;  %v8824_v20 = vand.u32 4294901760, %v8823_v62  ;;  %v22378_v32 = vand.u32 4294901760, %v22328_v56  ;;  %8686 = vmatprep.mubr.f32.mxu0 %v22379_v2  ;;  %14885 = vmatpush3.bf16.msra.mxu0 %v14884_v38  ;;  %v22383_v38 = vld [vmem:[#allocation20_spill] sm:$0xff] }
 0x36a   : > { %v8949_v30 = vsub.f32 %v22327_v8, %v22376_v31  ;;  %v18997_v53 = vsub.f32 %v15678_v5, %v18980_v11  ;;  %v14888_v44 = vpack.c.bf16 %v8810_v13, %v8803_v59  ;;  %v14890_v23 = vpack.c.bf16 %v8936_v60, %v8929_v36  ;;  %14887 = vmatprep.subr.bf16.mxu0 %v14886_v63  ;;  %v22384_v63 = vld [vmem:[#allocation141_spill] sm:$0xff]  ;;  %v22394_v2 = vld [vmem:[#allocation164_spill] sm:$0xff] }
 0x36b   : > { %v8830_v19 = vsub.f32 %v22328_v56, %v22378_v32  ;;  %v22380_v26 = vand.u32 4294901760, %v22329_v16  ;;  %v21585_v4 = vand.u32 4294901760, %v18984_v43  ;;  %v8943_v51 = vand.u32 4294901760, %v8942_v52  ;;  %14317 = vmatpush3.bf16.msra.mxu1 %v14314_v9 }
 0x36c   : > { %v8950_v27 = vand.u32 4294901760, %v8949_v30  ;;  %v22381_v62 = vand.u32 4294901760, %v18489_v37  ;;  %v22382_v5 = vand.u32 4294901760, %v22343_v45  ;;  %8692 = vmatmul.mubr.f32.gmra.mrb[82].mxu0 %v22383_v38  ;;  %14319 = vmatprep.subr.bf16.mxu1 %v14318_v47  ;;  %v14322_v59 = vpack.c.bf16 %v5609_v0, %v5602_v50 }
 0x36d   : > { %v8837_v6 = vsub.f32 %v22329_v16, %v22380_v26  ;;  %v14892_v13 = vpack.c.bf16 %v8824_v20, %v8817_v14  ;;  %v8831_v36 = vand.u32 4294901760, %v8830_v19  ;;  %v21586_v60 = vand.u32 4294901760, %v18997_v53  ;;  %8701 = vmatprep.mubr.f32.mxu0 %v22384_v63  ;;  %14889 = vmatpush3.bf16.msra.mxu0 %v14888_v44  ;;  %v22387_v19 = vld [vmem:[#allocation142_spill] sm:$0xff] }
 0x36e   : > { %v8956_v31 = vsub.f32 %v18489_v37, %v22381_v62  ;;  %v8963_v32 = vsub.f32 %v22343_v45, %v22382_v5  ;;  %v8729_v30 = vsub.f32 %v18984_v43, %v21585_v4  ;;  %v22385_v26 = vand.u32 4294901760, %v22344_v21  ;;  %14891 = vmatprep.subr.bf16.mxu0 %v14890_v23  ;;  %v22388_v44 = vld [vmem:[#allocation162_spill] sm:$0xff] }
 0x36f   : > { %v8838_v52 = vand.u32 4294901760, %v8837_v6  ;;  %v22386_v62 = vand.u32 4294901760, %v22345_v24  ;;  %v14894_v14 = vpack.c.bf16 %v8950_v27, %v8943_v51  ;;  %14321 = vmatpush3.bf16.msra.mxu1 %v14318_v47  ;;  %v22389_v6 = vld [vmem:[#allocation163_spill] sm:$0xff]  ;;  %v8735_v4 = vsub.f32 %v18997_v53, %v21586_v60  ;;  %v22391_v47 = vld [vmem:[#allocation21_spill] sm:$0xff] }
 0x370   : > { %v8844_v9 = vsub.f32 %v22344_v21, %v22385_v26  ;;  %v8957_v0 = vand.u32 4294901760, %v8956_v31  ;;  %v8964_v20 = vand.u32 4294901760, %v8963_v32  ;;  %8707 = vmatmul.mubr.f32.gmra.mrb[84].mxu0 %v22387_v19  ;;  %14323 = vmatprep.subr.bf16.mxu1 %v14322_v59  ;;  %v14326_v5 = vpack.c.bf16 %v22389_v6, %v22388_v44  ;;  %v22390_v26 = vld [vmem:[#allocation143_spill] sm:$0xff]  ;;  %v22392_v32 = vld [vmem:[#allocation170_spill] sm:$0xff] }
 0x371   : > { %v8851_v50 = vsub.f32 %v22345_v24, %v22386_v62  ;;  %8716 = vmatprep.mubr.f32.mxu0 %v22390_v26  ;;  %14893 = vmatpush3.bf16.msra.mxu0 %v14892_v13  ;;  %v14896_v63 = vpack.c.bf16 %v8838_v52, %v8831_v36  ;;  %v8730_v62 = vand.u32 4294901760, %v8729_v30  ;;  %v8736_v31 = vand.u32 4294901760, %v8735_v4  ;;  %v22393_v19 = vld [vmem:[#allocation47_spill] sm:$0xff]  ;;  %v22395_v13 = vld [vmem:[#allocation64_spill] sm:$0xff]  ;;  %v22397_v30 = vld [vmem:[#allocation169_spill] sm:$0xff] }
 0x372   : > { %v8845_v23 = vand.u32 4294901760, %v8844_v9  ;;  %14895 = vmatprep.subr.bf16.mxu0 %v14894_v14  ;;  %v14898_v27 = vpack.c.bf16 %v8964_v20, %v8957_v0  ;;  %v14330_v38 = vpack.c.bf16 %v22393_v19, %v22392_v32  ;;  %v22396_v36 = vld [vmem:[#allocation48_spill] sm:$0xff]  ;;  %v22399_v9 = vld [vmem:[#allocation186_spill] sm:$0xff]  ;;  %v22404_v19 = vld [vmem:[#allocation75_spill] sm:$0xff] }
 0x373   : > { %v8852_v51 = vand.u32 4294901760, %v8851_v50  ;;  %14325 = vmatpush3.bf16.msra.mxu1 %v14322_v59  ;;  %v14902_v52 = vpack.c.bf16 %v22396_v36, %v22395_v13  ;;  %v22398_v59 = vld [vmem:[#allocation185_spill] sm:$0xff]  ;;  %v22400_v50 = vld [vmem:[#allocation91_spill] sm:$0xff]  ;;  %v22402_v14 = vld [vmem:[#allocation74_spill] sm:$0xff]  ;;  %v14906_v26 = vpack.c.bf16 %v22404_v19, %v22213_v25  ;;  %v14910_v25 = vpack.c.bf16 %v22222_v29, %v22221_v48 }
 0x374   : > { %8722 = vmatmul.mubr.f32.gmra.mrb[86].mxu0 %v22391_v47  ;;  %14327 = vmatprep.subr.bf16.mxu1 %v14326_v5  ;;  %v14334_v4 = vpack.c.bf16 %v22399_v9, %v22398_v59  ;;  %v22403_v20 = vld [vmem:[#allocation176_spill] sm:$0xff]  ;;  %v22410_v47 = vld [vmem:[#allocation81_spill] sm:$0xff]  ;;  %v22412_v13 = vld [vmem:[#allocation203_spill] sm:$0xff]  ;;  %v14342_v36 = vpack.c.bf16 %v18575_v42, %v18560_v35  ;;  %v14914_v29 = vpack.c.bf16 %v22246_v61, %v22245_v28 }
 0x375   : > { %14897 = vmatpush3.bf16.msra.mxu0 %v14896_v63  ;;  %8731 = vmatprep.mubr.f32.mxu0 %v8730_v62  ;;  %v14900_v60 = vpack.c.bf16 %v8852_v51, %v8845_v23  ;;  %v22401_v63 = vld [vmem:[#allocation73_spill] sm:$0xff]  ;;  %v22405_v62 = vld [vmem:[#allocation178_spill] sm:$0xff]  ;;  %v22407_v23 = vld [vmem:[#allocation196_spill] sm:$0xff]  ;;  %v14350_v61 = vpack.c.bf16 %v18667_v7, %v18662_v10  ;;  %v14922_v19 = vpack.c.bf16 %v22305_v58, %v22304_v17 }
 0x376   : > { %13259 = vmatmul.mubr.f32.vlgmr.msra.gmra.mrb[74].mxu1 %v22394_v2  ;;  %14899 = vmatprep.subr.bf16.mxu0 %v14898_v27  ;;  %v14904_v0 = vpack.c.bf16 %v22402_v14, %v22401_v63  ;;  %v22408_v51 = vld [vmem:[#allocation197_spill] sm:$0xff]  ;;  %v22409_v27 = vld [vmem:[#allocation96_spill] sm:$0xff]  ;;  %v22417_v9 = vld [vmem:[#allocation110_spill] sm:$0xff]  ;;  %v14918_v14 = vpack.c.bf16 %v22265_v12, %v22264_v34  ;;  %v14354_v12 = vpack.c.bf16 %v18773_v1, %v18768_v41 }
 0x377   : > { %13261 = vmatprep.mubr.f32.mxu1 %v22397_v30  ;;  %14329 = vmatpush3.bf16.msra.mxu1 %v14326_v5  ;;  %v22406_v5 = vld [vmem:[#allocation99_spill] sm:$0xff]  ;;  %v22411_v32 = vld [vmem:[#allocation200_spill] sm:$0xff]  ;;  %v22416_v48 = vld [vmem:[#allocation161_spill] sm:$0xff]  ;;  %v14924_v7 = vpack.c.bf16 %v22308_v39, %v22307_v33  ;;  %v14926_v10 = vpack.c.bf16 %v22327_v8, %v22326_v3  ;;  %v14930_v17 = vpack.c.bf16 %v22343_v45, %v18489_v37 }
 0x378   : > { %8737 = vmatmul.mubr.f32.gmra.mrb[88].mxu0 %v8736_v31  ;;  %14331 = vmatprep.subr.bf16.mxu1 %v14330_v38  ;;  %v14908_v31 = vpack.c.bf16 %v22219_v46, %v22410_v47  ;;  %v14912_v46 = vpack.c.bf16 %v18205_v49, %v22225_v54  ;;  %v22415_v59 = vld [vmem:[#allocation148_spill] sm:$0xff]  ;;  %v22418_v35 = vld [vmem:[#allocation83_spill] sm:$0xff]  ;;  %v22421_v49 = vld [vmem:[#allocation6_spill] sm:$0xff]  ;;  %v14932_v8 = vpack.c.bf16 %v22345_v24, %v22344_v21 }
 0x379   : > { %14901 = vmatpush3.bf16.msra.mxu0 %v14900_v60  ;;  %8967 = vmatprep.mubr.f32.mxu0 %v22400_v50  ;;  %v14338_v60 = vpack.c.bf16 %v22408_v51, %v22407_v23  ;;  %v14346_v42 = vpack.c.bf16 %v22418_v35, %v18611_v15  ;;  %v22420_v63 = vld [vmem:[#allocation152_spill] sm:$0xff]  ;;  %v22422_v28 = vld [vmem:[#allocation113_spill] sm:$0xff]  ;;  %v14920_v15 = vpack.c.bf16 %v22268_v22, %v22267_v57  ;;  %v22425_v34 = vld [vmem:[#allocation123_spill] sm:$0xff] }
 0x37a   : > { %13262 = vmatmul.mubr.f32.gmra.mrb[76].mxu1 %v22403_v20  ;;  %14903 = vmatprep.subr.bf16.mxu0 %v14902_v52  ;;  %v22414_v52 = vld [vmem:[#allocation103_spill] sm:$0xff]  ;;  %v14916_v54 = vpack.c.bf16 %v22421_v49, %v22420_v63  ;;  %v22426_v22 = vld [vmem:[#allocation126_spill] sm:$0xff]  ;;  %v22427_v58 = vld [vmem:[#allocation129_spill] sm:$0xff]  ;;  %v14928_v57 = vpack.c.bf16 %v22329_v16, %v22328_v56 }
 0x37b   : > { %13264 = vmatprep.mubr.f32.mxu1 %v22405_v62  ;;  %14333 = vmatpush3.bf16.msra.mxu1 %v14330_v38  ;;  %v22413_v38 = vld [vmem:[#allocation98_spill] sm:$0xff]  ;;  %v22428_v33 = vld [vmem:[#allocation133_spill] sm:$0xff]  ;;  %v22429_v41 = vld [vmem:[#allocation56_spill] sm:$0xff] }
 0x37c   : > { %8969 = vmatmul.mubr.f32.vlgmr.msra.gmra.mrb[90].mxu0 %v22406_v5  ;;  %14335 = vmatprep.subr.bf16.mxu1 %v14334_v4  ;;  %v22430_v1 = vld [vmem:[#allocation10_spill] sm:$0xff]  ;;  %v22431_v39 = vld [vmem:[#allocation23_spill] sm:$0xff]  ;;  %v22432_v56 = vld [vmem:[#allocation24_spill] sm:$0xff] }
 0x37d   : > { %8974 = vmatprep.mubr.f32.mxu0 %v22409_v27  ;;  %14905 = vmatpush3.bf16.msra.mxu0 %v14904_v0  ;;  %v22423_v0 = vld [vmem:[#allocation116_spill] sm:$0xff]  ;;  %v21590_v16 = vand.u32 4294901760, %v22431_v39  ;;  %v21589_v3 = vand.u32 4294901760, %v22432_v56  ;;  %v22433_v23 = vld [vmem:[#allocation175_spill] sm:$0xff]  ;;  %v22434_v37 = vld [vmem:[#allocation57_spill] sm:$0xff] }
 0x37e   : > { %13265 = vmatmul.mubr.f32.gmra.mrb[78].mxu1 %v22411_v32  ;;  %14907 = vmatprep.subr.bf16.mxu0 %v14906_v26  ;;  %v22424_v26 = vld [vmem:[#allocation122_spill] sm:$0xff]  ;;  %v22435_v24 = vld [vmem:[#allocation92_spill] sm:$0xff]  ;;  %v22436_v51 = vld [vmem:[#allocation25_spill] sm:$0xff] }
 0x37f   : > { %13267 = vmatprep.mubr.f32.mxu1 %v22412_v13  ;;  %14337 = vmatpush3.bf16.msra.mxu1 %v14334_v4  ;;  %v22419_v4 = vld [vmem:[#allocation106_spill] sm:$0xff]  ;;  %v6613_v45 = vsub.f32 %v22431_v39, %v21590_v16  ;;  %v6620_v21 = vsub.f32 %v22432_v56, %v21589_v3  ;;  %v22452_v16 = vld [vmem:[#allocation39_spill] sm:$0xff] }
 0x380   : > { %8976 = vmatmul.mubr.f32.gmra.mrb[92].mxu0 %v22413_v38  ;;  %14339 = vmatprep.subr.bf16.mxu1 %v14338_v60  ;;  %v22437_v47 = vld [vmem:[#allocation26_spill] sm:$0xff]  ;;  %v22514_v13 = vld [vmem:[#allocation131_spill] sm:$0xff] }
 0x381   : > { %8981 = vmatprep.mubr.f32.mxu0 %v22414_v52  ;;  %14909 = vmatpush3.bf16.msra.mxu0 %v14908_v31  ;;  %v21587_v31 = vand.u32 4294901760, %v22437_v47  ;;  %v22440_v35 = vld [vmem:[#allocation18_spill] sm:$0xff]  ;;  %v22535_v62 = vld [vmem:[#allocation187_spill] sm:$0xff] }
 0x382   : > { %13268 = vmatmul.mubr.f32.gmra.mrb[80].mxu1 %v22415_v59  ;;  %14911 = vmatprep.subr.bf16.mxu0 %v14910_v25  ;;  %v22438_v25 = vld [vmem:[#allocation184_spill] sm:$0xff]  ;;  %v22441_v49 = vld [vmem:[#allocation30_spill] sm:$0xff]  ;;  %v22504_v59 = vld [vmem:[#allocation159_spill] sm:$0xff] }
 0x383   : > { %14341 = vmatpush3.bf16.msra.mxu1 %v14338_v60  ;;  %13302 = vmatprep.mubr.f32.mxu1 %v22416_v48  ;;  %v21588_v60 = vand.u32 4294901760, %v22436_v51  ;;  %v6508_v63 = vsub.f32 %v22437_v47, %v21587_v31  ;;  %v22449_v31 = vld [vmem:[#allocation58_spill] sm:$0xff]  ;;  %v22538_v20 = vld [vmem:[#allocation183_spill] sm:$0xff] }
 0x384   : > { %8983 = vmatmul.mubr.f32.gmra.mrb[94].mxu0 %v22417_v9  ;;  %14343 = vmatprep.subr.bf16.mxu1 %v14342_v36 }
 0x385   : > { %8988 = vmatprep.mubr.f32.mxu0 %v22419_v4  ;;  %14913 = vmatpush3.bf16.msra.mxu0 %v14912_v46  ;;  %v6614_v46 = vand.u32 4294901760, %v6613_v45  ;;  %v22495_v4 = vld [vmem:[#allocation154_spill] sm:$0xff] }
 0x386   : > { %14915 = vmatprep.subr.bf16.mxu0 %v14914_v29  ;;  %v6621_v29 = vand.u32 4294901760, %v6620_v21  ;;  %v22448_v21 = vld [vmem:[#allocation84_spill] sm:$0xff] }
 0x387   : > { %14345 = vmatpush3.bf16.msra.mxu1 %v14342_v36  ;;  %v22439_v36 = vld [vmem:[#allocation63_spill] sm:$0xff] }
 0x388   : > { %8990 = vmatmul.mubr.f32.gmra.mrb[96].mxu0 %v22422_v28  ;;  %14347 = vmatprep.subr.bf16.mxu1 %v14346_v42 }
 0x389   : > { %8995 = vmatprep.mubr.f32.mxu0 %v22423_v0  ;;  %14917 = vmatpush3.bf16.msra.mxu0 %v14916_v54  ;;  %v21591_v54 = vand.u32 4294901760, %v22441_v49  ;;  %v22484_v0 = vld [vmem:[#allocation119_spill] sm:$0xff] }
 0x38a   : > { %14919 = vmatprep.subr.bf16.mxu0 %v14918_v14  ;;  %v22442_v14 = vld [vmem:[#allocation31_spill] sm:$0xff] }
 0x38b   : > { %14349 = vmatpush3.bf16.msra.mxu1 %v14346_v42  ;;  %v6501_v42 = vsub.f32 %v22436_v51, %v21588_v60  ;;  %v22451_v60 = vld [vmem:[#allocation33_spill] sm:$0xff] }
 0x38c   : > { %8997 = vmatmul.mubr.f32.gmra.mrb[98].mxu0 %v22424_v26  ;;  %14351 = vmatprep.subr.bf16.mxu1 %v14350_v61 }
 0x38d   : > { %9002 = vmatprep.mubr.f32.mxu0 %v22425_v34  ;;  %14921 = vmatpush3.bf16.msra.mxu0 %v14920_v15  ;;  %v22443_v15 = vld [vmem:[#allocation102_spill] sm:$0xff] }
 0x38e   : > { %14923 = vmatprep.subr.bf16.mxu0 %v14922_v19  ;;  %v22444_v19 = vld [vmem:[#allocation66_spill] sm:$0xff] }
 0x38f   : > { %14353 = vmatpush3.bf16.msra.mxu1 %v14350_v61  ;;  %v21592_v61 = vand.u32 4294901760, %v22442_v14 }
 0x390   : > { %9004 = vmatmul.mubr.f32.gmra.mrb[100].mxu0 %v22426_v22  ;;  %14355 = vmatprep.subr.bf16.mxu1 %v14354_v12  ;;  %v22478_v22 = vld [vmem:[#allocation52_spill] sm:$0xff] }
 0x391   : > { %9009 = vmatprep.mubr.f32.mxu0 %v22427_v58  ;;  %14925 = vmatpush3.bf16.msra.mxu0 %v14924_v7  ;;  %v22446_v7 = vld [vmem:[#allocation100_spill] sm:$0xff]  ;;  %v6634_v45 = vsub.f32 %v22442_v14, %v21592_v61  ;;  %v22476_v58 = vld [vmem:[#allocation14_spill] sm:$0xff] }
 0x392   : > { %14927 = vmatprep.subr.bf16.mxu0 %v14926_v10  ;;  %v22447_v10 = vld [vmem:[#allocation67_spill] sm:$0xff] }
 0x393   : > { %14357 = vmatpush3.bf16.msra.mxu1 %v14354_v12  ;;  %v19130_v12 = vpack.c.bf16 %v6621_v29, %v6614_v46  ;;  %v22450_v46 = vld [vmem:[#allocation32_spill] sm:$0xff]  ;;  %v6635_v61 = vand.u32 4294901760, %v6634_v45 }
 0x394   : > { %9011 = vmatmul.mubr.f32.gmra.mrb[102].mxu0 %v22428_v33  ;;  %14359 = vmatprep.subr.bf16.mxu1 %v22429_v41  ;;  %v21593_v29 = vand.u32 4294901760, %v22450_v46 }
 0x395   : > { %14929 = vmatpush3.bf16.msra.mxu0 %v14928_v57  ;;  %9016 = vmatprep.mubr.f32.mxu0 %v18962_v18  ;;  %22445 = vst [vmem:[#allocation162_spill] sm:$0xff] %v19130_v12  ;;  %v6502_v57 = vand.u32 4294901760, %v6501_v42  ;;  %v22453_v42 = vld [vmem:[#allocation40_spill] sm:$0xff] }
 0x396   : > { %13303 = vmatmul.mubr.f32.vlgmr.msra.gmra.mrb[74].mxu1 %v22430_v1  ;;  %14931 = vmatprep.subr.bf16.mxu0 %v14930_v17  ;;  %v6509_v17 = vand.u32 4294901760, %v6508_v63  ;;  %v22456_v1 = vld [vmem:[#allocation101_spill] sm:$0xff]  ;;  %v6515_v3 = vsub.f32 %v22450_v46, %v21593_v29  ;;  %v22463_v45 = vand.u32 4294901760, %v22453_v42  ;;  %v22474_v18 = vld [vmem:[#allocation16_spill] sm:$0xff] }
 0x397   : > { %13305 = vmatprep.mubr.f32.mxu1 %v22433_v23  ;;  %14361 = vmatpush3.bf16.msra.mxu1 %v22429_v41 }
 0x398   : > { %9018 = vmatmul.mubr.f32.gmra.mrb[104].mxu0 %v18980_v11  ;;  %14363 = vmatprep.subr.bf16.mxu1 %v22434_v37  ;;  %v6516_v55 = vand.u32 4294901760, %v6515_v3  ;;  %v22470_v3 = vld [vmem:[#allocation114_spill] sm:$0xff] }
 0x399   : > { %14933 = vmatpush3.bf16.msra.mxu0 %v14932_v8  ;;  %9153 = vmatprep.mubr.f32.mxu0 %v22435_v24  ;;  %v6627_v8 = vsub.f32 %v22441_v49, %v21591_v54  ;;  %v19148_v54 = vpack.c.bf16 %v6509_v17, %v6502_v57  ;;  %v22460_v57 = vld [vmem:[#allocation108_spill] sm:$0xff]  ;;  %v22461_v17 = vld [vmem:[#allocation82_spill] sm:$0xff] }
 0x39a   : > { %13306 = vmatmul.mubr.f32.gmra.mrb[76].mxu1 %v22438_v25  ;;  %14935 = vmatprep.subr.bf16.mxu0 %v22439_v36  ;;  %v22454_v25 = vld [vmem:[#allocation13_spill] sm:$0xff] }
 0x39b   : > { %13308 = vmatprep.mubr.f32.mxu1 %v22440_v35  ;;  %14365 = vmatpush3.bf16.msra.mxu1 %v22434_v37  ;;  %22455 = vst [vmem:[#allocation163_spill] sm:$0xff] %v19148_v54  ;;  %v6628_v23 = vand.u32 4294901760, %v6627_v8  ;;  %v22458_v35 = vand.u32 4294901760, %v22451_v60 }
 0x39c   : > { %9156 = vmatmul.mubr.f32.vlgmr.msra.gmra.mrb[106].mxu0 %v22443_v15  ;;  %14367 = vmatprep.subr.bf16.mxu1 %v22444_v19  ;;  %v22465_v15 = vld [vmem:[#allocation42_spill] sm:$0xff] }
 0x39d   : > { %9162 = vmatprep.mubr.f32.mxu0 %v22446_v7  ;;  %14937 = vmatpush3.bf16.msra.mxu0 %v22447_v10  ;;  %v6522_v63 = vsub.f32 %v22451_v60, %v22458_v35  ;;  %v19163_v8 = vpack.c.bf16 %v6635_v61, %v6628_v23  ;;  %v22464_v7 = vld [vmem:[#allocation41_spill] sm:$0xff]  ;;  %v21600_v24 = vand.u32 4294901760, %v22465_v15  ;;  %v22466_v35 = vld [vmem:[#allocation12_spill] sm:$0xff]  ;;  %v22525_v10 = vld [vmem:[#allocation86_spill] sm:$0xff] }
 0x39e   : > { %13309 = vmatmul.mubr.f32.gmra.mrb[78].mxu1 %v22448_v21  ;;  %14939 = vmatprep.subr.bf16.mxu0 %v22449_v31  ;;  %v22457_v21 = vld [vmem:[#allocation76_spill] sm:$0xff]  ;;  %v21599_v29 = vand.u32 4294901760, %v22464_v7  ;;  %v21613_v27 = vand.u32 4294901760, %v22525_v10 }
 0x39f   : > { %13311 = vmatprep.mubr.f32.mxu1 %v22454_v25  ;;  %14369 = vmatpush3.bf16.msra.mxu1 %v22444_v19  ;;  %v22459_v25 = vand.u32 4294901760, %v22452_v16  ;;  %22462 = vst [vmem:[#allocation143_spill] sm:$0xff] %v19163_v8  ;;  %v22468_v23 = vld [vmem:[#allocation168_spill] sm:$0xff]  ;;  %v22469_v8 = vld [vmem:[#allocation50_spill] sm:$0xff] }
 0x3a0   : > { %9165 = vmatmul.mubr.f32.gmra.mrb[108].mxu0 %v22456_v1  ;;  %14371 = vmatprep.subr.bf16.mxu1 %v22457_v21  ;;  %v6648_v1 = vsub.f32 %v22453_v42, %v22463_v45  ;;  %v6529_v45 = vsub.f32 %v22464_v7, %v21599_v29  ;;  %v21602_v11 = vand.u32 4294901760, %v22469_v8 }
 0x3a1   : > { %v6641_v48 = vsub.f32 %v22452_v16, %v22459_v25  ;;  %9171 = vmatprep.mubr.f32.mxu0 %v22460_v57  ;;  %14941 = vmatpush3.bf16.msra.mxu0 %v22461_v17  ;;  %v6523_v25 = vand.u32 4294901760, %v6522_v63  ;;  %v22467_v57 = vld [vmem:[#allocation49_spill] sm:$0xff] }
 0x3a2   : > { %13312 = vmatmul.mubr.f32.gmra.mrb[80].mxu1 %v18722_v40  ;;  %14943 = vmatprep.subr.bf16.mxu0 %v22466_v35  ;;  %v21601_v12 = vand.u32 4294901760, %v22467_v57  ;;  %v6649_v61 = vand.u32 4294901760, %v6648_v1  ;;  %v6536_v40 = vsub.f32 %v22465_v15, %v21600_v24  ;;  %v6530_v33 = vand.u32 4294901760, %v6529_v45 }
 0x3a3   : > { %v6642_v54 = vand.u32 4294901760, %v6641_v48  ;;  %14373 = vmatpush3.bf16.msra.mxu1 %v22457_v21  ;;  %13346 = vmatprep.mubr.f32.mxu1 %v22468_v23  ;;  %v22471_v48 = vld [vmem:[#allocation15_spill] sm:$0xff]  ;;  %v19184_v63 = vpack.c.bf16 %v6523_v25, %v6516_v55  ;;  %v22513_v21 = vld [vmem:[#allocation78_spill] sm:$0xff] }
 0x3a4   : > { %9174 = vmatmul.mubr.f32.gmra.mrb[110].mxu0 %v22470_v3  ;;  %14375 = vmatprep.subr.bf16.mxu1 %v22471_v48  ;;  %v6655_v1 = vsub.f32 %v22467_v57, %v21601_v12  ;;  %v22473_v23 = vld [vmem:[#allocation111_spill] sm:$0xff]  ;;  %v6537_v24 = vand.u32 4294901760, %v6536_v40  ;;  %v6662_v3 = vsub.f32 %v22469_v8, %v21602_v11 }
 0x3a5   : > { %22472 = vst [vmem:[#allocation21_spill] sm:$0xff] %v19184_v63  ;;  %9180 = vmatprep.mubr.f32.mxu0 %v22473_v23  ;;  %14945 = vmatpush3.bf16.msra.mxu0 %v22474_v18  ;;  %v19191_v29 = vpack.c.bf16 %v6649_v61, %v6642_v54  ;;  %v22477_v25 = vld [vmem:[#allocation51_spill] sm:$0xff]  ;;  %v22480_v54 = vand.u32 4294901760, %v22388_v44  ;;  %v22481_v61 = vand.u32 4294901760, %v22389_v6  ;;  %v22483_v23 = vld [vmem:[#allocation60_spill] sm:$0xff]  ;;  %v22485_v63 = vld [vmem:[#allocation150_spill] sm:$0xff] }
 0x3a6   : > { %14947 = vmatprep.subr.bf16.mxu0 %v22476_v58  ;;  %v6656_v55 = vand.u32 4294901760, %v6655_v1  ;;  %v22479_v12 = vld [vmem:[#allocation59_spill] sm:$0xff]  ;;  %v19207_v45 = vpack.c.bf16 %v6537_v24, %v6530_v33  ;;  %v6663_v11 = vand.u32 4294901760, %v6662_v3  ;;  %v11430_v1 = vpop.f32.mrb[10].mxu1  ;;  %v22486_v26 = vand.u32 4294901760, %v22477_v25  ;;  %v22494_v58 = vld [vmem:[#allocation62_spill] sm:$0xff] }
 0x3a7   : > { %22475 = vst [vmem:[#allocation170_spill] sm:$0xff] %v19191_v29  ;;  %14377 = vmatpush3.bf16.msra.mxu1 %v22471_v48  ;;  %v19205_v40 = vpack.c.bf16 %v22481_v61, %v22480_v54  ;;  %v22487_v44 = vand.u32 4294901760, %v22478_v22  ;;  %v22488_v54 = vand.u32 4294901760, %v22479_v12  ;;  %v11431_v24 = vpop.f32.mrb[11].mxu1  ;;  %v22489_v3 = vld [vmem:[#allocation3_spill] sm:$0xff]  ;;  %v21606_v18 = vand.u32 4294901760, %v22494_v58 }
 0x3a8   : > { %22482 = vst [vmem:[#allocation47_spill] sm:$0xff] %v19207_v45  ;;  %9183 = vmatmul.mubr.f32.gmra.mrb[112].mxu0 %v22484_v0  ;;  %14379 = vmatprep.subr.bf16.mxu1 %v22485_v63  ;;  %v6543_v34 = vsub.f32 %v22477_v25, %v22486_v26  ;;  %v22490_v61 = vld [vmem:[#allocation151_spill] sm:$0xff]  ;;  %v19223_v29 = vpack.c.bf16 %v6663_v11, %v6656_v55  ;;  %v22492_v0 = vand.u32 4294901760, %v22483_v23  ;;  %v22493_v26 = vld [vmem:[#allocation61_spill] sm:$0xff]  ;;  %v11433_v35 = vpop.f32.mrb[12].mxu1 }
 0x3a9   : > { %v6550_v6 = vsub.f32 %v22478_v22, %v22487_v44  ;;  %v6669_v33 = vsub.f32 %v22479_v12, %v22488_v54  ;;  %9189 = vmatprep.mubr.f32.mxu0 %v22489_v3  ;;  %14949 = vmatpush3.bf16.msra.mxu0 %v22490_v61  ;;  %v21605_v28 = vand.u32 4294901760, %v22493_v26  ;;  %v19230_v44 = vadd.f32 %v11431_v24, %v11430_v1  ;;  %v22496_v55 = vld [vmem:[#allocation69_spill] sm:$0xff]  ;;  %v22497_v1 = vld [vmem:[#allocation124_spill] sm:$0xff]  ;;  %v22498_v24 = vld [vmem:[#allocation158_spill] sm:$0xff] }
 0x3aa   : > { %22491 = vst [vmem:[#allocation64_spill] sm:$0xff] %v19223_v29  ;;  %v6676_v45 = vsub.f32 %v22483_v23, %v22492_v0  ;;  %14951 = vmatprep.subr.bf16.mxu0 %v22495_v4  ;;  %v6544_v54 = vand.u32 4294901760, %v6543_v34  ;;  %v6564_v0 = vsub.f32 %v22494_v58, %v21606_v18  ;;  %v22501_v4 = vld [vmem:[#allocation71_spill] sm:$0xff]  ;;  %v22502_v61 = vld [vmem:[#allocation72_spill] sm:$0xff] }
 0x3ab   : > { %v6551_v48 = vand.u32 4294901760, %v6550_v6  ;;  %v6670_v9 = vand.u32 4294901760, %v6669_v33  ;;  %14381 = vmatpush3.bf16.msra.mxu1 %v22485_v63  ;;  %v6557_v11 = vsub.f32 %v22493_v26, %v21605_v28  ;;  %v22500_v6 = vld [vmem:[#allocation70_spill] sm:$0xff]  ;;  %v22503_v28 = vld [vmem:[#allocation127_spill] sm:$0xff]  ;;  %v22507_v33 = vld [vmem:[#allocation165_spill] sm:$0xff] }
 0x3ac   : > { %v6677_v3 = vand.u32 4294901760, %v6676_v45  ;;  %9192 = vmatmul.mubr.f32.gmra.mrb[114].mxu0 %v22497_v1  ;;  %14383 = vmatprep.subr.bf16.mxu1 %v22498_v24  ;;  %v6565_v17 = vand.u32 4294901760, %v6564_v0  ;;  %v22506_v1 = vand.u32 4294901760, %v22496_v55  ;;  %v22508_v45 = vand.u32 4294901760, %v22500_v6 }
 0x3ad   : > { %v19243_v34 = vpack.c.bf16 %v6551_v48, %v6544_v54  ;;  %9198 = vmatprep.mubr.f32.mxu0 %v22503_v28  ;;  %14953 = vmatpush3.bf16.msra.mxu0 %v22504_v59  ;;  %v6558_v29 = vand.u32 4294901760, %v6557_v11  ;;  %v11318_v54 = vpop.f32.mrb[10].mxu0  ;;  %v22509_v28 = vand.u32 4294901760, %v22501_v4  ;;  %v22511_v11 = vld [vmem:[#allocation77_spill] sm:$0xff] }
 0x3ae   : > { %v19250_v18 = vpack.c.bf16 %v6677_v3, %v6670_v9  ;;  %v6683_v48 = vsub.f32 %v22496_v55, %v22506_v1  ;;  %14955 = vmatprep.subr.bf16.mxu0 %v22507_v33  ;;  %v6690_v63 = vsub.f32 %v22500_v6, %v22508_v45  ;;  %v22510_v9 = vand.u32 4294901760, %v22502_v61  ;;  %v11319_v1 = vpop.f32.mrb[11].mxu0 }
 0x3af   : > { %22499 = vst [vmem:[#allocation48_spill] sm:$0xff] %v19243_v34  ;;  %v11434_v34 = vpop.f32.mrb[13].mxu1  ;;  %v6571_v59 = vsub.f32 %v22501_v4, %v22509_v28  ;;  %14385 = vmatpush3.bf16.msra.mxu1 %v22498_v24  ;;  %v19269_v33 = vpack.c.bf16 %v6565_v17, %v6558_v29  ;;  %v21609_v45 = vand.u32 4294901760, %v22513_v21  ;;  %v19272_v38 = vadd.f32 %v11319_v1, %v11318_v54  ;;  %v22515_v28 = vld [vmem:[#allocation9_spill] sm:$0xff]  ;;  %v22519_v54 = vld [vmem:[#allocation79_spill] sm:$0xff] }
 0x3b0   : > { %22505 = vst [vmem:[#allocation185_spill] sm:$0xff] %v19250_v18  ;;  %v6578_v3 = vsub.f32 %v22502_v61, %v22510_v9  ;;  %v19266_v18 = vadd.f32 %v11434_v34, %v11433_v35  ;;  %v6684_v52 = vand.u32 4294901760, %v6683_v48  ;;  %9201 = vmatmul.mubr.f32.gmra.mrb[116].mxu0 %v22514_v13  ;;  %14387 = vmatprep.subr.bf16.mxu1 %v22515_v28  ;;  %v6691_v31 = vand.u32 4294901760, %v6690_v63  ;;  %v11436_v0 = vpop.f32.mrb[14].mxu1  ;;  %v22516_v35 = vld [vmem:[#allocation134_spill] sm:$0xff]  ;;  %v22517_v34 = vld [vmem:[#allocation171_spill] sm:$0xff] }
 0x3b1   : > { %22512 = vst [vmem:[#allocation186_spill] sm:$0xff] %v19269_v33  ;;  %v6572_v9 = vand.u32 4294901760, %v6571_v59  ;;  %9207 = vmatprep.mubr.f32.mxu0 %v22516_v35  ;;  %14957 = vmatpush3.bf16.msra.mxu0 %v22517_v34  ;;  %v22518_v29 = vand.u32 4294901760, %v22511_v11  ;;  %v6704_v48 = vsub.f32 %v22513_v21, %v21609_v45  ;;  %v22520_v13 = vld [vmem:[#allocation80_spill] sm:$0xff]  ;;  %v11437_v63 = vpop.f32.mrb[15].mxu1  ;;  %v22521_v59 = vld [vmem:[#allocation174_spill] sm:$0xff] }
 0x3b2   : > { %v6579_v32 = vand.u32 4294901760, %v6578_v3  ;;  %14959 = vmatprep.subr.bf16.mxu0 %v22521_v59  ;;  %v19287_v3 = vpack.c.bf16 %v6691_v31, %v6684_v52  ;;  %v22524_v34 = vld [vmem:[#allocation85_spill] sm:$0xff]  ;;  %v11321_v45 = vpop.f32.mrb[12].mxu0  ;;  %v22527_v33 = vand.u32 4294901760, %v22519_v54  ;;  %v22528_v52 = vld [vmem:[#allocation19_spill] sm:$0xff] }
 0x3b3   : > { %v6697_v17 = vsub.f32 %v22511_v11, %v22518_v29  ;;  %v21612_v24 = vand.u32 4294901760, %v22524_v34  ;;  %v19293_v29 = vadd.f32 %v11437_v63, %v11436_v0  ;;  %14389 = vmatpush3.bf16.msra.mxu1 %v22515_v28  ;;  %v6705_v1 = vand.u32 4294901760, %v6704_v48  ;;  %v11322_v59 = vpop.f32.mrb[13].mxu0  ;;  %v11439_v63 = vpop.f32.mrb[16].mxu1  ;;  %v22583_v61 = vld [vmem:[#allocation139_spill] sm:$0xff] }
 0x3b4   : > { %22522 = vst [vmem:[#allocation91_spill] sm:$0xff] %v19287_v3  ;;  %v19289_v35 = vpack.c.bf16 %v6579_v32, %v6572_v9  ;;  %v6585_v5 = vsub.f32 %v22519_v54, %v22527_v33  ;;  %9210 = vmatmul.mubr.f32.gmra.mrb[118].mxu0 %v22528_v52  ;;  %14391 = vmatprep.subr.bf16.mxu1 %v19205_v40  ;;  %v22529_v32 = vand.u32 4294901760, %v22520_v13  ;;  %v22531_v52 = vld [vmem:[#allocation17_spill] sm:$0xff]  ;;  %v22533_v3 = vld [vmem:[#allocation88_spill] sm:$0xff] }
 0x3b5   : > { %22526 = vst [vmem:[#allocation74_spill] sm:$0xff] %v19293_v29  ;;  %v6698_v19 = vand.u32 4294901760, %v6697_v17  ;;  %v6711_v0 = vsub.f32 %v22524_v34, %v21612_v24  ;;  %v6718_v9 = vsub.f32 %v22525_v10, %v21613_v27  ;;  %v22530_v17 = vld [vmem:[#allocation87_spill] sm:$0xff]  ;;  %v19311_v33 = vadd.f32 %v11322_v59, %v11321_v45  ;;  %14961 = vmatpush3.bf16.msra.mxu0 %v22531_v52  ;;  %v11440_v24 = vpop.f32.mrb[17].mxu1 }
 0x3b6   : > { %22523 = vst [vmem:[#allocation73_spill] sm:$0xff] %v19289_v35  ;;  %v6592_v31 = vsub.f32 %v22520_v13, %v22529_v32  ;;  %9216 = vmatprep.mubr.f32.mxu0 %v18984_v43  ;;  %v6586_v32 = vand.u32 4294901760, %v6585_v5  ;;  %v21614_v28 = vand.u32 4294901760, %v22533_v3  ;;  %v22534_v29 = vld [vmem:[#allocation179_spill] sm:$0xff]  ;;  %14963 = vmatprep.subr.bf16.mxu0 %v22535_v62  ;;  %v22536_v45 = vand.u32 4294901760, %v22530_v17  ;;  %v11324_v5 = vpop.f32.mrb[14].mxu0 }
 0x3b7   : > { %v19315_v35 = vpack.c.bf16 %v6705_v1, %v6698_v19  ;;  %13347 = vmatmul.mubr.f32.vlgmr.msra.gmra.mrb[74].mxu1 %v22534_v29  ;;  %v6712_v36 = vand.u32 4294901760, %v6711_v0  ;;  %v6719_v48 = vand.u32 4294901760, %v6718_v9  ;;  %v19323_v52 = vadd.f32 %v11440_v24, %v11439_v63  ;;  %v22539_v0 = vld [vmem:[#allocation198_spill] sm:$0xff]  ;;  %v22543_v29 = vld [vmem:[#allocation97_spill] sm:$0xff] }
 0x3b8   : > { %v6593_v27 = vand.u32 4294901760, %v6592_v31  ;;  %v6599_v59 = vsub.f32 %v22530_v17, %v22536_v45  ;;  %13349 = vmatprep.mubr.f32.mxu1 %v22538_v20  ;;  %14393 = vmatpush3.bf16.msra.mxu1 %v19205_v40  ;;  %v6606_v19 = vsub.f32 %v22533_v3, %v21614_v28  ;;  %v11325_v31 = vpop.f32.mrb[15].mxu0  ;;  %v11442_v20 = vpop.f32.mrb[18].mxu1  ;;  %v22542_v28 = vld [vmem:[#allocation192_spill] sm:$0xff]  ;;  %v22552_v40 = vld [vmem:[#allocation147_spill] sm:$0xff] }
 0x3b9   : > { %22532 = vst [vmem:[#allocation75_spill] sm:$0xff] %v19315_v35  ;;  %22537 = vst [vmem:[#allocation196_spill] sm:$0xff] %v19323_v52  ;;  %9219 = vmatmul.mubr.f32.gmra.mrb[120].mxu0 %v18997_v53  ;;  %14395 = vmatprep.subr.bf16.mxu1 %v22539_v0  ;;  %v19336_v24 = vpack.c.bf16 %v6719_v48, %v6712_v36  ;;  %v19340_v45 = vadd.f32 %v11325_v31, %v11324_v5  ;;  %v22544_v35 = vld [vmem:[#allocation188_spill] sm:$0xff]  ;;  %v11443_v62 = vpop.f32.mrb[19].mxu1  ;;  %v22545_v52 = vld [vmem:[#allocation199_spill] sm:$0xff] }
 0x3ba   : > { %v19334_v9 = vpack.c.bf16 %v6593_v27, %v6586_v32  ;;  %v6600_v63 = vand.u32 4294901760, %v6599_v59  ;;  %14965 = vmatpush3.bf16.msra.mxu0 %v22542_v28  ;;  %9323 = vmatprep.mubr.f32.mxu0 %v22543_v29  ;;  %v6607_v1 = vand.u32 4294901760, %v6606_v19  ;;  %v19348_v36 = vadd.f32 %v11443_v62, %v11442_v20  ;;  %v22546_v48 = vld [vmem:[#allocation189_spill] sm:$0xff]  ;;  %v11327_v32 = vpop.f32.mrb[16].mxu0  ;;  %v11445_v27 = vpop.f32.mrb[20].mxu1  ;;  %v22551_v62 = vld [vmem:[#allocation202_spill] sm:$0xff] }
 0x3bb   : > { %22541 = vst [vmem:[#allocation81_spill] sm:$0xff] %v19336_v24  ;;  %13350 = vmatmul.mubr.f32.gmra.mrb[76].mxu1 %v22544_v35  ;;  %14967 = vmatprep.subr.bf16.mxu0 %v22545_v52  ;;  %v11328_v5 = vpop.f32.mrb[17].mxu0  ;;  %v22548_v19 = vld [vmem:[#allocation109_spill] sm:$0xff]  ;;  %v22557_v35 = vld [vmem:[#allocation115_spill] sm:$0xff] }
 0x3bc   : > { %22540 = vst [vmem:[#allocation197_spill] sm:$0xff] %v19334_v9  ;;  %13352 = vmatprep.mubr.f32.mxu1 %v22546_v48  ;;  %14397 = vmatpush3.bf16.msra.mxu1 %v22539_v0  ;;  %v19352_v59 = vpack.c.bf16 %v6607_v1, %v6600_v63  ;;  %v22549_v31 = vld [vmem:[#allocation201_spill] sm:$0xff]  ;;  %v19358_v52 = vadd.f32 %v11328_v5, %v11327_v32  ;;  %v11446_v0 = vpop.f32.mrb[21].mxu1  ;;  %v11330_v32 = vpop.f32.mrb[18].mxu0 }
 0x3bd   : > { %9327 = vmatmul.mubr.f32.vlgmr.msra.gmra.mrb[122].mxu0 %v22548_v19  ;;  %14399 = vmatprep.subr.bf16.mxu1 %v22549_v31  ;;  %v22550_v20 = vld [vmem:[#allocation105_spill] sm:$0xff]  ;;  %v19366_v29 = vadd.f32 %v11446_v0, %v11445_v27  ;;  %v22554_v19 = vld [vmem:[#allocation207_spill] sm:$0xff]  ;;  %v22558_v27 = vld [vmem:[#allocation68_spill] sm:$0xff] }
 0x3be   : > { %22547 = vst [vmem:[#allocation83_spill] sm:$0xff] %v19352_v59  ;;  %9334 = vmatprep.mubr.f32.mxu0 %v22550_v20  ;;  %14969 = vmatpush3.bf16.msra.mxu0 %v22551_v62  ;;  %v22553_v1 = vld [vmem:[#allocation65_spill] sm:$0xff]  ;;  %v11331_v20 = vpop.f32.mrb[19].mxu0  ;;  %v22555_v62 = vld [vmem:[#allocation112_spill] sm:$0xff] }
 0x3bf   : > { %13353 = vmatmul.mubr.f32.gmra.mrb[78].mxu1 %v22552_v40  ;;  %14971 = vmatprep.subr.bf16.mxu0 %v22553_v1  ;;  %v22556_v40 = vld [vmem:[#allocation55_spill] sm:$0xff]  ;;  %v19374_v48 = vadd.f32 %v11331_v20, %v11330_v32  ;;  %v11448_v1 = vpop.f32.mrb[22].mxu1  ;;  %v22559_v0 = vld [vmem:[#allocation153_spill] sm:$0xff]  ;;  %v11333_v32 = vpop.f32.mrb[20].mxu0 }
 0x3c0   : > { %13355 = vmatprep.mubr.f32.mxu1 %v22554_v19  ;;  %14401 = vmatpush3.bf16.msra.mxu1 %v22549_v31  ;;  %v11449_v63 = vpop.f32.mrb[23].mxu1  ;;  %v22560_v31 = vld [vmem:[#allocation204_spill] sm:$0xff]  ;;  %v11334_v20 = vpop.f32.mrb[21].mxu0  ;;  %v22565_v24 = vld [vmem:[#allocation121_spill] sm:$0xff] }
 0x3c1   : > { %9338 = vmatmul.mubr.f32.gmra.mrb[124].mxu0 %v22555_v62  ;;  %14403 = vmatprep.subr.bf16.mxu1 %v22556_v40  ;;  %v19382_v19 = vadd.f32 %v11449_v63, %v11448_v1  ;;  %v22562_v62 = vld [vmem:[#allocation149_spill] sm:$0xff]  ;;  %v19390_v59 = vadd.f32 %v11334_v20, %v11333_v32  ;;  %v22566_v63 = vld [vmem:[#allocation206_spill] sm:$0xff] }
 0x3c2   : > { %9345 = vmatprep.mubr.f32.mxu0 %v22557_v35  ;;  %14973 = vmatpush3.bf16.msra.mxu0 %v22558_v27  ;;  %v22563_v27 = vld [vmem:[#allocation120_spill] sm:$0xff]  ;;  %v22569_v35 = vld [vmem:[#allocation125_spill] sm:$0xff] }
 0x3c3   : > { %13356 = vmatmul.mubr.f32.gmra.mrb[80].mxu1 %v22559_v0  ;;  %14975 = vmatprep.subr.bf16.mxu0 %v22560_v31  ;;  %22561 = vst [vmem:[#allocation152_spill] sm:$0xff] %v19382_v19  ;;  %v22564_v0 = vld [vmem:[#allocation205_spill] sm:$0xff]  ;;  %v11451_v31 = vpop.f32.mrb[24].mxu1  ;;  %v22573_v19 = vld [vmem:[#allocation210_spill] sm:$0xff] }
 0x3c4   : > { %14405 = vmatpush3.bf16.msra.mxu1 %v22556_v40  ;;  %13390 = vmatprep.mubr.f32.mxu1 %v22562_v62  ;;  %v11452_v1 = vpop.f32.mrb[25].mxu1  ;;  %v22567_v40 = vld [vmem:[#allocation208_spill] sm:$0xff] }
 0x3c5   : > { %9349 = vmatmul.mubr.f32.gmra.mrb[126].mxu0 %v22563_v27  ;;  %14407 = vmatprep.subr.bf16.mxu1 %v22564_v0  ;;  %v19397_v9 = vadd.f32 %v11452_v1, %v11451_v31  ;;  %v11336_v27 = vpop.f32.mrb[22].mxu0  ;;  %v11486_v28 = vpop.f32.mrb[26].mxu1  ;;  %v22574_v1 = vld [vmem:[#allocation157_spill] sm:$0xff] }
 0x3c6   : > { %9356 = vmatprep.mubr.f32.mxu0 %v22565_v24  ;;  %14977 = vmatpush3.bf16.msra.mxu0 %v22566_v63  ;;  %v11337_v20 = vpop.f32.mrb[23].mxu0  ;;  %v22570_v24 = vld [vmem:[#allocation209_spill] sm:$0xff]  ;;  %v11487_v31 = vpop.f32.mrb[27].mxu1 }
 0x3c7   : > { %14979 = vmatprep.subr.bf16.mxu0 %v22567_v40  ;;  %22568 = vst [vmem:[#allocation6_spill] sm:$0xff] %v19397_v9  ;;  %v19404_v63 = vadd.f32 %v11337_v20, %v11336_v27  ;;  %v22572_v40 = vld [vmem:[#allocation128_spill] sm:$0xff]  ;;  %v11488_v5 = vadd.f32 %v11487_v31, %v11486_v28  ;;  %v11339_v32 = vpop.f32.mrb[24].mxu0 }
 0x3c8   : > { %14409 = vmatpush3.bf16.msra.mxu1 %v22564_v0  ;;  %v11340_v27 = vpop.f32.mrb[25].mxu0  ;;  %v22575_v20 = vld [vmem:[#allocation132_spill] sm:$0xff] }
 0x3c9   : > { %9360 = vmatmul.mubr.f32.gmra.mrb[128].mxu0 %v22569_v35  ;;  %14411 = vmatprep.subr.bf16.mxu1 %v22570_v24  ;;  %22571 = vst [vmem:[#allocation56_spill] sm:$0xff] %v19404_v63  ;;  %v22576_v9 = vld [vmem:[#allocation160_spill] sm:$0xff]  ;;  %v22578_v63 = vld [vmem:[#allocation135_spill] sm:$0xff]  ;;  %v11374_v35 = vpop.f32.mrb[26].mxu0 }
 0x3ca   : > { %9367 = vmatprep.mubr.f32.mxu0 %v22572_v40  ;;  %14981 = vmatpush3.bf16.msra.mxu0 %v22573_v19  ;;  %v19416_v40 = vadd.f32 %v11340_v27, %v11339_v32  ;;  %v11489_v19 = vpop.f32.mrb[28].mxu1  ;;  %v22580_v28 = vld [vmem:[#allocation172_spill] sm:$0xff]  ;;  %v11375_v32 = vpop.f32.mrb[27].mxu0  ;;  %v22581_v27 = vld [vmem:[#allocation137_spill] sm:$0xff] }
 0x3cb   : > { %14983 = vmatprep.subr.bf16.mxu0 %v22574_v1  ;;  %v22579_v1 = vld [vmem:[#allocation8_spill] sm:$0xff]  ;;  %v11490_v0 = vpop.f32.mrb[29].mxu1 }
 0x3cc   : > { %14413 = vmatpush3.bf16.msra.mxu1 %v22570_v24  ;;  %22577 = vst [vmem:[#allocation23_spill] sm:$0xff] %v19416_v40  ;;  %v11491_v31 = vadd.f32 %v11490_v0, %v11489_v19  ;;  %v22582_v40 = vld [vmem:[#allocation173_spill] sm:$0xff]  ;;  %v22585_v24 = vld [vmem:[#allocation11_spill] sm:$0xff]  ;;  %v11377_v19 = vpop.f32.mrb[28].mxu0 }
 0x3cd   : > { %9371 = vmatmul.mubr.f32.gmra.mrb[130].mxu0 %v22575_v20  ;;  %14415 = vmatprep.subr.bf16.mxu1 %v22576_v9  ;;  %v22586_v20 = vld [vmem:[#allocation140_spill] sm:$0xff] }
 0x3ce   : > { %9378 = vmatprep.mubr.f32.mxu0 %v22578_v63  ;;  %14985 = vmatpush3.bf16.msra.mxu0 %v22579_v1  ;;  %v11376_v63 = vadd.f32 %v11375_v32, %v11374_v35  ;;  %v11492_v1 = vpop.f32.mrb[30].mxu1  ;;  %v11378_v32 = vpop.f32.mrb[29].mxu0 }
 0x3cf   : > { %14987 = vmatprep.subr.bf16.mxu0 %v22580_v28  ;;  %v22584_v28 = vld [vmem:[#allocation212_spill] sm:$0xff]  ;;  %v11493_v4 = vpop.f32.mrb[31].mxu1 }
 0x3d0   : > { %14417 = vmatpush3.bf16.msra.mxu1 %v22576_v9  ;;  %v4530_v9 = vadd.f32 %v11376_v63, %v19272_v38  ;;  %v11494_v0 = vadd.f32 %v11493_v4, %v11492_v1  ;;  %v22587_v38 = vld [vmem:[#allocation177_spill] sm:$0xff]  ;;  %v22588_v4 = vand.u32 4294901760, %v18984_v43  ;;  %v22589_v63 = vld [vmem:[#allocation180_spill] sm:$0xff]  ;;  %v22591_v43 = vand.u32 4294901760, %v22431_v39 }
 0x3d1   : > { %9382 = vmatmul.mubr.f32.gmra.mrb[132].mxu0 %v22581_v27  ;;  %14419 = vmatprep.subr.bf16.mxu1 %v22582_v40  ;;  %v22610_v27 = vld [vmem:[#allocation96_spill] sm:$0xff] }
 0x3d2   : > { %9389 = vmatprep.mubr.f32.mxu0 %v22583_v61  ;;  %14989 = vmatpush3.bf16.msra.mxu0 %v22584_v28  ;;  %v4717_v61 = vadd.f32 %v19230_v44, %v4530_v9  ;;  %v11495_v28 = vpop.f32.mrb[32].mxu1  ;;  %v11380_v44 = vpop.f32.mrb[30].mxu0 }
 0x3d3   : > { %14991 = vmatprep.subr.bf16.mxu0 %v22585_v24  ;;  %v11379_v24 = vadd.f32 %v11378_v32, %v11377_v19  ;;  %v11381_v9 = vpop.f32.mrb[31].mxu0  ;;  %v22590_v19 = vand.u32 4294901760, %v18997_v53  ;;  %v22592_v32 = vand.u32 4294901760, %v22432_v56  ;;  %v22597_v53 = vld [vmem:[#allocation181_spill] sm:$0xff] }
 0x3d4   : > { %14421 = vmatpush3.bf16.msra.mxu1 %v22582_v40  ;;  %v11496_v40 = vpop.f32.mrb[33].mxu1 }
 0x3d5   : > { %9393 = vmatmul.mubr.f32.gmra.mrb[134].mxu0 %v22586_v20  ;;  %14423 = vmatprep.subr.bf16.mxu1 %v22429_v41  ;;  %v4537_v1 = vadd.f32 %v11379_v24, %v19311_v33  ;;  %v11497_v35 = vadd.f32 %v11496_v40, %v11495_v28  ;;  %v19448_v20 = vadd.f32 %v11488_v5, %v4717_v61  ;;  %v22594_v33 = vand.u32 4294901760, %v22436_v51  ;;  %v11498_v28 = vpop.f32.mrb[34].mxu1 }
 0x3d6   : > { %14993 = vmatpush3.bf16.msra.mxu0 %v22587_v38  ;;  %9400 = vmatprep.mubr.f32.mxu0 %v22588_v4  ;;  %v19457_v38 = vpack.c.bf16 %v22592_v32, %v22591_v43  ;;  %v22595_v24 = vand.u32 4294901760, %v22437_v47  ;;  %v11382_v61 = vadd.f32 %v11381_v9, %v11380_v44  ;;  %v22598_v4 = vld [vmem:[#allocation176_spill] sm:$0xff]  ;;  %v11499_v40 = vpop.f32.mrb[35].mxu1  ;;  %v22600_v32 = vld [vmem:[#allocation178_spill] sm:$0xff]  ;;  %v22601_v44 = vld [vmem:[#allocation99_spill] sm:$0xff] }
 0x3d7   : > { %13391 = vmatmul.mubr.f32.vlgmr.msra.gmra.mrb[74].mxu1 %v22394_v2  ;;  %14995 = vmatprep.subr.bf16.mxu0 %v22589_v63  ;;  %v4726_v5 = vadd.f32 %v19266_v18, %v4537_v1  ;;  %v22599_v63 = vld [vmem:[#allocation63_spill] sm:$0xff]  ;;  %v11500_v43 = vadd.f32 %v11499_v40, %v11498_v28  ;;  %v22602_v9 = vld [vmem:[#allocation66_spill] sm:$0xff]  ;;  %v11501_v40 = vpop.f32.mrb[36].mxu1 }
 0x3d8   : > { %13393 = vmatprep.mubr.f32.mxu1 %v22397_v30  ;;  %14425 = vmatpush3.bf16.msra.mxu1 %v22429_v41  ;;  %22593 = vst [vmem:[#allocation24_spill] sm:$0xff] %v19457_v38  ;;  %v19463_v41 = vpack.c.bf16 %v22595_v24, %v22594_v33  ;;  %v11383_v33 = vpop.f32.mrb[32].mxu0  ;;  %v22603_v24 = vand.u32 4294901760, %v22441_v49  ;;  %v22612_v38 = vld [vmem:[#allocation200_spill] sm:$0xff]  ;;  %v11502_v49 = vpop.f32.mrb[37].mxu1 }
 0x3d9   : > { %9404 = vmatmul.mubr.f32.gmra.mrb[136].mxu0 %v22590_v19  ;;  %14427 = vmatprep.subr.bf16.mxu1 %v22434_v37  ;;  %v4544_v19 = vadd.f32 %v11382_v61, %v19340_v45  ;;  %v19473_v18 = vadd.f32 %v11491_v31, %v4726_v5  ;;  %v11384_v1 = vpop.f32.mrb[33].mxu0  ;;  %v22606_v45 = vand.u32 4294901760, %v22450_v46  ;;  %v22607_v61 = vand.u32 4294901760, %v22451_v60  ;;  %v22625_v46 = vld [vmem:[#allocation82_spill] sm:$0xff]  ;;  %v22626_v60 = vld [vmem:[#allocation148_spill] sm:$0xff] }
 0x3da   : > { %22596 = vst [vmem:[#allocation57_spill] sm:$0xff] %v19463_v41  ;;  %14997 = vmatpush3.bf16.msra.mxu0 %v22597_v53  ;;  %9570 = vmatprep.mubr.f32.mxu0 %v22400_v50  ;;  %v22604_v53 = vand.u32 4294901760, %v22442_v14  ;;  %v11385_v5 = vadd.f32 %v11384_v1, %v11383_v33  ;;  %v22611_v41 = vld [vmem:[#allocation67_spill] sm:$0xff]  ;;  %v22613_v14 = vld [vmem:[#allocation58_spill] sm:$0xff] }
 0x3db   : > { %13394 = vmatmul.mubr.f32.gmra.mrb[76].mxu1 %v22598_v4  ;;  %14999 = vmatprep.subr.bf16.mxu0 %v22599_v63  ;;  %v19487_v28 = vpack.c.bf16 %v22607_v61, %v22606_v45  ;;  %v11386_v45 = vpop.f32.mrb[34].mxu0  ;;  %v22615_v1 = vld [vmem:[#allocation98_spill] sm:$0xff]  ;;  %v22616_v61 = vld [vmem:[#allocation76_spill] sm:$0xff] }
 0x3dc   : > { %13396 = vmatprep.mubr.f32.mxu1 %v22600_v32  ;;  %14429 = vmatpush3.bf16.msra.mxu1 %v22434_v37  ;;  %v19481_v63 = vpack.c.bf16 %v22604_v53, %v22603_v24  ;;  %v22609_v37 = vld [vmem:[#allocation74_spill] sm:$0xff]  ;;  %v4551_v24 = vadd.f32 %v11385_v5, %v19358_v52  ;;  %v11503_v53 = vadd.f32 %v11502_v49, %v11501_v40  ;;  %v11387_v33 = vpop.f32.mrb[35].mxu0  ;;  %v22620_v49 = vand.u32 4294901760, %v22464_v7  ;;  %v11504_v40 = vpop.f32.mrb[38].mxu1 }
 0x3dd   : > { %9572 = vmatmul.mubr.f32.vlgmr.msra.gmra.mrb[138].mxu0 %v22601_v44  ;;  %14431 = vmatprep.subr.bf16.mxu1 %v22602_v9  ;;  %22608 = vst [vmem:[#allocation26_spill] sm:$0xff] %v19487_v28  ;;  %v4735_v31 = vadd.f32 %v22609_v37, %v4544_v19  ;;  %v22618_v37 = vand.u32 4294901760, %v22453_v42  ;;  %v22621_v52 = vand.u32 4294901760, %v22465_v15  ;;  %v22624_v28 = vld [vmem:[#allocation103_spill] sm:$0xff]  ;;  %v22627_v42 = vld [vmem:[#allocation12_spill] sm:$0xff] }
 0x3de   : > { %22605 = vst [vmem:[#allocation25_spill] sm:$0xff] %v19481_v63  ;;  %9577 = vmatprep.mubr.f32.mxu0 %v22610_v27  ;;  %15001 = vmatpush3.bf16.msra.mxu0 %v22611_v41  ;;  %v22614_v63 = vld [vmem:[#allocation203_spill] sm:$0xff]  ;;  %v22617_v41 = vand.u32 4294901760, %v22452_v16  ;;  %v11505_v16 = vpop.f32.mrb[39].mxu1 }
 0x3df   : > { %13397 = vmatmul.mubr.f32.gmra.mrb[78].mxu1 %v22612_v38  ;;  %15003 = vmatprep.subr.bf16.mxu0 %v22613_v14  ;;  %v19497_v19 = vadd.f32 %v11494_v0, %v4735_v31  ;;  %v19511_v5 = vpack.c.bf16 %v22621_v52, %v22620_v49  ;;  %v11388_v31 = vadd.f32 %v11387_v33, %v11386_v45  ;;  %v11389_v49 = vpop.f32.mrb[36].mxu0  ;;  %v22628_v33 = vld [vmem:[#allocation110_spill] sm:$0xff]  ;;  %v22629_v52 = vld [vmem:[#allocation15_spill] sm:$0xff] }
 0x3e0   : > { %13399 = vmatprep.mubr.f32.mxu1 %v22614_v63  ;;  %14433 = vmatpush3.bf16.msra.mxu1 %v22602_v9  ;;  %v19505_v14 = vpack.c.bf16 %v22618_v37, %v22617_v41  ;;  %v22623_v9 = vld [vmem:[#allocation196_spill] sm:$0xff]  ;;  %v11506_v37 = vadd.f32 %v11505_v16, %v11504_v40  ;;  %v11390_v45 = vpop.f32.mrb[37].mxu0  ;;  %v22633_v16 = vand.u32 4294901760, %v22477_v25  ;;  %v22636_v40 = vld [vmem:[#allocation106_spill] sm:$0xff] }
 0x3e1   : > { %9579 = vmatmul.mubr.f32.gmra.mrb[140].mxu0 %v22615_v1  ;;  %14435 = vmatprep.subr.bf16.mxu1 %v22616_v61  ;;  %22622 = vst [vmem:[#allocation42_spill] sm:$0xff] %v19511_v5  ;;  %v4744_v0 = vadd.f32 %v22623_v9, %v4551_v24  ;;  %v4558_v41 = vadd.f32 %v11388_v31, %v19374_v48  ;;  %v22631_v9 = vand.u32 4294901760, %v22469_v8  ;;  %v22634_v48 = vand.u32 4294901760, %v22478_v22  ;;  %v11507_v31 = vpop.f32.mrb[40].mxu1 }
 0x3e2   : > { %22619 = vst [vmem:[#allocation41_spill] sm:$0xff] %v19505_v14  ;;  %9584 = vmatprep.mubr.f32.mxu0 %v22624_v28  ;;  %15005 = vmatpush3.bf16.msra.mxu0 %v22625_v46  ;;  %v22630_v46 = vand.u32 4294901760, %v22467_v57  ;;  %v11508_v5 = vpop.f32.mrb[41].mxu1  ;;  %v22638_v14 = vld [vmem:[#allocation14_spill] sm:$0xff] }
 0x3e3   : > { %13400 = vmatmul.mubr.f32.gmra.mrb[80].mxu1 %v22626_v60  ;;  %15007 = vmatprep.subr.bf16.mxu0 %v22627_v42  ;;  %v19521_v24 = vadd.f32 %v11497_v35, %v4744_v0  ;;  %v4753_v35 = vadd.f32 %v19348_v36, %v4558_v41  ;;  %v11391_v0 = vadd.f32 %v11390_v45, %v11389_v49  ;;  %v22640_v36 = vand.u32 4294901760, %v22483_v23  ;;  %v22642_v45 = vld [vmem:[#allocation113_spill] sm:$0xff] }
 0x3e4   : > { %14437 = vmatpush3.bf16.msra.mxu1 %v22616_v61  ;;  %13434 = vmatprep.mubr.f32.mxu1 %v22562_v62  ;;  %v19529_v42 = vpack.c.bf16 %v22631_v9, %v22630_v46  ;;  %v19535_v61 = vpack.c.bf16 %v22634_v48, %v22633_v16  ;;  %v22637_v62 = vld [vmem:[#allocation16_spill] sm:$0xff]  ;;  %v11509_v9 = vadd.f32 %v11508_v5, %v11507_v31  ;;  %v22639_v16 = vand.u32 4294901760, %v22479_v12  ;;  %v11542_v48 = vpop.f32.mrb[42].mxu1 }
 0x3e5   : > { %9586 = vmatmul.mubr.f32.gmra.mrb[142].mxu0 %v22628_v33  ;;  %14439 = vmatprep.subr.bf16.mxu1 %v22629_v52  ;;  %v4565_v46 = vadd.f32 %v11391_v0, %v19390_v59  ;;  %v19543_v25 = vadd.f32 %v11500_v43, %v4753_v35  ;;  %v22645_v59 = vand.u32 4294901760, %v22494_v58  ;;  %v22647_v35 = vld [vmem:[#allocation116_spill] sm:$0xff]  ;;  %v22648_v0 = vld [vmem:[#allocation151_spill] sm:$0xff]  ;;  %v11543_v31 = vpop.f32.mrb[43].mxu1 }
 0x3e6   : > { %22632 = vst [vmem:[#allocation49_spill] sm:$0xff] %v19529_v42  ;;  %22635 = vst [vmem:[#allocation50_spill] sm:$0xff] %v19535_v61  ;;  %9591 = vmatprep.mubr.f32.mxu0 %v22636_v40  ;;  %15009 = vmatpush3.bf16.msra.mxu0 %v22637_v62  ;;  %v11392_v42 = vpop.f32.mrb[38].mxu0  ;;  %v19549_v41 = vpack.c.bf16 %v22640_v36, %v22639_v16  ;;  %v22643_v62 = vld [vmem:[#allocation150_spill] sm:$0xff]  ;;  %v22650_v36 = vld [vmem:[#allocation56_spill] sm:$0xff]  ;;  %v11544_v61 = vadd.f32 %v11543_v31, %v11542_v48 }
 0x3e7   : > { %15011 = vmatprep.subr.bf16.mxu0 %v22638_v14  ;;  %v11393_v49 = vpop.f32.mrb[39].mxu0  ;;  %v22644_v14 = vand.u32 4294901760, %v22493_v26  ;;  %v4762_v43 = vadd.f32 %v19366_v29, %v4565_v46  ;;  %v22649_v16 = vld [vmem:[#allocation154_spill] sm:$0xff]  ;;  %v22652_v29 = vand.u32 4294901760, %v22500_v6 }
 0x3e8   : > { %14441 = vmatpush3.bf16.msra.mxu1 %v22629_v52  ;;  %22641 = vst [vmem:[#allocation52_spill] sm:$0xff] %v19549_v41  ;;  %v11394_v52 = vadd.f32 %v11393_v49, %v11392_v42  ;;  %v11395_v26 = vpop.f32.mrb[40].mxu0  ;;  %v22654_v49 = vld [vmem:[#allocation122_spill] sm:$0xff] }
 0x3e9   : > { %9593 = vmatmul.mubr.f32.gmra.mrb[144].mxu0 %v22642_v45  ;;  %14443 = vmatprep.subr.bf16.mxu1 %v22643_v62  ;;  %v19557_v5 = vpack.c.bf16 %v22645_v59, %v22644_v14  ;;  %v19565_v58 = vadd.f32 %v11503_v53, %v4762_v43  ;;  %v22651_v14 = vand.u32 4294901760, %v22496_v55  ;;  %v11396_v46 = vpop.f32.mrb[41].mxu0  ;;  %v22655_v59 = vld [vmem:[#allocation158_spill] sm:$0xff]  ;;  %v19583_v43 = vadd.f32 %v11544_v61, %v19448_v20  ;;  %v22664_v55 = vld [vmem:[#allocation165_spill] sm:$0xff]  ;;  %v19599_v20 = vld [vmem:[%s21107_s4 + $0x400] sm:$0xff] }
 0x3ea   : > { %9598 = vmatprep.mubr.f32.mxu0 %v22647_v35  ;;  %15013 = vmatpush3.bf16.msra.mxu0 %v22648_v0  ;;  %v4572_v41 = vadd.f32 %v11394_v52, %v22650_v36  ;;  %v22656_v0 = vld [vmem:[#allocation71_spill] sm:$0xff]  ;;  %v22658_v52 = vld [vmem:[#allocation72_spill] sm:$0xff]  ;;  %v11397_v36 = vadd.f32 %v11396_v46, %v11395_v26  ;;  %v11966_v26 = vpop.f32.mrb[42].mxu0  ;;  %22669 = vst [vmem:[#allocation78_spill] sm:$0xff] %v19599_v20  ;;  %v22671_v46 = vand.u32 4294901760, %v22519_v54 }
 0x3eb   : > { %22646 = vst [vmem:[#allocation59_spill] sm:$0xff] %v19557_v5  ;;  %15015 = vmatprep.subr.bf16.mxu0 %v22649_v16  ;;  %v19571_v42 = vpack.c.bf16 %v22652_v29, %v22651_v14  ;;  %v22657_v16 = vand.u32 4294901760, %v22656_v0  ;;  %v22659_v48 = vand.u32 4294901760, %v22658_v52  ;;  %v11545_v5 = vpop.f32.mrb[44].mxu1  ;;  %v22662_v14 = vld [vmem:[#allocation123_spill] sm:$0xff]  ;;  %v22665_v0 = vand.u32 4294901760, %v22511_v11 }
 0x3ec   : > { %14445 = vmatpush3.bf16.msra.mxu1 %v22643_v62  ;;  %v22661_v62 = vld [vmem:[#allocation152_spill] sm:$0xff]  ;;  %v22663_v29 = vld [vmem:[#allocation159_spill] sm:$0xff]  ;;  %v22666_v52 = vand.u32 4294901760, %v22513_v21 }
 0x3ed   : > { %22653 = vst [vmem:[#allocation60_spill] sm:$0xff] %v19571_v42  ;;  %9600 = vmatmul.mubr.f32.gmra.mrb[146].mxu0 %v22654_v49  ;;  %14447 = vmatprep.subr.bf16.mxu1 %v22655_v59  ;;  %v19579_v31 = vpack.c.bf16 %v22659_v48, %v22657_v16  ;;  %v4771_v53 = vadd.f32 %v22661_v62, %v4572_v41  ;;  %v11546_v42 = vpop.f32.mrb[45].mxu1  ;;  %v22668_v48 = vld [vmem:[#allocation23_spill] sm:$0xff] }
 0x3ee   : > { %9605 = vmatprep.mubr.f32.mxu0 %v22662_v14  ;;  %15017 = vmatpush3.bf16.msra.mxu0 %v22663_v29  ;;  %v19592_v16 = vpack.c.bf16 %v22666_v52, %v22665_v0  ;;  %v4579_v41 = vadd.f32 %v11397_v36, %v22668_v48  ;;  %v11547_v62 = vadd.f32 %v11546_v42, %v11545_v5  ;;  %v22672_v0 = vand.u32 4294901760, %v22520_v13  ;;  %v22674_v42 = vld [vmem:[#allocation126_spill] sm:$0xff]  ;;  %v11967_v52 = vpop.f32.mrb[43].mxu0 }
 0x3ef   : > { %22660 = vst [vmem:[#allocation70_spill] sm:$0xff] %v19579_v31  ;;  %15019 = vmatprep.subr.bf16.mxu0 %v22664_v55  ;;  %v19604_v55 = vld [vmem:[%s21107_s4 + $0x408] sm:$0xff]  ;;  %v19606_v61 = vadd.f32 %v11506_v37, %v4771_v53  ;;  %v22676_v36 = vld [vmem:[#allocation6_spill] sm:$0xff]  ;;  %v22677_v31 = vld [vmem:[#allocation129_spill] sm:$0xff]  ;;  %v19622_v53 = vadd.f32 %v11967_v52, %v11966_v26  ;;  %v22683_v52 = vand.u32 4294901760, %v22524_v34 }
 0x3f0   : > { %22667 = vst [vmem:[#allocation77_spill] sm:$0xff] %v19592_v16  ;;  %14449 = vmatpush3.bf16.msra.mxu1 %v22655_v59  ;;  %22670 = vst [vmem:[#allocation134_spill] sm:$0xff] %v19604_v55  ;;  %v19612_v5 = vpack.c.bf16 %v22672_v0, %v22671_v46  ;;  %v22675_v59 = vld [vmem:[#allocation9_spill] sm:$0xff]  ;;  %v4780_v29 = vadd.f32 %v22676_v36, %v4579_v41  ;;  %v19618_v48 = vadd.f32 %v11547_v62, %v19473_v18  ;;  %v11548_v16 = vpop.f32.mrb[46].mxu1  ;;  %v22678_v37 = vld [vmem:[#allocation171_spill] sm:$0xff]  ;;  %v11969_v41 = vpop.f32.mrb[44].mxu0 }
 0x3f1   : > { %9607 = vmatmul.mubr.f32.gmra.mrb[148].mxu0 %v22674_v42  ;;  %14451 = vmatprep.subr.bf16.mxu1 %v22675_v59  ;;  %22679 = vst [vmem:[#allocation19_spill] sm:$0xff] %v19622_v53  ;;  %v11549_v54 = vpop.f32.mrb[47].mxu1  ;;  %v22680_v46 = vld [vmem:[#allocation174_spill] sm:$0xff]  ;;  %v19631_v18 = vld [vmem:[%s21107_s4 + $0x410] sm:$0xff]  ;;  %v22684_v36 = vand.u32 4294901760, %v22525_v10 }
 0x3f2   : > { %22673 = vst [vmem:[#allocation86_spill] sm:$0xff] %v19612_v5  ;;  %9612 = vmatprep.mubr.f32.mxu0 %v22677_v31  ;;  %15021 = vmatpush3.bf16.msra.mxu0 %v22678_v37  ;;  %v11550_v13 = vadd.f32 %v11549_v54, %v11548_v16  ;;  %22681 = vst [vmem:[#allocation87_spill] sm:$0xff] %v19631_v18  ;;  %v19636_v62 = vld [vmem:[%s21107_s4 + $0x418] sm:$0xff]  ;;  %v19638_v26 = vadd.f32 %v11509_v9, %v4780_v29  ;;  %v22685_v16 = vand.u32 4294901760, %v22530_v17  ;;  %v22688_v5 = vld [vmem:[#allocation133_spill] sm:$0xff]  ;;  %v11551_v53 = vpop.f32.mrb[48].mxu1 }
 0x3f3   : > { %15023 = vmatprep.subr.bf16.mxu0 %v22680_v46  ;;  %22682 = vst [vmem:[#allocation88_spill] sm:$0xff] %v19636_v62  ;;  %v19644_v54 = vpack.c.bf16 %v22684_v36, %v22683_v52  ;;  %v11970_v46 = vpop.f32.mrb[45].mxu0  ;;  %v22689_v0 = vld [vmem:[#allocation22_spill] sm:$0xff]  ;;  %v22691_v34 = vld [vmem:[#allocation17_spill] sm:$0xff]  ;;  %v11552_v36 = vpop.f32.mrb[49].mxu1 }
 0x3f4   : > { %14453 = vmatpush3.bf16.msra.mxu1 %v22675_v59  ;;  %v22686_v59 = vand.u32 4294901760, %v22533_v3  ;;  %v19655_v9 = vadd.f32 %v11550_v13, %v19497_v19  ;;  %v19657_v29 = vadd.f32 %v11970_v46, %v11969_v41  ;;  %v22692_v52 = vld [vmem:[#allocation194_spill] sm:$0xff]  ;;  %v11553_v41 = vadd.f32 %v11552_v36, %v11551_v53  ;;  %v11972_v46 = vpop.f32.mrb[46].mxu0  ;;  %v22700_v13 = vld [vmem:[#allocation195_spill] sm:$0xff]  ;;  %v22701_v19 = vld [vmem:[#allocation145_spill] sm:$0xff] }
 0x3f5   : > { %9614 = vmatmul.mubr.f32.gmra.mrb[150].mxu0 %v22688_v5  ;;  %14455 = vmatprep.subr.bf16.mxu1 %v22689_v0 }
 0x3f6   : > { %v19650_v37 = vpack.c.bf16 %v22686_v59, %v22685_v16  ;;  %22690 = vst [vmem:[#allocation97_spill] sm:$0xff] %v19657_v29  ;;  %15025 = vmatpush3.bf16.msra.mxu0 %v22691_v34  ;;  %9619 = vmatprep.mubr.f32.mxu0 %v22692_v52  ;;  %v22693_v16 = vld [vmem:[#allocation187_spill] sm:$0xff]  ;;  %v22694_v59 = vand.u32 4294901760, %v19599_v20  ;;  %v22697_v34 = vld [vmem:[#allocation144_spill] sm:$0xff]  ;;  %v19686_v53 = vadd.f32 %v11553_v41, %v19521_v24  ;;  %v22704_v20 = vand.u32 4294901760, %v19631_v18 }
 0x3f7   : > { %13435 = vmatmul.mubr.f32.vlgmr.msra.gmra.mrb[74].mxu1 %v22394_v2  ;;  %15027 = vmatprep.subr.bf16.mxu0 %v22693_v16  ;;  %v19676_v16 = vld [vmem:[%s21107_s4 + $0x420] sm:$0xff]  ;;  %v22703_v29 = vld [vmem:[#allocation192_spill] sm:$0xff] }
 0x3f8   : > { %22687 = vst [vmem:[#allocation198_spill] sm:$0xff] %v19650_v37  ;;  %v22695_v37 = vand.u32 4294901760, %v19604_v55  ;;  %13437 = vmatprep.mubr.f32.mxu1 %v22397_v30  ;;  %14457 = vmatpush3.bf16.msra.mxu1 %v22697_v34  ;;  %22698 = vst [vmem:[#allocation109_spill] sm:$0xff] %v19676_v16  ;;  %v11554_v34 = vpop.f32.mrb[50].mxu1  ;;  %v22705_v30 = vand.u32 4294901760, %v19636_v62 }
 0x3f9   : > { %9621 = vmatmul.mubr.f32.gmra.mrb[152].mxu0 %v22700_v13  ;;  %14459 = vmatprep.subr.bf16.mxu1 %v22701_v19  ;;  %v11555_v55 = vpop.f32.mrb[51].mxu1 }
 0x3fa   : > { %v19667_v0 = vpack.c.bf16 %v22695_v37, %v22694_v59  ;;  %v19681_v37 = vld [vmem:[%s21107_s4 + $0x428] sm:$0xff]  ;;  %v11973_v59 = vpop.f32.mrb[47].mxu0  ;;  %15029 = vmatpush3.bf16.msra.mxu0 %v22703_v29  ;;  %9723 = vmatprep.mubr.f32.mxu0 %v22400_v50  ;;  %v19698_v19 = vpack.c.bf16 %v22705_v30, %v22704_v20  ;;  %v22707_v29 = vld [vmem:[#allocation146_spill] sm:$0xff]  ;;  %v11557_v18 = vpop.f32.mrb[52].mxu1 }
 0x3fb   : > { %22699 = vst [vmem:[#allocation201_spill] sm:$0xff] %v19681_v37  ;;  %v19688_v36 = vadd.f32 %v11973_v59, %v11972_v46  ;;  %13438 = vmatmul.mubr.f32.gmra.mrb[76].mxu1 %v22598_v4  ;;  %v11556_v46 = vadd.f32 %v11555_v55, %v11554_v34  ;;  %v11975_v59 = vpop.f32.mrb[48].mxu0  ;;  %v19712_v30 = vld [vmem:[%s21107_s4 + $0x438] sm:$0xff]  ;;  %v22715_v4 = vand.u32 4294901760, %v19681_v37 }
 0x3fc   : > { %22696 = vst [vmem:[#allocation199_spill] sm:$0xff] %v19667_v0  ;;  %15031 = vmatprep.subr.bf16.mxu0 %v19667_v0  ;;  %22706 = vst [vmem:[#allocation202_spill] sm:$0xff] %v19698_v19  ;;  %13440 = vmatprep.mubr.f32.mxu1 %v22600_v32  ;;  %v22710_v20 = vld [vmem:[#allocation38_spill] sm:$0xff]  ;;  %v11976_v55 = vpop.f32.mrb[49].mxu0  ;;  %v11558_v32 = vpop.f32.mrb[53].mxu1 }
 0x3fd   : > { %22702 = vst [vmem:[#allocation105_spill] sm:$0xff] %v19688_v36  ;;  %14461 = vmatpush3.bf16.msra.mxu1 %v22707_v29  ;;  %v19707_v36 = vld [vmem:[%s21107_s4 + $0x430] sm:$0xff]  ;;  %22709 = vst [vmem:[#allocation112_spill] sm:$0xff] %v19712_v30  ;;  %v22711_v24 = vand.u32 4294901760, %v22710_v20  ;;  %9725 = vmatmul.mubr.f32.vlgmr.msra.gmra.mrb[154].mxu0 %v22601_v44  ;;  %v22712_v34 = vld [vmem:[#allocation34_spill] sm:$0xff]  ;;  %v19720_v29 = vadd.f32 %v11556_v46, %v19543_v25  ;;  %v19722_v62 = vadd.f32 %v11976_v55, %v11975_v59  ;;  %v11560_v46 = vpop.f32.mrb[54].mxu1 }
 0x3fe   : > { %22708 = vst [vmem:[#allocation65_spill] sm:$0xff] %v19707_v36  ;;  %14463 = vmatprep.subr.bf16.mxu1 %v22712_v34  ;;  %9730 = vmatprep.mubr.f32.mxu0 %v22610_v27  ;;  %v11559_v59 = vadd.f32 %v11558_v32, %v11557_v18  ;;  %v22717_v55 = vld [vmem:[#allocation27_spill] sm:$0xff]  ;;  %v22720_v32 = vld [vmem:[#allocation28_spill] sm:$0xff]  ;;  %v11561_v37 = vpop.f32.mrb[55].mxu1 }
 0x3ff   : > { %v6379_v41 = vsub.f32 %v22710_v20, %v22711_v24  ;;  %22713 = vst [vmem:[#allocation55_spill] sm:$0xff] %v19722_v62  ;;  %15033 = vmatpush3.bf16.msra.mxu0 %v19667_v0  ;;  %13441 = vmatmul.mubr.f32.gmra.mrb[78].mxu1 %v22612_v38  ;;  %v22714_v24 = vand.u32 4294901760, %v19676_v16  ;;  %v11978_v0 = vpop.f32.mrb[50].mxu0  ;;  %v19741_v62 = vld [vmem:[%s21107_s4 + $0x440] sm:$0xff]  ;;  %v22723_v16 = vand.u32 4294901760, %v19712_v30 }
 0x400   : > { %15035 = vmatprep.subr.bf16.mxu0 %v19698_v19  ;;  %13443 = vmatprep.mubr.f32.mxu1 %v22614_v63  ;;  %22718 = vst [vmem:[#allocation68_spill] sm:$0xff] %v19741_v62  ;;  %v11979_v25 = vpop.f32.mrb[51].mxu0  ;;  %v19751_v18 = vadd.f32 %v11559_v59, %v19565_v58  ;;  %v21648_v58 = vand.u32 4294901760, %v19741_v62  ;;  %v22725_v59 = vld [vmem:[#allocation36_spill] sm:$0xff] }
 0x401   : > { %v19732_v34 = vpack.c.bf16 %v22715_v4, %v22714_v24  ;;  %14465 = vmatpush3.bf16.msra.mxu1 %v22717_v55  ;;  %v19746_v4 = vld [vmem:[%s21107_s4 + $0x448] sm:$0xff]  ;;  %v6380_v24 = vand.u32 4294901760, %v6379_v41  ;;  %9732 = vmatmul.mubr.f32.gmra.mrb[156].mxu0 %v22615_v1  ;;  %v19753_v55 = vadd.f32 %v11979_v25, %v11978_v0  ;;  %v22722_v41 = vand.u32 4294901760, %v19707_v36 }
 0x402   : > { %22719 = vst [vmem:[#allocation204_spill] sm:$0xff] %v19746_v4  ;;  %14467 = vmatprep.subr.bf16.mxu1 %v22720_v32  ;;  %9737 = vmatprep.mubr.f32.mxu0 %v22624_v28  ;;  %v11562_v25 = vadd.f32 %v11561_v37, %v11560_v46 }
 0x403   : > { %22716 = vst [vmem:[#allocation115_spill] sm:$0xff] %v19732_v34  ;;  %22721 = vst [vmem:[#allocation120_spill] sm:$0xff] %v19753_v55  ;;  %15037 = vmatpush3.bf16.msra.mxu0 %v19698_v19  ;;  %13444 = vmatmul.mubr.f32.gmra.mrb[80].mxu1 %v22626_v60  ;;  %v19763_v32 = vpack.c.bf16 %v22723_v16, %v22722_v41  ;;  %v11981_v55 = vpop.f32.mrb[52].mxu0  ;;  %v19771_v19 = vld [vmem:[%s21107_s4 + $0x450] sm:$0xff]  ;;  %v19776_v60 = vld [vmem:[%s21107_s4 + $0x458] sm:$0xff] }
 0x404   : > { %15039 = vmatprep.subr.bf16.mxu0 %v19732_v34  ;;  %22726 = vst [vmem:[#allocation121_spill] sm:$0xff] %v19771_v19  ;;  %22727 = vst [vmem:[#allocation206_spill] sm:$0xff] %v19776_v60  ;;  %6381 = vmatprep.mubr.f32.mxu1 %v6380_v24  ;;  %v11982_v16 = vpop.f32.mrb[53].mxu0  ;;  %v22728_v41 = vld [vmem:[#allocation37_spill] sm:$0xff]  ;;  %v19781_v37 = vadd.f32 %v11562_v25, %v19606_v61  ;;  %v22730_v24 = vand.u32 4294901760, %v19746_v4  ;;  %v22732_v25 = vld [vmem:[#allocation43_spill] sm:$0xff] }
 0x405   : > { %22724 = vst [vmem:[#allocation205_spill] sm:$0xff] %v19763_v32  ;;  %14469 = vmatpush3.bf16.msra.mxu1 %v22725_v59  ;;  %9739 = vmatmul.mubr.f32.gmra.mrb[158].mxu0 %v22628_v33  ;;  %v19783_v46 = vadd.f32 %v11982_v16, %v11981_v55  ;;  %v11563_v59 = vpop.f32.mrb[56].mxu1  ;;  %v11984_v16 = vpop.f32.mrb[54].mxu0  ;;  %v22737_v4 = vand.u32 4294901760, %v19776_v60 }
 0x406   : > { %14471 = vmatprep.subr.bf16.mxu1 %v22728_v41  ;;  %9744 = vmatprep.mubr.f32.mxu0 %v22636_v40  ;;  %v11564_v0 = vpop.f32.mrb[57].mxu1  ;;  %v19792_v30 = vpack.c.bf16 %v22730_v24, %v21648_v58  ;;  %v21653_v41 = vand.u32 4294901760, %v19771_v19  ;;  %v11985_v24 = vpop.f32.mrb[55].mxu0  ;;  %v22735_v58 = vld [vmem:[#allocation44_spill] sm:$0xff] }
 0x407   : > { %22729 = vst [vmem:[#allocation208_spill] sm:$0xff] %v19783_v46  ;;  %15041 = vmatpush3.bf16.msra.mxu0 %v19732_v34  ;;  %v11565_v55 = vadd.f32 %v11564_v0, %v11563_v59  ;;  %v19800_v34 = vld [vmem:[%s21107_s4 + $0x460] sm:$0xff]  ;;  %v19805_v46 = vld [vmem:[%s21107_s4 + $0x468] sm:$0xff]  ;;  %v19812_v59 = vadd.f32 %v11985_v24, %v11984_v16  ;;  %v22739_v16 = vld [vmem:[#allocation29_spill] sm:$0xff]  ;;  %v11987_v24 = vpop.f32.mrb[56].mxu0 }
 0x408   : > { %15043 = vmatprep.subr.bf16.mxu0 %v19763_v32  ;;  %22731 = vst [vmem:[#allocation125_spill] sm:$0xff] %v19792_v30  ;;  %22733 = vst [vmem:[#allocation209_spill] sm:$0xff] %v19800_v34  ;;  %v19821_v62 = vpack.c.bf16 %v22737_v4, %v21653_v41  ;;  %v11988_v4 = vpop.f32.mrb[57].mxu0  ;;  %v22742_v41 = vld [vmem:[#allocation46_spill] sm:$0xff]  ;;  %v22744_v60 = vand.u32 4294901760, %v19805_v46 }
 0x409   : > { %14473 = vmatpush3.bf16.msra.mxu1 %v22732_v25  ;;  %22734 = vst [vmem:[#allocation128_spill] sm:$0xff] %v19805_v46  ;;  %9746 = vmatmul.mubr.f32.gmra.mrb[160].mxu0 %v22642_v45  ;;  %v19810_v0 = vadd.f32 %v11565_v55, %v19638_v26  ;;  %22736 = vst [vmem:[#allocation210_spill] sm:$0xff] %v19812_v59  ;;  %v11598_v25 = vpop.f32.mrb[58].mxu1  ;;  %v19834_v59 = vld [vmem:[%s21107_s4 + $0x478] sm:$0xff] }
 0x40a   : > { %14475 = vmatprep.subr.bf16.mxu1 %v22735_v58  ;;  %9751 = vmatprep.mubr.f32.mxu0 %v22647_v35  ;;  %v11599_v61 = vpop.f32.mrb[59].mxu1  ;;  %22738 = vst [vmem:[#allocation157_spill] sm:$0xff] %v19821_v62  ;;  %v21660_v58 = vand.u32 4294901760, %v19800_v34  ;;  %22741 = vst [vmem:[#allocation160_spill] sm:$0xff] %v19834_v59 }
 0x40b   : > { %15045 = vmatpush3.bf16.msra.mxu0 %v19763_v32  ;;  %v11600_v55 = vadd.f32 %v11599_v61, %v11598_v25  ;;  %v19829_v32 = vld [vmem:[%s21107_s4 + $0x470] sm:$0xff]  ;;  %v19841_v25 = vadd.f32 %v11988_v4, %v11987_v24  ;;  %v12078_v4 = vpop.f32.mrb[58].mxu0 }
 0x40c   : > { %15047 = vmatprep.subr.bf16.mxu0 %v19792_v30  ;;  %22740 = vst [vmem:[#allocation132_spill] sm:$0xff] %v19829_v32  ;;  %v19850_v19 = vpack.c.bf16 %v22744_v60, %v21660_v58  ;;  %v22746_v24 = vld [vmem:[#allocation53_spill] sm:$0xff] }
 0x40d   : > { %14477 = vmatpush3.bf16.msra.mxu1 %v22739_v16  ;;  %9753 = vmatmul.mubr.f32.gmra.mrb[162].mxu0 %v22654_v49  ;;  %v19839_v61 = vadd.f32 %v11600_v55, %v19583_v43  ;;  %22743 = vst [vmem:[#allocation135_spill] sm:$0xff] %v19841_v25  ;;  %v11601_v16 = vpop.f32.mrb[60].mxu1  ;;  %v21661_v43 = vand.u32 4294901760, %v19834_v59  ;;  %v12079_v25 = vpop.f32.mrb[59].mxu0 }
 0x40e   : > { %14479 = vmatprep.subr.bf16.mxu1 %v22742_v41  ;;  %9758 = vmatprep.mubr.f32.mxu0 %v22662_v14  ;;  %v11602_v26 = vpop.f32.mrb[61].mxu1  ;;  %22745 = vst [vmem:[#allocation8_spill] sm:$0xff] %v19850_v19  ;;  %v21662_v41 = vand.u32 4294901760, %v19829_v32  ;;  %v19862_v60 = vadd.f32 %v12079_v25, %v12078_v4  ;;  %v22781_v32 = vld [vmem:[#allocation167_spill] sm:$0xff] }
 0x40f   : > { %15049 = vmatpush3.bf16.msra.mxu0 %v19792_v30  ;;  %v11603_v55 = vadd.f32 %v11602_v26, %v11601_v16  ;;  %v22747_v30 = vld [vmem:[#allocation54_spill] sm:$0xff]  ;;  %v11604_v34 = vpop.f32.mrb[62].mxu1  ;;  %v22751_v16 = vld [vmem:[#allocation45_spill] sm:$0xff] }
 0x410   : > { %15051 = vmatprep.subr.bf16.mxu0 %v19821_v62  ;;  %22749 = vst [vmem:[#allocation137_spill] sm:$0xff] %v19862_v60  ;;  %v11605_v58 = vpop.f32.mrb[63].mxu1  ;;  %v19869_v26 = vpack.c.bf16 %v21661_v43, %v21662_v41  ;;  %v22755_v43 = vmov 0.0   ;;  %v22761_v41 = vld [vmem:[#allocation190_spill] sm:$0xff]  ;;  %v22773_v60 = vld [vmem:[#allocation156_spill] sm:$0xff] }
 0x411   : > { %14481 = vmatpush3.bf16.msra.mxu1 %v22746_v24  ;;  %9760 = vmatmul.mubr.f32.gmra.mrb[164].mxu0 %v22674_v42  ;;  %v19858_v36 = vadd.f32 %v11603_v55, %v19618_v48  ;;  %v12081_v48 = vpop.f32.mrb[60].mxu0  ;;  %v11607_v4 = vpop.f32.mrb[64].mxu1 }
 0x412   : > { %14483 = vmatprep.subr.bf16.mxu1 %v22747_v30  ;;  %9765 = vmatprep.mubr.f32.mxu0 %v22677_v31  ;;  %22750 = vst [vmem:[#allocation173_spill] sm:$0xff] %v19869_v26  ;;  %v11606_v30 = vadd.f32 %v11605_v58, %v11604_v34  ;;  %v12082_v55 = vpop.f32.mrb[61].mxu0  ;;  %v22752_v31 = vld [vmem:[#allocation162_spill] sm:$0xff]  ;;  %v11608_v34 = vpop.f32.mrb[65].mxu1 }
 0x413   : > { %22748 = vst [vmem:[#allocation172_spill] sm:$0xff] %v19858_v36  ;;  %15053 = vmatpush3.bf16.msra.mxu0 %v19821_v62  ;;  %v19877_v24 = vadd.f32 %v12082_v55, %v12081_v48  ;;  %v11609_v58 = vadd.f32 %v11608_v34, %v11607_v4  ;;  %v11610_v55 = vpop.f32.mrb[66].mxu1  ;;  %v22762_v4 = vld [vmem:[#allocation104_spill] sm:$0xff]  ;;  %v22765_v62 = vld [vmem:[#allocation193_spill] sm:$0xff] }
 0x414   : > { %15055 = vmatprep.subr.bf16.mxu0 %v19850_v19  ;;  %v19875_v25 = vadd.f32 %v11606_v30, %v19655_v9  ;;  %v22758_v30 = vld [vmem:[#allocation143_spill] sm:$0xff]  ;;  %v11611_v34 = vpop.f32.mrb[67].mxu1 }
 0x415   : > { %14485 = vmatpush3.bf16.msra.mxu1 %v22751_v16  ;;  %9767 = vmatmul.mubr.f32.gmra.mrb[166].mxu0 %v22688_v5  ;;  %22754 = vst [vmem:[#allocation212_spill] sm:$0xff] %v19877_v24  ;;  %v22756_v16 = vld [vmem:[#allocation94_spill] sm:$0xff]  ;;  %v22757_v5 = vld [vmem:[#allocation163_spill] sm:$0xff]  ;;  %v19888_v48 = vadd.f32 %v11609_v58, %v19686_v53 }
 0x416   : > { %14487 = vmatprep.subr.bf16.mxu1 %v22752_v31  ;;  %22753 = vst [vmem:[#allocation139_spill] sm:$0xff] %v19875_v25  ;;  %9772 = vmatprep.mubr.f32.mxu0 %v22692_v52  ;;  %v12084_v31 = vpop.f32.mrb[62].mxu0  ;;  %v22766_v53 = vld [vmem:[#allocation170_spill] sm:$0xff] }
 0x417   : > { %15057 = vmatpush3.bf16.msra.mxu0 %v19850_v19  ;;  %v12085_v9 = vpop.f32.mrb[63].mxu0  ;;  %22759 = vst [vmem:[#allocation11_spill] sm:$0xff] %v19888_v48  ;;  %v22764_v19 = vld [vmem:[#allocation21_spill] sm:$0xff] }
 0x418   : > { %6387 = vmatmul.mubr.f32.vlgmr.msra.gmra.mrb[82].mxu1 %v22755_v43  ;;  %15059 = vmatprep.subr.bf16.mxu0 %v19869_v26  ;;  %v19890_v52 = vadd.f32 %v12085_v9, %v12084_v31  ;;  %v11613_v9 = vpop.f32.mrb[68].mxu1 }
 0x419   : > { %6396 = vmatprep.mubr.f32.mxu1 %v22756_v16  ;;  %14489 = vmatpush3.bf16.msra.mxu1 %v22757_v5  ;;  %v11612_v16 = vadd.f32 %v11611_v34, %v11610_v55  ;;  %v22763_v5 = vld [vmem:[#allocation107_spill] sm:$0xff]  ;;  %v11614_v55 = vpop.f32.mrb[69].mxu1 }
 0x41a   : > { %9774 = vmatmul.mubr.f32.gmra.mrb[168].mxu0 %v22700_v13  ;;  %14491 = vmatprep.subr.bf16.mxu1 %v22758_v30  ;;  %22760 = vst [vmem:[#allocation140_spill] sm:$0xff] %v19890_v52  ;;  %v12087_v13 = vpop.f32.mrb[64].mxu0  ;;  %v11615_v34 = vadd.f32 %v11614_v55, %v11613_v9 }
 0x41b   : > { %15061 = vmatpush3.bf16.msra.mxu0 %v19869_v26  ;;  %13742 = vmatprep.mubr.f32.mxu0 %v22761_v41  ;;  %v12088_v30 = vpop.f32.mrb[65].mxu0  ;;  %v19900_v58 = vadd.f32 %v11612_v16, %v19720_v29  ;;  %v22769_v26 = vld [vmem:[#allocation211_spill] sm:$0xff] }
 0x41c   : > { %6402 = vmatmul.mubr.f32.gmra.mrb[84].mxu1 %v22762_v4  ;;  %v19902_v31 = vadd.f32 %v12088_v30, %v12087_v13  ;;  %v22770_v4 = vld [vmem:[#allocation118_spill] sm:$0xff]  ;;  %v12090_v52 = vpop.f32.mrb[66].mxu0  ;;  %v19911_v29 = vadd.f32 %v11615_v34, %v19751_v18  ;;  %v11616_v13 = vpop.f32.mrb[70].mxu1  ;;  %v22785_v34 = vld [vmem:[#allocation191_spill] sm:$0xff] }
 0x41d   : > { %6411 = vmatprep.mubr.f32.mxu1 %v22763_v5  ;;  %14493 = vmatpush3.bf16.msra.mxu1 %v22764_v19  ;;  %22767 = vst [vmem:[#allocation177_spill] sm:$0xff] %v19900_v58  ;;  %v22771_v5 = vld [vmem:[#allocation117_spill] sm:$0xff]  ;;  %v22772_v19 = vld [vmem:[#allocation47_spill] sm:$0xff]  ;;  %v12091_v24 = vpop.f32.mrb[67].mxu0  ;;  %v22777_v30 = vld [vmem:[#allocation166_spill] sm:$0xff]  ;;  %v11617_v9 = vpop.f32.mrb[71].mxu1 }
 0x41e   : > { %13743 = vmatmul.mubr.f32.vlgmr.msra.gmra.mrb[170].mxu0 %v22765_v62  ;;  %14495 = vmatprep.subr.bf16.mxu1 %v22766_v53  ;;  %22768 = vst [vmem:[#allocation180_spill] sm:$0xff] %v19902_v31  ;;  %v22774_v53 = vld [vmem:[#allocation64_spill] sm:$0xff]  ;;  %22775 = vst [vmem:[#allocation181_spill] sm:$0xff] %v19911_v29  ;;  %v19913_v16 = vadd.f32 %v12091_v24, %v12090_v52  ;;  %v11618_v55 = vadd.f32 %v11617_v9, %v11616_v13  ;;  %v12093_v31 = vpop.f32.mrb[68].mxu0  ;;  %v22789_v29 = vld [vmem:[#allocation91_spill] sm:$0xff] }
 0x41f   : > { %13745 = vmatprep.mubr.f32.mxu0 %v22769_v26  ;;  %v12094_v59 = vpop.f32.mrb[69].mxu0  ;;  %v11619_v52 = vpop.f32.mrb[72].mxu1 }
 0x420   : > { %6417 = vmatmul.mubr.f32.gmra.mrb[86].mxu1 %v22770_v4  ;;  %22776 = vst [vmem:[#allocation63_spill] sm:$0xff] %v19913_v16  ;;  %v22778_v4 = vld [vmem:[#allocation4_spill] sm:$0xff]  ;;  %v19922_v18 = vadd.f32 %v11618_v55, %v19781_v37  ;;  %v19924_v24 = vadd.f32 %v12094_v59, %v12093_v31  ;;  %v11620_v13 = vpop.f32.mrb[73].mxu1  ;;  %v22793_v55 = vld [vmem:[#allocation138_spill] sm:$0xff] }
 0x421   : > { %6426 = vmatprep.mubr.f32.mxu1 %v22771_v5  ;;  %14497 = vmatpush3.bf16.msra.mxu1 %v22772_v19  ;;  %v22779_v5 = vld [vmem:[#allocation5_spill] sm:$0xff]  ;;  %v22780_v19 = vld [vmem:[#allocation48_spill] sm:$0xff]  ;;  %v11621_v9 = vadd.f32 %v11620_v13, %v11619_v52  ;;  %v12096_v16 = vpop.f32.mrb[70].mxu0 }
 0x422   : > { %13746 = vmatmul.mubr.f32.gmra.mrb[172].mxu0 %v22773_v60  ;;  %14499 = vmatprep.subr.bf16.mxu1 %v22774_v53  ;;  %v22782_v53 = vld [vmem:[#allocation185_spill] sm:$0xff]  ;;  %22783 = vst [vmem:[#allocation99_spill] sm:$0xff] %v19922_v18  ;;  %22784 = vst [vmem:[#allocation66_spill] sm:$0xff] %v19924_v24  ;;  %v12097_v46 = vpop.f32.mrb[71].mxu0  ;;  %v22792_v31 = vld [vmem:[#allocation136_spill] sm:$0xff] }
 0x423   : > { %13748 = vmatprep.mubr.f32.mxu0 %v22777_v30  ;;  %v19932_v37 = vadd.f32 %v11621_v9, %v19810_v0  ;;  %v19934_v59 = vadd.f32 %v12097_v46, %v12096_v16  ;;  %v22799_v0 = vld [vmem:[#allocation197_spill] sm:$0xff]  ;;  %v22814_v24 = vld [vmem:[#allocation40_spill] sm:$0xff] }
 0x424   : > { %6432 = vmatmul.mubr.f32.gmra.mrb[88].mxu1 %v22778_v4  ;;  %v22786_v4 = vld [vmem:[#allocation130_spill] sm:$0xff]  ;;  %v22800_v9 = vld [vmem:[#allocation81_spill] sm:$0xff] }
 0x425   : > { %6441 = vmatprep.mubr.f32.mxu1 %v22779_v5  ;;  %14501 = vmatpush3.bf16.msra.mxu1 %v22780_v19  ;;  %v22787_v5 = vld [vmem:[#allocation7_spill] sm:$0xff]  ;;  %v22788_v19 = vld [vmem:[#allocation186_spill] sm:$0xff]  ;;  %22790 = vst [vmem:[#allocation74_spill] sm:$0xff] %v19932_v37  ;;  %22791 = vst [vmem:[#allocation96_spill] sm:$0xff] %v19934_v59  ;;  %v12099_v52 = vpop.f32.mrb[72].mxu0 }
 0x426   : > { %13749 = vmatmul.mubr.f32.gmra.mrb[174].mxu0 %v22781_v32  ;;  %14503 = vmatprep.subr.bf16.mxu1 %v22782_v53  ;;  %v22794_v53 = vld [vmem:[#allocation73_spill] sm:$0xff]  ;;  %v22803_v59 = vld [vmem:[#allocation35_spill] sm:$0xff] }
 0x427   : > { %13751 = vmatprep.mubr.f32.mxu0 %v22785_v34  ;;  %v12100_v34 = vpop.f32.mrb[73].mxu0 }
 0x428   : > { %6447 = vmatmul.mubr.f32.gmra.mrb[90].mxu1 %v22786_v4  ;;  %v22795_v4 = vld [vmem:[#allocation75_spill] sm:$0xff]  ;;  %v19940_v13 = vadd.f32 %v12100_v34, %v12099_v52  ;;  %v22804_v34 = vpack.c.bf16 %v22432_v56, %v22431_v39  ;;  %v22811_v39 = vld [vmem:[#allocation33_spill] sm:$0xff]  ;;  %v22812_v56 = vld [vmem:[#allocation32_spill] sm:$0xff] }
 0x429   : > { %6456 = vmatprep.mubr.f32.mxu1 %v22787_v5  ;;  %14505 = vmatpush3.bf16.msra.mxu1 %v22788_v19  ;;  %v22797_v5 = vld [vmem:[#allocation20_spill] sm:$0xff] }
 0x42a   : > { %14507 = vmatprep.subr.bf16.mxu1 %v22789_v29  ;;  %22796 = vst [vmem:[#allocation67_spill] sm:$0xff] %v19940_v13  ;;  %v22798_v29 = vld [vmem:[#allocation141_spill] sm:$0xff] }
 0x42b   : > { %v22810_v13 = vld [vmem:[#allocation93_spill] sm:$0xff] }
 0x42c   : > { %6462 = vmatmul.mubr.f32.gmra.mrb[92].mxu1 %v22792_v31  ;;  %v22801_v31 = vld [vmem:[#allocation142_spill] sm:$0xff] }
 0x42d   : > { %6471 = vmatprep.mubr.f32.mxu1 %v22793_v55  ;;  %14509 = vmatpush3.bf16.msra.mxu1 %v22794_v53  ;;  %v22802_v55 = vld [vmem:[#allocation83_spill] sm:$0xff] }
 0x42e   : > { %14511 = vmatprep.subr.bf16.mxu1 %v22795_v4 }
 0x42f   : > { %v12278_v46 = vpop.f32.mrb[74].mxu0 }
 0x430   : > { %6477 = vmatmul.mubr.f32.gmra.mrb[94].mxu1 %v22797_v5  ;;  %v12279_v16 = vpop.f32.mrb[75].mxu0  ;;  %v22805_v5 = vld [vmem:[#allocation89_spill] sm:$0xff] }
 0x431   : > { %6486 = vmatprep.mubr.f32.mxu1 %v22798_v29  ;;  %14513 = vmatpush3.bf16.msra.mxu1 %v22799_v0  ;;  %v12280_v19 = vadd.f32 %v12279_v16, %v12278_v46  ;;  %v22806_v29 = vpack.c.bf16 %v22437_v47, %v22436_v51  ;;  %v22807_v16 = vld [vmem:[#allocation31_spill] sm:$0xff] }
 0x432   : > { %14515 = vmatprep.subr.bf16.mxu1 %v22800_v9  ;;  %v22808_v9 = vld [vmem:[#allocation30_spill] sm:$0xff]  ;;  %v22815_v51 = vld [vmem:[#allocation39_spill] sm:$0xff] }
 0x433   : > { %v12281_v53 = vpop.f32.mrb[76].mxu0  ;;  %v22816_v47 = vpack.c.bf16 %v22814_v24, %v22815_v51  ;;  %v22819_v24 = vld [vmem:[#allocation51_spill] sm:$0xff] }
 0x434   : > { %6492 = vmatmul.mubr.f32.gmra.mrb[96].mxu1 %v22801_v31  ;;  %v12282_v52 = vpop.f32.mrb[77].mxu0  ;;  %v22809_v31 = vpack.c.bf16 %v22807_v16, %v22808_v9  ;;  %v22818_v9 = vpack.c.bf16 %v22469_v8, %v22467_v57  ;;  %v22822_v57 = vld [vmem:[#allocation62_spill] sm:$0xff]  ;;  %v22823_v8 = vld [vmem:[#allocation61_spill] sm:$0xff] }
 0x435   : > { %14517 = vmatpush3.bf16.msra.mxu1 %v22802_v55  ;;  %6722 = vmatprep.mubr.f32.mxu1 %v22803_v59  ;;  %v12283_v4 = vadd.f32 %v12282_v52, %v12281_v53  ;;  %v22813_v53 = vpack.c.bf16 %v22811_v39, %v22812_v56  ;;  %v22820_v39 = vpack.c.bf16 %v22478_v22, %v22819_v24  ;;  %v22825_v22 = vld [vmem:[#allocation69_spill] sm:$0xff] }
 0x436   : > { %14519 = vmatprep.subr.bf16.mxu1 %v22804_v34 }
 0x437   : > { %v12284_v0 = vpop.f32.mrb[78].mxu0 }
 0x438   : > { %6724 = vmatmul.mubr.f32.vlgmr.msra.gmra.mrb[98].mxu1 %v22755_v43  ;;  %v12285_v46 = vpop.f32.mrb[79].mxu0 }
 0x439   : > { %6729 = vmatprep.mubr.f32.mxu1 %v22805_v5  ;;  %14521 = vmatpush3.bf16.msra.mxu1 %v22806_v29  ;;  %v12286_v55 = vadd.f32 %v12285_v46, %v12284_v0  ;;  %v22817_v0 = vpack.c.bf16 %v22465_v15, %v22464_v7  ;;  %v22821_v15 = vpack.c.bf16 %v22483_v23, %v22479_v12  ;;  %v22827_v12 = vld [vmem:[#allocation72_spill] sm:$0xff]  ;;  %v22828_v23 = vld [vmem:[#allocation71_spill] sm:$0xff] }
 0x43a   : > { %14523 = vmatprep.subr.bf16.mxu1 %v22809_v31 }
 0x43b   : > { %v12287_v52 = vpop.f32.mrb[80].mxu0 }
 0x43c   : > { %6731 = vmatmul.mubr.f32.gmra.mrb[100].mxu1 %v22810_v13  ;;  %v12288_v34 = vpop.f32.mrb[81].mxu0 }
 0x43d   : > { %6736 = vmatprep.mubr.f32.mxu1 %v22400_v50  ;;  %14525 = vmatpush3.bf16.msra.mxu1 %v22813_v53  ;;  %v12289_v29 = vadd.f32 %v12288_v34, %v12287_v52  ;;  %v22824_v52 = vpack.c.bf16 %v22822_v57, %v22823_v8  ;;  %v22834_v8 = vld [vmem:[#allocation85_spill] sm:$0xff] }
 0x43e   : > { %14527 = vmatprep.subr.bf16.mxu1 %v22816_v47  ;;  %v22826_v47 = vpack.c.bf16 %v22500_v6, %v22825_v22  ;;  %v22831_v6 = vld [vmem:[#allocation80_spill] sm:$0xff] }
 0x43f   : > { %v12290_v46 = vpop.f32.mrb[82].mxu0 }
 0x440   : > { %6738 = vmatmul.mubr.f32.gmra.mrb[102].mxu1 %v22601_v44  ;;  %v12291_v16 = vpop.f32.mrb[83].mxu0 }
 0x441   : > { %6743 = vmatprep.mubr.f32.mxu1 %v22610_v27  ;;  %14529 = vmatpush3.bf16.msra.mxu1 %v22817_v0  ;;  %v12292_v31 = vadd.f32 %v12291_v16, %v12290_v46  ;;  %v22829_v46 = vpack.c.bf16 %v22827_v12, %v22828_v23  ;;  %v22838_v23 = vld [vmem:[#allocation90_spill] sm:$0xff] }
 0x442   : > { %14531 = vmatprep.subr.bf16.mxu1 %v22818_v9  ;;  %v22830_v9 = vpack.c.bf16 %v22513_v21, %v22511_v11  ;;  %v22836_v11 = vpack.c.bf16 %v22533_v3, %v22530_v17  ;;  %v22841_v17 = vld [vmem:[#allocation95_spill] sm:$0xff] }
 0x443   : > { %v12293_v56 = vpop.f32.mrb[84].mxu0 }
 0x444   : > { %6745 = vmatmul.mubr.f32.gmra.mrb[104].mxu1 %v22615_v1  ;;  %v12294_v53 = vpop.f32.mrb[85].mxu0 }
 0x445   : > { %6750 = vmatprep.mubr.f32.mxu1 %v22624_v28  ;;  %14533 = vmatpush3.bf16.msra.mxu1 %v22820_v39  ;;  %v19984_v7 = vadd.f32 %v12294_v53, %v12293_v56  ;;  %v22832_v56 = vld [vmem:[#allocation79_spill] sm:$0xff] }
 0x446   : > { %14535 = vmatprep.subr.bf16.mxu1 %v22821_v15  ;;  %v22833_v53 = vpack.c.bf16 %v22831_v6, %v22832_v56  ;;  %v22843_v6 = vld [vmem:[#allocation26_spill] sm:$0xff] }
 0x447   : > { %v12296_v34 = vpop.f32.mrb[86].mxu0 }
 0x448   : > { %6752 = vmatmul.mubr.f32.gmra.mrb[106].mxu1 %v22628_v33  ;;  %v12297_v51 = vpop.f32.mrb[87].mxu0 }
 0x449   : > { %6757 = vmatprep.mubr.f32.mxu1 %v22636_v40  ;;  %14537 = vmatpush3.bf16.msra.mxu1 %v22824_v52  ;;  %v19994_v0 = vadd.f32 %v12297_v51, %v12296_v34  ;;  %v22835_v52 = vpack.c.bf16 %v22525_v10, %v22834_v8 }
 0x44a   : > { %14539 = vmatprep.subr.bf16.mxu1 %v22826_v47  ;;  %v22837_v47 = vld [vmem:[#allocation24_spill] sm:$0xff] }
 0x44b   : > { %v12299_v16 = vpop.f32.mrb[88].mxu0 }
 0x44c   : > { %6759 = vmatmul.mubr.f32.gmra.mrb[108].mxu1 %v22642_v45  ;;  %v12300_v24 = vpop.f32.mrb[89].mxu0 }
 0x44d   : > { %6764 = vmatprep.mubr.f32.mxu1 %v22647_v35  ;;  %14541 = vmatpush3.bf16.msra.mxu1 %v22829_v46  ;;  %v20004_v39 = vadd.f32 %v12300_v24, %v12299_v16  ;;  %v22839_v46 = vld [vmem:[#allocation57_spill] sm:$0xff]  ;;  %v22842_v24 = vld [vmem:[#allocation92_spill] sm:$0xff] }
 0x44e   : > { %14543 = vmatprep.subr.bf16.mxu1 %v22830_v9  ;;  %v22840_v9 = vld [vmem:[#allocation25_spill] sm:$0xff] }
 0x44f   : > { %v12334_v15 = vpop.f32.mrb[90].mxu0 }
 0x450   : > { %6766 = vmatmul.mubr.f32.gmra.mrb[110].mxu1 %v22654_v49  ;;  %v12335_v57 = vpop.f32.mrb[91].mxu0 }
 0x451   : > { %6771 = vmatprep.mubr.f32.mxu1 %v22662_v14  ;;  %14545 = vmatpush3.bf16.msra.mxu1 %v22833_v53  ;;  %v12336_v34 = vadd.f32 %v12335_v57, %v12334_v15  ;;  %v22844_v53 = vld [vmem:[#allocation41_spill] sm:$0xff]  ;;  %v22845_v57 = vld [vmem:[#allocation102_spill] sm:$0xff] }
 0x452   : > { %14547 = vmatprep.subr.bf16.mxu1 %v22835_v52  ;;  %v22846_v52 = vld [vmem:[#allocation100_spill] sm:$0xff] }
 0x453   : > { %v20015_v21 = vadd.f32 %v12336_v34, %v12280_v19  ;;  %v12337_v51 = vpop.f32.mrb[92].mxu0  ;;  %v22847_v34 = vld [vmem:[#allocation42_spill] sm:$0xff] }
 0x454   : > { %6773 = vmatmul.mubr.f32.gmra.mrb[112].mxu1 %v22674_v42  ;;  %v12338_v22 = vpop.f32.mrb[93].mxu0 }
 0x455   : > { %14549 = vmatpush3.bf16.msra.mxu1 %v22836_v11  ;;  %6908 = vmatprep.mubr.f32.mxu1 %v22710_v20  ;;  %v12339_v12 = vadd.f32 %v12338_v22, %v12337_v51  ;;  %v22848_v51 = vld [vmem:[#allocation49_spill] sm:$0xff] }
 0x456   : > { %14583 = vmatprep.subr.bf16.mxu1 %v22837_v47  ;;  %v22849_v47 = vld [vmem:[#allocation101_spill] sm:$0xff] }
 0x457   : > { %v20023_v10 = vadd.f32 %v12339_v12, %v12283_v4  ;;  %v12340_v19 = vpop.f32.mrb[94].mxu0 }
 0x458   : > { %6911 = vmatmul.mubr.f32.vlgmr.msra.gmra.mrb[114].mxu1 %v22755_v43  ;;  %v12341_v16 = vpop.f32.mrb[95].mxu0 }
 0x459   : > { %6917 = vmatprep.mubr.f32.mxu1 %v22838_v23  ;;  %14585 = vmatpush3.bf16.msra.mxu1 %v22839_v46  ;;  %v12342_v3 = vadd.f32 %v12341_v16, %v12340_v19  ;;  %v22850_v23 = vld [vmem:[#allocation108_spill] sm:$0xff]  ;;  %v22851_v46 = vld [vmem:[#allocation50_spill] sm:$0xff] }
 0x45a   : > { %14587 = vmatprep.subr.bf16.mxu1 %v22840_v9  ;;  %v22852_v16 = vld [vmem:[#allocation52_spill] sm:$0xff] }
 0x45b   : > { %v20029_v20 = vadd.f32 %v12342_v3, %v12286_v55  ;;  %v12343_v56 = vpop.f32.mrb[96].mxu0  ;;  %v22853_v3 = vld [vmem:[#allocation114_spill] sm:$0xff] }
 0x45c   : > { %6920 = vmatmul.mubr.f32.gmra.mrb[116].mxu1 %v22841_v17  ;;  %v12344_v4 = vpop.f32.mrb[97].mxu0 }
 0x45d   : > { %6926 = vmatprep.mubr.f32.mxu1 %v22842_v24  ;;  %14589 = vmatpush3.bf16.msra.mxu1 %v22843_v6  ;;  %v12345_v15 = vadd.f32 %v12344_v4, %v12343_v56  ;;  %v22854_v24 = vld [vmem:[#allocation111_spill] sm:$0xff]  ;;  %v22856_v4 = vld [vmem:[#allocation60_spill] sm:$0xff] }
 0x45e   : > { %14591 = vmatprep.subr.bf16.mxu1 %v22844_v53  ;;  %v22855_v6 = vld [vmem:[#allocation59_spill] sm:$0xff] }
 0x45f   : > { %v20035_v8 = vadd.f32 %v12345_v15, %v12289_v29  ;;  %v12346_v11 = vpop.f32.mrb[98].mxu0  ;;  %v20056_v15 = vld [vmem:[%s21107_s4 + $0x100] sm:$0xff] }
 0x460   : > { %6929 = vmatmul.mubr.f32.gmra.mrb[118].mxu1 %v22845_v57  ;;  %v12347_v55 = vpop.f32.mrb[99].mxu0  ;;  %v20061_v57 = vld [vmem:[%s21107_s4 + $0x108] sm:$0xff] }
 0x461   : > { %6935 = vmatprep.mubr.f32.mxu1 %v22846_v52  ;;  %14593 = vmatpush3.bf16.msra.mxu1 %v22847_v34  ;;  %v12348_v22 = vadd.f32 %v12347_v55, %v12346_v11  ;;  %v22858_v34 = vld [vmem:[#allocation3_spill] sm:$0xff]  ;;  %v22859_v11 = vld [vmem:[#allocation70_spill] sm:$0xff] }
 0x462   : > { %14595 = vmatprep.subr.bf16.mxu1 %v22848_v51  ;;  %v22860_v51 = vld [vmem:[#allocation77_spill] sm:$0xff] }
 0x463   : > { %v20041_v12 = vadd.f32 %v12348_v22, %v12292_v31  ;;  %v12349_v19 = vpop.f32.mrb[100].mxu0 }
 0x464   : > { %6938 = vmatmul.mubr.f32.gmra.mrb[120].mxu1 %v22849_v47  ;;  %v12350_v29 = vpop.f32.mrb[101].mxu0  ;;  %v7535_v47 = vand.u32 4294901760, %v20056_v15 }
 0x465   : > { %6944 = vmatprep.mubr.f32.mxu1 %v22850_v23  ;;  %14597 = vmatpush3.bf16.msra.mxu1 %v22851_v46  ;;  %v12351_v9 = vadd.f32 %v12350_v29, %v12349_v19  ;;  %v7538_v23 = vand.u32 4294901760, %v20061_v57  ;;  %v20075_v19 = vld [vmem:[%s21107_s4 + $0x110] sm:$0xff]  ;;  %v22861_v29 = vld [vmem:[#allocation124_spill] sm:$0xff] }
 0x466   : > { %14599 = vmatprep.subr.bf16.mxu1 %v22852_v16  ;;  %v22862_v16 = vld [vmem:[#allocation127_spill] sm:$0xff] }
 0x467   : > { %v20048_v17 = vadd.f32 %v12351_v9, %v19984_v7  ;;  %v12352_v31 = vpop.f32.mrb[102].mxu0  ;;  %v22857_v7 = vld [vmem:[#allocation119_spill] sm:$0xff]  ;;  %v22863_v9 = vld [vmem:[#allocation86_spill] sm:$0xff] }
 0x468   : > { %6947 = vmatmul.mubr.f32.gmra.mrb[122].mxu1 %v22853_v3  ;;  %v12353_v56 = vpop.f32.mrb[103].mxu0 }
 0x469   : > { %6953 = vmatprep.mubr.f32.mxu1 %v22854_v24  ;;  %14601 = vmatpush3.bf16.msra.mxu1 %v22855_v6  ;;  %v12354_v53 = vadd.f32 %v12353_v56, %v12352_v31  ;;  %v20093_v31 = vpack.c.bf16 %v7538_v23, %v7535_v47  ;;  %v7541_v56 = vand.u32 4294901760, %v20075_v19 }
 0x46a   : > { %14603 = vmatprep.subr.bf16.mxu1 %v22856_v4 }
 0x46b   : > { %v20065_v52 = vadd.f32 %v12354_v53, %v19994_v0  ;;  %v12355_v55 = vpop.f32.mrb[104].mxu0  ;;  %v20080_v0 = vld [vmem:[%s21107_s4 + $0x118] sm:$0xff] }
 0x46c   : > { %6956 = vmatmul.mubr.f32.gmra.mrb[124].mxu1 %v22857_v7  ;;  %v12356_v22 = vpop.f32.mrb[105].mxu0  ;;  %v21674_v4 = vand.u32 4294901760, %v20080_v0  ;;  %v22864_v7 = vld [vmem:[#allocation131_spill] sm:$0xff] }
 0x46d   : > { %6962 = vmatprep.mubr.f32.mxu1 %v22858_v34  ;;  %14605 = vmatpush3.bf16.msra.mxu1 %v22859_v11  ;;  %v12357_v46 = vadd.f32 %v12356_v22, %v12355_v55  ;;  %v22865_v11 = vld [vmem:[#allocation198_spill] sm:$0xff] }
 0x46e   : > { %14607 = vmatprep.subr.bf16.mxu1 %v22860_v51  ;;  %v20118_v22 = vpack.c.bf16 %v21674_v4, %v7541_v56 }
 0x46f   : > { %v20086_v3 = vadd.f32 %v12357_v46, %v20004_v39  ;;  %v12390_v24 = vpop.f32.mrb[106].mxu0  ;;  %v20100_v39 = vld [vmem:[%s21107_s4 + $0x120] sm:$0xff] }
 0x470   : > { %6965 = vmatmul.mubr.f32.gmra.mrb[126].mxu1 %v22861_v29  ;;  %v12391_v6 = vpop.f32.mrb[107].mxu0  ;;  %v21673_v46 = vand.u32 4294901760, %v20100_v39 }
 0x471   : > { %6971 = vmatprep.mubr.f32.mxu1 %v22862_v16  ;;  %14609 = vmatpush3.bf16.msra.mxu1 %v22863_v9  ;;  %v12392_v53 = vadd.f32 %v12391_v6, %v12390_v24  ;;  %v20125_v16 = vld [vmem:[%s21107_s4 + $0x130] sm:$0xff] }
 0x472   : > { %14611 = vmatprep.subr.bf16.mxu1 %v19644_v54  ;;  %v20105_v54 = vld [vmem:[%s21107_s4 + $0x128] sm:$0xff] }
 0x473   : > { %v20109_v34 = vadd.f32 %v12392_v53, %v20015_v21  ;;  %v12393_v55 = vpop.f32.mrb[108].mxu0  ;;  %v21672_v29 = vand.u32 4294901760, %v20105_v54 }
 0x474   : > { %6974 = vmatmul.mubr.f32.gmra.mrb[128].mxu1 %v22864_v7  ;;  %v12394_v51 = vpop.f32.mrb[109].mxu0  ;;  %v21676_v7 = vand.u32 4294901760, %v20125_v16 }
 0x475   : > { %14613 = vmatpush3.bf16.msra.mxu1 %v22865_v11  ;;  %7325 = vmatprep.mubr.f32.mxu1 %v22803_v59  ;;  %v12395_v21 = vadd.f32 %v12394_v51, %v12393_v55  ;;  %v20130_v59 = vld [vmem:[%s21107_s4 + $0x138] sm:$0xff]  ;;  %v20143_v53 = vpack.c.bf16 %v21672_v29, %v21673_v46  ;;  %v3977_v46 = vld [vmem:[#allocation2 + $0x2] sm:$0xff] }
 0x476   : > { %14647 = vmatprep.subr.bf16.mxu1 %v20093_v31 }
 0x477   : > { %v20134_v9 = vadd.f32 %v12395_v21, %v20023_v10  ;;  %v12396_v24 = vpop.f32.mrb[110].mxu0  ;;  %v20155_v10 = vld [vmem:[%s21107_s4 + $0x148] sm:$0xff] }
 0x478   : > { %7327 = vmatmul.mubr.f32.vlgmr.msra.gmra.mrb[130].mxu1 %v22755_v43  ;;  %v12397_v6 = vpop.f32.mrb[111].mxu0  ;;  %v21675_v43 = vand.u32 4294901760, %v20130_v59  ;;  %v21677_v29 = vand.u32 4294901760, %v20155_v10 }
 0x479   : > { %7332 = vmatprep.mubr.f32.mxu1 %v22805_v5  ;;  %14649 = vmatpush3.bf16.msra.mxu1 %v20093_v31  ;;  %v20150_v5 = vld [vmem:[%s21107_s4 + $0x140] sm:$0xff]  ;;  %v12398_v11 = vadd.f32 %v12397_v6, %v12396_v24  ;;  %v20180_v24 = vld [vmem:[%s21107_s4 + $0x158] sm:$0xff]  ;;  %v20183_v6 = vand.u32 4294901760, %v3977_v46 }
 0x47a   : > { %14651 = vmatprep.subr.bf16.mxu1 %v20118_v22  ;;  %v21678_v21 = vand.u32 4294901760, %v20150_v5  ;;  %v22879_v36 = vand.u32 4294901760, %v20150_v5 }
 0x47b   : > { %v20159_v55 = vadd.f32 %v12398_v11, %v20029_v20  ;;  %v12399_v51 = vpop.f32.mrb[112].mxu0 }
 0x47c   : > { %7334 = vmatmul.mubr.f32.gmra.mrb[132].mxu1 %v22810_v13  ;;  %v12400_v4 = vpop.f32.mrb[113].mxu0  ;;  %v20170_v13 = vpack.c.bf16 %v21675_v43, %v21676_v7  ;;  %v20221_v7 = vsub.f32 %v3977_v46, %v20183_v6  ;;  %v22868_v46 = vand.u32 4294901760, %v20180_v24 }
 0x47d   : > { %7339 = vmatprep.mubr.f32.mxu1 %v22400_v50  ;;  %14653 = vmatpush3.bf16.msra.mxu1 %v20118_v22  ;;  %v12401_v20 = vadd.f32 %v12400_v4, %v12399_v51  ;;  %v20175_v50 = vld [vmem:[%s21107_s4 + $0x150] sm:$0xff]  ;;  %v20194_v51 = vpack.c.bf16 %v21677_v29, %v21678_v21  ;;  %v20217_v29 = vsub.f32 %v20061_v57, %v7538_v23  ;;  %v20243_v23 = vld [vmem:[%s21107_s4 + $0x178] sm:$0xff] }
 0x47e   : > { %14655 = vmatprep.subr.bf16.mxu1 %v20143_v53 }
 0x47f   : > { %v20186_v11 = vadd.f32 %v12401_v20, %v20035_v8  ;;  %v12402_v4 = vpop.f32.mrb[114].mxu0  ;;  %v20207_v8 = vld [vmem:[%s21107_s4 + $0x168] sm:$0xff]  ;;  %v20212_v20 = vsub.f32 %v20056_v15, %v7535_v47  ;;  %v20238_v47 = vld [vmem:[%s21107_s4 + $0x170] sm:$0xff] }
 0x480   : > { %7341 = vmatmul.mubr.f32.gmra.mrb[134].mxu1 %v22601_v44  ;;  %v12403_v43 = vpop.f32.mrb[115].mxu0  ;;  %v20226_v44 = vsub.f32 %v20075_v19, %v7541_v56  ;;  %v22867_v56 = vand.u32 4294901760, %v20175_v50  ;;  %v21681_v57 = vand.u32 4294901760, %v20238_v47 }
 0x481   : > { %7346 = vmatprep.mubr.f32.mxu1 %v22610_v27  ;;  %14657 = vmatpush3.bf16.msra.mxu1 %v20143_v53  ;;  %v20202_v27 = vld [vmem:[%s21107_s4 + $0x160] sm:$0xff]  ;;  %v12404_v21 = vadd.f32 %v12403_v43, %v12402_v4  ;;  %v21680_v4 = vand.u32 4294901760, %v20217_v29 }
 0x482   : > { %14659 = vmatprep.subr.bf16.mxu1 %v20170_v13  ;;  %v20255_v43 = vpack.c.bf16 %v22868_v46, %v22867_v56 }
 0x483   : > { %v20229_v37 = vadd.f32 %v12404_v21, %v20041_v12  ;;  %v12405_v15 = vpop.f32.mrb[116].mxu0  ;;  %v22866_v12 = vand.u32 4294901760, %v20080_v0  ;;  %v21679_v21 = vand.u32 4294901760, %v20212_v20 }
 0x484   : > { %7348 = vmatmul.mubr.f32.gmra.mrb[136].mxu1 %v22615_v1  ;;  %v12406_v19 = vpop.f32.mrb[117].mxu0 }
 0x485   : > { %7353 = vmatprep.mubr.f32.mxu1 %v22624_v28  ;;  %14661 = vmatpush3.bf16.msra.mxu1 %v20170_v13  ;;  %v20248_v28 = vsub.f32 %v20080_v0, %v22866_v12  ;;  %v12407_v1 = vadd.f32 %v12406_v19, %v12405_v15  ;;  %v22869_v15 = vand.u32 4294901760, %v20202_v27 }
 0x486   : > { %14663 = vmatprep.subr.bf16.mxu1 %v20194_v51 }
 0x487   : > { %v20265_v58 = vadd.f32 %v12407_v1, %v20048_v17  ;;  %v12408_v56 = vpop.f32.mrb[118].mxu0  ;;  %v7699_v17 = vsub.f32 %v20212_v20, %v21679_v21  ;;  %v22871_v1 = vand.u32 4294901760, %v20100_v39  ;;  %v22873_v21 = vand.u32 4294901760, %v20243_v23 }
 0x488   : > { %7355 = vmatmul.mubr.f32.gmra.mrb[138].mxu1 %v22628_v33  ;;  %v22870_v33 = vand.u32 4294901760, %v20207_v8  ;;  %v12409_v0 = vpop.f32.mrb[119].mxu0 }
 0x489   : > { %7360 = vmatprep.mubr.f32.mxu1 %v22636_v40  ;;  %14665 = vmatpush3.bf16.msra.mxu1 %v20194_v51  ;;  %v7706_v40 = vsub.f32 %v20217_v29, %v21680_v4  ;;  %v20286_v18 = vsub.f32 %v20100_v39, %v22871_v1  ;;  %v12410_v46 = vadd.f32 %v12409_v0, %v12408_v56  ;;  %v22874_v4 = vand.u32 4294901760, %v20221_v7 }
 0x48a   : > { %v20273_v19 = vpack.c.bf16 %v22870_v33, %v22869_v15  ;;  %14667 = vmatprep.subr.bf16.mxu1 %v20255_v43  ;;  %v22872_v15 = vand.u32 4294901760, %v20105_v54  ;;  %v20298_v12 = vpack.c.bf16 %v22873_v21, %v21681_v57  ;;  %v22875_v39 = vand.u32 4294901760, %v20226_v44 }
 0x48b   : > { %v7618_v48 = vsub.f32 %v20221_v7, %v22874_v4  ;;  %v22877_v56 = vand.u32 4294901760, %v20248_v28 }
 0x48c   : > { %v20291_v33 = vsub.f32 %v20105_v54, %v22872_v15  ;;  %7362 = vmatmul.mubr.f32.gmra.mrb[140].mxu1 %v22642_v45  ;;  %v7713_v1 = vsub.f32 %v20226_v44, %v22875_v39  ;;  %v22876_v54 = vand.u32 4294901760, %v20125_v16  ;;  %v20312_v45 = vadd.f32 %v12410_v46, %v20065_v52  ;;  %v12411_v21 = vpop.f32.mrb[120].mxu0 }
 0x48d   : > { %7367 = vmatprep.mubr.f32.mxu1 %v22647_v35  ;;  %14669 = vmatpush3.bf16.msra.mxu1 %v20255_v43  ;;  %v7720_v4 = vsub.f32 %v20248_v28, %v22877_v56  ;;  %v22878_v15 = vand.u32 4294901760, %v20130_v59  ;;  %v7707_v52 = vand.u32 4294901760, %v7706_v40  ;;  %v21683_v46 = vand.u32 4294901760, %v20286_v18 }
 0x48e   : > { %v20309_v0 = vsub.f32 %v20125_v16, %v22876_v54  ;;  %14671 = vmatprep.subr.bf16.mxu1 %v20273_v19  ;;  %v12412_v16 = vpop.f32.mrb[121].mxu0  ;;  %v7700_v54 = vand.u32 4294901760, %v7699_v17  ;;  %v21682_v35 = vand.u32 4294901760, %v20291_v33  ;;  %v7619_v25 = vand.u32 4294901760, %v7618_v48 }
 0x48f   : > { %v20322_v39 = vsub.f32 %v20130_v59, %v22878_v15  ;;  %v12413_v57 = vadd.f32 %v12412_v16, %v12411_v21  ;;  %v20332_v59 = vsub.f32 %v20150_v5, %v22879_v36  ;;  %v22880_v15 = vand.u32 4294901760, %v20155_v10 }
 0x490   : > { %7369 = vmatmul.mubr.f32.gmra.mrb[142].mxu1 %v22654_v49  ;;  %v12446_v49 = vpop.f32.mrb[122].mxu0  ;;  %v7714_v48 = vand.u32 4294901760, %v7713_v1  ;;  %v7721_v21 = vand.u32 4294901760, %v7720_v4  ;;  %v14678_v36 = vpack.c.bf16 %v7707_v52, %v7700_v54  ;;  %v7727_v5 = vsub.f32 %v20286_v18, %v21683_v46 }
 0x491   : > { %v20337_v17 = vsub.f32 %v20155_v10, %v22880_v15  ;;  %7374 = vmatprep.mubr.f32.mxu1 %v22662_v14  ;;  %14673 = vmatpush3.bf16.msra.mxu1 %v20273_v19  ;;  %v20342_v40 = vadd.f32 %v12413_v57, %v20086_v3  ;;  %v21684_v16 = vand.u32 4294901760, %v20322_v39  ;;  %v12447_v56 = vpop.f32.mrb[123].mxu0  ;;  %v7734_v14 = vsub.f32 %v20291_v33, %v21682_v35 }
 0x492   : > { %14675 = vmatprep.subr.bf16.mxu1 %v20298_v12  ;;  %v12448_v10 = vadd.f32 %v12447_v56, %v12446_v49  ;;  %v22881_v3 = vand.u32 4294901760, %v20309_v0  ;;  %v21693_v1 = vand.u32 4294901760, %v20332_v59  ;;  %v14682_v15 = vpack.c.bf16 %v7721_v21, %v7714_v48  ;;  %v22884_v48 = vld [vmem:[#allocation182_spill] sm:$0xff] }
 0x493   : > { %v21692_v4 = vand.u32 4294901760, %v20337_v17  ;;  %v7728_v49 = vand.u32 4294901760, %v7727_v5  ;;  %v22882_v35 = vand.u32 4294901760, %v20175_v50 }
 0x494   : > { %7376 = vmatmul.mubr.f32.gmra.mrb[144].mxu1 %v22674_v42  ;;  %v7741_v57 = vsub.f32 %v20309_v0, %v22881_v3  ;;  %v20359_v54 = vadd.f32 %v12448_v10, %v20109_v34  ;;  %v12449_v52 = vpop.f32.mrb[124].mxu0  ;;  %v7748_v42 = vsub.f32 %v20322_v39, %v21684_v16  ;;  %v7735_v3 = vand.u32 4294901760, %v7734_v14 }
 0x495   : > { %14677 = vmatpush3.bf16.msra.mxu1 %v20298_v12  ;;  %13478 = vmatprep.mubr.f32.mxu1 %v7619_v25  ;;  %v12450_v56 = vpop.f32.mrb[125].mxu0  ;;  %v20368_v46 = vsub.f32 %v20175_v50, %v22882_v35  ;;  %v22883_v34 = vand.u32 4294901760, %v20180_v24  ;;  %v7755_v16 = vsub.f32 %v20332_v59, %v21693_v1  ;;  %v7762_v5 = vsub.f32 %v20337_v17, %v21692_v4 }
 0x496   : > { %14679 = vmatprep.subr.bf16.mxu1 %v14678_v36  ;;  %v12451_v25 = vadd.f32 %v12450_v56, %v12449_v52  ;;  %v7742_v21 = vand.u32 4294901760, %v7741_v57  ;;  %v7749_v35 = vand.u32 4294901760, %v7748_v42  ;;  %v22885_v14 = vand.u32 4294901760, %v20202_v27 }
 0x497   : > { %v20373_v10 = vsub.f32 %v20180_v24, %v22883_v34  ;;  %v22886_v52 = vand.u32 4294901760, %v20207_v8  ;;  %v7756_v42 = vand.u32 4294901760, %v7755_v16  ;;  %v22887_v16 = vand.u32 4294901760, %v20238_v47 }
 0x498   : > { %13479 = vmatmul.mubr.f32.vlgmr.msra.gmra.mrb[74].mxu1 %v22884_v48  ;;  %v20383_v50 = vadd.f32 %v12451_v25, %v20134_v9  ;;  %v12452_v24 = vpop.f32.mrb[126].mxu0  ;;  %v20389_v57 = vsub.f32 %v20202_v27, %v22885_v14  ;;  %v14686_v48 = vpack.c.bf16 %v7735_v3, %v7728_v49  ;;  %v21691_v9 = vand.u32 4294901760, %v20368_v46 }
 0x499   : > { %13481 = vmatprep.mubr.f32.mxu1 %v22761_v41  ;;  %14681 = vmatpush3.bf16.msra.mxu1 %v14678_v36  ;;  %v20394_v56 = vsub.f32 %v20207_v8, %v22886_v52  ;;  %v12453_v34 = vpop.f32.mrb[127].mxu0  ;;  %v21690_v41 = vand.u32 4294901760, %v20373_v10  ;;  %v7763_v25 = vand.u32 4294901760, %v7762_v5  ;;  %v14690_v14 = vpack.c.bf16 %v7749_v35, %v7742_v21 }
 0x49a   : > { %14683 = vmatprep.subr.bf16.mxu1 %v14682_v15  ;;  %v12454_v36 = vadd.f32 %v12453_v34, %v12452_v24  ;;  %v21689_v52 = vand.u32 4294901760, %v20389_v57 }
 0x49b   : > { %v21688_v49 = vand.u32 4294901760, %v20394_v56  ;;  %v14694_v24 = vpack.c.bf16 %v7763_v25, %v7756_v42 }
 0x49c   : > { %13482 = vmatmul.mubr.f32.gmra.mrb[76].mxu1 %v22765_v62  ;;  %v20400_v27 = vadd.f32 %v12454_v36, %v20159_v55  ;;  %v12455_v8 = vpop.f32.mrb[128].mxu0  ;;  %v7769_v62 = vsub.f32 %v20368_v46, %v21691_v9  ;;  %v7776_v55 = vsub.f32 %v20373_v10, %v21690_v41 }
 0x49d   : > { %13484 = vmatprep.mubr.f32.mxu1 %v22769_v26  ;;  %14685 = vmatpush3.bf16.msra.mxu1 %v14682_v15  ;;  %v12456_v3 = vpop.f32.mrb[129].mxu0  ;;  %v20414_v26 = vsub.f32 %v20238_v47, %v22887_v16  ;;  %v22888_v15 = vand.u32 4294901760, %v20243_v23  ;;  %v7783_v47 = vsub.f32 %v20389_v57, %v21689_v52 }
 0x49e   : > { %14687 = vmatprep.subr.bf16.mxu1 %v14686_v48  ;;  %v12457_v5 = vadd.f32 %v12456_v3, %v12455_v8  ;;  %v7770_v8 = vand.u32 4294901760, %v7769_v62 }
 0x49f   : > { %v20419_v21 = vsub.f32 %v20243_v23, %v22888_v15  ;;  %v7790_v23 = vsub.f32 %v20394_v56, %v21688_v49  ;;  %v21685_v42 = vand.u32 4294901760, %v20414_v26  ;;  %v7784_v3 = vand.u32 4294901760, %v7783_v47 }
 0x4a0   : > { %13485 = vmatmul.mubr.f32.gmra.mrb[78].mxu1 %v22773_v60  ;;  %v20423_v35 = vadd.f32 %v12457_v5, %v20186_v11  ;;  %v12458_v34 = vpop.f32.mrb[130].mxu0  ;;  %v7777_v60 = vand.u32 4294901760, %v7776_v55 }
 0x4a1   : > { %13487 = vmatprep.mubr.f32.mxu1 %v22777_v30  ;;  %14689 = vmatpush3.bf16.msra.mxu1 %v14686_v48  ;;  %v12459_v36 = vpop.f32.mrb[131].mxu0  ;;  %v21686_v11 = vand.u32 4294901760, %v20419_v21  ;;  %v7791_v62 = vand.u32 4294901760, %v7790_v23  ;;  %v7797_v55 = vsub.f32 %v20414_v26, %v21685_v42 }
 0x4a2   : > { %14691 = vmatprep.subr.bf16.mxu1 %v14690_v14  ;;  %v12460_v25 = vadd.f32 %v12459_v36, %v12458_v34  ;;  %v14698_v15 = vpack.c.bf16 %v7777_v60, %v7770_v8 }
 0x4a3   : > { %v14702_v47 = vpack.c.bf16 %v7791_v62, %v7784_v3  ;;  %v7798_v36 = vand.u32 4294901760, %v7797_v55  ;;  %v14710_v3 = vpack.c.bf16 %v20217_v29, %v20212_v20 }
 0x4a4   : > { %13488 = vmatmul.mubr.f32.gmra.mrb[80].mxu1 %v22781_v32  ;;  %v20436_v30 = vadd.f32 %v12460_v25, %v20229_v37  ;;  %v12461_v48 = vpop.f32.mrb[132].mxu0  ;;  %v7804_v32 = vsub.f32 %v20419_v21, %v21686_v11 }
 0x4a5   : > { %14693 = vmatpush3.bf16.msra.mxu1 %v14690_v14  ;;  %13522 = vmatprep.mubr.f32.mxu1 %v20183_v6  ;;  %v12462_v16 = vpop.f32.mrb[133].mxu0 }
 0x4a6   : > { %14695 = vmatprep.subr.bf16.mxu1 %v14694_v24  ;;  %v12463_v5 = vadd.f32 %v12462_v16, %v12461_v48  ;;  %v7805_v8 = vand.u32 4294901760, %v7804_v32 }
 0x4a8   : > { %v20446_v37 = vadd.f32 %v12463_v5, %v20265_v58  ;;  %v12464_v14 = vpop.f32.mrb[134].mxu0  ;;  %v14706_v11 = vpack.c.bf16 %v7805_v8, %v7798_v36  ;;  %v22891_v8 = vld [vmem:[#allocation176_spill] sm:$0xff] }
 0x4a9   : > { %14697 = vmatpush3.bf16.msra.mxu1 %v14694_v24  ;;  %v12465_v34 = vpop.f32.mrb[135].mxu0 }
 0x4aa   : > { %14699 = vmatprep.subr.bf16.mxu1 %v14698_v15  ;;  %v12466_v23 = vadd.f32 %v12465_v34, %v12464_v14 }
 0x4ac   : > { %v20449_v60 = vadd.f32 %v12466_v23, %v20312_v45  ;;  %v12467_v25 = vpop.f32.mrb[136].mxu0 }
 0x4ad   : > { %14701 = vmatpush3.bf16.msra.mxu1 %v14698_v15  ;;  %v12468_v42 = vpop.f32.mrb[137].mxu0 }
 0x4ae   : > { %14703 = vmatprep.subr.bf16.mxu1 %v14702_v47  ;;  %v12469_v48 = vadd.f32 %v12468_v42, %v12467_v25  ;;  %v14714_v42 = vpack.c.bf16 %v20248_v28, %v20226_v44  ;;  %v14722_v25 = vpack.c.bf16 %v20322_v39, %v20309_v0 }
 0x4b0   : > { %v20452_v58 = vadd.f32 %v12469_v48, %v20342_v40  ;;  %v12502_v24 = vpop.f32.mrb[138].mxu0  ;;  %v22889_v40 = vld [vmem:[#allocation149_spill] sm:$0xff] }
 0x4b1   : > { %14705 = vmatpush3.bf16.msra.mxu1 %v14702_v47  ;;  %v12503_v16 = vpop.f32.mrb[139].mxu0  ;;  %v22890_v47 = vld [vmem:[#allocation169_spill] sm:$0xff] }
 0x4b2   : > { %14707 = vmatprep.subr.bf16.mxu1 %v14706_v11  ;;  %v12504_v62 = vadd.f32 %v12503_v16, %v12502_v24  ;;  %v22892_v24 = vld [vmem:[#allocation178_spill] sm:$0xff] }
 0x4b4   : > { %v20457_v45 = vadd.f32 %v12504_v62, %v20359_v54  ;;  %v12505_v15 = vpop.f32.mrb[140].mxu0  ;;  %v14718_v54 = vpack.c.bf16 %v20291_v33, %v20286_v18  ;;  %v14726_v62 = vpack.c.bf16 %v20337_v17, %v20332_v59 }
 0x4b5   : > { %14709 = vmatpush3.bf16.msra.mxu1 %v14706_v11  ;;  %v12506_v55 = vpop.f32.mrb[141].mxu0 }
 0x4b6   : > { %14711 = vmatprep.subr.bf16.mxu1 %v14710_v3  ;;  %v12507_v32 = vadd.f32 %v12506_v55, %v12505_v15 }
 0x4b8   : > { %13523 = vmatmul.mubr.f32.vlgmr.msra.gmra.mrb[74].mxu1 %v22889_v40  ;;  %v20463_v5 = vadd.f32 %v12507_v32, %v20383_v50  ;;  %v12508_v14 = vpop.f32.mrb[142].mxu0  ;;  %v14730_v32 = vpack.c.bf16 %v20373_v10, %v20368_v46 }
 0x4b9   : > { %13525 = vmatprep.mubr.f32.mxu1 %v22394_v2  ;;  %14713 = vmatpush3.bf16.msra.mxu1 %v14710_v3  ;;  %v12509_v34 = vpop.f32.mrb[143].mxu0 }
 0x4ba   : > { %14715 = vmatprep.subr.bf16.mxu1 %v14714_v42  ;;  %v12510_v11 = vadd.f32 %v12509_v34, %v12508_v14 }
 0x4bc   : > { %13526 = vmatmul.mubr.f32.gmra.mrb[76].mxu1 %v22890_v47  ;;  %v20470_v36 = vadd.f32 %v12510_v11, %v20400_v27  ;;  %v12511_v50 = vpop.f32.mrb[144].mxu0 }
 0x4bd   : > { %13528 = vmatprep.mubr.f32.mxu1 %v22891_v8  ;;  %14717 = vmatpush3.bf16.msra.mxu1 %v14714_v42  ;;  %v12512_v23 = vpop.f32.mrb[145].mxu0 }
 0x4be   : > { %14719 = vmatprep.subr.bf16.mxu1 %v14718_v54  ;;  %v12513_v48 = vadd.f32 %v12512_v23, %v12511_v50  ;;  %v3986_v23 = vld [vmem:[#allocation2 + $0x92] sm:$0xff] }
 0x4c0   : > { %13529 = vmatmul.mubr.f32.gmra.mrb[78].mxu1 %v22892_v24  ;;  %v20477_v16 = vadd.f32 %v12513_v48, %v20423_v35  ;;  %v12514_v27 = vpop.f32.mrb[146].mxu0 }
 0x4c1   : > { %13531 = vmatprep.mubr.f32.mxu1 %v22612_v38  ;;  %14721 = vmatpush3.bf16.msra.mxu1 %v14718_v54  ;;  %v12515_v3 = vpop.f32.mrb[147].mxu0 }
 0x4c2   : > { %14723 = vmatprep.subr.bf16.mxu1 %v14722_v25  ;;  %v12516_v15 = vadd.f32 %v12515_v3, %v12514_v27 }
 0x4c4   : > { %13532 = vmatmul.mubr.f32.gmra.mrb[80].mxu1 %v22614_v63  ;;  %v20484_v55 = vadd.f32 %v12516_v15, %v20436_v30  ;;  %v12517_v42 = vpop.f32.mrb[148].mxu0  ;;  %v14734_v30 = vpack.c.bf16 %v20394_v56, %v20389_v57 }
 0x4c5   : > { %14725 = vmatpush3.bf16.msra.mxu1 %v14722_v25  ;;  %13566 = vmatprep.mubr.f32.mxu1 %v20221_v7  ;;  %v12518_v35 = vpop.f32.mrb[149].mxu0  ;;  %v20494_v25 = vand.u32 4294901760, %v3986_v23 }
 0x4c6   : > { %14727 = vmatprep.subr.bf16.mxu1 %v14726_v62  ;;  %v12519_v14 = vadd.f32 %v12518_v35, %v12517_v42 }
 0x4c8   : > { %v20490_v34 = vadd.f32 %v12519_v14, %v20446_v37  ;;  %v12520_v54 = vpop.f32.mrb[150].mxu0  ;;  %v14738_v37 = vpack.c.bf16 %v20419_v21, %v20414_v26 }
 0x4c9   : > { %14729 = vmatpush3.bf16.msra.mxu1 %v14726_v62  ;;  %v12521_v11 = vpop.f32.mrb[151].mxu0  ;;  %v20502_v62 = vsub.f32 %v3986_v23, %v20494_v25 }
 0x4ca   : > { %14731 = vmatprep.subr.bf16.mxu1 %v14730_v32  ;;  %v12522_v50 = vadd.f32 %v12521_v11, %v12520_v54 }
 0x4cb   : > { %v21687_v42 = vand.u32 4294901760, %v20502_v62 }
 0x4cc   : > { %v20497_v48 = vadd.f32 %v12522_v50, %v20449_v60  ;;  %v12523_v27 = vpop.f32.mrb[152].mxu0 }
 0x4cd   : > { %14733 = vmatpush3.bf16.msra.mxu1 %v14730_v32  ;;  %v12524_v3 = vpop.f32.mrb[153].mxu0  ;;  %v9933_v32 = vsub.f32 %v20502_v62, %v21687_v42 }
 0x4ce   : > { %14735 = vmatprep.subr.bf16.mxu1 %v14734_v30  ;;  %v12525_v15 = vadd.f32 %v12524_v3, %v12523_v27 }
 0x4cf   : > { %v9934_v11 = vand.u32 4294901760, %v9933_v32 }
 0x4d0   : > { %v20506_v35 = vadd.f32 %v12525_v15, %v20452_v58  ;;  %v12558_v14 = vpop.f32.mrb[154].mxu0  ;;  %v22896_v15 = vld [vmem:[#allocation10_spill] sm:$0xff] }
 0x4d1   : > { %14737 = vmatpush3.bf16.msra.mxu1 %v14734_v30  ;;  %v12559_v60 = vpop.f32.mrb[155].mxu0  ;;  %13752 = vmatmul.mubr.f32.gmra.mrb[176].mxu0 %v9934_v11  ;;  %v22894_v30 = vld [vmem:[#allocation161_spill] sm:$0xff] }
 0x4d2   : > { %14739 = vmatprep.subr.bf16.mxu1 %v14738_v37  ;;  %v12560_v54 = vadd.f32 %v12559_v60, %v12558_v14 }
 0x4d4   : > { %v20512_v50 = vadd.f32 %v12560_v54, %v20457_v45  ;;  %v12561_v23 = vpop.f32.mrb[156].mxu0  ;;  %v22899_v54 = vld [vmem:[#allocation184_spill] sm:$0xff] }
 0x4d5   : > { %14741 = vmatpush3.bf16.msra.mxu1 %v14738_v37  ;;  %v12562_v27 = vpop.f32.mrb[157].mxu0  ;;  %v22897_v37 = vld [vmem:[#allocation175_spill] sm:$0xff] }
 0x4d6   : > { %22893 = vst [vmem:[#allocation200_spill] sm:$0xff] %v20512_v50  ;;  %14743 = vmatprep.subr.bf16.mxu1 %v20093_v31  ;;  %v12563_v58 = vadd.f32 %v12562_v27, %v12561_v23  ;;  %v22900_v27 = vld [vmem:[#allocation18_spill] sm:$0xff] }
 0x4d8   : > { %13567 = vmatmul.mubr.f32.vlgmr.msra.gmra.mrb[74].mxu1 %v22894_v30  ;;  %v20517_v3 = vadd.f32 %v12563_v58, %v20463_v5  ;;  %v12564_v14 = vpop.f32.mrb[158].mxu0  ;;  %v22902_v30 = vld [vmem:[#allocation84_spill] sm:$0xff] }
 0x4d9   : > { %13569 = vmatprep.mubr.f32.mxu1 %v22896_v15  ;;  %14745 = vmatpush3.bf16.msra.mxu1 %v20093_v31  ;;  %v12565_v60 = vpop.f32.mrb[159].mxu0 }
 0x4da   : > { %22895 = vst [vmem:[#allocation58_spill] sm:$0xff] %v20517_v3  ;;  %14747 = vmatprep.subr.bf16.mxu1 %v20118_v22  ;;  %v12566_v45 = vadd.f32 %v12565_v60, %v12564_v14 }
 0x4dc   : > { %13570 = vmatmul.mubr.f32.gmra.mrb[76].mxu1 %v22897_v37  ;;  %v20524_v32 = vadd.f32 %v12566_v45, %v20470_v36  ;;  %v12567_v5 = vpop.f32.mrb[160].mxu0  ;;  %v22903_v45 = vld [vmem:[#allocation13_spill] sm:$0xff] }
 0x4dd   : > { %13572 = vmatprep.mubr.f32.mxu1 %v22899_v54  ;;  %14749 = vmatpush3.bf16.msra.mxu1 %v20118_v22  ;;  %v12568_v11 = vpop.f32.mrb[161].mxu0 }
 0x4de   : > { %22898 = vst [vmem:[#allocation203_spill] sm:$0xff] %v20524_v32  ;;  %14751 = vmatprep.subr.bf16.mxu1 %v20143_v53  ;;  %v12569_v23 = vadd.f32 %v12568_v11, %v12567_v5 }
 0x4e0   : > { %13573 = vmatmul.mubr.f32.gmra.mrb[78].mxu1 %v22900_v27  ;;  %v20531_v58 = vadd.f32 %v12569_v23, %v20477_v16  ;;  %v12570_v36 = vpop.f32.mrb[162].mxu0  ;;  %v22905_v16 = vand.u32 4294901760, %v20221_v7 }
 0x4e1   : > { %13575 = vmatprep.mubr.f32.mxu1 %v22902_v30  ;;  %14753 = vmatpush3.bf16.msra.mxu1 %v20143_v53  ;;  %v12571_v14 = vpop.f32.mrb[163].mxu0 }
 0x4e2   : > { %22901 = vst [vmem:[#allocation98_spill] sm:$0xff] %v20531_v58  ;;  %14755 = vmatprep.subr.bf16.mxu1 %v20170_v13  ;;  %v12572_v60 = vadd.f32 %v12571_v14, %v12570_v36 }
 0x4e4   : > { %13576 = vmatmul.mubr.f32.gmra.mrb[80].mxu1 %v22903_v45  ;;  %v20538_v42 = vadd.f32 %v12572_v60, %v20484_v55  ;;  %v12573_v5 = vpop.f32.mrb[164].mxu0 }
 0x4e5   : > { %14757 = vmatpush3.bf16.msra.mxu1 %v20170_v13  ;;  %13610 = vmatprep.mubr.f32.mxu1 %v22905_v16  ;;  %v12574_v11 = vpop.f32.mrb[165].mxu0 }
 0x4e6   : > { %22904 = vst [vmem:[#allocation76_spill] sm:$0xff] %v20538_v42  ;;  %14759 = vmatprep.subr.bf16.mxu1 %v20194_v51  ;;  %v12575_v23 = vadd.f32 %v12574_v11, %v12573_v5 }
 0x4e8   : > { %v20545_v49 = vadd.f32 %v12575_v23, %v20490_v34  ;;  %v12576_v36 = vpop.f32.mrb[166].mxu0 }
 0x4e9   : > { %14761 = vmatpush3.bf16.msra.mxu1 %v20194_v51  ;;  %v12577_v14 = vpop.f32.mrb[167].mxu0 }
 0x4ea   : > { %22906 = vst [vmem:[#allocation196_spill] sm:$0xff] %v20545_v49  ;;  %14763 = vmatprep.subr.bf16.mxu1 %v20255_v43  ;;  %v12578_v60 = vadd.f32 %v12577_v14, %v12576_v36  ;;  %v22911_v14 = vand.u32 4294901760, %v20212_v20  ;;  %v22917_v20 = vand.u32 4294901760, %v20248_v28  ;;  %v22924_v28 = vand.u32 4294901760, %v20291_v33  ;;  %v22926_v49 = vld [vmem:[#allocation183_spill] sm:$0xff] }
 0x4eb   : > { %v11798_v55 = vpop.f32.mrb[82].mxu1 }
 0x4ec   : > { %v11799_v52 = vpop.f32.mrb[83].mxu1  ;;  %v20550_v41 = vadd.f32 %v12578_v60, %v20497_v48  ;;  %v22913_v60 = vld [vmem:[#allocation172_spill] sm:$0xff] }
 0x4ed   : > { %v11800_v7 = vadd.f32 %v11799_v52, %v11798_v55  ;;  %14765 = vmatpush3.bf16.msra.mxu1 %v20255_v43  ;;  %v12579_v16 = vpop.f32.mrb[168].mxu0 }
 0x4ee   : > { %22907 = vst [vmem:[#allocation103_spill] sm:$0xff] %v20550_v41  ;;  %14767 = vmatprep.subr.bf16.mxu1 %v20273_v19  ;;  %v12580_v34 = vpop.f32.mrb[169].mxu0 }
 0x4ef   : > { %v20555_v5 = vadd.f32 %v11800_v7, %v19839_v61  ;;  %v11801_v11 = vpop.f32.mrb[84].mxu1  ;;  %v12581_v23 = vadd.f32 %v12580_v34, %v12579_v16  ;;  %v22912_v61 = vand.u32 4294901760, %v20217_v29  ;;  %v22918_v29 = vld [vmem:[#allocation139_spill] sm:$0xff] }
 0x4f0   : > { %v11802_v9 = vpop.f32.mrb[85].mxu1 }
 0x4f1   : > { %v11803_v4 = vadd.f32 %v11802_v9, %v11801_v11  ;;  %14769 = vmatpush3.bf16.msra.mxu1 %v20273_v19  ;;  %v20559_v36 = vadd.f32 %v12581_v23, %v20506_v35  ;;  %v20561_v48 = vpop.f32.mrb[170].mxu0  ;;  %v14774_v55 = vpack.c.bf16 %v22912_v61, %v22911_v14  ;;  %v22916_v23 = vand.u32 4294901760, %v20226_v44 }
 0x4f2   : > { %22909 = vst [vmem:[#allocation12_spill] sm:$0xff] %v20561_v48  ;;  %v20563_v52 = vpop.f32.mrb[171].mxu0  ;;  %14771 = vmatprep.subr.bf16.mxu1 %v20298_v12  ;;  %v22923_v44 = vand.u32 4294901760, %v20286_v18  ;;  %v22930_v18 = vld [vmem:[#allocation177_spill] sm:$0xff] }
 0x4f3   : > { %22908 = vst [vmem:[#allocation82_spill] sm:$0xff] %v20559_v36  ;;  %22910 = vst [vmem:[#allocation110_spill] sm:$0xff] %v20563_v52  ;;  %v20571_v7 = vadd.f32 %v11803_v4, %v22913_v60  ;;  %v11804_v9 = vpop.f32.mrb[86].mxu1  ;;  %v14778_v1 = vpack.c.bf16 %v22917_v20, %v22916_v23  ;;  %v22919_v60 = vld [vmem:[#allocation168_spill] sm:$0xff] }
 0x4f4   : > { %v11805_v16 = vpop.f32.mrb[87].mxu1  ;;  %v14782_v23 = vpack.c.bf16 %v22924_v28, %v22923_v44  ;;  %v22931_v28 = vld [vmem:[#allocation189_spill] sm:$0xff] }
 0x4f5   : > { %v11806_v34 = vadd.f32 %v11805_v16, %v11804_v9  ;;  %14773 = vmatpush3.bf16.msra.mxu1 %v20298_v12  ;;  %v20574_v35 = vpop.f32.mrb[172].mxu0  ;;  %v22920_v16 = vld [vmem:[#allocation179_spill] sm:$0xff] }
 0x4f6   : > { %22914 = vst [vmem:[#allocation15_spill] sm:$0xff] %v20574_v35  ;;  %v20576_v11 = vpop.f32.mrb[173].mxu0  ;;  %14775 = vmatprep.subr.bf16.mxu1 %v14774_v55 }
 0x4f7   : > { %22915 = vst [vmem:[#allocation106_spill] sm:$0xff] %v20576_v11  ;;  %v20583_v14 = vadd.f32 %v11806_v34, %v22918_v29  ;;  %v11807_v4 = vpop.f32.mrb[88].mxu1  ;;  %v22925_v34 = vld [vmem:[#allocation11_spill] sm:$0xff] }
 0x4f8   : > { %v11808_v61 = vpop.f32.mrb[89].mxu1  ;;  %13611 = vmatmul.mubr.f32.vlgmr.msra.gmra.mrb[74].mxu1 %v22919_v60  ;;  %v22929_v60 = vand.u32 4294901760, %v20322_v39 }
 0x4f9   : > { %v11809_v9 = vadd.f32 %v11808_v61, %v11807_v4  ;;  %13613 = vmatprep.mubr.f32.mxu1 %v22920_v16  ;;  %14777 = vmatpush3.bf16.msra.mxu1 %v14774_v55  ;;  %v20587_v41 = vpop.f32.mrb[174].mxu0  ;;  %v22927_v61 = vld [vmem:[#allocation188_spill] sm:$0xff]  ;;  %v22928_v55 = vand.u32 4294901760, %v20309_v0  ;;  %v22935_v0 = vld [vmem:[#allocation181_spill] sm:$0xff] }
 0x4fa   : > { %22921 = vst [vmem:[#allocation16_spill] sm:$0xff] %v20587_v41  ;;  %v20589_v36 = vpop.f32.mrb[175].mxu0  ;;  %14779 = vmatprep.subr.bf16.mxu1 %v14778_v1 }
 0x4fb   : > { %22922 = vst [vmem:[#allocation14_spill] sm:$0xff] %v20589_v36  ;;  %v15252_v20 = vadd.f32 %v11809_v9, %v22925_v34  ;;  %v11810_v29 = vpop.f32.mrb[90].mxu1  ;;  %v14786_v36 = vpack.c.bf16 %v22929_v60, %v22928_v55  ;;  %v22932_v34 = vld [vmem:[#allocation147_spill] sm:$0xff] }
 0x4fc   : > { %v11811_v42 = vpop.f32.mrb[91].mxu1  ;;  %13614 = vmatmul.mubr.f32.gmra.mrb[76].mxu1 %v22926_v49 }
 0x4fd   : > { %v11812_v4 = vadd.f32 %v11811_v42, %v11810_v29  ;;  %13616 = vmatprep.mubr.f32.mxu1 %v22927_v61  ;;  %14781 = vmatpush3.bf16.msra.mxu1 %v14778_v1  ;;  %v22933_v42 = vand.u32 4294901760, %v20332_v59  ;;  %v22934_v1 = vand.u32 4294901760, %v20337_v17 }
 0x4fe   : > { %14783 = vmatprep.subr.bf16.mxu1 %v14782_v23 }
 0x4ff   : > { %v15282_v41 = vadd.f32 %v11812_v4, %v22930_v18  ;;  %v11813_v33 = vpop.f32.mrb[92].mxu1  ;;  %v14790_v29 = vpack.c.bf16 %v22934_v1, %v22933_v42  ;;  %v22936_v4 = vld [vmem:[#allocation207_spill] sm:$0xff]  ;;  %v22938_v18 = vand.u32 4294901760, %v20373_v10  ;;  %v22940_v1 = vand.u32 4294901760, %v20389_v57 }
 0x500   : > { %v11814_v44 = vpop.f32.mrb[93].mxu1  ;;  %13617 = vmatmul.mubr.f32.gmra.mrb[78].mxu1 %v22931_v28 }
 0x501   : > { %v11815_v9 = vadd.f32 %v11814_v44, %v11813_v33  ;;  %13619 = vmatprep.mubr.f32.mxu1 %v22932_v34  ;;  %14785 = vmatpush3.bf16.msra.mxu1 %v14782_v23  ;;  %v22937_v23 = vand.u32 4294901760, %v20368_v46  ;;  %v22939_v33 = vld [vmem:[#allocation99_spill] sm:$0xff] }
 0x502   : > { %14787 = vmatprep.subr.bf16.mxu1 %v14786_v36 }
 0x503   : > { %v20610_v11 = vadd.f32 %v11815_v9, %v22935_v0  ;;  %v11816_v39 = vpop.f32.mrb[94].mxu1  ;;  %v14794_v59 = vpack.c.bf16 %v22938_v18, %v22937_v23  ;;  %v22944_v23 = vand.u32 4294901760, %v20419_v21 }
 0x504   : > { %v11817_v55 = vpop.f32.mrb[95].mxu1  ;;  %13620 = vmatmul.mubr.f32.gmra.mrb[80].mxu1 %v22936_v4 }
 0x505   : > { %v11818_v60 = vadd.f32 %v11817_v55, %v11816_v39  ;;  %14789 = vmatpush3.bf16.msra.mxu1 %v14786_v36  ;;  %13654 = vmatprep.mubr.f32.mxu1 %v20183_v6  ;;  %v22941_v36 = vand.u32 4294901760, %v20394_v56  ;;  %v22942_v39 = vld [vmem:[#allocation74_spill] sm:$0xff] }
 0x506   : > { %14791 = vmatprep.subr.bf16.mxu1 %v14790_v29 }
 0x507   : > { %v20619_v17 = vadd.f32 %v11818_v60, %v22939_v33  ;;  %v11819_v44 = vpop.f32.mrb[96].mxu1  ;;  %v14798_v0 = vpack.c.bf16 %v22941_v36, %v22940_v1  ;;  %v22943_v60 = vand.u32 4294901760, %v20414_v26 }
 0x508   : > { %v11820_v9 = vpop.f32.mrb[97].mxu1 }
 0x509   : > { %v11821_v42 = vadd.f32 %v11820_v9, %v11819_v44  ;;  %14793 = vmatpush3.bf16.msra.mxu1 %v14790_v29  ;;  %v14802_v18 = vpack.c.bf16 %v22944_v23, %v22943_v60  ;;  %v22947_v23 = vld [vmem:[#allocation134_spill] sm:$0xff] }
 0x50a   : > { %14795 = vmatprep.subr.bf16.mxu1 %v14794_v59 }
 0x50b   : > { %v20626_v55 = vadd.f32 %v11821_v42, %v22942_v39  ;;  %v11854_v46 = vpop.f32.mrb[98].mxu1 }
 0x50c   : > { %v11855_v35 = vpop.f32.mrb[99].mxu1 }
 0x50d   : > { %v11856_v10 = vadd.f32 %v11855_v35, %v11854_v46  ;;  %14797 = vmatpush3.bf16.msra.mxu1 %v14794_v59 }
 0x50e   : > { %14799 = vmatprep.subr.bf16.mxu1 %v14798_v0 }
 0x50f   : > { %v20633_v29 = vadd.f32 %v20555_v5, %v11856_v10  ;;  %v11857_v57 = vpop.f32.mrb[100].mxu1  ;;  %v22945_v10 = vld [vmem:[#allocation78_spill] sm:$0xff] }
 0x510   : > { %v11858_v33 = vpop.f32.mrb[101].mxu1  ;;  %v22946_v60 = vand.u32 4294901760, %v22945_v10 }
 0x511   : > { %v11859_v56 = vadd.f32 %v11858_v33, %v11857_v57  ;;  %14801 = vmatpush3.bf16.msra.mxu1 %v14798_v0 }
 0x512   : > { %14803 = vmatprep.subr.bf16.mxu1 %v14802_v18 }
 0x513   : > { %v20636_v44 = vadd.f32 %v20571_v7, %v11859_v56  ;;  %v11860_v9 = vpop.f32.mrb[102].mxu1 }
 0x514   : > { %v11861_v35 = vpop.f32.mrb[103].mxu1 }
 0x515   : > { %v11862_v59 = vadd.f32 %v11861_v35, %v11860_v9  ;;  %14805 = vmatpush3.bf16.msra.mxu1 %v14802_v18  ;;  %v22948_v18 = vand.u32 4294901760, %v22947_v23  ;;  %v22953_v23 = vld [vmem:[#allocation109_spill] sm:$0xff] }
 0x516   : > { %14807 = vmatprep.subr.bf16.mxu1 %v20093_v31 }
 0x517   : > { %v20640_v26 = vadd.f32 %v20583_v14, %v11862_v59  ;;  %v11863_v21 = vpop.f32.mrb[104].mxu1 }
 0x518   : > { %v11864_v5 = vpop.f32.mrb[105].mxu1  ;;  %13655 = vmatmul.mubr.f32.vlgmr.msra.gmra.mrb[74].mxu1 %v22889_v40 }
 0x519   : > { %v11865_v42 = vadd.f32 %v11864_v5, %v11863_v21  ;;  %13657 = vmatprep.mubr.f32.mxu1 %v22394_v2  ;;  %14809 = vmatpush3.bf16.msra.mxu1 %v20093_v31  ;;  %v22949_v21 = vld [vmem:[#allocation87_spill] sm:$0xff] }
 0x51a   : > { %14811 = vmatprep.subr.bf16.mxu1 %v20118_v22  ;;  %v22950_v5 = vand.u32 4294901760, %v22949_v21 }
 0x51b   : > { %v20646_v7 = vadd.f32 %v15252_v20, %v11865_v42  ;;  %v11866_v1 = vpop.f32.mrb[106].mxu1  ;;  %v15679_v20 = vld [vmem:[%s21107_s4 + $0x400] sm:$0xff] }
 0x51c   : > { %v11867_v36 = vpop.f32.mrb[107].mxu1  ;;  %13658 = vmatmul.mubr.f32.gmra.mrb[76].mxu1 %v22890_v47 }
 0x51d   : > { %v11868_v0 = vadd.f32 %v11867_v36, %v11866_v1  ;;  %13660 = vmatprep.mubr.f32.mxu1 %v22891_v8  ;;  %14813 = vmatpush3.bf16.msra.mxu1 %v20118_v22  ;;  %v20662_v22 = vsub.f32 %v15679_v20, %v22946_v60  ;;  %v22951_v1 = vld [vmem:[#allocation88_spill] sm:$0xff] }
 0x51e   : > { %14815 = vmatprep.subr.bf16.mxu1 %v20143_v53 }
 0x51f   : > { %v20652_v14 = vadd.f32 %v15282_v41, %v11868_v0  ;;  %v11869_v39 = vpop.f32.mrb[108].mxu1  ;;  %v15680_v41 = vld [vmem:[%s21107_s4 + $0x408] sm:$0xff]  ;;  %v21697_v35 = vand.u32 4294901760, %v20662_v22 }
 0x520   : > { %v11870_v46 = vpop.f32.mrb[109].mxu1  ;;  %13661 = vmatmul.mubr.f32.gmra.mrb[78].mxu1 %v22892_v24  ;;  %v20669_v57 = vsub.f32 %v15680_v41, %v22948_v18  ;;  %v15683_v41 = vld [vmem:[%s21107_s4 + $0x420] sm:$0xff] }
 0x521   : > { %v11871_v31 = vadd.f32 %v11870_v46, %v11869_v39  ;;  %13663 = vmatprep.mubr.f32.mxu1 %v22612_v38  ;;  %14817 = vmatpush3.bf16.msra.mxu1 %v20143_v53  ;;  %v9944_v20 = vsub.f32 %v20662_v22, %v21697_v35 }
 0x522   : > { %14819 = vmatprep.subr.bf16.mxu1 %v20170_v13  ;;  %v21696_v59 = vand.u32 4294901760, %v20669_v57 }
 0x523   : > { %v20673_v53 = vadd.f32 %v20610_v11, %v11871_v31  ;;  %v11872_v33 = vpop.f32.mrb[110].mxu1  ;;  %v15681_v11 = vld [vmem:[%s21107_s4 + $0x410] sm:$0xff] }
 0x524   : > { %v11873_v56 = vpop.f32.mrb[111].mxu1  ;;  %13664 = vmatmul.mubr.f32.gmra.mrb[80].mxu1 %v22614_v63  ;;  %v20686_v42 = vsub.f32 %v15681_v11, %v22950_v5  ;;  %v9951_v10 = vsub.f32 %v20669_v57, %v21696_v59  ;;  %v22963_v59 = vld [vmem:[#allocation204_spill] sm:$0xff] }
 0x525   : > { %v11874_v9 = vadd.f32 %v11873_v56, %v11872_v33  ;;  %14821 = vmatpush3.bf16.msra.mxu1 %v20170_v13  ;;  %13698 = vmatprep.mubr.f32.mxu1 %v20183_v6  ;;  %v15682_v13 = vld [vmem:[%s21107_s4 + $0x418] sm:$0xff]  ;;  %v22952_v6 = vand.u32 4294901760, %v22951_v1  ;;  %v15684_v33 = vld [vmem:[%s21107_s4 + $0x428] sm:$0xff]  ;;  %v22955_v56 = vld [vmem:[#allocation201_spill] sm:$0xff] }
 0x526   : > { %14823 = vmatprep.subr.bf16.mxu1 %v20194_v51  ;;  %v21694_v60 = vand.u32 4294901760, %v20686_v42  ;;  %v22957_v1 = vld [vmem:[#allocation65_spill] sm:$0xff] }
 0x527   : > { %v20693_v36 = vsub.f32 %v15682_v13, %v22952_v6  ;;  %v20696_v0 = vadd.f32 %v20619_v17, %v11874_v9  ;;  %v11875_v39 = vpop.f32.mrb[112].mxu1  ;;  %v22956_v9 = vand.u32 4294901760, %v22955_v56  ;;  %v15685_v13 = vld [vmem:[%s21107_s4 + $0x430] sm:$0xff]  ;;  %v22958_v6 = vand.u32 4294901760, %v22957_v1 }
 0x528   : > { %v11876_v46 = vpop.f32.mrb[113].mxu1  ;;  %v9952_v56 = vand.u32 4294901760, %v9951_v10 }
 0x529   : > { %v11877_v31 = vadd.f32 %v11876_v46, %v11875_v39  ;;  %14825 = vmatpush3.bf16.msra.mxu1 %v20194_v51  ;;  %v21695_v17 = vand.u32 4294901760, %v20693_v36  ;;  %v22954_v51 = vand.u32 4294901760, %v22953_v23  ;;  %v20720_v11 = vsub.f32 %v15684_v33, %v22956_v9  ;;  %v22959_v23 = vld [vmem:[#allocation112_spill] sm:$0xff] }
 0x52a   : > { %14827 = vmatprep.subr.bf16.mxu1 %v20255_v43  ;;  %v20730_v39 = vsub.f32 %v15685_v13, %v22958_v6  ;;  %v9958_v9 = vsub.f32 %v20686_v42, %v21694_v60 }
 0x52b   : > { %v20713_v18 = vsub.f32 %v15683_v41, %v22954_v51  ;;  %v20723_v21 = vadd.f32 %v20626_v55, %v11877_v31  ;;  %v11910_v5 = vpop.f32.mrb[114].mxu1  ;;  %v15686_v41 = vld [vmem:[%s21107_s4 + $0x438] sm:$0xff]  ;;  %v22960_v51 = vand.u32 4294901760, %v22959_v23  ;;  %v9945_v31 = vand.u32 4294901760, %v9944_v20  ;;  %v22961_v23 = vld [vmem:[#allocation68_spill] sm:$0xff] }
 0x52c   : > { %v11911_v46 = vpop.f32.mrb[115].mxu1  ;;  %v9965_v13 = vsub.f32 %v20693_v36, %v21695_v17  ;;  %v15688_v17 = vld [vmem:[%s21107_s4 + $0x448] sm:$0xff]  ;;  %v22966_v32 = vand.u32 4294901760, %v20720_v11 }
 0x52d   : > { %v20737_v33 = vsub.f32 %v15686_v41, %v22960_v51  ;;  %v11912_v55 = vadd.f32 %v11911_v46, %v11910_v5  ;;  %14829 = vmatpush3.bf16.msra.mxu1 %v20255_v43  ;;  %v21698_v1 = vand.u32 4294901760, %v20713_v18  ;;  %v15687_v41 = vld [vmem:[%s21107_s4 + $0x440] sm:$0xff]  ;;  %v22962_v51 = vand.u32 4294901760, %v22961_v23 }
 0x52e   : > { %14831 = vmatprep.subr.bf16.mxu1 %v20273_v19  ;;  %v15062_v10 = vpack.c.bf16 %v9952_v56, %v9945_v31  ;;  %v22965_v43 = vld [vmem:[#allocation19_spill] sm:$0xff]  ;;  %v9959_v23 = vand.u32 4294901760, %v9958_v9 }
 0x52f   : > { %v15244_v5 = vadd.f32 %v20633_v29, %v11912_v55  ;;  %v11913_v46 = vpop.f32.mrb[116].mxu1  ;;  %v20757_v60 = vsub.f32 %v15687_v41, %v22962_v51  ;;  %v22964_v29 = vand.u32 4294901760, %v22963_v59  ;;  %v9966_v41 = vand.u32 4294901760, %v9965_v13 }
 0x530   : > { %v11914_v20 = vpop.f32.mrb[117].mxu1  ;;  %v9972_v51 = vsub.f32 %v20713_v18, %v21698_v1  ;;  %v9979_v59 = vsub.f32 %v20720_v11, %v22966_v32  ;;  %v15689_v32 = vld [vmem:[%s21107_s4 + $0x450] sm:$0xff] }
 0x531   : > { %v20764_v55 = vsub.f32 %v15688_v17, %v22964_v29  ;;  %v11915_v35 = vadd.f32 %v11914_v20, %v11913_v46  ;;  %14833 = vmatpush3.bf16.msra.mxu1 %v20273_v19  ;;  %v20768_v6 = vadd.f32 %v15244_v5, %v22965_v43  ;;  %v22967_v19 = vand.u32 4294901760, %v20730_v39  ;;  %v22969_v20 = vld [vmem:[#allocation121_spill] sm:$0xff] }
 0x532   : > { %14835 = vmatprep.subr.bf16.mxu1 %v20298_v12  ;;  %v22968_v5 = vand.u32 4294901760, %v20737_v33  ;;  %v22973_v43 = vld [vmem:[#allocation97_spill] sm:$0xff]  ;;  %v15066_v52 = vpack.c.bf16 %v9966_v41, %v9959_v23  ;;  %v9973_v48 = vand.u32 4294901760, %v9972_v51  ;;  %v22974_v50 = vand.u32 4294901760, %v20757_v60 }
 0x533   : > { %v15234_v17 = vadd.f32 %v20636_v44, %v11915_v35  ;;  %v11916_v46 = vpop.f32.mrb[118].mxu1  ;;  %v9986_v31 = vsub.f32 %v20730_v39, %v22967_v19  ;;  %v22970_v44 = vand.u32 4294901760, %v22969_v20  ;;  %v15690_v19 = vld [vmem:[%s21107_s4 + $0x458] sm:$0xff]  ;;  %v9980_v20 = vand.u32 4294901760, %v9979_v59  ;;  %v22976_v51 = vld [vmem:[#allocation105_spill] sm:$0xff] }
 0x534   : > { %v11917_v56 = vpop.f32.mrb[119].mxu1  ;;  %v9993_v9 = vsub.f32 %v20737_v33, %v22968_v5  ;;  %v22971_v5 = vld [vmem:[#allocation206_spill] sm:$0xff] }
 0x535   : > { %v20791_v35 = vsub.f32 %v15689_v32, %v22970_v44  ;;  %v11918_v29 = vadd.f32 %v11917_v56, %v11916_v46  ;;  %14837 = vmatpush3.bf16.msra.mxu1 %v20298_v12  ;;  %v22972_v1 = vand.u32 4294901760, %v22971_v5  ;;  %v20802_v58 = vadd.f32 %v15234_v17, %v22973_v43 }
 0x536   : > { %15063 = vmatprep.subr.bf16.mxu1 %v15062_v10  ;;  %v9987_v56 = vand.u32 4294901760, %v9986_v31  ;;  %v9994_v44 = vand.u32 4294901760, %v9993_v9  ;;  %v22977_v31 = vld [vmem:[#allocation209_spill] sm:$0xff] }
 0x537   : > { %v20799_v13 = vsub.f32 %v15690_v19, %v22972_v1  ;;  %v15264_v32 = vadd.f32 %v20640_v26, %v11918_v29  ;;  %v11919_v46 = vpop.f32.mrb[120].mxu1  ;;  %v10000_v1 = vsub.f32 %v20757_v60, %v22974_v50  ;;  %v22975_v19 = vand.u32 4294901760, %v20764_v55  ;;  %v15691_v50 = vld [vmem:[%s21107_s4 + $0x460] sm:$0xff]  ;;  %v15692_v29 = vld [vmem:[%s21107_s4 + $0x468] sm:$0xff] }
 0x538   : > { %v11920_v12 = vpop.f32.mrb[121].mxu1  ;;  %13699 = vmatmul.mubr.f32.vlgmr.msra.gmra.mrb[74].mxu1 %v22889_v40  ;;  %v21700_v23 = vand.u32 4294901760, %v20791_v35  ;;  %v15070_v40 = vpack.c.bf16 %v9980_v20, %v9973_v48  ;;  %v22978_v9 = vand.u32 4294901760, %v22977_v31  ;;  %v15074_v20 = vpack.c.bf16 %v9994_v44, %v9987_v56 }
 0x539   : > { %v10007_v17 = vsub.f32 %v20764_v55, %v22975_v19  ;;  %v11921_v41 = vadd.f32 %v11920_v12, %v11919_v46  ;;  %13701 = vmatprep.mubr.f32.mxu1 %v22394_v2  ;;  %15065 = vmatpush3.bf16.msra.mxu1 %v15062_v10  ;;  %v21699_v26 = vand.u32 4294901760, %v20799_v13  ;;  %v20816_v59 = vadd.f32 %v15264_v32, %v22976_v51  ;;  %v22979_v10 = vld [vmem:[#allocation128_spill] sm:$0xff] }
 0x53a   : > { %15067 = vmatprep.subr.bf16.mxu1 %v15066_v52  ;;  %v20823_v43 = vsub.f32 %v15691_v50, %v22978_v9  ;;  %v22980_v5 = vand.u32 4294901760, %v22979_v10  ;;  %v10001_v19 = vand.u32 4294901760, %v10000_v1  ;;  %v10014_v50 = vsub.f32 %v20791_v35, %v21700_v23  ;;  %v15693_v1 = vld [vmem:[%s21107_s4 + $0x470] sm:$0xff] }
 0x53b   : > { %v15254_v32 = vadd.f32 %v20646_v7, %v11921_v41  ;;  %v11922_v12 = vpop.f32.mrb[122].mxu1  ;;  %v10008_v51 = vand.u32 4294901760, %v10007_v17  ;;  %v10021_v9 = vsub.f32 %v20799_v13, %v21699_v26  ;;  %v22981_v7 = vld [vmem:[#allocation55_spill] sm:$0xff]  ;;  %v22982_v17 = vld [vmem:[#allocation132_spill] sm:$0xff] }
 0x53c   : > { %v20830_v46 = vsub.f32 %v15692_v29, %v22980_v5  ;;  %v11923_v48 = vpop.f32.mrb[123].mxu1  ;;  %13702 = vmatmul.mubr.f32.gmra.mrb[76].mxu1 %v22890_v47  ;;  %v22983_v29 = vand.u32 4294901760, %v22982_v17  ;;  %v22984_v5 = vld [vmem:[#allocation160_spill] sm:$0xff] }
 0x53d   : > { %v11924_v31 = vadd.f32 %v11923_v48, %v11922_v12  ;;  %13704 = vmatprep.mubr.f32.mxu1 %v22891_v8  ;;  %15069 = vmatpush3.bf16.msra.mxu1 %v15066_v52  ;;  %v20842_v41 = vadd.f32 %v15254_v32, %v22981_v7  ;;  %v15694_v52 = vld [vmem:[%s21107_s4 + $0x478] sm:$0xff]  ;;  %v22985_v32 = vand.u32 4294901760, %v22984_v5  ;;  %v15078_v23 = vpack.c.bf16 %v10008_v51, %v10001_v19 }
 0x53e   : > { %15071 = vmatprep.subr.bf16.mxu1 %v15070_v40  ;;  %v20851_v10 = vsub.f32 %v15693_v1, %v22983_v29  ;;  %v10015_v1 = vand.u32 4294901760, %v10014_v50  ;;  %v10022_v17 = vand.u32 4294901760, %v10021_v9  ;;  %v22986_v29 = vld [vmem:[#allocation120_spill] sm:$0xff] }
 0x53f   : > { %v20858_v12 = vsub.f32 %v15694_v52, %v22985_v32  ;;  %v15284_v48 = vadd.f32 %v20652_v14, %v11924_v31  ;;  %v11925_v7 = vpop.f32.mrb[124].mxu1  ;;  %v22987_v52 = vand.u32 4294901760, %v20823_v43  ;;  %v22988_v14 = vand.u32 4294901760, %v20830_v46 }
 0x540   : > { %v11926_v26 = vpop.f32.mrb[125].mxu1  ;;  %13705 = vmatmul.mubr.f32.gmra.mrb[78].mxu1 %v22892_v24  ;;  %v21701_v19 = vand.u32 4294901760, %v20851_v10  ;;  %v15082_v32 = vpack.c.bf16 %v10022_v17, %v10015_v1  ;;  %v22990_v1 = vld [vmem:[#allocation210_spill] sm:$0xff] }
 0x541   : > { %v11927_v44 = vadd.f32 %v11926_v26, %v11925_v7  ;;  %13707 = vmatprep.mubr.f32.mxu1 %v22612_v38  ;;  %15073 = vmatpush3.bf16.msra.mxu1 %v15070_v40  ;;  %v20864_v56 = vadd.f32 %v15284_v48, %v22986_v29  ;;  %v10028_v5 = vsub.f32 %v20823_v43, %v22987_v52  ;;  %v21703_v26 = vand.u32 4294901760, %v20858_v12  ;;  %v22989_v48 = vld [vmem:[#allocation208_spill] sm:$0xff] }
 0x542   : > { %15075 = vmatprep.subr.bf16.mxu1 %v15074_v20  ;;  %v10035_v31 = vsub.f32 %v20830_v46, %v22988_v14  ;;  %v10042_v14 = vsub.f32 %v20851_v10, %v21701_v19 }
 0x543   : > { %v15274_v40 = vadd.f32 %v20673_v53, %v11927_v44  ;;  %v11928_v51 = vpop.f32.mrb[126].mxu1  ;;  %v10029_v29 = vand.u32 4294901760, %v10028_v5  ;;  %v10049_v53 = vsub.f32 %v20858_v12, %v21703_v26  ;;  %v22991_v26 = vld [vmem:[#allocation135_spill] sm:$0xff] }
 0x544   : > { %v11929_v50 = vpop.f32.mrb[127].mxu1  ;;  %13708 = vmatmul.mubr.f32.gmra.mrb[80].mxu1 %v22614_v63  ;;  %v10036_v52 = vand.u32 4294901760, %v10035_v31  ;;  %v10043_v31 = vand.u32 4294901760, %v10042_v14  ;;  %v22993_v14 = vld [vmem:[#allocation212_spill] sm:$0xff] }
 0x545   : > { %v11930_v9 = vadd.f32 %v11929_v50, %v11928_v51  ;;  %15077 = vmatpush3.bf16.msra.mxu1 %v15074_v20  ;;  %13786 = vmatprep.mubr.f32.mxu1 %v22394_v2  ;;  %v20878_v7 = vadd.f32 %v15274_v40, %v22989_v48  ;;  %v10050_v40 = vand.u32 4294901760, %v10049_v53 }
 0x546   : > { %15079 = vmatprep.subr.bf16.mxu1 %v15078_v23  ;;  %v15086_v5 = vpack.c.bf16 %v10036_v52, %v10029_v29  ;;  %v22992_v29 = vld [vmem:[#allocation137_spill] sm:$0xff] }
 0x547   : > { %v15304_v44 = vadd.f32 %v20696_v0, %v11930_v9  ;;  %v11931_v20 = vpop.f32.mrb[128].mxu1  ;;  %v15090_v0 = vpack.c.bf16 %v10050_v40, %v10043_v31  ;;  %v15102_v31 = vpack.c.bf16 %v20720_v11, %v20713_v18 }
 0x548   : > { %v11932_v51 = vpop.f32.mrb[129].mxu1 }
 0x549   : > { %v11933_v50 = vadd.f32 %v11932_v51, %v11931_v20  ;;  %15081 = vmatpush3.bf16.msra.mxu1 %v15078_v23  ;;  %v20888_v17 = vadd.f32 %v15304_v44, %v22990_v1 }
 0x54a   : > { %15083 = vmatprep.subr.bf16.mxu1 %v15082_v32 }
 0x54b   : > { %v15294_v48 = vadd.f32 %v20723_v21, %v11933_v50  ;;  %v12022_v19 = vpop.f32.mrb[130].mxu1  ;;  %v15094_v21 = vpack.c.bf16 %v20669_v57, %v20662_v22 }
 0x54c   : > { %v12023_v3 = vpop.f32.mrb[131].mxu1 }
 0x54d   : > { %v12024_v2 = vadd.f32 %v12023_v3, %v12022_v19  ;;  %15085 = vmatpush3.bf16.msra.mxu1 %v15082_v32  ;;  %v20892_v4 = vadd.f32 %v15294_v48, %v22991_v26 }
 0x54e   : > { %15087 = vmatprep.subr.bf16.mxu1 %v15086_v5 }
 0x54f   : > { %v15246_v23 = vadd.f32 %v20768_v6, %v12024_v2  ;;  %v12025_v9 = vpop.f32.mrb[132].mxu1  ;;  %v15098_v2 = vpack.c.bf16 %v20693_v36, %v20686_v42 }
 0x550   : > { %v12026_v44 = vpop.f32.mrb[133].mxu1 }
 0x551   : > { %v12027_v20 = vadd.f32 %v12026_v44, %v12025_v9  ;;  %15089 = vmatpush3.bf16.msra.mxu1 %v15086_v5  ;;  %v20896_v52 = vadd.f32 %v15246_v23, %v22992_v29  ;;  %v22995_v23 = vld [vmem:[#allocation180_spill] sm:$0xff]  ;;  %v15106_v44 = vpack.c.bf16 %v20737_v33, %v20730_v39 }
 0x552   : > { %15091 = vmatprep.subr.bf16.mxu1 %v15090_v0 }
 0x553   : > { %v15236_v3 = vadd.f32 %v20802_v58, %v12027_v20  ;;  %v12028_v19 = vpop.f32.mrb[134].mxu1  ;;  %v22994_v58 = vld [vmem:[#allocation140_spill] sm:$0xff] }
 0x554   : > { %v12029_v26 = vpop.f32.mrb[135].mxu1 }
 0x555   : > { %v12030_v32 = vadd.f32 %v12029_v26, %v12028_v19  ;;  %15093 = vmatpush3.bf16.msra.mxu1 %v15090_v0  ;;  %v20902_v53 = vadd.f32 %v15236_v3, %v22993_v14  ;;  %v22996_v3 = vld [vmem:[#allocation148_spill] sm:$0xff]  ;;  %v22997_v19 = vld [vmem:[#allocation63_spill] sm:$0xff] }
 0x556   : > { %15095 = vmatprep.subr.bf16.mxu1 %v15094_v21 }
 0x557   : > { %v15266_v6 = vadd.f32 %v20816_v59, %v12030_v32  ;;  %v12031_v51 = vpop.f32.mrb[136].mxu1  ;;  %v15110_v32 = vpack.c.bf16 %v20764_v55, %v20757_v60 }
 0x558   : > { %v12032_v50 = vpop.f32.mrb[137].mxu1  ;;  %13787 = vmatmul.mubr.f32.vlgmr.msra.gmra.mrb[146].mxu1 %v22890_v47 }
 0x559   : > { %v12033_v1 = vadd.f32 %v12032_v50, %v12031_v51  ;;  %13789 = vmatprep.mubr.f32.mxu1 %v22891_v8  ;;  %15097 = vmatpush3.bf16.msra.mxu1 %v15094_v21  ;;  %v20910_v5 = vadd.f32 %v15266_v6, %v22994_v58  ;;  %v22998_v51 = vld [vmem:[#allocation66_spill] sm:$0xff] }
 0x55a   : > { %15099 = vmatprep.subr.bf16.mxu1 %v15098_v2 }
 0x55b   : > { %v15256_v40 = vadd.f32 %v20842_v41, %v12033_v1  ;;  %v12034_v48 = vpop.f32.mrb[138].mxu1  ;;  %v15114_v1 = vpack.c.bf16 %v20799_v13, %v20791_v35 }
 0x55c   : > { %v12035_v0 = vpop.f32.mrb[139].mxu1  ;;  %13790 = vmatmul.mubr.f32.gmra.mrb[148].mxu1 %v22892_v24 }
 0x55d   : > { %v12036_v59 = vadd.f32 %v12035_v0, %v12034_v48  ;;  %13792 = vmatprep.mubr.f32.mxu1 %v22612_v38  ;;  %15101 = vmatpush3.bf16.msra.mxu1 %v15098_v2  ;;  %v20918_v9 = vadd.f32 %v15256_v40, %v22995_v23  ;;  %v22999_v48 = vld [vmem:[#allocation96_spill] sm:$0xff]  ;;  %v23000_v23 = vld [vmem:[#allocation67_spill] sm:$0xff] }
 0x55e   : > { %15103 = vmatprep.subr.bf16.mxu1 %v15102_v31 }
 0x55f   : > { %v15286_v20 = vadd.f32 %v20864_v56, %v12036_v59  ;;  %v12037_v29 = vpop.f32.mrb[140].mxu1 }
 0x560   : > { %v12038_v21 = vpop.f32.mrb[141].mxu1  ;;  %13793 = vmatmul.mubr.f32.gmra.mrb[150].mxu1 %v22614_v63 }
 0x561   : > { %v12039_v41 = vadd.f32 %v12038_v21, %v12037_v29  ;;  %13795 = vmatprep.mubr.f32.mxu1 %v22996_v3  ;;  %15105 = vmatpush3.bf16.msra.mxu1 %v15102_v31  ;;  %v20926_v26 = vadd.f32 %v15286_v20, %v22997_v19  ;;  %v23001_v20 = vld [vmem:[#allocation199_spill] sm:$0xff]  ;;  %v23011_v19 = vand.u32 4294901760, %v20669_v57 }
 0x562   : > { %15107 = vmatprep.subr.bf16.mxu1 %v15106_v44  ;;  %v23003_v29 = vld [vmem:[#allocation115_spill] sm:$0xff] }
 0x563   : > { %v15276_v14 = vadd.f32 %v20878_v7, %v12039_v41  ;;  %v12040_v2 = vpop.f32.mrb[142].mxu1  ;;  %v23004_v21 = vld [vmem:[#allocation155_spill] sm:$0xff]  ;;  %v23010_v41 = vand.u32 4294901760, %v20662_v22  ;;  %v23015_v22 = vand.u32 4294901760, %v20720_v11  ;;  %v23021_v11 = vand.u32 4294901760, %v20764_v55 }
 0x564   : > { %v12041_v6 = vpop.f32.mrb[143].mxu1  ;;  %13796 = vmatmul.mubr.f32.gmra.mrb[152].mxu1 %v20494_v25  ;;  %v23027_v55 = vand.u32 4294901760, %v20830_v46 }
 0x565   : > { %v12042_v56 = vadd.f32 %v12041_v6, %v12040_v2  ;;  %15109 = vmatpush3.bf16.msra.mxu1 %v15106_v44  ;;  %13830 = vmatprep.mubr.f32.mxu1 %v22896_v15  ;;  %v20934_v50 = vadd.f32 %v15276_v14, %v22998_v51  ;;  %v15118_v15 = vpack.c.bf16 %v20830_v46, %v20823_v43  ;;  %v23013_v14 = vand.u32 4294901760, %v20693_v36  ;;  %v23023_v51 = vld [vmem:[#allocation164_spill] sm:$0xff] }
 0x566   : > { %15111 = vmatprep.subr.bf16.mxu1 %v15110_v32  ;;  %v23014_v6 = vand.u32 4294901760, %v20713_v18  ;;  %v23017_v36 = vand.u32 4294901760, %v20737_v33  ;;  %v23020_v18 = vand.u32 4294901760, %v20757_v60  ;;  %v23025_v33 = vand.u32 4294901760, %v20799_v13 }
 0x567   : > { %v15306_v58 = vadd.f32 %v20888_v17, %v12042_v56  ;;  %v12043_v31 = vpop.f32.mrb[144].mxu1  ;;  %v15122_v17 = vpack.c.bf16 %v20858_v12, %v20851_v10  ;;  %v23018_v56 = vld [vmem:[#allocation207_spill] sm:$0xff]  ;;  %v23026_v60 = vand.u32 4294901760, %v20823_v43 }
 0x568   : > { %v12044_v40 = vpop.f32.mrb[145].mxu1  ;;  %v15166_v57 = vpack.c.bf16 %v23015_v22, %v23014_v6  ;;  %v23041_v22 = vld [vmem:[#allocation14_spill] sm:$0xff] }
 0x569   : > { %v12045_v7 = vadd.f32 %v12044_v40, %v12043_v31  ;;  %15113 = vmatpush3.bf16.msra.mxu1 %v15110_v32  ;;  %v20940_v0 = vadd.f32 %v15306_v58, %v22999_v48  ;;  %v15158_v32 = vpack.c.bf16 %v23011_v19, %v23010_v41  ;;  %v15182_v31 = vpack.c.bf16 %v23027_v55, %v23026_v60  ;;  %v23031_v48 = vld [vmem:[#allocation200_spill] sm:$0xff] }
 0x56a   : > { %15115 = vmatprep.subr.bf16.mxu1 %v15114_v1  ;;  %v23028_v40 = vand.u32 4294901760, %v20851_v10  ;;  %v23039_v19 = vld [vmem:[#allocation76_spill] sm:$0xff] }
 0x56b   : > { %v15296_v59 = vadd.f32 %v20892_v4, %v12045_v7  ;;  %v23002_v4 = vld [vmem:[#allocation202_spill] sm:$0xff] }
 0x56d   : > { %15117 = vmatpush3.bf16.msra.mxu1 %v15114_v1  ;;  %v20946_v44 = vadd.f32 %v15296_v59, %v23000_v23  ;;  %v23032_v59 = vld [vmem:[#allocation12_spill] sm:$0xff]  ;;  %v23033_v23 = vld [vmem:[#allocation110_spill] sm:$0xff] }
 0x56e   : > { %15119 = vmatprep.subr.bf16.mxu1 %v15118_v15 }
 0x571   : > { %15121 = vmatpush3.bf16.msra.mxu1 %v15118_v15 }
 0x572   : > { %15123 = vmatprep.subr.bf16.mxu1 %v15122_v17 }
 0x575   : > { %15125 = vmatpush3.bf16.msra.mxu1 %v15122_v17  ;;  %v23034_v17 = vld [vmem:[#allocation98_spill] sm:$0xff] }
 0x576   : > { %15127 = vmatprep.subr.bf16.mxu1 %v23001_v20 }
 0x578   : > { %13831 = vmatmul.mubr.f32.vlgmr.msra.gmra.mrb[146].mxu1 %v22897_v37  ;;  %v23005_v37 = vld [vmem:[#allocation205_spill] sm:$0xff] }
 0x579   : > { %13833 = vmatprep.mubr.f32.mxu1 %v22899_v54  ;;  %15129 = vmatpush3.bf16.msra.mxu1 %v23001_v20  ;;  %v23006_v54 = vld [vmem:[#allocation125_spill] sm:$0xff] }
 0x57a   : > { %15131 = vmatprep.subr.bf16.mxu1 %v23002_v4 }
 0x57c   : > { %13834 = vmatmul.mubr.f32.gmra.mrb[148].mxu1 %v22900_v27  ;;  %v23007_v27 = vld [vmem:[#allocation157_spill] sm:$0xff] }
 0x57d   : > { %13836 = vmatprep.mubr.f32.mxu1 %v22902_v30  ;;  %15133 = vmatpush3.bf16.msra.mxu1 %v23002_v4  ;;  %v23008_v30 = vld [vmem:[#allocation8_spill] sm:$0xff] }
 0x57e   : > { %15135 = vmatprep.subr.bf16.mxu1 %v23003_v29 }
 0x580   : > { %13837 = vmatmul.mubr.f32.gmra.mrb[150].mxu1 %v22903_v45  ;;  %v23009_v45 = vld [vmem:[#allocation173_spill] sm:$0xff] }
 0x581   : > { %13839 = vmatprep.mubr.f32.mxu1 %v23004_v21  ;;  %15137 = vmatpush3.bf16.msra.mxu1 %v23003_v29 }
 0x582   : > { %15139 = vmatprep.subr.bf16.mxu1 %v23005_v37 }
 0x584   : > { %13840 = vmatmul.mubr.f32.gmra.mrb[152].mxu1 %v20502_v62 }
 0x585   : > { %15141 = vmatpush3.bf16.msra.mxu1 %v23005_v37  ;;  %13874 = vmatprep.mubr.f32.mxu1 %v22920_v16  ;;  %v23012_v16 = vand.u32 4294901760, %v20686_v42  ;;  %v23016_v42 = vand.u32 4294901760, %v20730_v39  ;;  %v23024_v39 = vand.u32 4294901760, %v20791_v35  ;;  %v23029_v35 = vand.u32 4294901760, %v20858_v12  ;;  %v23030_v12 = vld [vmem:[#allocation58_spill] sm:$0xff] }
 0x586   : > { %15143 = vmatprep.subr.bf16.mxu1 %v23006_v54 }
 0x587   : > { %v15162_v2 = vpack.c.bf16 %v23013_v14, %v23012_v16  ;;  %v15178_v1 = vpack.c.bf16 %v23025_v33, %v23024_v39  ;;  %v15186_v7 = vpack.c.bf16 %v23029_v35, %v23028_v40 }
 0x589   : > { %15145 = vmatpush3.bf16.msra.mxu1 %v23006_v54 }
 0x58a   : > { %15147 = vmatprep.subr.bf16.mxu1 %v23007_v27 }
 0x58d   : > { %15149 = vmatpush3.bf16.msra.mxu1 %v23007_v27 }
 0x58e   : > { %15151 = vmatprep.subr.bf16.mxu1 %v23008_v30 }
 0x591   : > { %15153 = vmatpush3.bf16.msra.mxu1 %v23008_v30 }
 0x592   : > { %15155 = vmatprep.subr.bf16.mxu1 %v23009_v45 }
 0x595   : > { %15157 = vmatpush3.bf16.msra.mxu1 %v23009_v45 }
 0x596   : > { %15159 = vmatprep.subr.bf16.mxu1 %v15158_v32 }
 0x598   : > { %13875 = vmatmul.mubr.f32.vlgmr.msra.gmra.mrb[146].mxu1 %v22926_v49  ;;  %v15170_v49 = vpack.c.bf16 %v23017_v36, %v23016_v42  ;;  %v23042_v42 = vld [vmem:[#allocation82_spill] sm:$0xff] }
 0x599   : > { %13877 = vmatprep.mubr.f32.mxu1 %v22927_v61  ;;  %15161 = vmatpush3.bf16.msra.mxu1 %v15158_v32  ;;  %v23019_v61 = vld [vmem:[#allocation153_spill] sm:$0xff] }
 0x59a   : > { %15163 = vmatprep.subr.bf16.mxu1 %v15162_v2 }
 0x59c   : > { %13878 = vmatmul.mubr.f32.gmra.mrb[148].mxu1 %v22931_v28  ;;  %v15174_v28 = vpack.c.bf16 %v23021_v11, %v23020_v18 }
 0x59d   : > { %13880 = vmatprep.mubr.f32.mxu1 %v22932_v34  ;;  %15165 = vmatpush3.bf16.msra.mxu1 %v15162_v2  ;;  %v23022_v34 = vand.u32 4294901760, %v20502_v62  ;;  %v23040_v2 = vld [vmem:[#allocation16_spill] sm:$0xff] }
 0x59e   : > { %15167 = vmatprep.subr.bf16.mxu1 %v15166_v57 }
 0x5a0   : > { %13881 = vmatmul.mubr.f32.gmra.mrb[150].mxu1 %v23018_v56 }
 0x5a1   : > { %13883 = vmatprep.mubr.f32.mxu1 %v23019_v61  ;;  %15169 = vmatpush3.bf16.msra.mxu1 %v15166_v57 }
 0x5a2   : > { %15171 = vmatprep.subr.bf16.mxu1 %v15170_v49 }
 0x5a4   : > { %13884 = vmatmul.mubr.f32.gmra.mrb[152].mxu1 %v23022_v34  ;;  %v21007_v58 = vpop.f32.mrb[176].mxu0 }
 0x5a5   : > { %15173 = vmatpush3.bf16.msra.mxu1 %v15170_v49  ;;  %13918 = vmatprep.mubr.f32.mxu1 %v23023_v51  ;;  %v21013_v62 = vpop.f32.mrb[177].mxu0 }
 0x5a6   : > { %15175 = vmatprep.subr.bf16.mxu1 %v15174_v28 }
 0x5a9   : > { %15177 = vmatpush3.bf16.msra.mxu1 %v15174_v28 }
 0x5aa   : > { %15179 = vmatprep.subr.bf16.mxu1 %v15178_v1 }
 0x5ad   : > { %15181 = vmatpush3.bf16.msra.mxu1 %v15178_v1 }
 0x5ae   : > { %15183 = vmatprep.subr.bf16.mxu1 %v15182_v31 }
 0x5b1   : > { %15185 = vmatpush3.bf16.msra.mxu1 %v15182_v31 }
 0x5b2   : > { %15187 = vmatprep.subr.bf16.mxu1 %v15186_v7 }
 0x5b5   : > { %15189 = vmatpush3.bf16.msra.mxu1 %v15186_v7 }
 0x5b6   : > { %15191 = vmatprep.subr.bf16.mxu1 %v23001_v20 }
 0x5b8   : > { %13919 = vmatmul.mubr.f32.vlgmr.msra.gmra.mrb[146].mxu1 %v22890_v47 }
 0x5b9   : > { %13921 = vmatprep.mubr.f32.mxu1 %v22891_v8  ;;  %15193 = vmatpush3.bf16.msra.mxu1 %v23001_v20 }
 0x5ba   : > { %15195 = vmatprep.subr.bf16.mxu1 %v23002_v4 }
 0x5bc   : > { %13922 = vmatmul.mubr.f32.gmra.mrb[148].mxu1 %v22892_v24 }
 0x5bd   : > { %13924 = vmatprep.mubr.f32.mxu1 %v22612_v38  ;;  %15197 = vmatpush3.bf16.msra.mxu1 %v23002_v4 }
 0x5be   : > { %15199 = vmatprep.subr.bf16.mxu1 %v23003_v29 }
 0x5c0   : > { %13925 = vmatmul.mubr.f32.gmra.mrb[150].mxu1 %v22614_v63 }
 0x5c1   : > { %13927 = vmatprep.mubr.f32.mxu1 %v22996_v3  ;;  %15201 = vmatpush3.bf16.msra.mxu1 %v23003_v29 }
 0x5c2   : > { %15203 = vmatprep.subr.bf16.mxu1 %v23005_v37 }
 0x5c4   : > { %13928 = vmatmul.mubr.f32.gmra.mrb[152].mxu1 %v20494_v25 }
 0x5c5   : > { %15205 = vmatpush3.bf16.msra.mxu1 %v23005_v37  ;;  %13962 = vmatprep.mubr.f32.mxu1 %v23023_v51  ;;  %v23036_v37 = vld [vmem:[#allocation15_spill] sm:$0xff] }
 0x5c6   : > { %15207 = vmatprep.subr.bf16.mxu1 %v23006_v54 }
 0x5c9   : > { %15209 = vmatpush3.bf16.msra.mxu1 %v23006_v54 }
 0x5ca   : > { %15211 = vmatprep.subr.bf16.mxu1 %v23007_v27 }
 0x5cd   : > { %15213 = vmatpush3.bf16.msra.mxu1 %v23007_v27 }
 0x5ce   : > { %15215 = vmatprep.subr.bf16.mxu1 %v23008_v30 }
 0x5d1   : > { %15217 = vmatpush3.bf16.msra.mxu1 %v23008_v30 }
 0x5d2   : > { %15219 = vmatprep.subr.bf16.mxu1 %v23009_v45 }
 0x5d5   : > { %15221 = vmatpush3.bf16.msra.mxu1 %v23009_v45  ;;  %v23038_v45 = vld [vmem:[#allocation196_spill] sm:$0xff] }
 0x5d8   : > { %13963 = vmatmul.mubr.f32.vlgmr.msra.gmra.mrb[146].mxu1 %v22890_v47 }
 0x5d9   : > { %13965 = vmatprep.mubr.f32.mxu1 %v22891_v8 }
 0x5dc   : > { %13966 = vmatmul.mubr.f32.gmra.mrb[148].mxu1 %v22892_v24 }
 0x5dd   : > { %13968 = vmatprep.mubr.f32.mxu1 %v22612_v38 }
 0x5e0   : > { %13969 = vmatmul.mubr.f32.gmra.mrb[150].mxu1 %v22614_v63 }
 0x5e1   : > { %13971 = vmatprep.mubr.f32.mxu1 %v22996_v3 }
 0x5e4   : > { %13972 = vmatmul.mubr.f32.gmra.mrb[152].mxu1 %v20494_v25 }
 0x60b   : > { %v13700_v13 = vpop.f32.mrb[74].mxu1 }
 0x60c   : > { %v15238_v43 = vadd.f32 %v20902_v53, %v13700_v13  ;;  %v8430_v46 = vpop.f32.mrb[75].mxu1  ;;  %v23035_v53 = vld [vmem:[#allocation203_spill] sm:$0xff] }
 0x60d   : > { %v15248_v10 = vadd.f32 %v20896_v52, %v8430_v46 }
 0x60e   : > { %v15239_v47 = vadd.f32 %v15238_v43, %v23030_v12 }
 0x60f   : > { %v15249_v8 = vadd.f32 %v15248_v10, %v23031_v48  ;;  %v13703_v15 = vpop.f32.mrb[76].mxu1 }
 0x610   : > { %v15258_v24 = vadd.f32 %v20918_v9, %v13703_v15  ;;  %v8442_v38 = vpop.f32.mrb[77].mxu1  ;;  %v15240_v63 = vadd.f32 %v15239_v47, %v23032_v59  ;;  %v23037_v9 = vld [vmem:[#allocation106_spill] sm:$0xff] }
 0x611   : > { %v15268_v3 = vadd.f32 %v20910_v5, %v8442_v38  ;;  %v15250_v25 = vadd.f32 %v15249_v8, %v23033_v23 }
 0x612   : > { %v15259_v20 = vadd.f32 %v15258_v24, %v23034_v17 }
 0x613   : > { %v15269_v4 = vadd.f32 %v15268_v3, %v23035_v53  ;;  %v13706_v29 = vpop.f32.mrb[78].mxu1 }
 0x614   : > { %v15278_v52 = vadd.f32 %v20934_v50, %v13706_v29  ;;  %v8454_v21 = vpop.f32.mrb[79].mxu1  ;;  %v15260_v54 = vadd.f32 %v15259_v20, %v23036_v37 }
 0x615   : > { %v15288_v27 = vadd.f32 %v20926_v26, %v8454_v21  ;;  %v15270_v30 = vadd.f32 %v15269_v4, %v23037_v9  ;;  %v23043_v26 = vld [vmem:[#allocation103_spill] sm:$0xff] }
 0x616   : > { %v15279_v41 = vadd.f32 %v15278_v52, %v23038_v45 }
 0x617   : > { %v15289_v5 = vadd.f32 %v15288_v27, %v23039_v19  ;;  %v13709_v32 = vpop.f32.mrb[80].mxu1 }
 0x618   : > { %v15298_v16 = vadd.f32 %v20946_v44, %v13709_v32  ;;  %v8466_v14 = vpop.f32.mrb[81].mxu1  ;;  %v15280_v6 = vadd.f32 %v15279_v41, %v23040_v2  ;;  %v10993_v44 = vld [vmem:[%s21108_s5] ss:$0 sm:$0xff] }
 0x619   : > { %v15308_v50 = vadd.f32 %v20940_v0, %v8466_v14  ;;  %v15290_v57 = vadd.f32 %v15289_v5, %v23041_v22  ;;  %v10994_v0 = vld [vmem:[%s21109_s6] ss:$0 sm:$0xff] }
 0x61a   : > { %v15299_v36 = vadd.f32 %v15298_v16, %v23042_v42 }
 0x61b   : > { %v15309_v49 = vadd.f32 %v15308_v50, %v23043_v26 }
 0x61c   : > { %v15300_v56 = vadd.f32 %v15299_v36, %v21007_v58 }
 0x61d   : > { %v15310_v61 = vadd.f32 %v15309_v49, %v21013_v62 }
 0x6ab   : > { %v13964_v18 = vpop.f32.mrb[146].mxu1 }
 0x6ac   : > { %v15241_v11 = vadd.f32 %v15240_v63, %v13964_v18  ;;  %v10675_v28 = vpop.f32.mrb[147].mxu1 }
 0x6ad   : > { %v15251_v34 = vadd.f32 %v15250_v25, %v10675_v28 }
 0x6ae   : > { %v10737_v51 = vmul.f32 %v15241_v11, %v10993_v44 }
 0x6af   : > { %v10736_v39 = vmul.f32 %v15251_v34, %v10993_v44  ;;  %v13967_v33 = vpop.f32.mrb[148].mxu1 }
 0x6b0   : > { %v10752_v1 = vadd.f32 %v10994_v0, %v10737_v51  ;;  %v15261_v58 = vadd.f32 %v15260_v54, %v13967_v33  ;;  %v10687_v60 = vpop.f32.mrb[149].mxu1 }
 0x6b1   : > { %v10751_v55 = vadd.f32 %v10994_v0, %v10736_v39  ;;  %v15271_v31 = vadd.f32 %v15270_v30, %v10687_v60 }
 0x6b2   : > { %vm10760_vm12 = vcmp.ge.f32.partialorder %v10752_v1, 0.0  ;;  %v10768_v62 = vmul.f32 0.2, %v10752_v1  ;;  %v10739_v40 = vmul.f32 %v15261_v58, %v10993_v44 }
 0x6b3   : > { %vm10759_vm13 = vcmp.ge.f32.partialorder %v10751_v55, 0.0  ;;  %v10767_v35 = vmul.f32 0.2, %v10751_v55  ;;  %v10738_v7 = vmul.f32 %v15271_v31, %v10993_v44  ;;  %v13970_v13 = vpop.f32.mrb[150].mxu1 }
 0x6b4   : > { %v10776_v43 = vsel %vm10760_vm12, %v10752_v1, %v10768_v62  ;;  %v10754_v46 = vadd.f32 %v10994_v0, %v10739_v40  ;;  %v15281_v10 = vadd.f32 %v15280_v6, %v13970_v13  ;;  %v10699_v12 = vpop.f32.mrb[151].mxu1 }
 0x6b5   : > { %10784 = vst [vmem:[%s21084_s14 + $0x8] sm:$0xff] %v10776_v43  ;;  %v10775_v47 = vsel %vm10759_vm13, %v10751_v55, %v10767_v35  ;;  %v10753_v48 = vadd.f32 %v10994_v0, %v10738_v7  ;;  %v15291_v8 = vadd.f32 %v15290_v57, %v10699_v12 }
 0x6b6   : > { %10783 = vst [vmem:[%s21084_s14] sm:$0xff] %v10775_v47  ;;  %vm10762_vm14 = vcmp.ge.f32.partialorder %v10754_v46, 0.0  ;;  %v10770_v15 = vmul.f32 0.2, %v10754_v46  ;;  %v10741_v24 = vmul.f32 %v15281_v10, %v10993_v44 }
 0x6b7   : > { %vm10761_vm15 = vcmp.ge.f32.partialorder %v10753_v48, 0.0  ;;  %v10769_v38 = vmul.f32 0.2, %v10753_v48  ;;  %v10740_v59 = vmul.f32 %v15291_v8, %v10993_v44  ;;  %v13973_v63 = vpop.f32.mrb[152].mxu1 }
 0x6b8   : > { %v10778_v3 = vsel %vm10762_vm14, %v10754_v46, %v10770_v15  ;;  %v10756_v23 = vadd.f32 %v10994_v0, %v10741_v24  ;;  %v15301_v25 = vadd.f32 %v15300_v56, %v13973_v63  ;;  %v10711_v17 = vpop.f32.mrb[153].mxu1 }
 0x6b9   : > { %10786 = vst [vmem:[%s21084_s14 + $0x18] sm:$0xff] %v10778_v3  ;;  %v10777_v20 = vsel %vm10761_vm15, %v10753_v48, %v10769_v38  ;;  %v10755_v53 = vadd.f32 %v10994_v0, %v10740_v59  ;;  %v15311_v4 = vadd.f32 %v15310_v61, %v10711_v17 }
 0x6ba   : > { %10785 = vst [vmem:[%s21084_s14 + $0x10] sm:$0xff] %v10777_v20  ;;  %vm10764_vm0 = vcmp.ge.f32.partialorder %v10756_v23, 0.0  ;;  %v10772_v29 = vmul.f32 0.2, %v10756_v23  ;;  %v10743_v52 = vmul.f32 %v15301_v25, %v10993_v44 }
 0x6bb   : > { %vm10763_vm1 = vcmp.ge.f32.partialorder %v10755_v53, 0.0  ;;  %v10771_v21 = vmul.f32 0.2, %v10755_v53  ;;  %v10742_v37 = vmul.f32 %v15311_v4, %v10993_v44 }
 0x6bc   : > { %v10780_v54 = vsel %vm10764_vm0, %v10756_v23, %v10772_v29  ;;  %v10758_v27 = vadd.f32 %v10994_v0, %v10743_v52 }
 0x6bd   : > { %10788 = vst [vmem:[%s21084_s14 + $0x28] sm:$0xff] %v10780_v54  ;;  %v10779_v9 = vsel %vm10763_vm1, %v10755_v53, %v10771_v21  ;;  %v10757_v30 = vadd.f32 %v10994_v0, %v10742_v37 }
 0x6be   : > { %10787 = vst [vmem:[%s21084_s14 + $0x20] sm:$0xff] %v10779_v9  ;;  %vm10766_vm2 = vcmp.ge.f32.partialorder %v10758_v27, 0.0  ;;  %v10774_v45 = vmul.f32 0.2, %v10758_v27 }
 0x6bf   : > { %vm10765_vm3 = vcmp.ge.f32.partialorder %v10757_v30, 0.0  ;;  %v10773_v41 = vmul.f32 0.2, %v10757_v30 }
 0x6c0   : > { %v10782_v19 = vsel %vm10766_vm2, %v10758_v27, %v10774_v45 }
 0x6c1   : > { %10790 = vst [vmem:[%s21084_s14 + $0x38] sm:$0xff] %v10782_v19  ;;  %v10781_v5 = vsel %vm10765_vm3, %v10757_v30, %v10773_v41 }
 0x6c2   : > { %10789 = vst [vmem:[%s21084_s14 + $0x30] sm:$0xff] %v10781_v5 }
 0x6c3 PF: > { %s17_s26 = sadd.s32 1, %s15717_s26   ;;  %s23044_s24 = smov %s15713_s25 }
 0x6c4   : > { %p14_p5 = scmp.ge.s32.totalorder %s17_s26, 4   ;;  %s23045_s25 = smov %s23047_s27 }
 0x6c6   :  { %16 = sbr.rel (!%p14_p5) target bundleno = 2 (0x2), region = 88 }

</bundles_post_ra>
